<compile_context>
chip_gen: v5e
topology: v5e:2x2
jax: 0.10.0
libtpu: 0.0.40
codegen_flags: <defaults>
</compile_context>

<pallas_src>
import functools

import jax
import jax.numpy as jnp
from jax.experimental import pallas as pl
from jax.experimental.pallas import tpu as pltpu

EXPANSION = 1  # BasicBlock.expansion


def _round_up(v, m):
    return (v + m - 1) // m * m


# ----------------------------------------------------------------------------- Pallas kernels
def _conv_mm_kernel(x_ref, w_ref, b_ref, o_ref, acc_ref, *, relu):
    # grid = (M tiles, N(cout) tiles, K tiles); K is the (last, "arbitrary") reduction axis.
    kk = pl.program_id(2)

    @pl.when(kk == 0)
    def _():
        acc_ref[...] = jnp.zeros_like(acc_ref)

    acc_ref[...] += jnp.dot(x_ref[...], w_ref[...], preferred_element_type=jnp.float32)

    @pl.when(kk == pl.num_programs(2) - 1)
    def _():
        y = acc_ref[...] + b_ref[...]        # BN scale already folded into the weights
        if relu:
            y = jnp.maximum(y, 0.0)
        o_ref[...] = y.astype(o_ref.dtype)   # bf16 activation out


def _conv_mm_res_kernel(x_ref, w_ref, b_ref, r_ref, o_ref, acc_ref):
    # Same as above, but the epilogue also adds the (bf16) residual and applies ReLU
    # (second conv of a BasicBlock).
    kk = pl.program_id(2)

    @pl.when(kk == 0)
    def _():
        acc_ref[...] = jnp.zeros_like(acc_ref)

    acc_ref[...] += jnp.dot(x_ref[...], w_ref[...], preferred_element_type=jnp.float32)

    @pl.when(kk == pl.num_programs(2) - 1)
    def _():
        y = acc_ref[...] + b_ref[...] + r_ref[...].astype(jnp.float32)
        o_ref[...] = jnp.maximum(y, 0.0).astype(o_ref.dtype)


def _maxpool_kernel(p_ref, o_ref):
    # p_ref: (9, TR, 128) -- taps on the leading (non-sublane) axis, lane-dense data;
    # reduce over taps.
    o_ref[...] = jnp.max(p_ref[...], axis=0)


def _head_kernel(x_ref, w_ref, b_ref, o_ref):
    # Fused AdaptiveAvgPool2d((1,1)) + flatten + Linear.
    # x_ref: (N, HW, C) bf16, w_ref: (C, num_classes) bf16, b_ref: (1, num_classes) f32.
    feat = jnp.mean(x_ref[...].astype(jnp.float32), axis=1)
    o_ref[...] = (
        jnp.dot(feat.astype(jnp.bfloat16), w_ref[...], preferred_element_type=jnp.float32)
        + b_ref[...]
    )


# ----------------------------------------------------------------------------- glue / wrappers
def _im2col(x, kh, kw, stride, pad):
    """x: (N, H, W, C) -> patches (N*OH*OW, kh*kw*C), OH, OW."""
    if pad > 0:
        x = jnp.pad(x, ((0, 0), (pad, pad), (pad, pad), (0, 0)))
    n, h, w, c = x.shape
    oh = (h - kh) // stride + 1
    ow = (w - kw) // stride + 1
    cols = []
    for i in range(kh):
        for j in range(kw):
            cols.append(x[:, i:i + stride * oh:stride, j:j + stride * ow:stride, :])
    p = jnp.stack(cols, axis=3)  # (N, OH, OW, kh*kw, C)
    return p.reshape(n * oh * ow, kh * kw * c), oh, ow


def _choose_tk(k128):
    """k128 is K rounded up to a multiple of 128.  Small K -> single K block; otherwise pick
    the multiple of 128 in [512, 1024] that minimizes K padding (prefer larger on ties)."""
    if k128 <= 1280:
        return k128
    best_tk, best_pad = 512, _round_up(k128, 512)
    for tk in (640, 768, 896, 1024):
        p = _round_up(k128, tk)
        if p <= best_pad:
            best_tk, best_pad = tk, p
    return best_tk


def conv_bn_act(x, w, scale, bias, *, stride, pad, relu=True, residual=None):
    """Conv2d(bias=False) + BatchNorm2d(eval) [+ residual] [+ ReLU] via a Pallas matmul with
    (M, N, K) tiling, f32 VMEM accumulation and a fused bias/residual/ReLU epilogue.
    Matmul operands are bf16 (BN scale folded into the weights), output activations are bf16."""
    n = x.shape[0]
    cout, cin, kh, kw = w.shape

    patches, oh, ow = _im2col(x.astype(jnp.bfloat16), kh, kw, stride, pad)
    m, k = patches.shape

    # --- M tiling: bf16 vregs pack (16, 128) -> multiples of 16; cap tile at 1024 rows ---
    m16 = _round_up(m, 16)
    tm = m16 if m16 <= 1024 else 1024
    m_pad = _round_up(m, tm)

    # --- K tiling ---
    k128 = _round_up(k, 128)
    tk = _choose_tk(k128)
    k_pad = _round_up(k128, tk)

    # --- N (cout) tiling: second parallel axis so v7x's two TensorCores both get work ---
    tn = cout if cout <= 256 else 256  # cout in {64,128,256,512} -> always divides

    if (m_pad, k_pad) != (m, k):
        patches = jnp.pad(patches, ((0, m_pad - m), (0, k_pad - k)))

    # Fold the BN scale into the weights in f32, then cast to bf16.
    w2d = jnp.transpose(w, (2, 3, 1, 0)).reshape(k, cout)
    w2d = (w2d * scale.reshape(1, cout)).astype(jnp.bfloat16)
    if k_pad != k:
        w2d = jnp.pad(w2d, ((0, k_pad - k), (0, 0)))
    bias2d = bias.reshape(1, cout).astype(jnp.float32)

    grid = (m_pad // tm, cout // tn, k_pad // tk)  # reduction axis last
    in_specs = [
        pl.BlockSpec((tm, tk), lambda i, j, kk: (i, kk)),
        pl.BlockSpec((tk, tn), lambda i, j, kk: (kk, j)),
        pl.BlockSpec((1, tn), lambda i, j, kk: (0, j)),
    ]
    out_spec = pl.BlockSpec((tm, tn), lambda i, j, kk: (i, j))
    out_shape = jax.ShapeDtypeStruct((m_pad, cout), jnp.bfloat16)
    scratch = [pltpu.VMEM((tm, tn), jnp.float32)]
    cparams = pltpu.CompilerParams(
        dimension_semantics=("parallel", "parallel", "arbitrary"))

    bytes_in = patches.size * 2 + w2d.size * 2 + bias2d.size * 4
    bytes_out = m_pad * cout * 2

    if residual is None:
        cost = pl.CostEstimate(
            flops=2 * m_pad * k_pad * cout, transcendentals=0,
            bytes_accessed=bytes_in + bytes_out)
        y = pl.pallas_call(
            functools.partial(_conv_mm_kernel, relu=relu),
            grid=grid,
            in_specs=in_specs,
            out_specs=out_spec,
            out_shape=out_shape,
            scratch_shapes=scratch,
            compiler_params=cparams,
            cost_estimate=cost,
        )(patches, w2d, bias2d)
    else:
        res2d = residual.reshape(m, cout).astype(jnp.bfloat16)
        if m_pad != m:
            res2d = jnp.pad(res2d, ((0, m_pad - m), (0, 0)))
        cost = pl.CostEstimate(
            flops=2 * m_pad * k_pad * cout, transcendentals=0,
            bytes_accessed=bytes_in + bytes_out + res2d.size * 2)
        y = pl.pallas_call(
            _conv_mm_res_kernel,
            grid=grid,
            in_specs=in_specs + [pl.BlockSpec((tm, tn), lambda i, j, kk: (i, j))],
            out_specs=out_spec,
            out_shape=out_shape,
            scratch_shapes=scratch,
            compiler_params=cparams,
            cost_estimate=cost,
        )(patches, w2d, bias2d, res2d)

    if m_pad != m:
        y = y[:m]
    return y.reshape(n, oh, ow, cout)


def maxpool_3x3_s2_p1(x):
    """nn.MaxPool2d(kernel_size=3, stride=2, padding=1). Input is post-ReLU (>=0), so
    zero-padding is equivalent to PyTorch's implicit -inf padding.  The 9-tap stack is
    reshaped to a lane-dense (taps, rows, 128) layout so the reduce uses full vector stores."""
    n, h, w, c = x.shape
    xp = jnp.pad(x, ((0, 0), (1, 1), (1, 1), (0, 0)))
    oh = (h + 2 - 3) // 2 + 1
    ow = (w + 2 - 3) // 2 + 1
    cols = []
    for i in range(3):
        for j in range(3):
            cols.append(xp[:, i:i + 2 * oh:2, j:j + 2 * ow:2, :])
    total = n * oh * ow * c
    p = jnp.stack(cols, axis=0).reshape(9, total)  # flatten -> lane-dense reshape is free

    rows = _round_up(total, 8 * 128) // 128        # multiple of 8 sublanes
    tr = rows if rows <= 1024 else 1024
    rows_pad = _round_up(rows, tr)
    pad_elems = rows_pad * 128 - total
    if pad_elems:
        p = jnp.pad(p, ((0, 0), (0, pad_elems)))
    p = p.reshape(9, rows_pad, 128)

    y = pl.pallas_call(
        _maxpool_kernel,
        grid=(rows_pad // tr,),
        in_specs=[pl.BlockSpec((9, tr, 128), lambda i: (0, i, 0))],
        out_specs=pl.BlockSpec((tr, 128), lambda i: (i, 0)),
        out_shape=jax.ShapeDtypeStruct((rows_pad, 128), x.dtype),
        compiler_params=pltpu.CompilerParams(dimension_semantics=("parallel",)),
    )(p)
    return y.reshape(-1)[:total].reshape(n, oh, ow, c)


def avgpool_fc(x, w, b):
    """Fused AdaptiveAvgPool2d((1,1)) + flatten + nn.Linear (PyTorch weight layout)."""
    n, h, w_, c = x.shape
    xr = x.reshape(n, h * w_, c).astype(jnp.bfloat16)
    wt = jnp.transpose(w).astype(jnp.bfloat16)          # (C, num_classes)
    b2 = b.reshape(1, -1).astype(jnp.float32)
    num_classes = w.shape[0]
    # Small head: whole-array blocks are fine at these sizes.
    return pl.pallas_call(
        _head_kernel,
        out_shape=jax.ShapeDtypeStruct((n, num_classes), jnp.float32),
    )(xr, wt, b2)


# ----------------------------------------------------------------------------- parameters
def _kaiming_conv(key, cout, cin, kh, kw):
    # nn.init.kaiming_normal_(mode='fan_out', nonlinearity='relu')
    fan_out = cout * kh * kw
    std = (2.0 / fan_out) ** 0.5
    return jax.random.normal(key, (cout, cin, kh, kw), jnp.float32) * std


def _bn_params(c, eps=1e-5):
    # PyTorch BatchNorm2d defaults: gamma=1, beta=0, running_mean=0, running_var=1 (eval mode)
    gamma = jnp.ones((c,), jnp.float32)
    beta = jnp.zeros((c,), jnp.float32)
    mean = jnp.zeros((c,), jnp.float32)
    var = jnp.ones((c,), jnp.float32)
    scale = gamma / jnp.sqrt(var + eps)
    bias = beta - mean * scale
    return scale, bias


def make_resnet_params(key, blocks_num, num_classes):
    keys = iter(jax.random.split(key, 128))
    params = {}
    params["conv1"] = _kaiming_conv(next(keys), 64, 3, 7, 7)
    params["bn1"] = _bn_params(64)
    in_ch = 64
    for li, (channel, nblocks, stride0) in enumerate(
        zip([64, 128, 256, 512], blocks_num, [1, 2, 2, 2]), start=1
    ):
        blocks = []
        for bi in range(nblocks):
            s = stride0 if bi == 0 else 1
            blk = {}
            blk["conv1"] = _kaiming_conv(next(keys), channel, in_ch, 3, 3)
            blk["bn1"] = _bn_params(channel)
            blk["conv2"] = _kaiming_conv(next(keys), channel, channel, 3, 3)
            blk["bn2"] = _bn_params(channel)
            if s != 1 or in_ch != channel * EXPANSION:
                blk["ds_conv"] = _kaiming_conv(next(keys), channel * EXPANSION, in_ch, 1, 1)
                blk["ds_bn"] = _bn_params(channel * EXPANSION)
            blocks.append(blk)
            in_ch = channel * EXPANSION
        params[f"layer{li}"] = blocks
    # nn.Linear default init (kaiming_uniform a=sqrt(5) -> U(-1/sqrt(fan_in), 1/sqrt(fan_in)))
    fan_in = 512 * EXPANSION
    bound = 1.0 / (fan_in ** 0.5)
    kw_, kb_ = jax.random.split(next(keys))
    params["fc_w"] = jax.random.uniform(kw_, (num_classes, fan_in), jnp.float32, -bound, bound)
    params["fc_b"] = jax.random.uniform(kb_, (num_classes,), jnp.float32, -bound, bound)
    return params


# ----------------------------------------------------------------------------- forward
def _resnet_forward(params, x_nchw, include_top=True):
    x = jnp.transpose(x_nchw, (0, 2, 3, 1))  # NCHW (PyTorch) -> NHWC (kernel layout)

    s, b = params["bn1"]
    x = conv_bn_act(x, params["conv1"], s, b, stride=2, pad=3, relu=True)
    x = maxpool_3x3_s2_p1(x)

    for li in range(1, 5):
        stride0 = 1 if li == 1 else 2
        for bi, blk in enumerate(params[f"layer{li}"]):
            stride = stride0 if bi == 0 else 1
            identity = x
            if "ds_conv" in blk:
                ds_s, ds_b = blk["ds_bn"]
                identity = conv_bn_act(
                    x, blk["ds_conv"], ds_s, ds_b, stride=stride, pad=0, relu=False
                )
            s1, b1 = blk["bn1"]
            out = conv_bn_act(x, blk["conv1"], s1, b1, stride=stride, pad=1, relu=True)
            s2, b2 = blk["bn2"]
            x = conv_bn_act(out, blk["conv2"], s2, b2, stride=1, pad=1, relu=True,
                            residual=identity)

    if include_top:
        x = avgpool_fc(x, params["fc_w"], params["fc_b"])  # (N, num_classes)
    return x


resnet_forward = jax.jit(_resnet_forward, static_argnames=("include_top",))


if __name__ == "__main__":
    key = jax.random.PRNGKey(0)
    kx, kp = jax.random.split(key)

    # Small shapes: batch=2, 3x32x32 input, ResNet with BasicBlock and blocks_num=[1,1,1,1],
    # num_classes=10 -> final spatial size 1x1 before avgpool, output (2, 10).
    x = jax.random.normal(kx, (2, 3, 32, 32), jnp.float32)  # NCHW, like the PyTorch module
    params = make_resnet_params(kp, blocks_num=[1, 1, 1, 1], num_classes=10)

    y = resnet_forward(params, x, include_top=True)
    y = jax.block_until_ready(y)
    assert y.shape == (2, 10) and y.dtype == jnp.float32

    print("KERNEL_OK")
</pallas_src>

<mosaic_0001>
module attributes {stable_mosaic.version = 11 : i64} {
  func.func @_conv_mm_kernel(%arg0: i32, %arg1: i32, %arg2: i32, %arg3: memref<512x256xbf16, #tpu.memory_space<vmem>>, %arg4: memref<256x64xbf16, #tpu.memory_space<vmem>>, %arg5: memref<1x64xf32, #tpu.memory_space<vmem>>, %arg6: memref<512x64xbf16, #tpu.memory_space<vmem>>, %arg7: memref<512x64xf32, #tpu.memory_space<vmem>>) attributes {dimension_semantics = [#tpu.dimension_semantics<parallel>, #tpu.dimension_semantics<parallel>, #tpu.dimension_semantics<arbitrary>], iteration_bounds = array<i64: 1, 1, 1>, scalar_prefetch = 0 : i64, scratch_operands = 1 : i64, tpu.core_type = #tpu.core_type<tc>, window_params = [{transform_indices = @transform_0, window_bounds = array<i64: 512, 256>}, {transform_indices = @transform_1, window_bounds = array<i64: 256, 64>}, {transform_indices = @transform_2, window_bounds = array<i64: 1, 64>}, {transform_indices = @transform_3, window_bounds = array<i64: 512, 64>}]} {
    %c0_i32 = arith.constant 0 : i32
    %0 = arith.cmpi eq, %arg2, %c0_i32 : i32
    %1 = arith.extui %0 : i1 to i32
    %c0_i32_0 = arith.constant 0 : i32
    %2 = arith.cmpi ne, %1, %c0_i32_0 : i32
    scf.if %2 {
      %cst_10 = arith.constant 0.000000e+00 : f32
      %12 = vector.broadcast %cst_10 : f32 to vector<512x64xf32>
      %c0_11 = arith.constant 0 : index
      %c0_12 = arith.constant 0 : index
      %13 = vector.load %arg7[%c0_11, %c0_12] : memref<512x64xf32, #tpu.memory_space<vmem>>, vector<512x64xf32>
      tpu.vector_store %arg7[%c0_11, %c0_12], %12 {strides = array<i32>} : memref<512x64xf32, #tpu.memory_space<vmem>>, vector<512x64xf32>,
    } else {
    }
    %c0 = arith.constant 0 : index
    %c0_1 = arith.constant 0 : index
    %3 = vector.load %arg7[%c0, %c0_1] : memref<512x64xf32, #tpu.memory_space<vmem>>, vector<512x64xf32>
    %c0_2 = arith.constant 0 : index
    %c0_3 = arith.constant 0 : index
    %4 = vector.load %arg3[%c0_2, %c0_3] : memref<512x256xbf16, #tpu.memory_space<vmem>>, vector<512x256xbf16>
    %c0_4 = arith.constant 0 : index
    %c0_5 = arith.constant 0 : index
    %5 = vector.load %arg4[%c0_4, %c0_5] : memref<256x64xbf16, #tpu.memory_space<vmem>>, vector<256x64xbf16>
    %cst = arith.constant dense<0.000000e+00> : vector<512x64xf32>
    %6 = tpu.matmul %4, %5, %cst {dimension_numbers = #tpu.dot_dimension_numbers<[1], [0], [0], [1], [0, 0, 1, 1], [], []>} : vector<512x256xbf16>, vector<256x64xbf16>, vector<512x64xf32> -> vector<512x64xf32>
    %7 = arith.addf %3, %6 : vector<512x64xf32>
    %c0_6 = arith.constant 0 : index
    %c0_7 = arith.constant 0 : index
    %8 = vector.load %arg7[%c0_6, %c0_7] : memref<512x64xf32, #tpu.memory_space<vmem>>, vector<512x64xf32>
    tpu.vector_store %arg7[%c0_6, %c0_7], %7 {strides = array<i32>} : memref<512x64xf32, #tpu.memory_space<vmem>>, vector<512x64xf32>,
    %c0_i32_8 = arith.constant 0 : i32
    %9 = arith.cmpi eq, %arg2, %c0_i32_8 : i32
    %10 = arith.extui %9 : i1 to i32
    %c0_i32_9 = arith.constant 0 : i32
    %11 = arith.cmpi ne, %10, %c0_i32_9 : i32
    scf.if %11 {
      %c0_10 = arith.constant 0 : index
      %c0_11 = arith.constant 0 : index
      %12 = vector.load %arg7[%c0_10, %c0_11] : memref<512x64xf32, #tpu.memory_space<vmem>>, vector<512x64xf32>
      %c0_12 = arith.constant 0 : index
      %c0_13 = arith.constant 0 : index
      %13 = vector.load %arg5[%c0_12, %c0_13] : memref<1x64xf32, #tpu.memory_space<vmem>>, vector<1x64xf32>
      %14 = vector.broadcast %13 : vector<1x64xf32> to vector<512x64xf32>
      %15 = arith.addf %12, %14 : vector<512x64xf32>
      %cst_14 = arith.constant 0.000000e+00 : f32
      %16 = vector.broadcast %cst_14 : f32 to vector<512x64xf32>
      %17 = arith.maximumf %15, %16 : vector<512x64xf32>
      %18 = arith.truncf %17 : vector<512x64xf32> to vector<512x64xbf16>
      %c0_15 = arith.constant 0 : index
      %c0_16 = arith.constant 0 : index
      %19 = vector.load %arg6[%c0_15, %c0_16] : memref<512x64xbf16, #tpu.memory_space<vmem>>, vector<512x64xbf16>
      tpu.vector_store %arg6[%c0_15, %c0_16], %18 {strides = array<i32>} : memref<512x64xbf16, #tpu.memory_space<vmem>>, vector<512x64xbf16>,
    } else {
    }
    return
  }
  func.func @transform_0(%arg0: i32, %arg1: i32, %arg2: i32) -> (i32, i32) {
    %c0_i32 = arith.constant 0 : i32
    return %arg0, %arg2 : i32, i32
  }
  func.func @transform_1(%arg0: i32, %arg1: i32, %arg2: i32) -> (i32, i32) {
    %c0_i32 = arith.constant 0 : i32
    return %arg2, %arg1 : i32, i32
  }
  func.func @transform_2(%arg0: i32, %arg1: i32, %arg2: i32) -> (i32, i32) {
    %c0_i32 = arith.constant 0 : i32
    %c0_i32_0 = arith.constant 0 : i32
    return %c0_i32, %arg1 : i32, i32
  }
  func.func @transform_3(%arg0: i32, %arg1: i32, %arg2: i32) -> (i32, i32) {
    %c0_i32 = arith.constant 0 : i32
    return %arg0, %arg1 : i32, i32
  }
}

module attributes {stable_mosaic.version = 11 : i64} {
  func.func @_maxpool_kernel(%arg0: i32, %arg1: memref<9x64x128xbf16, #tpu.memory_space<vmem>>, %arg2: memref<64x128xbf16, #tpu.memory_space<vmem>>) attributes {dimension_semantics = [#tpu.dimension_semantics<parallel>], iteration_bounds = array<i64: 1>, scalar_prefetch = 0 : i64, scratch_operands = 0 : i64, tpu.core_type = #tpu.core_type<tc>, window_params = [{transform_indices = @transform_0, window_bounds = array<i64: 9, 64, 128>}, {transform_indices = @transform_1, window_bounds = array<i64: 64, 128>}]} {
    %c0 = arith.constant 0 : index
    %c0_0 = arith.constant 0 : index
    %c0_1 = arith.constant 0 : index
    %0 = vector.load %arg1[%c0, %c0_0, %c0_1] : memref<9x64x128xbf16, #tpu.memory_space<vmem>>, vector<9x64x128xbf16>
    %cst = arith.constant dense<0xFF80> : vector<64x128xbf16>
    %1 = vector.multi_reduction <maximumf>, %0, %cst [0] : vector<9x64x128xbf16> to vector<64x128xbf16>
    %c0_2 = arith.constant 0 : index
    %c0_3 = arith.constant 0 : index
    %2 = vector.load %arg2[%c0_2, %c0_3] : memref<64x128xbf16, #tpu.memory_space<vmem>>, vector<64x128xbf16>
    tpu.vector_store %arg2[%c0_2, %c0_3], %1 {strides = array<i32>} : memref<64x128xbf16, #tpu.memory_space<vmem>>, vector<64x128xbf16>,
    return
  }
  func.func @transform_0(%arg0: i32) -> (i32, i32, i32) {
    %c0_i32 = arith.constant 0 : i32
    %c0_i32_0 = arith.constant 0 : i32
    %c0_i32_1 = arith.constant 0 : i32
    return %c0_i32, %arg0, %c0_i32_0 : i32, i32, i32
  }
  func.func @transform_1(%arg0: i32) -> (i32, i32) {
    %c0_i32 = arith.constant 0 : i32
    %c0_i32_0 = arith.constant 0 : i32
    return %arg0, %c0_i32 : i32, i32
  }
}

module attributes {stable_mosaic.version = 11 : i64} {
  func.func @_conv_mm_kernel(%arg0: i32, %arg1: i32, %arg2: i32, %arg3: memref<128x640xbf16, #tpu.memory_space<vmem>>, %arg4: memref<640x64xbf16, #tpu.memory_space<vmem>>, %arg5: memref<1x64xf32, #tpu.memory_space<vmem>>, %arg6: memref<128x64xbf16, #tpu.memory_space<vmem>>, %arg7: memref<128x64xf32, #tpu.memory_space<vmem>>) attributes {dimension_semantics = [#tpu.dimension_semantics<parallel>, #tpu.dimension_semantics<parallel>, #tpu.dimension_semantics<arbitrary>], iteration_bounds = array<i64: 1, 1, 1>, scalar_prefetch = 0 : i64, scratch_operands = 1 : i64, tpu.core_type = #tpu.core_type<tc>, window_params = [{transform_indices = @transform_0, window_bounds = array<i64: 128, 640>}, {transform_indices = @transform_1, window_bounds = array<i64: 640, 64>}, {transform_indices = @transform_2, window_bounds = array<i64: 1, 64>}, {transform_indices = @transform_3, window_bounds = array<i64: 128, 64>}]} {
    %c0_i32 = arith.constant 0 : i32
    %0 = arith.cmpi eq, %arg2, %c0_i32 : i32
    %1 = arith.extui %0 : i1 to i32
    %c0_i32_0 = arith.constant 0 : i32
    %2 = arith.cmpi ne, %1, %c0_i32_0 : i32
    scf.if %2 {
      %cst_10 = arith.constant 0.000000e+00 : f32
      %12 = vector.broadcast %cst_10 : f32 to vector<128x64xf32>
      %c0_11 = arith.constant 0 : index
      %c0_12 = arith.constant 0 : index
      %13 = vector.load %arg7[%c0_11, %c0_12] : memref<128x64xf32, #tpu.memory_space<vmem>>, vector<128x64xf32>
      tpu.vector_store %arg7[%c0_11, %c0_12], %12 {strides = array<i32>} : memref<128x64xf32, #tpu.memory_space<vmem>>, vector<128x64xf32>,
    } else {
    }
    %c0 = arith.constant 0 : index
    %c0_1 = arith.constant 0 : index
    %3 = vector.load %arg7[%c0, %c0_1] : memref<128x64xf32, #tpu.memory_space<vmem>>, vector<128x64xf32>
    %c0_2 = arith.constant 0 : index
    %c0_3 = arith.constant 0 : index
    %4 = vector.load %arg3[%c0_2, %c0_3] : memref<128x640xbf16, #tpu.memory_space<vmem>>, vector<128x640xbf16>
    %c0_4 = arith.constant 0 : index
    %c0_5 = arith.constant 0 : index
    %5 = vector.load %arg4[%c0_4, %c0_5] : memref<640x64xbf16, #tpu.memory_space<vmem>>, vector<640x64xbf16>
    %cst = arith.constant dense<0.000000e+00> : vector<128x64xf32>
    %6 = tpu.matmul %4, %5, %cst {dimension_numbers = #tpu.dot_dimension_numbers<[1], [0], [0], [1], [0, 0, 1, 1], [], []>} : vector<128x640xbf16>, vector<640x64xbf16>, vector<128x64xf32> -> vector<128x64xf32>
    %7 = arith.addf %3, %6 : vector<128x64xf32>
    %c0_6 = arith.constant 0 : index
    %c0_7 = arith.constant 0 : index
    %8 = vector.load %arg7[%c0_6, %c0_7] : memref<128x64xf32, #tpu.memory_space<vmem>>, vector<128x64xf32>
    tpu.vector_store %arg7[%c0_6, %c0_7], %7 {strides = array<i32>} : memref<128x64xf32, #tpu.memory_space<vmem>>, vector<128x64xf32>,
    %c0_i32_8 = arith.constant 0 : i32
    %9 = arith.cmpi eq, %arg2, %c0_i32_8 : i32
    %10 = arith.extui %9 : i1 to i32
    %c0_i32_9 = arith.constant 0 : i32
    %11 = arith.cmpi ne, %10, %c0_i32_9 : i32
    scf.if %11 {
      %c0_10 = arith.constant 0 : index
      %c0_11 = arith.constant 0 : index
      %12 = vector.load %arg7[%c0_10, %c0_11] : memref<128x64xf32, #tpu.memory_space<vmem>>, vector<128x64xf32>
      %c0_12 = arith.constant 0 : index
      %c0_13 = arith.constant 0 : index
      %13 = vector.load %arg5[%c0_12, %c0_13] : memref<1x64xf32, #tpu.memory_space<vmem>>, vector<1x64xf32>
      %14 = vector.broadcast %13 : vector<1x64xf32> to vector<128x64xf32>
      %15 = arith.addf %12, %14 : vector<128x64xf32>
      %cst_14 = arith.constant 0.000000e+00 : f32
      %16 = vector.broadcast %cst_14 : f32 to vector<128x64xf32>
      %17 = arith.maximumf %15, %16 : vector<128x64xf32>
      %18 = arith.truncf %17 : vector<128x64xf32> to vector<128x64xbf16>
      %c0_15 = arith.constant 0 : index
      %c0_16 = arith.constant 0 : index
      %19 = vector.load %arg6[%c0_15, %c0_16] : memref<128x64xbf16, #tpu.memory_space<vmem>>, vector<128x64xbf16>
      tpu.vector_store %arg6[%c0_15, %c0_16], %18 {strides = array<i32>} : memref<128x64xbf16, #tpu.memory_space<vmem>>, vector<128x64xbf16>,
    } else {
    }
    return
  }
  func.func @transform_0(%arg0: i32, %arg1: i32, %arg2: i32) -> (i32, i32) {
    %c0_i32 = arith.constant 0 : i32
    return %arg0, %arg2 : i32, i32
  }
  func.func @transform_1(%arg0: i32, %arg1: i32, %arg2: i32) -> (i32, i32) {
    %c0_i32 = arith.constant 0 : i32
    return %arg2, %arg1 : i32, i32
  }
  func.func @transform_2(%arg0: i32, %arg1: i32, %arg2: i32) -> (i32, i32) {
    %c0_i32 = arith.constant 0 : i32
    %c0_i32_0 = arith.constant 0 : i32
    return %c0_i32, %arg1 : i32, i32
  }
  func.func @transform_3(%arg0: i32, %arg1: i32, %arg2: i32) -> (i32, i32) {
    %c0_i32 = arith.constant 0 : i32
    return %arg0, %arg1 : i32, i32
  }
}

module attributes {stable_mosaic.version = 11 : i64} {
  func.func @_conv_mm_res_kernel(%arg0: i32, %arg1: i32, %arg2: i32, %arg3: memref<128x640xbf16, #tpu.memory_space<vmem>>, %arg4: memref<640x64xbf16, #tpu.memory_space<vmem>>, %arg5: memref<1x64xf32, #tpu.memory_space<vmem>>, %arg6: memref<128x64xbf16, #tpu.memory_space<vmem>>, %arg7: memref<128x64xbf16, #tpu.memory_space<vmem>>, %arg8: memref<128x64xf32, #tpu.memory_space<vmem>>) attributes {dimension_semantics = [#tpu.dimension_semantics<parallel>, #tpu.dimension_semantics<parallel>, #tpu.dimension_semantics<arbitrary>], iteration_bounds = array<i64: 1, 1, 1>, scalar_prefetch = 0 : i64, scratch_operands = 1 : i64, tpu.core_type = #tpu.core_type<tc>, window_params = [{transform_indices = @transform_0, window_bounds = array<i64: 128, 640>}, {transform_indices = @transform_1, window_bounds = array<i64: 640, 64>}, {transform_indices = @transform_2, window_bounds = array<i64: 1, 64>}, {transform_indices = @transform_3, window_bounds = array<i64: 128, 64>}, {transform_indices = @transform_4, window_bounds = array<i64: 128, 64>}]} {
    %c0_i32 = arith.constant 0 : i32
    %0 = arith.cmpi eq, %arg2, %c0_i32 : i32
    %1 = arith.extui %0 : i1 to i32
    %c0_i32_0 = arith.constant 0 : i32
    %2 = arith.cmpi ne, %1, %c0_i32_0 : i32
    scf.if %2 {
      %cst_10 = arith.constant 0.000000e+00 : f32
      %12 = vector.broadcast %cst_10 : f32 to vector<128x64xf32>
      %c0_11 = arith.constant 0 : index
      %c0_12 = arith.constant 0 : index
      %13 = vector.load %arg8[%c0_11, %c0_12] : memref<128x64xf32, #tpu.memory_space<vmem>>, vector<128x64xf32>
      tpu.vector_store %arg8[%c0_11, %c0_12], %12 {strides = array<i32>} : memref<128x64xf32, #tpu.memory_space<vmem>>, vector<128x64xf32>,
    } else {
    }
    %c0 = arith.constant 0 : index
    %c0_1 = arith.constant 0 : index
    %3 = vector.load %arg8[%c0, %c0_1] : memref<128x64xf32, #tpu.memory_space<vmem>>, vector<128x64xf32>
    %c0_2 = arith.constant 0 : index
    %c0_3 = arith.constant 0 : index
    %4 = vector.load %arg3[%c0_2, %c0_3] : memref<128x640xbf16, #tpu.memory_space<vmem>>, vector<128x640xbf16>
    %c0_4 = arith.constant 0 : index
    %c0_5 = arith.constant 0 : index
    %5 = vector.load %arg4[%c0_4, %c0_5] : memref<640x64xbf16, #tpu.memory_space<vmem>>, vector<640x64xbf16>
    %cst = arith.constant dense<0.000000e+00> : vector<128x64xf32>
    %6 = tpu.matmul %4, %5, %cst {dimension_numbers = #tpu.dot_dimension_numbers<[1], [0], [0], [1], [0, 0, 1, 1], [], []>} : vector<128x640xbf16>, vector<640x64xbf16>, vector<128x64xf32> -> vector<128x64xf32>
    %7 = arith.addf %3, %6 : vector<128x64xf32>
    %c0_6 = arith.constant 0 : index
    %c0_7 = arith.constant 0 : index
    %8 = vector.load %arg8[%c0_6, %c0_7] : memref<128x64xf32, #tpu.memory_space<vmem>>, vector<128x64xf32>
    tpu.vector_store %arg8[%c0_6, %c0_7], %7 {strides = array<i32>} : memref<128x64xf32, #tpu.memory_space<vmem>>, vector<128x64xf32>,
    %c0_i32_8 = arith.constant 0 : i32
    %9 = arith.cmpi eq, %arg2, %c0_i32_8 : i32
    %10 = arith.extui %9 : i1 to i32
    %c0_i32_9 = arith.constant 0 : i32
    %11 = arith.cmpi ne, %10, %c0_i32_9 : i32
    scf.if %11 {
      %c0_10 = arith.constant 0 : index
      %c0_11 = arith.constant 0 : index
      %12 = vector.load %arg8[%c0_10, %c0_11] : memref<128x64xf32, #tpu.memory_space<vmem>>, vector<128x64xf32>
      %c0_12 = arith.constant 0 : index
      %c0_13 = arith.constant 0 : index
      %13 = vector.load %arg5[%c0_12, %c0_13] : memref<1x64xf32, #tpu.memory_space<vmem>>, vector<1x64xf32>
      %14 = vector.broadcast %13 : vector<1x64xf32> to vector<128x64xf32>
      %15 = arith.addf %12, %14 : vector<128x64xf32>
      %c0_14 = arith.constant 0 : index
      %c0_15 = arith.constant 0 : index
      %16 = vector.load %arg6[%c0_14, %c0_15] : memref<128x64xbf16, #tpu.memory_space<vmem>>, vector<128x64xbf16>
      %17 = arith.extf %16 : vector<128x64xbf16> to vector<128x64xf32>
      %18 = arith.addf %15, %17 : vector<128x64xf32>
      %cst_16 = arith.constant 0.000000e+00 : f32
      %19 = vector.broadcast %cst_16 : f32 to vector<128x64xf32>
      %20 = arith.maximumf %18, %19 : vector<128x64xf32>
      %21 = arith.truncf %20 : vector<128x64xf32> to vector<128x64xbf16>
      %c0_17 = arith.constant 0 : index
      %c0_18 = arith.constant 0 : index
      %22 = vector.load %arg7[%c0_17, %c0_18] : memref<128x64xbf16, #tpu.memory_space<vmem>>, vector<128x64xbf16>
      tpu.vector_store %arg7[%c0_17, %c0_18], %21 {strides = array<i32>} : memref<128x64xbf16, #tpu.memory_space<vmem>>, vector<128x64xbf16>,
    } else {
    }
    return
  }
  func.func @transform_0(%arg0: i32, %arg1: i32, %arg2: i32) -> (i32, i32) {
    %c0_i32 = arith.constant 0 : i32
    return %arg0, %arg2 : i32, i32
  }
  func.func @transform_1(%arg0: i32, %arg1: i32, %arg2: i32) -> (i32, i32) {
    %c0_i32 = arith.constant 0 : i32
    return %arg2, %arg1 : i32, i32
  }
  func.func @transform_2(%arg0: i32, %arg1: i32, %arg2: i32) -> (i32, i32) {
    %c0_i32 = arith.constant 0 : i32
    %c0_i32_0 = arith.constant 0 : i32
    return %c0_i32, %arg1 : i32, i32
  }
  func.func @transform_3(%arg0: i32, %arg1: i32, %arg2: i32) -> (i32, i32) {
    %c0_i32 = arith.constant 0 : i32
    return %arg0, %arg1 : i32, i32
  }
  func.func @transform_4(%arg0: i32, %arg1: i32, %arg2: i32) -> (i32, i32) {
    %c0_i32 = arith.constant 0 : i32
    return %arg0, %arg1 : i32, i32
  }
}

module attributes {stable_mosaic.version = 11 : i64} {
  func.func @_conv_mm_kernel(%arg0: i32, %arg1: i32, %arg2: i32, %arg3: memref<32x640xbf16, #tpu.memory_space<vmem>>, %arg4: memref<640x128xbf16, #tpu.memory_space<vmem>>, %arg5: memref<1x128xf32, #tpu.memory_space<vmem>>, %arg6: memref<32x128xbf16, #tpu.memory_space<vmem>>, %arg7: memref<32x128xf32, #tpu.memory_space<vmem>>) attributes {dimension_semantics = [#tpu.dimension_semantics<parallel>, #tpu.dimension_semantics<parallel>, #tpu.dimension_semantics<arbitrary>], iteration_bounds = array<i64: 1, 1, 1>, scalar_prefetch = 0 : i64, scratch_operands = 1 : i64, tpu.core_type = #tpu.core_type<tc>, window_params = [{transform_indices = @transform_0, window_bounds = array<i64: 32, 640>}, {transform_indices = @transform_1, window_bounds = array<i64: 640, 128>}, {transform_indices = @transform_2, window_bounds = array<i64: 1, 128>}, {transform_indices = @transform_3, window_bounds = array<i64: 32, 128>}]} {
    %c0_i32 = arith.constant 0 : i32
    %0 = arith.cmpi eq, %arg2, %c0_i32 : i32
    %1 = arith.extui %0 : i1 to i32
    %c0_i32_0 = arith.constant 0 : i32
    %2 = arith.cmpi ne, %1, %c0_i32_0 : i32
    scf.if %2 {
      %cst_10 = arith.constant 0.000000e+00 : f32
      %12 = vector.broadcast %cst_10 : f32 to vector<32x128xf32>
      %c0_11 = arith.constant 0 : index
      %c0_12 = arith.constant 0 : index
      %13 = vector.load %arg7[%c0_11, %c0_12] : memref<32x128xf32, #tpu.memory_space<vmem>>, vector<32x128xf32>
      tpu.vector_store %arg7[%c0_11, %c0_12], %12 {strides = array<i32>} : memref<32x128xf32, #tpu.memory_space<vmem>>, vector<32x128xf32>,
    } else {
    }
    %c0 = arith.constant 0 : index
    %c0_1 = arith.constant 0 : index
    %3 = vector.load %arg7[%c0, %c0_1] : memref<32x128xf32, #tpu.memory_space<vmem>>, vector<32x128xf32>
    %c0_2 = arith.constant 0 : index
    %c0_3 = arith.constant 0 : index
    %4 = vector.load %arg3[%c0_2, %c0_3] : memref<32x640xbf16, #tpu.memory_space<vmem>>, vector<32x640xbf16>
    %c0_4 = arith.constant 0 : index
    %c0_5 = arith.constant 0 : index
    %5 = vector.load %arg4[%c0_4, %c0_5] : memref<640x128xbf16, #tpu.memory_space<vmem>>, vector<640x128xbf16>
    %cst = arith.constant dense<0.000000e+00> : vector<32x128xf32>
    %6 = tpu.matmul %4, %5, %cst {dimension_numbers = #tpu.dot_dimension_numbers<[1], [0], [0], [1], [0, 0, 1, 1], [], []>} : vector<32x640xbf16>, vector<640x128xbf16>, vector<32x128xf32> -> vector<32x128xf32>
    %7 = arith.addf %3, %6 : vector<32x128xf32>
    %c0_6 = arith.constant 0 : index
    %c0_7 = arith.constant 0 : index
    %8 = vector.load %arg7[%c0_6, %c0_7] : memref<32x128xf32, #tpu.memory_space<vmem>>, vector<32x128xf32>
    tpu.vector_store %arg7[%c0_6, %c0_7], %7 {strides = array<i32>} : memref<32x128xf32, #tpu.memory_space<vmem>>, vector<32x128xf32>,
    %c0_i32_8 = arith.constant 0 : i32
    %9 = arith.cmpi eq, %arg2, %c0_i32_8 : i32
    %10 = arith.extui %9 : i1 to i32
    %c0_i32_9 = arith.constant 0 : i32
    %11 = arith.cmpi ne, %10, %c0_i32_9 : i32
    scf.if %11 {
      %c0_10 = arith.constant 0 : index
      %c0_11 = arith.constant 0 : index
      %12 = vector.load %arg7[%c0_10, %c0_11] : memref<32x128xf32, #tpu.memory_space<vmem>>, vector<32x128xf32>
      %c0_12 = arith.constant 0 : index
      %c0_13 = arith.constant 0 : index
      %13 = vector.load %arg5[%c0_12, %c0_13] : memref<1x128xf32, #tpu.memory_space<vmem>>, vector<1x128xf32>
      %14 = vector.broadcast %13 : vector<1x128xf32> to vector<32x128xf32>
      %15 = arith.addf %12, %14 : vector<32x128xf32>
      %cst_14 = arith.constant 0.000000e+00 : f32
      %16 = vector.broadcast %cst_14 : f32 to vector<32x128xf32>
      %17 = arith.maximumf %15, %16 : vector<32x128xf32>
      %18 = arith.truncf %17 : vector<32x128xf32> to vector<32x128xbf16>
      %c0_15 = arith.constant 0 : index
      %c0_16 = arith.constant 0 : index
      %19 = vector.load %arg6[%c0_15, %c0_16] : memref<32x128xbf16, #tpu.memory_space<vmem>>, vector<32x128xbf16>
      tpu.vector_store %arg6[%c0_15, %c0_16], %18 {strides = array<i32>} : memref<32x128xbf16, #tpu.memory_space<vmem>>, vector<32x128xbf16>,
    } else {
    }
    return
  }
  func.func @transform_0(%arg0: i32, %arg1: i32, %arg2: i32) -> (i32, i32) {
    %c0_i32 = arith.constant 0 : i32
    return %arg0, %arg2 : i32, i32
  }
  func.func @transform_1(%arg0: i32, %arg1: i32, %arg2: i32) -> (i32, i32) {
    %c0_i32 = arith.constant 0 : i32
    return %arg2, %arg1 : i32, i32
  }
  func.func @transform_2(%arg0: i32, %arg1: i32, %arg2: i32) -> (i32, i32) {
    %c0_i32 = arith.constant 0 : i32
    %c0_i32_0 = arith.constant 0 : i32
    return %c0_i32, %arg1 : i32, i32
  }
  func.func @transform_3(%arg0: i32, %arg1: i32, %arg2: i32) -> (i32, i32) {
    %c0_i32 = arith.constant 0 : i32
    return %arg0, %arg1 : i32, i32
  }
}

module attributes {stable_mosaic.version = 11 : i64} {
  func.func @_conv_mm_kernel(%arg0: i32, %arg1: i32, %arg2: i32, %arg3: memref<32x128xbf16, #tpu.memory_space<vmem>>, %arg4: memref<128x128xbf16, #tpu.memory_space<vmem>>, %arg5: memref<1x128xf32, #tpu.memory_space<vmem>>, %arg6: memref<32x128xbf16, #tpu.memory_space<vmem>>, %arg7: memref<32x128xf32, #tpu.memory_space<vmem>>) attributes {dimension_semantics = [#tpu.dimension_semantics<parallel>, #tpu.dimension_semantics<parallel>, #tpu.dimension_semantics<arbitrary>], iteration_bounds = array<i64: 1, 1, 1>, scalar_prefetch = 0 : i64, scratch_operands = 1 : i64, tpu.core_type = #tpu.core_type<tc>, window_params = [{transform_indices = @transform_0, window_bounds = array<i64: 32, 128>}, {transform_indices = @transform_1, window_bounds = array<i64: 128, 128>}, {transform_indices = @transform_2, window_bounds = array<i64: 1, 128>}, {transform_indices = @transform_3, window_bounds = array<i64: 32, 128>}]} {
    %c0_i32 = arith.constant 0 : i32
    %0 = arith.cmpi eq, %arg2, %c0_i32 : i32
    %1 = arith.extui %0 : i1 to i32
    %c0_i32_0 = arith.constant 0 : i32
    %2 = arith.cmpi ne, %1, %c0_i32_0 : i32
    scf.if %2 {
      %cst_10 = arith.constant 0.000000e+00 : f32
      %12 = vector.broadcast %cst_10 : f32 to vector<32x128xf32>
      %c0_11 = arith.constant 0 : index
      %c0_12 = arith.constant 0 : index
      %13 = vector.load %arg7[%c0_11, %c0_12] : memref<32x128xf32, #tpu.memory_space<vmem>>, vector<32x128xf32>
      tpu.vector_store %arg7[%c0_11, %c0_12], %12 {strides = array<i32>} : memref<32x128xf32, #tpu.memory_space<vmem>>, vector<32x128xf32>,
    } else {
    }
    %c0 = arith.constant 0 : index
    %c0_1 = arith.constant 0 : index
    %3 = vector.load %arg7[%c0, %c0_1] : memref<32x128xf32, #tpu.memory_space<vmem>>, vector<32x128xf32>
    %c0_2 = arith.constant 0 : index
    %c0_3 = arith.constant 0 : index
    %4 = vector.load %arg3[%c0_2, %c0_3] : memref<32x128xbf16, #tpu.memory_space<vmem>>, vector<32x128xbf16>
    %c0_4 = arith.constant 0 : index
    %c0_5 = arith.constant 0 : index
    %5 = vector.load %arg4[%c0_4, %c0_5] : memref<128x128xbf16, #tpu.memory_space<vmem>>, vector<128x128xbf16>
    %cst = arith.constant dense<0.000000e+00> : vector<32x128xf32>
    %6 = tpu.matmul %4, %5, %cst {dimension_numbers = #tpu.dot_dimension_numbers<[1], [0], [0], [1], [0, 0, 1, 1], [], []>} : vector<32x128xbf16>, vector<128x128xbf16>, vector<32x128xf32> -> vector<32x128xf32>
    %7 = arith.addf %3, %6 : vector<32x128xf32>
    %c0_6 = arith.constant 0 : index
    %c0_7 = arith.constant 0 : index
    %8 = vector.load %arg7[%c0_6, %c0_7] : memref<32x128xf32, #tpu.memory_space<vmem>>, vector<32x128xf32>
    tpu.vector_store %arg7[%c0_6, %c0_7], %7 {strides = array<i32>} : memref<32x128xf32, #tpu.memory_space<vmem>>, vector<32x128xf32>,
    %c0_i32_8 = arith.constant 0 : i32
    %9 = arith.cmpi eq, %arg2, %c0_i32_8 : i32
    %10 = arith.extui %9 : i1 to i32
    %c0_i32_9 = arith.constant 0 : i32
    %11 = arith.cmpi ne, %10, %c0_i32_9 : i32
    scf.if %11 {
      %c0_10 = arith.constant 0 : index
      %c0_11 = arith.constant 0 : index
      %12 = vector.load %arg7[%c0_10, %c0_11] : memref<32x128xf32, #tpu.memory_space<vmem>>, vector<32x128xf32>
      %c0_12 = arith.constant 0 : index
      %c0_13 = arith.constant 0 : index
      %13 = vector.load %arg5[%c0_12, %c0_13] : memref<1x128xf32, #tpu.memory_space<vmem>>, vector<1x128xf32>
      %14 = vector.broadcast %13 : vector<1x128xf32> to vector<32x128xf32>
      %15 = arith.addf %12, %14 : vector<32x128xf32>
      %16 = arith.truncf %15 : vector<32x128xf32> to vector<32x128xbf16>
      %c0_14 = arith.constant 0 : index
      %c0_15 = arith.constant 0 : index
      %17 = vector.load %arg6[%c0_14, %c0_15] : memref<32x128xbf16, #tpu.memory_space<vmem>>, vector<32x128xbf16>
      tpu.vector_store %arg6[%c0_14, %c0_15], %16 {strides = array<i32>} : memref<32x128xbf16, #tpu.memory_space<vmem>>, vector<32x128xbf16>,
    } else {
    }
    return
  }
  func.func @transform_0(%arg0: i32, %arg1: i32, %arg2: i32) -> (i32, i32) {
    %c0_i32 = arith.constant 0 : i32
    return %arg0, %arg2 : i32, i32
  }
  func.func @transform_1(%arg0: i32, %arg1: i32, %arg2: i32) -> (i32, i32) {
    %c0_i32 = arith.constant 0 : i32
    return %arg2, %arg1 : i32, i32
  }
  func.func @transform_2(%arg0: i32, %arg1: i32, %arg2: i32) -> (i32, i32) {
    %c0_i32 = arith.constant 0 : i32
    %c0_i32_0 = arith.constant 0 : i32
    return %c0_i32, %arg1 : i32, i32
  }
  func.func @transform_3(%arg0: i32, %arg1: i32, %arg2: i32) -> (i32, i32) {
    %c0_i32 = arith.constant 0 : i32
    return %arg0, %arg1 : i32, i32
  }
}

module attributes {stable_mosaic.version = 11 : i64} {
  func.func @_conv_mm_res_kernel(%arg0: i32, %arg1: i32, %arg2: i32, %arg3: memref<32x1152xbf16, #tpu.memory_space<vmem>>, %arg4: memref<1152x128xbf16, #tpu.memory_space<vmem>>, %arg5: memref<1x128xf32, #tpu.memory_space<vmem>>, %arg6: memref<32x128xbf16, #tpu.memory_space<vmem>>, %arg7: memref<32x128xbf16, #tpu.memory_space<vmem>>, %arg8: memref<32x128xf32, #tpu.memory_space<vmem>>) attributes {dimension_semantics = [#tpu.dimension_semantics<parallel>, #tpu.dimension_semantics<parallel>, #tpu.dimension_semantics<arbitrary>], iteration_bounds = array<i64: 1, 1, 1>, scalar_prefetch = 0 : i64, scratch_operands = 1 : i64, tpu.core_type = #tpu.core_type<tc>, window_params = [{transform_indices = @transform_0, window_bounds = array<i64: 32, 1152>}, {transform_indices = @transform_1, window_bounds = array<i64: 1152, 128>}, {transform_indices = @transform_2, window_bounds = array<i64: 1, 128>}, {transform_indices = @transform_3, window_bounds = array<i64: 32, 128>}, {transform_indices = @transform_4, window_bounds = array<i64: 32, 128>}]} {
    %c0_i32 = arith.constant 0 : i32
    %0 = arith.cmpi eq, %arg2, %c0_i32 : i32
    %1 = arith.extui %0 : i1 to i32
    %c0_i32_0 = arith.constant 0 : i32
    %2 = arith.cmpi ne, %1, %c0_i32_0 : i32
    scf.if %2 {
      %cst_10 = arith.constant 0.000000e+00 : f32
      %12 = vector.broadcast %cst_10 : f32 to vector<32x128xf32>
      %c0_11 = arith.constant 0 : index
      %c0_12 = arith.constant 0 : index
      %13 = vector.load %arg8[%c0_11, %c0_12] : memref<32x128xf32, #tpu.memory_space<vmem>>, vector<32x128xf32>
      tpu.vector_store %arg8[%c0_11, %c0_12], %12 {strides = array<i32>} : memref<32x128xf32, #tpu.memory_space<vmem>>, vector<32x128xf32>,
    } else {
    }
    %c0 = arith.constant 0 : index
    %c0_1 = arith.constant 0 : index
    %3 = vector.load %arg8[%c0, %c0_1] : memref<32x128xf32, #tpu.memory_space<vmem>>, vector<32x128xf32>
    %c0_2 = arith.constant 0 : index
    %c0_3 = arith.constant 0 : index
    %4 = vector.load %arg3[%c0_2, %c0_3] : memref<32x1152xbf16, #tpu.memory_space<vmem>>, vector<32x1152xbf16>
    %c0_4 = arith.constant 0 : index
    %c0_5 = arith.constant 0 : index
    %5 = vector.load %arg4[%c0_4, %c0_5] : memref<1152x128xbf16, #tpu.memory_space<vmem>>, vector<1152x128xbf16>
    %cst = arith.constant dense<0.000000e+00> : vector<32x128xf32>
    %6 = tpu.matmul %4, %5, %cst {dimension_numbers = #tpu.dot_dimension_numbers<[1], [0], [0], [1], [0, 0, 1, 1], [], []>} : vector<32x1152xbf16>, vector<1152x128xbf16>, vector<32x128xf32> -> vector<32x128xf32>
    %7 = arith.addf %3, %6 : vector<32x128xf32>
    %c0_6 = arith.constant 0 : index
    %c0_7 = arith.constant 0 : index
    %8 = vector.load %arg8[%c0_6, %c0_7] : memref<32x128xf32, #tpu.memory_space<vmem>>, vector<32x128xf32>
    tpu.vector_store %arg8[%c0_6, %c0_7], %7 {strides = array<i32>} : memref<32x128xf32, #tpu.memory_space<vmem>>, vector<32x128xf32>,
    %c0_i32_8 = arith.constant 0 : i32
    %9 = arith.cmpi eq, %arg2, %c0_i32_8 : i32
    %10 = arith.extui %9 : i1 to i32
    %c0_i32_9 = arith.constant 0 : i32
    %11 = arith.cmpi ne, %10, %c0_i32_9 : i32
    scf.if %11 {
      %c0_10 = arith.constant 0 : index
      %c0_11 = arith.constant 0 : index
      %12 = vector.load %arg8[%c0_10, %c0_11] : memref<32x128xf32, #tpu.memory_space<vmem>>, vector<32x128xf32>
      %c0_12 = arith.constant 0 : index
      %c0_13 = arith.constant 0 : index
      %13 = vector.load %arg5[%c0_12, %c0_13] : memref<1x128xf32, #tpu.memory_space<vmem>>, vector<1x128xf32>
      %14 = vector.broadcast %13 : vector<1x128xf32> to vector<32x128xf32>
      %15 = arith.addf %12, %14 : vector<32x128xf32>
      %c0_14 = arith.constant 0 : index
      %c0_15 = arith.constant 0 : index
      %16 = vector.load %arg6[%c0_14, %c0_15] : memref<32x128xbf16, #tpu.memory_space<vmem>>, vector<32x128xbf16>
      %17 = arith.extf %16 : vector<32x128xbf16> to vector<32x128xf32>
      %18 = arith.addf %15, %17 : vector<32x128xf32>
      %cst_16 = arith.constant 0.000000e+00 : f32
      %19 = vector.broadcast %cst_16 : f32 to vector<32x128xf32>
      %20 = arith.maximumf %18, %19 : vector<32x128xf32>
      %21 = arith.truncf %20 : vector<32x128xf32> to vector<32x128xbf16>
      %c0_17 = arith.constant 0 : index
      %c0_18 = arith.constant 0 : index
      %22 = vector.load %arg7[%c0_17, %c0_18] : memref<32x128xbf16, #tpu.memory_space<vmem>>, vector<32x128xbf16>
      tpu.vector_store %arg7[%c0_17, %c0_18], %21 {strides = array<i32>} : memref<32x128xbf16, #tpu.memory_space<vmem>>, vector<32x128xbf16>,
    } else {
    }
    return
  }
  func.func @transform_0(%arg0: i32, %arg1: i32, %arg2: i32) -> (i32, i32) {
    %c0_i32 = arith.constant 0 : i32
    return %arg0, %arg2 : i32, i32
  }
  func.func @transform_1(%arg0: i32, %arg1: i32, %arg2: i32) -> (i32, i32) {
    %c0_i32 = arith.constant 0 : i32
    return %arg2, %arg1 : i32, i32
  }
  func.func @transform_2(%arg0: i32, %arg1: i32, %arg2: i32) -> (i32, i32) {
    %c0_i32 = arith.constant 0 : i32
    %c0_i32_0 = arith.constant 0 : i32
    return %c0_i32, %arg1 : i32, i32
  }
  func.func @transform_3(%arg0: i32, %arg1: i32, %arg2: i32) -> (i32, i32) {
    %c0_i32 = arith.constant 0 : i32
    return %arg0, %arg1 : i32, i32
  }
  func.func @transform_4(%arg0: i32, %arg1: i32, %arg2: i32) -> (i32, i32) {
    %c0_i32 = arith.constant 0 : i32
    return %arg0, %arg1 : i32, i32
  }
}

module attributes {stable_mosaic.version = 11 : i64} {
  func.func @_conv_mm_kernel(%arg0: i32, %arg1: i32, %arg2: i32, %arg3: memref<16x1152xbf16, #tpu.memory_space<vmem>>, %arg4: memref<1152x256xbf16, #tpu.memory_space<vmem>>, %arg5: memref<1x256xf32, #tpu.memory_space<vmem>>, %arg6: memref<16x256xbf16, #tpu.memory_space<vmem>>, %arg7: memref<16x256xf32, #tpu.memory_space<vmem>>) attributes {dimension_semantics = [#tpu.dimension_semantics<parallel>, #tpu.dimension_semantics<parallel>, #tpu.dimension_semantics<arbitrary>], iteration_bounds = array<i64: 1, 1, 1>, scalar_prefetch = 0 : i64, scratch_operands = 1 : i64, tpu.core_type = #tpu.core_type<tc>, window_params = [{transform_indices = @transform_0, window_bounds = array<i64: 16, 1152>}, {transform_indices = @transform_1, window_bounds = array<i64: 1152, 256>}, {transform_indices = @transform_2, window_bounds = array<i64: 1, 256>}, {transform_indices = @transform_3, window_bounds = array<i64: 16, 256>}]} {
    %c0_i32 = arith.constant 0 : i32
    %0 = arith.cmpi eq, %arg2, %c0_i32 : i32
    %1 = arith.extui %0 : i1 to i32
    %c0_i32_0 = arith.constant 0 : i32
    %2 = arith.cmpi ne, %1, %c0_i32_0 : i32
    scf.if %2 {
      %cst_10 = arith.constant 0.000000e+00 : f32
      %12 = vector.broadcast %cst_10 : f32 to vector<16x256xf32>
      %c0_11 = arith.constant 0 : index
      %c0_12 = arith.constant 0 : index
      %13 = vector.load %arg7[%c0_11, %c0_12] : memref<16x256xf32, #tpu.memory_space<vmem>>, vector<16x256xf32>
      tpu.vector_store %arg7[%c0_11, %c0_12], %12 {strides = array<i32>} : memref<16x256xf32, #tpu.memory_space<vmem>>, vector<16x256xf32>,
    } else {
    }
    %c0 = arith.constant 0 : index
    %c0_1 = arith.constant 0 : index
    %3 = vector.load %arg7[%c0, %c0_1] : memref<16x256xf32, #tpu.memory_space<vmem>>, vector<16x256xf32>
    %c0_2 = arith.constant 0 : index
    %c0_3 = arith.constant 0 : index
    %4 = vector.load %arg3[%c0_2, %c0_3] : memref<16x1152xbf16, #tpu.memory_space<vmem>>, vector<16x1152xbf16>
    %c0_4 = arith.constant 0 : index
    %c0_5 = arith.constant 0 : index
    %5 = vector.load %arg4[%c0_4, %c0_5] : memref<1152x256xbf16, #tpu.memory_space<vmem>>, vector<1152x256xbf16>
    %cst = arith.constant dense<0.000000e+00> : vector<16x256xf32>
    %6 = tpu.matmul %4, %5, %cst {dimension_numbers = #tpu.dot_dimension_numbers<[1], [0], [0], [1], [0, 0, 1, 1], [], []>} : vector<16x1152xbf16>, vector<1152x256xbf16>, vector<16x256xf32> -> vector<16x256xf32>
    %7 = arith.addf %3, %6 : vector<16x256xf32>
    %c0_6 = arith.constant 0 : index
    %c0_7 = arith.constant 0 : index
    %8 = vector.load %arg7[%c0_6, %c0_7] : memref<16x256xf32, #tpu.memory_space<vmem>>, vector<16x256xf32>
    tpu.vector_store %arg7[%c0_6, %c0_7], %7 {strides = array<i32>} : memref<16x256xf32, #tpu.memory_space<vmem>>, vector<16x256xf32>,
    %c0_i32_8 = arith.constant 0 : i32
    %9 = arith.cmpi eq, %arg2, %c0_i32_8 : i32
    %10 = arith.extui %9 : i1 to i32
    %c0_i32_9 = arith.constant 0 : i32
    %11 = arith.cmpi ne, %10, %c0_i32_9 : i32
    scf.if %11 {
      %c0_10 = arith.constant 0 : index
      %c0_11 = arith.constant 0 : index
      %12 = vector.load %arg7[%c0_10, %c0_11] : memref<16x256xf32, #tpu.memory_space<vmem>>, vector<16x256xf32>
      %c0_12 = arith.constant 0 : index
      %c0_13 = arith.constant 0 : index
      %13 = vector.load %arg5[%c0_12, %c0_13] : memref<1x256xf32, #tpu.memory_space<vmem>>, vector<1x256xf32>
      %14 = vector.broadcast %13 : vector<1x256xf32> to vector<16x256xf32>
      %15 = arith.addf %12, %14 : vector<16x256xf32>
      %cst_14 = arith.constant 0.000000e+00 : f32
      %16 = vector.broadcast %cst_14 : f32 to vector<16x256xf32>
      %17 = arith.maximumf %15, %16 : vector<16x256xf32>
      %18 = arith.truncf %17 : vector<16x256xf32> to vector<16x256xbf16>
      %c0_15 = arith.constant 0 : index
      %c0_16 = arith.constant 0 : index
      %19 = vector.load %arg6[%c0_15, %c0_16] : memref<16x256xbf16, #tpu.memory_space<vmem>>, vector<16x256xbf16>
      tpu.vector_store %arg6[%c0_15, %c0_16], %18 {strides = array<i32>} : memref<16x256xbf16, #tpu.memory_space<vmem>>, vector<16x256xbf16>,
    } else {
    }
    return
  }
  func.func @transform_0(%arg0: i32, %arg1: i32, %arg2: i32) -> (i32, i32) {
    %c0_i32 = arith.constant 0 : i32
    return %arg0, %arg2 : i32, i32
  }
  func.func @transform_1(%arg0: i32, %arg1: i32, %arg2: i32) -> (i32, i32) {
    %c0_i32 = arith.constant 0 : i32
    return %arg2, %arg1 : i32, i32
  }
  func.func @transform_2(%arg0: i32, %arg1: i32, %arg2: i32) -> (i32, i32) {
    %c0_i32 = arith.constant 0 : i32
    %c0_i32_0 = arith.constant 0 : i32
    return %c0_i32, %arg1 : i32, i32
  }
  func.func @transform_3(%arg0: i32, %arg1: i32, %arg2: i32) -> (i32, i32) {
    %c0_i32 = arith.constant 0 : i32
    return %arg0, %arg1 : i32, i32
  }
}

module attributes {stable_mosaic.version = 11 : i64} {
  func.func @_conv_mm_kernel(%arg0: i32, %arg1: i32, %arg2: i32, %arg3: memref<16x128xbf16, #tpu.memory_space<vmem>>, %arg4: memref<128x256xbf16, #tpu.memory_space<vmem>>, %arg5: memref<1x256xf32, #tpu.memory_space<vmem>>, %arg6: memref<16x256xbf16, #tpu.memory_space<vmem>>, %arg7: memref<16x256xf32, #tpu.memory_space<vmem>>) attributes {dimension_semantics = [#tpu.dimension_semantics<parallel>, #tpu.dimension_semantics<parallel>, #tpu.dimension_semantics<arbitrary>], iteration_bounds = array<i64: 1, 1, 1>, scalar_prefetch = 0 : i64, scratch_operands = 1 : i64, tpu.core_type = #tpu.core_type<tc>, window_params = [{transform_indices = @transform_0, window_bounds = array<i64: 16, 128>}, {transform_indices = @transform_1, window_bounds = array<i64: 128, 256>}, {transform_indices = @transform_2, window_bounds = array<i64: 1, 256>}, {transform_indices = @transform_3, window_bounds = array<i64: 16, 256>}]} {
    %c0_i32 = arith.constant 0 : i32
    %0 = arith.cmpi eq, %arg2, %c0_i32 : i32
    %1 = arith.extui %0 : i1 to i32
    %c0_i32_0 = arith.constant 0 : i32
    %2 = arith.cmpi ne, %1, %c0_i32_0 : i32
    scf.if %2 {
      %cst_10 = arith.constant 0.000000e+00 : f32
      %12 = vector.broadcast %cst_10 : f32 to vector<16x256xf32>
      %c0_11 = arith.constant 0 : index
      %c0_12 = arith.constant 0 : index
      %13 = vector.load %arg7[%c0_11, %c0_12] : memref<16x256xf32, #tpu.memory_space<vmem>>, vector<16x256xf32>
      tpu.vector_store %arg7[%c0_11, %c0_12], %12 {strides = array<i32>} : memref<16x256xf32, #tpu.memory_space<vmem>>, vector<16x256xf32>,
    } else {
    }
    %c0 = arith.constant 0 : index
    %c0_1 = arith.constant 0 : index
    %3 = vector.load %arg7[%c0, %c0_1] : memref<16x256xf32, #tpu.memory_space<vmem>>, vector<16x256xf32>
    %c0_2 = arith.constant 0 : index
    %c0_3 = arith.constant 0 : index
    %4 = vector.load %arg3[%c0_2, %c0_3] : memref<16x128xbf16, #tpu.memory_space<vmem>>, vector<16x128xbf16>
    %c0_4 = arith.constant 0 : index
    %c0_5 = arith.constant 0 : index
    %5 = vector.load %arg4[%c0_4, %c0_5] : memref<128x256xbf16, #tpu.memory_space<vmem>>, vector<128x256xbf16>
    %cst = arith.constant dense<0.000000e+00> : vector<16x256xf32>
    %6 = tpu.matmul %4, %5, %cst {dimension_numbers = #tpu.dot_dimension_numbers<[1], [0], [0], [1], [0, 0, 1, 1], [], []>} : vector<16x128xbf16>, vector<128x256xbf16>, vector<16x256xf32> -> vector<16x256xf32>
    %7 = arith.addf %3, %6 : vector<16x256xf32>
    %c0_6 = arith.constant 0 : index
    %c0_7 = arith.constant 0 : index
    %8 = vector.load %arg7[%c0_6, %c0_7] : memref<16x256xf32, #tpu.memory_space<vmem>>, vector<16x256xf32>
    tpu.vector_store %arg7[%c0_6, %c0_7], %7 {strides = array<i32>} : memref<16x256xf32, #tpu.memory_space<vmem>>, vector<16x256xf32>,
    %c0_i32_8 = arith.constant 0 : i32
    %9 = arith.cmpi eq, %arg2, %c0_i32_8 : i32
    %10 = arith.extui %9 : i1 to i32
    %c0_i32_9 = arith.constant 0 : i32
    %11 = arith.cmpi ne, %10, %c0_i32_9 : i32
    scf.if %11 {
      %c0_10 = arith.constant 0 : index
      %c0_11 = arith.constant 0 : index
      %12 = vector.load %arg7[%c0_10, %c0_11] : memref<16x256xf32, #tpu.memory_space<vmem>>, vector<16x256xf32>
      %c0_12 = arith.constant 0 : index
      %c0_13 = arith.constant 0 : index
      %13 = vector.load %arg5[%c0_12, %c0_13] : memref<1x256xf32, #tpu.memory_space<vmem>>, vector<1x256xf32>
      %14 = vector.broadcast %13 : vector<1x256xf32> to vector<16x256xf32>
      %15 = arith.addf %12, %14 : vector<16x256xf32>
      %16 = arith.truncf %15 : vector<16x256xf32> to vector<16x256xbf16>
      %c0_14 = arith.constant 0 : index
      %c0_15 = arith.constant 0 : index
      %17 = vector.load %arg6[%c0_14, %c0_15] : memref<16x256xbf16, #tpu.memory_space<vmem>>, vector<16x256xbf16>
      tpu.vector_store %arg6[%c0_14, %c0_15], %16 {strides = array<i32>} : memref<16x256xbf16, #tpu.memory_space<vmem>>, vector<16x256xbf16>,
    } else {
    }
    return
  }
  func.func @transform_0(%arg0: i32, %arg1: i32, %arg2: i32) -> (i32, i32) {
    %c0_i32 = arith.constant 0 : i32
    return %arg0, %arg2 : i32, i32
  }
  func.func @transform_1(%arg0: i32, %arg1: i32, %arg2: i32) -> (i32, i32) {
    %c0_i32 = arith.constant 0 : i32
    return %arg2, %arg1 : i32, i32
  }
  func.func @transform_2(%arg0: i32, %arg1: i32, %arg2: i32) -> (i32, i32) {
    %c0_i32 = arith.constant 0 : i32
    %c0_i32_0 = arith.constant 0 : i32
    return %c0_i32, %arg1 : i32, i32
  }
  func.func @transform_3(%arg0: i32, %arg1: i32, %arg2: i32) -> (i32, i32) {
    %c0_i32 = arith.constant 0 : i32
    return %arg0, %arg1 : i32, i32
  }
}

module attributes {stable_mosaic.version = 11 : i64} {
  func.func @_conv_mm_res_kernel(%arg0: i32, %arg1: i32, %arg2: i32, %arg3: memref<16x768xbf16, #tpu.memory_space<vmem>>, %arg4: memref<768x256xbf16, #tpu.memory_space<vmem>>, %arg5: memref<1x256xf32, #tpu.memory_space<vmem>>, %arg6: memref<16x256xbf16, #tpu.memory_space<vmem>>, %arg7: memref<16x256xbf16, #tpu.memory_space<vmem>>, %arg8: memref<16x256xf32, #tpu.memory_space<vmem>>) attributes {dimension_semantics = [#tpu.dimension_semantics<parallel>, #tpu.dimension_semantics<parallel>, #tpu.dimension_semantics<arbitrary>], iteration_bounds = array<i64: 1, 1, 3>, scalar_prefetch = 0 : i64, scratch_operands = 1 : i64, tpu.core_type = #tpu.core_type<tc>, window_params = [{transform_indices = @transform_0, window_bounds = array<i64: 16, 768>}, {transform_indices = @transform_1, window_bounds = array<i64: 768, 256>}, {transform_indices = @transform_2, window_bounds = array<i64: 1, 256>}, {transform_indices = @transform_3, window_bounds = array<i64: 16, 256>}, {transform_indices = @transform_4, window_bounds = array<i64: 16, 256>}]} {
    %c0_i32 = arith.constant 0 : i32
    %0 = arith.cmpi eq, %arg2, %c0_i32 : i32
    %1 = arith.extui %0 : i1 to i32
    %c0_i32_0 = arith.constant 0 : i32
    %2 = arith.cmpi ne, %1, %c0_i32_0 : i32
    scf.if %2 {
      %cst_9 = arith.constant 0.000000e+00 : f32
      %12 = vector.broadcast %cst_9 : f32 to vector<16x256xf32>
      %c0_10 = arith.constant 0 : index
      %c0_11 = arith.constant 0 : index
      %13 = vector.load %arg8[%c0_10, %c0_11] : memref<16x256xf32, #tpu.memory_space<vmem>>, vector<16x256xf32>
      tpu.vector_store %arg8[%c0_10, %c0_11], %12 {strides = array<i32>} : memref<16x256xf32, #tpu.memory_space<vmem>>, vector<16x256xf32>,
    } else {
    }
    %c0 = arith.constant 0 : index
    %c0_1 = arith.constant 0 : index
    %3 = vector.load %arg8[%c0, %c0_1] : memref<16x256xf32, #tpu.memory_space<vmem>>, vector<16x256xf32>
    %c0_2 = arith.constant 0 : index
    %c0_3 = arith.constant 0 : index
    %4 = vector.load %arg3[%c0_2, %c0_3] : memref<16x768xbf16, #tpu.memory_space<vmem>>, vector<16x768xbf16>
    %c0_4 = arith.constant 0 : index
    %c0_5 = arith.constant 0 : index
    %5 = vector.load %arg4[%c0_4, %c0_5] : memref<768x256xbf16, #tpu.memory_space<vmem>>, vector<768x256xbf16>
    %cst = arith.constant dense<0.000000e+00> : vector<16x256xf32>
    %6 = tpu.matmul %4, %5, %cst {dimension_numbers = #tpu.dot_dimension_numbers<[1], [0], [0], [1], [0, 0, 1, 1], [], []>} : vector<16x768xbf16>, vector<768x256xbf16>, vector<16x256xf32> -> vector<16x256xf32>
    %7 = arith.addf %3, %6 : vector<16x256xf32>
    %c0_6 = arith.constant 0 : index
    %c0_7 = arith.constant 0 : index
    %8 = vector.load %arg8[%c0_6, %c0_7] : memref<16x256xf32, #tpu.memory_space<vmem>>, vector<16x256xf32>
    tpu.vector_store %arg8[%c0_6, %c0_7], %7 {strides = array<i32>} : memref<16x256xf32, #tpu.memory_space<vmem>>, vector<16x256xf32>,
    %c2_i32 = arith.constant 2 : i32
    %9 = arith.cmpi eq, %arg2, %c2_i32 : i32
    %10 = arith.extui %9 : i1 to i32
    %c0_i32_8 = arith.constant 0 : i32
    %11 = arith.cmpi ne, %10, %c0_i32_8 : i32
    scf.if %11 {
      %c0_9 = arith.constant 0 : index
      %c0_10 = arith.constant 0 : index
      %12 = vector.load %arg8[%c0_9, %c0_10] : memref<16x256xf32, #tpu.memory_space<vmem>>, vector<16x256xf32>
      %c0_11 = arith.constant 0 : index
      %c0_12 = arith.constant 0 : index
      %13 = vector.load %arg5[%c0_11, %c0_12] : memref<1x256xf32, #tpu.memory_space<vmem>>, vector<1x256xf32>
      %14 = vector.broadcast %13 : vector<1x256xf32> to vector<16x256xf32>
      %15 = arith.addf %12, %14 : vector<16x256xf32>
      %c0_13 = arith.constant 0 : index
      %c0_14 = arith.constant 0 : index
      %16 = vector.load %arg6[%c0_13, %c0_14] : memref<16x256xbf16, #tpu.memory_space<vmem>>, vector<16x256xbf16>
      %17 = arith.extf %16 : vector<16x256xbf16> to vector<16x256xf32>
      %18 = arith.addf %15, %17 : vector<16x256xf32>
      %cst_15 = arith.constant 0.000000e+00 : f32
      %19 = vector.broadcast %cst_15 : f32 to vector<16x256xf32>
      %20 = arith.maximumf %18, %19 : vector<16x256xf32>
      %21 = arith.truncf %20 : vector<16x256xf32> to vector<16x256xbf16>
      %c0_16 = arith.constant 0 : index
      %c0_17 = arith.constant 0 : index
      %22 = vector.load %arg7[%c0_16, %c0_17] : memref<16x256xbf16, #tpu.memory_space<vmem>>, vector<16x256xbf16>
      tpu.vector_store %arg7[%c0_16, %c0_17], %21 {strides = array<i32>} : memref<16x256xbf16, #tpu.memory_space<vmem>>, vector<16x256xbf16>,
    } else {
    }
    return
  }
  func.func @transform_0(%arg0: i32, %arg1: i32, %arg2: i32) -> (i32, i32) {
    %c0_i32 = arith.constant 0 : i32
    return %arg0, %arg2 : i32, i32
  }
  func.func @transform_1(%arg0: i32, %arg1: i32, %arg2: i32) -> (i32, i32) {
    %c0_i32 = arith.constant 0 : i32
    return %arg2, %arg1 : i32, i32
  }
  func.func @transform_2(%arg0: i32, %arg1: i32, %arg2: i32) -> (i32, i32) {
    %c0_i32 = arith.constant 0 : i32
    %c0_i32_0 = arith.constant 0 : i32
    return %c0_i32, %arg1 : i32, i32
  }
  func.func @transform_3(%arg0: i32, %arg1: i32, %arg2: i32) -> (i32, i32) {
    %c0_i32 = arith.constant 0 : i32
    return %arg0, %arg1 : i32, i32
  }
  func.func @transform_4(%arg0: i32, %arg1: i32, %arg2: i32) -> (i32, i32) {
    %c0_i32 = arith.constant 0 : i32
    return %arg0, %arg1 : i32, i32
  }
}

module attributes {stable_mosaic.version = 11 : i64} {
  func.func @_conv_mm_kernel(%arg0: i32, %arg1: i32, %arg2: i32, %arg3: memref<16x768xbf16, #tpu.memory_space<vmem>>, %arg4: memref<768x256xbf16, #tpu.memory_space<vmem>>, %arg5: memref<1x256xf32, #tpu.memory_space<vmem>>, %arg6: memref<16x256xbf16, #tpu.memory_space<vmem>>, %arg7: memref<16x256xf32, #tpu.memory_space<vmem>>) attributes {dimension_semantics = [#tpu.dimension_semantics<parallel>, #tpu.dimension_semantics<parallel>, #tpu.dimension_semantics<arbitrary>], iteration_bounds = array<i64: 1, 2, 3>, scalar_prefetch = 0 : i64, scratch_operands = 1 : i64, tpu.core_type = #tpu.core_type<tc>, window_params = [{transform_indices = @transform_0, window_bounds = array<i64: 16, 768>}, {transform_indices = @transform_1, window_bounds = array<i64: 768, 256>}, {transform_indices = @transform_2, window_bounds = array<i64: 1, 256>}, {transform_indices = @transform_3, window_bounds = array<i64: 16, 256>}]} {
    %c0_i32 = arith.constant 0 : i32
    %0 = arith.cmpi eq, %arg2, %c0_i32 : i32
    %1 = arith.extui %0 : i1 to i32
    %c0_i32_0 = arith.constant 0 : i32
    %2 = arith.cmpi ne, %1, %c0_i32_0 : i32
    scf.if %2 {
      %cst_9 = arith.constant 0.000000e+00 : f32
      %12 = vector.broadcast %cst_9 : f32 to vector<16x256xf32>
      %c0_10 = arith.constant 0 : index
      %c0_11 = arith.constant 0 : index
      %13 = vector.load %arg7[%c0_10, %c0_11] : memref<16x256xf32, #tpu.memory_space<vmem>>, vector<16x256xf32>
      tpu.vector_store %arg7[%c0_10, %c0_11], %12 {strides = array<i32>} : memref<16x256xf32, #tpu.memory_space<vmem>>, vector<16x256xf32>,
    } else {
    }
    %c0 = arith.constant 0 : index
    %c0_1 = arith.constant 0 : index
    %3 = vector.load %arg7[%c0, %c0_1] : memref<16x256xf32, #tpu.memory_space<vmem>>, vector<16x256xf32>
    %c0_2 = arith.constant 0 : index
    %c0_3 = arith.constant 0 : index
    %4 = vector.load %arg3[%c0_2, %c0_3] : memref<16x768xbf16, #tpu.memory_space<vmem>>, vector<16x768xbf16>
    %c0_4 = arith.constant 0 : index
    %c0_5 = arith.constant 0 : index
    %5 = vector.load %arg4[%c0_4, %c0_5] : memref<768x256xbf16, #tpu.memory_space<vmem>>, vector<768x256xbf16>
    %cst = arith.constant dense<0.000000e+00> : vector<16x256xf32>
    %6 = tpu.matmul %4, %5, %cst {dimension_numbers = #tpu.dot_dimension_numbers<[1], [0], [0], [1], [0, 0, 1, 1], [], []>} : vector<16x768xbf16>, vector<768x256xbf16>, vector<16x256xf32> -> vector<16x256xf32>
    %7 = arith.addf %3, %6 : vector<16x256xf32>
    %c0_6 = arith.constant 0 : index
    %c0_7 = arith.constant 0 : index
    %8 = vector.load %arg7[%c0_6, %c0_7] : memref<16x256xf32, #tpu.memory_space<vmem>>, vector<16x256xf32>
    tpu.vector_store %arg7[%c0_6, %c0_7], %7 {strides = array<i32>} : memref<16x256xf32, #tpu.memory_space<vmem>>, vector<16x256xf32>,
    %c2_i32 = arith.constant 2 : i32
    %9 = arith.cmpi eq, %arg2, %c2_i32 : i32
    %10 = arith.extui %9 : i1 to i32
    %c0_i32_8 = arith.constant 0 : i32
    %11 = arith.cmpi ne, %10, %c0_i32_8 : i32
    scf.if %11 {
      %c0_9 = arith.constant 0 : index
      %c0_10 = arith.constant 0 : index
      %12 = vector.load %arg7[%c0_9, %c0_10] : memref<16x256xf32, #tpu.memory_space<vmem>>, vector<16x256xf32>
      %c0_11 = arith.constant 0 : index
      %c0_12 = arith.constant 0 : index
      %13 = vector.load %arg5[%c0_11, %c0_12] : memref<1x256xf32, #tpu.memory_space<vmem>>, vector<1x256xf32>
      %14 = vector.broadcast %13 : vector<1x256xf32> to vector<16x256xf32>
      %15 = arith.addf %12, %14 : vector<16x256xf32>
      %cst_13 = arith.constant 0.000000e+00 : f32
      %16 = vector.broadcast %cst_13 : f32 to vector<16x256xf32>
      %17 = arith.maximumf %15, %16 : vector<16x256xf32>
      %18 = arith.truncf %17 : vector<16x256xf32> to vector<16x256xbf16>
      %c0_14 = arith.constant 0 : index
      %c0_15 = arith.constant 0 : index
      %19 = vector.load %arg6[%c0_14, %c0_15] : memref<16x256xbf16, #tpu.memory_space<vmem>>, vector<16x256xbf16>
      tpu.vector_store %arg6[%c0_14, %c0_15], %18 {strides = array<i32>} : memref<16x256xbf16, #tpu.memory_space<vmem>>, vector<16x256xbf16>,
    } else {
    }
    return
  }
  func.func @transform_0(%arg0: i32, %arg1: i32, %arg2: i32) -> (i32, i32) {
    %c0_i32 = arith.constant 0 : i32
    return %arg0, %arg2 : i32, i32
  }
  func.func @transform_1(%arg0: i32, %arg1: i32, %arg2: i32) -> (i32, i32) {
    %c0_i32 = arith.constant 0 : i32
    return %arg2, %arg1 : i32, i32
  }
  func.func @transform_2(%arg0: i32, %arg1: i32, %arg2: i32) -> (i32, i32) {
    %c0_i32 = arith.constant 0 : i32
    %c0_i32_0 = arith.constant 0 : i32
    return %c0_i32, %arg1 : i32, i32
  }
  func.func @transform_3(%arg0: i32, %arg1: i32, %arg2: i32) -> (i32, i32) {
    %c0_i32 = arith.constant 0 : i32
    return %arg0, %arg1 : i32, i32
  }
}

module attributes {stable_mosaic.version = 11 : i64} {
  func.func @_conv_mm_kernel(%arg0: i32, %arg1: i32, %arg2: i32, %arg3: memref<16x256xbf16, #tpu.memory_space<vmem>>, %arg4: memref<256x256xbf16, #tpu.memory_space<vmem>>, %arg5: memref<1x256xf32, #tpu.memory_space<vmem>>, %arg6: memref<16x256xbf16, #tpu.memory_space<vmem>>, %arg7: memref<16x256xf32, #tpu.memory_space<vmem>>) attributes {dimension_semantics = [#tpu.dimension_semantics<parallel>, #tpu.dimension_semantics<parallel>, #tpu.dimension_semantics<arbitrary>], iteration_bounds = array<i64: 1, 2, 1>, scalar_prefetch = 0 : i64, scratch_operands = 1 : i64, tpu.core_type = #tpu.core_type<tc>, window_params = [{transform_indices = @transform_0, window_bounds = array<i64: 16, 256>}, {transform_indices = @transform_1, window_bounds = array<i64: 256, 256>}, {transform_indices = @transform_2, window_bounds = array<i64: 1, 256>}, {transform_indices = @transform_3, window_bounds = array<i64: 16, 256>}]} {
    %c0_i32 = arith.constant 0 : i32
    %0 = arith.cmpi eq, %arg2, %c0_i32 : i32
    %1 = arith.extui %0 : i1 to i32
    %c0_i32_0 = arith.constant 0 : i32
    %2 = arith.cmpi ne, %1, %c0_i32_0 : i32
    scf.if %2 {
      %cst_10 = arith.constant 0.000000e+00 : f32
      %12 = vector.broadcast %cst_10 : f32 to vector<16x256xf32>
      %c0_11 = arith.constant 0 : index
      %c0_12 = arith.constant 0 : index
      %13 = vector.load %arg7[%c0_11, %c0_12] : memref<16x256xf32, #tpu.memory_space<vmem>>, vector<16x256xf32>
      tpu.vector_store %arg7[%c0_11, %c0_12], %12 {strides = array<i32>} : memref<16x256xf32, #tpu.memory_space<vmem>>, vector<16x256xf32>,
    } else {
    }
    %c0 = arith.constant 0 : index
    %c0_1 = arith.constant 0 : index
    %3 = vector.load %arg7[%c0, %c0_1] : memref<16x256xf32, #tpu.memory_space<vmem>>, vector<16x256xf32>
    %c0_2 = arith.constant 0 : index
    %c0_3 = arith.constant 0 : index
    %4 = vector.load %arg3[%c0_2, %c0_3] : memref<16x256xbf16, #tpu.memory_space<vmem>>, vector<16x256xbf16>
    %c0_4 = arith.constant 0 : index
    %c0_5 = arith.constant 0 : index
    %5 = vector.load %arg4[%c0_4, %c0_5] : memref<256x256xbf16, #tpu.memory_space<vmem>>, vector<256x256xbf16>
    %cst = arith.constant dense<0.000000e+00> : vector<16x256xf32>
    %6 = tpu.matmul %4, %5, %cst {dimension_numbers = #tpu.dot_dimension_numbers<[1], [0], [0], [1], [0, 0, 1, 1], [], []>} : vector<16x256xbf16>, vector<256x256xbf16>, vector<16x256xf32> -> vector<16x256xf32>
    %7 = arith.addf %3, %6 : vector<16x256xf32>
    %c0_6 = arith.constant 0 : index
    %c0_7 = arith.constant 0 : index
    %8 = vector.load %arg7[%c0_6, %c0_7] : memref<16x256xf32, #tpu.memory_space<vmem>>, vector<16x256xf32>
    tpu.vector_store %arg7[%c0_6, %c0_7], %7 {strides = array<i32>} : memref<16x256xf32, #tpu.memory_space<vmem>>, vector<16x256xf32>,
    %c0_i32_8 = arith.constant 0 : i32
    %9 = arith.cmpi eq, %arg2, %c0_i32_8 : i32
    %10 = arith.extui %9 : i1 to i32
    %c0_i32_9 = arith.constant 0 : i32
    %11 = arith.cmpi ne, %10, %c0_i32_9 : i32
    scf.if %11 {
      %c0_10 = arith.constant 0 : index
      %c0_11 = arith.constant 0 : index
      %12 = vector.load %arg7[%c0_10, %c0_11] : memref<16x256xf32, #tpu.memory_space<vmem>>, vector<16x256xf32>
      %c0_12 = arith.constant 0 : index
      %c0_13 = arith.constant 0 : index
      %13 = vector.load %arg5[%c0_12, %c0_13] : memref<1x256xf32, #tpu.memory_space<vmem>>, vector<1x256xf32>
      %14 = vector.broadcast %13 : vector<1x256xf32> to vector<16x256xf32>
      %15 = arith.addf %12, %14 : vector<16x256xf32>
      %16 = arith.truncf %15 : vector<16x256xf32> to vector<16x256xbf16>
      %c0_14 = arith.constant 0 : index
      %c0_15 = arith.constant 0 : index
      %17 = vector.load %arg6[%c0_14, %c0_15] : memref<16x256xbf16, #tpu.memory_space<vmem>>, vector<16x256xbf16>
      tpu.vector_store %arg6[%c0_14, %c0_15], %16 {strides = array<i32>} : memref<16x256xbf16, #tpu.memory_space<vmem>>, vector<16x256xbf16>,
    } else {
    }
    return
  }
  func.func @transform_0(%arg0: i32, %arg1: i32, %arg2: i32) -> (i32, i32) {
    %c0_i32 = arith.constant 0 : i32
    return %arg0, %arg2 : i32, i32
  }
  func.func @transform_1(%arg0: i32, %arg1: i32, %arg2: i32) -> (i32, i32) {
    %c0_i32 = arith.constant 0 : i32
    return %arg2, %arg1 : i32, i32
  }
  func.func @transform_2(%arg0: i32, %arg1: i32, %arg2: i32) -> (i32, i32) {
    %c0_i32 = arith.constant 0 : i32
    %c0_i32_0 = arith.constant 0 : i32
    return %c0_i32, %arg1 : i32, i32
  }
  func.func @transform_3(%arg0: i32, %arg1: i32, %arg2: i32) -> (i32, i32) {
    %c0_i32 = arith.constant 0 : i32
    return %arg0, %arg1 : i32, i32
  }
}

module attributes {stable_mosaic.version = 11 : i64} {
  func.func @_conv_mm_res_kernel(%arg0: i32, %arg1: i32, %arg2: i32, %arg3: memref<16x768xbf16, #tpu.memory_space<vmem>>, %arg4: memref<768x256xbf16, #tpu.memory_space<vmem>>, %arg5: memref<1x256xf32, #tpu.memory_space<vmem>>, %arg6: memref<16x256xbf16, #tpu.memory_space<vmem>>, %arg7: memref<16x256xbf16, #tpu.memory_space<vmem>>, %arg8: memref<16x256xf32, #tpu.memory_space<vmem>>) attributes {dimension_semantics = [#tpu.dimension_semantics<parallel>, #tpu.dimension_semantics<parallel>, #tpu.dimension_semantics<arbitrary>], iteration_bounds = array<i64: 1, 2, 6>, scalar_prefetch = 0 : i64, scratch_operands = 1 : i64, tpu.core_type = #tpu.core_type<tc>, window_params = [{transform_indices = @transform_0, window_bounds = array<i64: 16, 768>}, {transform_indices = @transform_1, window_bounds = array<i64: 768, 256>}, {transform_indices = @transform_2, window_bounds = array<i64: 1, 256>}, {transform_indices = @transform_3, window_bounds = array<i64: 16, 256>}, {transform_indices = @transform_4, window_bounds = array<i64: 16, 256>}]} {
    %c0_i32 = arith.constant 0 : i32
    %0 = arith.cmpi eq, %arg2, %c0_i32 : i32
    %1 = arith.extui %0 : i1 to i32
    %c0_i32_0 = arith.constant 0 : i32
    %2 = arith.cmpi ne, %1, %c0_i32_0 : i32
    scf.if %2 {
      %cst_9 = arith.constant 0.000000e+00 : f32
      %12 = vector.broadcast %cst_9 : f32 to vector<16x256xf32>
      %c0_10 = arith.constant 0 : index
      %c0_11 = arith.constant 0 : index
      %13 = vector.load %arg8[%c0_10, %c0_11] : memref<16x256xf32, #tpu.memory_space<vmem>>, vector<16x256xf32>
      tpu.vector_store %arg8[%c0_10, %c0_11], %12 {strides = array<i32>} : memref<16x256xf32, #tpu.memory_space<vmem>>, vector<16x256xf32>,
    } else {
    }
    %c0 = arith.constant 0 : index
    %c0_1 = arith.constant 0 : index
    %3 = vector.load %arg8[%c0, %c0_1] : memref<16x256xf32, #tpu.memory_space<vmem>>, vector<16x256xf32>
    %c0_2 = arith.constant 0 : index
    %c0_3 = arith.constant 0 : index
    %4 = vector.load %arg3[%c0_2, %c0_3] : memref<16x768xbf16, #tpu.memory_space<vmem>>, vector<16x768xbf16>
    %c0_4 = arith.constant 0 : index
    %c0_5 = arith.constant 0 : index
    %5 = vector.load %arg4[%c0_4, %c0_5] : memref<768x256xbf16, #tpu.memory_space<vmem>>, vector<768x256xbf16>
    %cst = arith.constant dense<0.000000e+00> : vector<16x256xf32>
    %6 = tpu.matmul %4, %5, %cst {dimension_numbers = #tpu.dot_dimension_numbers<[1], [0], [0], [1], [0, 0, 1, 1], [], []>} : vector<16x768xbf16>, vector<768x256xbf16>, vector<16x256xf32> -> vector<16x256xf32>
    %7 = arith.addf %3, %6 : vector<16x256xf32>
    %c0_6 = arith.constant 0 : index
    %c0_7 = arith.constant 0 : index
    %8 = vector.load %arg8[%c0_6, %c0_7] : memref<16x256xf32, #tpu.memory_space<vmem>>, vector<16x256xf32>
    tpu.vector_store %arg8[%c0_6, %c0_7], %7 {strides = array<i32>} : memref<16x256xf32, #tpu.memory_space<vmem>>, vector<16x256xf32>,
    %c5_i32 = arith.constant 5 : i32
    %9 = arith.cmpi eq, %arg2, %c5_i32 : i32
    %10 = arith.extui %9 : i1 to i32
    %c0_i32_8 = arith.constant 0 : i32
    %11 = arith.cmpi ne, %10, %c0_i32_8 : i32
    scf.if %11 {
      %c0_9 = arith.constant 0 : index
      %c0_10 = arith.constant 0 : index
      %12 = vector.load %arg8[%c0_9, %c0_10] : memref<16x256xf32, #tpu.memory_space<vmem>>, vector<16x256xf32>
      %c0_11 = arith.constant 0 : index
      %c0_12 = arith.constant 0 : index
      %13 = vector.load %arg5[%c0_11, %c0_12] : memref<1x256xf32, #tpu.memory_space<vmem>>, vector<1x256xf32>
      %14 = vector.broadcast %13 : vector<1x256xf32> to vector<16x256xf32>
      %15 = arith.addf %12, %14 : vector<16x256xf32>
      %c0_13 = arith.constant 0 : index
      %c0_14 = arith.constant 0 : index
      %16 = vector.load %arg6[%c0_13, %c0_14] : memref<16x256xbf16, #tpu.memory_space<vmem>>, vector<16x256xbf16>
      %17 = arith.extf %16 : vector<16x256xbf16> to vector<16x256xf32>
      %18 = arith.addf %15, %17 : vector<16x256xf32>
      %cst_15 = arith.constant 0.000000e+00 : f32
      %19 = vector.broadcast %cst_15 : f32 to vector<16x256xf32>
      %20 = arith.maximumf %18, %19 : vector<16x256xf32>
      %21 = arith.truncf %20 : vector<16x256xf32> to vector<16x256xbf16>
      %c0_16 = arith.constant 0 : index
      %c0_17 = arith.constant 0 : index
      %22 = vector.load %arg7[%c0_16, %c0_17] : memref<16x256xbf16, #tpu.memory_space<vmem>>, vector<16x256xbf16>
      tpu.vector_store %arg7[%c0_16, %c0_17], %21 {strides = array<i32>} : memref<16x256xbf16, #tpu.memory_space<vmem>>, vector<16x256xbf16>,
    } else {
    }
    return
  }
  func.func @transform_0(%arg0: i32, %arg1: i32, %arg2: i32) -> (i32, i32) {
    %c0_i32 = arith.constant 0 : i32
    return %arg0, %arg2 : i32, i32
  }
  func.func @transform_1(%arg0: i32, %arg1: i32, %arg2: i32) -> (i32, i32) {
    %c0_i32 = arith.constant 0 : i32
    return %arg2, %arg1 : i32, i32
  }
  func.func @transform_2(%arg0: i32, %arg1: i32, %arg2: i32) -> (i32, i32) {
    %c0_i32 = arith.constant 0 : i32
    %c0_i32_0 = arith.constant 0 : i32
    return %c0_i32, %arg1 : i32, i32
  }
  func.func @transform_3(%arg0: i32, %arg1: i32, %arg2: i32) -> (i32, i32) {
    %c0_i32 = arith.constant 0 : i32
    return %arg0, %arg1 : i32, i32
  }
  func.func @transform_4(%arg0: i32, %arg1: i32, %arg2: i32) -> (i32, i32) {
    %c0_i32 = arith.constant 0 : i32
    return %arg0, %arg1 : i32, i32
  }
}

module attributes {stable_mosaic.version = 11 : i64} {
  func.func @_head_kernel(%arg0: memref<2x1x512xbf16, #tpu.memory_space<vmem>>, %arg1: memref<512x10xbf16, #tpu.memory_space<vmem>>, %arg2: memref<1x10xf32, #tpu.memory_space<vmem>>, %arg3: memref<2x10xf32, #tpu.memory_space<vmem>>) attributes {dimension_semantics = [], scalar_prefetch = 0 : i64, scratch_operands = 0 : i64, tpu.core_type = #tpu.core_type<tc>} {
    %c0 = arith.constant 0 : index
    %c0_0 = arith.constant 0 : index
    %c0_1 = arith.constant 0 : index
    %0 = vector.load %arg0[%c0, %c0_0, %c0_1] : memref<2x1x512xbf16, #tpu.memory_space<vmem>>, vector<2x1x512xbf16>
    %1 = arith.extf %0 : vector<2x1x512xbf16> to vector<2x1x512xf32>
    %cst = arith.constant dense<0.000000e+00> : vector<2x512xf32>
    %2 = vector.multi_reduction <add>, %1, %cst [1] : vector<2x1x512xf32> to vector<2x512xf32>
    %cst_2 = arith.constant 1.000000e+00 : f32
    %3 = vector.broadcast %cst_2 : f32 to vector<2x512xf32>
    %4 = arith.divf %2, %3 : vector<2x512xf32>
    %5 = arith.truncf %4 : vector<2x512xf32> to vector<2x512xbf16>
    %c0_3 = arith.constant 0 : index
    %c0_4 = arith.constant 0 : index
    %6 = vector.load %arg1[%c0_3, %c0_4] : memref<512x10xbf16, #tpu.memory_space<vmem>>, vector<512x10xbf16>
    %cst_5 = arith.constant dense<0.000000e+00> : vector<2x10xf32>
    %7 = tpu.matmul %5, %6, %cst_5 {dimension_numbers = #tpu.dot_dimension_numbers<[1], [0], [0], [1], [0, 0, 1, 1], [], []>} : vector<2x512xbf16>, vector<512x10xbf16>, vector<2x10xf32> -> vector<2x10xf32>
    %c0_6 = arith.constant 0 : index
    %c0_7 = arith.constant 0 : index
    %8 = vector.load %arg2[%c0_6, %c0_7] : memref<1x10xf32, #tpu.memory_space<vmem>>, vector<1x10xf32>
    %9 = vector.broadcast %8 : vector<1x10xf32> to vector<2x10xf32>
    %10 = arith.addf %7, %9 : vector<2x10xf32>
    %c0_8 = arith.constant 0 : index
    %c0_9 = arith.constant 0 : index
    %11 = vector.load %arg3[%c0_8, %c0_9] : memref<2x10xf32, #tpu.memory_space<vmem>>, vector<2x10xf32>
    tpu.vector_store %arg3[%c0_8, %c0_9], %10 {strides = array<i32>} : memref<2x10xf32, #tpu.memory_space<vmem>>, vector<2x10xf32>,
    return
  }
}

</mosaic_0001>

<bundles_post_ra>
// kernel: _resnet_forward.14
= control target key start
LH: loop header
LB: loop body
LE: loop exit
PB: predicated region body
PF: predicated region fallthrough
CT: control target
= control target key end

     0   :  { %vm18_vm0 = vcmask 523264   ;;  %vm1389_vm1 = vcmask 519168   ;;  %s2852_s1 = inlined_call_operand.vmem [shape: bf16[256,64], index: 1, kind: input, shape index: {}]   ;;  %s2853_s0 = inlined_call_operand.vmem [shape: bf16[512,256], index: 0, kind: input, shape index: {}]   ;;  %s2854_s2 = inlined_call_operand.vmem [shape: f32[1,64], index: 2, kind: input, shape index: {}]   ;;  %s2855_s3 = inlined_call_operand.vmem [shape: bf16[512,64], index: 3, kind: output, shape index: {}]  }
   0x1   :  { %v1849_v0 = vld [vmem:[%s2852_s1 + $0x38] sm:$0xff]  ;;  %v1848_v2 = vld [vmem:[%s2852_s1 + $0x30] sm:$0xff]  ;;  %v1847_v4 = vld [vmem:[%s2852_s1 + $0x28] sm:$0xff] }
   0x2   :  { %v1857_v1 = vld [vmem:[%s2852_s1 + $0x78] sm:$0xff]  ;;  %659 = vmatpush.bf16.msra.mxu0 %v1849_v0  ;;  %1858 = vmatpush.bf16.msra.mxu2 %v1849_v0  ;;  %v1856_v3 = vld [vmem:[%s2852_s1 + $0x70] sm:$0xff]  ;;  %v1855_v5 = vld [vmem:[%s2852_s1 + $0x68] sm:$0xff] }
   0x3   :  { %828 = vmatpush.bf16.msra.mxu1 %v1857_v1  ;;  %1866 = vmatpush.bf16.msra.mxu3 %v1857_v1  ;;  %v1846_v6 = vld [vmem:[%s2852_s1 + $0x20] sm:$0xff]  ;;  %v1845_v8 = vld [vmem:[%s2852_s1 + $0x18] sm:$0xff]  ;;  %v1844_v10 = vld [vmem:[%s2852_s1 + $0x10] sm:$0xff] }
   0x4   :  { %v1854_v7 = vld [vmem:[%s2852_s1 + $0x60] sm:$0xff]  ;;  %v1853_v9 = vld [vmem:[%s2852_s1 + $0x58] sm:$0xff]  ;;  %v1852_v11 = vld [vmem:[%s2852_s1 + $0x50] sm:$0xff] }
   0x5   :  { %v1843_v12 = vld [vmem:[%s2852_s1 + $0x8] sm:$0xff]  ;;  %v1842_v14 = vld [vmem:[%s2852_s1] sm:$0xff]  ;;  %v1468_v28 = vld [vmem:[%s2853_s0 + $0x10] sm:$0xf] }
   0x6   :  { %660 = vmatpush.bf16.msra.mxu0 %v1848_v2  ;;  %1859 = vmatpush.bf16.msra.mxu2 %v1848_v2  ;;  %v1851_v13 = vld [vmem:[%s2852_s1 + $0x48] sm:$0xff]  ;;  %v1850_v15 = vld [vmem:[%s2852_s1 + $0x40] sm:$0xff]  ;;  %v1781_v29 = vld [vmem:[%s2853_s0 + $0x14] sm:$0xf0] }
   0x7   :  { %829 = vmatpush.bf16.msra.mxu1 %v1856_v3  ;;  %1867 = vmatpush.bf16.msra.mxu3 %v1856_v3  ;;  %v1460_v16 = vld [vmem:[%s2853_s0] sm:$0xf]  ;;  %v1779_v17 = vld [vmem:[%s2853_s0 + $0x4] sm:$0xf0]  ;;  %v1778_v20 = vld [vmem:[%s2853_s0 + $0x4] sm:$0xf]  ;;  %v1469_v36 = vor.u32 %v1781_v29, %v1468_v28 }
   0x8   :  { %v1588_v18 = vld [vmem:[%s2853_s0 + $0x100] sm:$0xf]  ;;  %v1811_v19 = vld [vmem:[%s2853_s0 + $0x104] sm:$0xf0]  ;;  %v1462_v21 = vld [vmem:[%s2853_s0 + $0x8] sm:$0xf0]  ;;  %v1461_v24 = vor.u32 %v1779_v17, %v1460_v16 }
   0x9   :  { %v1810_v22 = vld [vmem:[%s2853_s0 + $0x104] sm:$0xf]  ;;  %v1590_v23 = vld [vmem:[%s2853_s0 + $0x108] sm:$0xf0]  ;;  %v1589_v25 = vor.u32 %v1811_v19, %v1588_v18  ;;  %v1465_v26 = vor.u32 %v1778_v20, %v1462_v21  ;;  %v1596_v30 = vld [vmem:[%s2853_s0 + $0x110] sm:$0xf] }
   0xa   :  { %661 = vmatpush.bf16.msra.mxu0 %v1847_v4  ;;  %1860 = vmatpush.bf16.msra.mxu2 %v1847_v4  ;;  %v1593_v27 = vor.u32 %v1810_v22, %v1590_v23  ;;  %v1813_v31 = vld [vmem:[%s2853_s0 + $0x114] sm:$0xf0]  ;;  %v1780_v32 = vld [vmem:[%s2853_s0 + $0x14] sm:$0xf]  ;;  %v1470_v33 = vld [vmem:[%s2853_s0 + $0x18] sm:$0xf0] }
   0xb   :  { %830 = vmatpush.bf16.msra.mxu1 %v1855_v5  ;;  %1868 = vmatpush.bf16.msra.mxu3 %v1855_v5  ;;  %v1812_v34 = vld [vmem:[%s2853_s0 + $0x114] sm:$0xf]  ;;  %v1598_v35 = vld [vmem:[%s2853_s0 + $0x118] sm:$0xf0]  ;;  %v1597_v37 = vor.u32 %v1813_v31, %v1596_v30  ;;  %v1473_v38 = vor.u32 %v1780_v32, %v1470_v33  ;;  %v1476_v40 = vld [vmem:[%s2853_s0 + $0x20] sm:$0xf] }
   0xc   :  { %v1601_v39 = vor.u32 %v1812_v34, %v1598_v35  ;;  %v1783_v41 = vld [vmem:[%s2853_s0 + $0x24] sm:$0xf0]  ;;  %v1604_v42 = vld [vmem:[%s2853_s0 + $0x120] sm:$0xf]  ;;  %v1782_v44 = vld [vmem:[%s2853_s0 + $0x24] sm:$0xf] }
   0xd   :  { %v1815_v43 = vld [vmem:[%s2853_s0 + $0x124] sm:$0xf0]  ;;  %v1478_v45 = vld [vmem:[%s2853_s0 + $0x28] sm:$0xf0]  ;;  %v1814_v46 = vld [vmem:[%s2853_s0 + $0x124] sm:$0xf]  ;;  %v1477_v48 = vor.u32 %v1783_v41, %v1476_v40 }
   0xe   :  { %662 = vmatpush.bf16.msra.mxu0 %v1846_v6  ;;  %1861 = vmatpush.bf16.msra.mxu2 %v1846_v6  ;;  %v1606_v47 = vld [vmem:[%s2853_s0 + $0x128] sm:$0xf0]  ;;  %v1605_v49 = vor.u32 %v1815_v43, %v1604_v42  ;;  %v1481_v50 = vor.u32 %v1782_v44, %v1478_v45  ;;  %v1484_v52 = vld [vmem:[%s2853_s0 + $0x30] sm:$0xf]  ;;  %v1785_v53 = vld [vmem:[%s2853_s0 + $0x34] sm:$0xf0] }
   0xf   :  { %831 = vmatpush.bf16.msra.mxu1 %v1854_v7  ;;  %1869 = vmatpush.bf16.msra.mxu3 %v1854_v7  ;;  %v1609_v51 = vor.u32 %v1814_v46, %v1606_v47  ;;  %v1612_v54 = vld [vmem:[%s2853_s0 + $0x130] sm:$0xf]  ;;  %v1817_v55 = vld [vmem:[%s2853_s0 + $0x134] sm:$0xf0]  ;;  %v1784_v56 = vld [vmem:[%s2853_s0 + $0x34] sm:$0xf]  ;;  %v1485_v60 = vor.u32 %v1785_v53, %v1484_v52 }
  0x10   :  { %v1486_v57 = vld [vmem:[%s2853_s0 + $0x38] sm:$0xf0]  ;;  %v1816_v58 = vld [vmem:[%s2853_s0 + $0x134] sm:$0xf]  ;;  %v1613_v61 = vor.u32 %v1817_v55, %v1612_v54  ;;  %v1492_v0 = vld [vmem:[%s2853_s0 + $0x40] sm:$0xf] }
  0x11   :  { %v1614_v59 = vld [vmem:[%s2853_s0 + $0x138] sm:$0xf0]  ;;  %v1489_v62 = vor.u32 %v1784_v56, %v1486_v57  ;;  %v1787_v1 = vld [vmem:[%s2853_s0 + $0x44] sm:$0xf0]  ;;  %v1620_v2 = vld [vmem:[%s2853_s0 + $0x140] sm:$0xf] }
  0x12   :  { %663 = vmatpush.bf16.msra.mxu0 %v1845_v8  ;;  %1862 = vmatpush.bf16.msra.mxu2 %v1845_v8  ;;  %v1617_v63 = vor.u32 %v1816_v58, %v1614_v59  ;;  %v1819_v3 = vld [vmem:[%s2853_s0 + $0x144] sm:$0xf0]  ;;  %v1786_v4 = vld [vmem:[%s2853_s0 + $0x44] sm:$0xf]  ;;  %v1494_v5 = vld [vmem:[%s2853_s0 + $0x48] sm:$0xf0]  ;;  %v1493_v8 = vor.u32 %v1787_v1, %v1492_v0 }
  0x13   :  { %832 = vmatpush.bf16.msra.mxu1 %v1853_v9  ;;  %1870 = vmatpush.bf16.msra.mxu3 %v1853_v9  ;;  %v1818_v6 = vld [vmem:[%s2853_s0 + $0x144] sm:$0xf]  ;;  %v1622_v7 = vld [vmem:[%s2853_s0 + $0x148] sm:$0xf0]  ;;  %v1621_v9 = vor.u32 %v1819_v3, %v1620_v2  ;;  %v1788_v16 = vld [vmem:[%s2853_s0 + $0x54] sm:$0xf] }
  0x14   :  { %v1502_v17 = vld [vmem:[%s2853_s0 + $0x58] sm:$0xf0]  ;;  %v1820_v18 = vld [vmem:[%s2853_s0 + $0x154] sm:$0xf]  ;;  %v1790_v28 = vld [vmem:[%s2853_s0 + $0x64] sm:$0xf] }
  0x15   :  { %v1630_v19 = vld [vmem:[%s2853_s0 + $0x158] sm:$0xf0]  ;;  %v1505_v22 = vor.u32 %v1788_v16, %v1502_v17  ;;  %v1510_v29 = vld [vmem:[%s2853_s0 + $0x68] sm:$0xf0]  ;;  %v1822_v30 = vld [vmem:[%s2853_s0 + $0x164] sm:$0xf] }
  0x16   :  { %664 = vmatpush.bf16.msra.mxu0 %v1844_v10  ;;  %1863 = vmatpush.bf16.msra.mxu2 %v1844_v10  ;;  %v1497_v10 = vor.u32 %v1786_v4, %v1494_v5  ;;  %v1633_v23 = vor.u32 %v1820_v18, %v1630_v19  ;;  %v1638_v31 = vld [vmem:[%s2853_s0 + $0x168] sm:$0xf0]  ;;  %v1513_v34 = vor.u32 %v1790_v28, %v1510_v29  ;;  %v1825_v40 = vld [vmem:[%s2853_s0 + $0x174] sm:$0xf0]  ;;  %v1792_v41 = vld [vmem:[%s2853_s0 + $0x74] sm:$0xf] }
  0x17   :  { %833 = vmatpush.bf16.msra.mxu1 %v1852_v11  ;;  %1871 = vmatpush.bf16.msra.mxu3 %v1852_v11  ;;  %v1625_v11 = vor.u32 %v1818_v6, %v1622_v7  ;;  %v1641_v35 = vor.u32 %v1822_v30, %v1638_v31  ;;  %v1518_v42 = vld [vmem:[%s2853_s0 + $0x78] sm:$0xf0]  ;;  %v1824_v43 = vld [vmem:[%s2853_s0 + $0x174] sm:$0xf]  ;;  %v1827_v52 = vld [vmem:[%s2853_s0 + $0x184] sm:$0xf0] }
  0x18   :  { %v1646_v44 = vld [vmem:[%s2853_s0 + $0x178] sm:$0xf0]  ;;  %v1521_v47 = vor.u32 %v1792_v41, %v1518_v42  ;;  %v1794_v53 = vld [vmem:[%s2853_s0 + $0x84] sm:$0xf]  ;;  %v1526_v54 = vld [vmem:[%s2853_s0 + $0x88] sm:$0xf0] }
  0x19   :  { %v1826_v55 = vld [vmem:[%s2853_s0 + $0x184] sm:$0xf]  ;;  %v1654_v56 = vld [vmem:[%s2853_s0 + $0x188] sm:$0xf0]  ;;  %v2244_v5 = vld [vmem:[%s2854_s2] ss:$0 sm:$0xff] }
  0x1a   :  { %665 = vmatpush.bf16.msra.mxu0 %v1843_v12  ;;  %1864 = vmatpush.bf16.msra.mxu2 %v1843_v12  ;;  %v1500_v12 = vld [vmem:[%s2853_s0 + $0x50] sm:$0xf]  ;;  %v1540_v31 = vld [vmem:[%s2853_s0 + $0xa0] sm:$0xf] }
  0x1b   :  { %834 = vmatpush.bf16.msra.mxu1 %v1851_v13  ;;  %1872 = vmatpush.bf16.msra.mxu3 %v1851_v13  ;;  %v1789_v13 = vld [vmem:[%s2853_s0 + $0x54] sm:$0xf0]  ;;  %v1532_v7 = vld [vmem:[%s2853_s0 + $0x90] sm:$0xf] }
  0x1c   :  { %v1501_v20 = vor.u32 %v1789_v13, %v1500_v12  ;;  %v1534_v12 = vld [vmem:[%s2853_s0 + $0x98] sm:$0xf0] }
  0x1e   :  { %666 = vmatpush.bf16.msra.mxu0 %v1842_v14  ;;  %1865 = vmatpush.bf16.msra.mxu2 %v1842_v14  ;;  %v1628_v14 = vld [vmem:[%s2853_s0 + $0x150] sm:$0xf] }
  0x1f   :  { %835 = vmatpush.bf16.msra.mxu1 %v1850_v15  ;;  %1873 = vmatpush.bf16.msra.mxu3 %v1850_v15  ;;  %v1821_v15 = vld [vmem:[%s2853_s0 + $0x154] sm:$0xf0] }
  0x20   :  { %v1629_v21 = vor.u32 %v1821_v15, %v1628_v14  ;;  %v1828_v14 = vld [vmem:[%s2853_s0 + $0x194] sm:$0xf]  ;;  %v1662_v15 = vld [vmem:[%s2853_s0 + $0x198] sm:$0xf0] }
  0x21   :  { %667 = vmatmul.bf16.vlgmr.msra.gmra.mxu0 %v1461_v24  ;;  %747 = vmatmul.bf16.vlgmr.msra.gmra.mxu2 %v1589_v25  ;;  %v1508_v24 = vld [vmem:[%s2853_s0 + $0x60] sm:$0xf]  ;;  %v1791_v25 = vld [vmem:[%s2853_s0 + $0x64] sm:$0xf0] }
  0x22   :  { %836 = vmatmul.bf16.vlgmr.msra.gmra.mxu1 %v1465_v26  ;;  %916 = vmatmul.bf16.vlgmr.msra.gmra.mxu3 %v1593_v27  ;;  %v1636_v26 = vld [vmem:[%s2853_s0 + $0x160] sm:$0xf]  ;;  %v1823_v27 = vld [vmem:[%s2853_s0 + $0x164] sm:$0xf0]  ;;  %v1509_v32 = vor.u32 %v1791_v25, %v1508_v24  ;;  %v1665_v24 = vor.u32 %v1828_v14, %v1662_v15 }
  0x23   :  { %v1637_v33 = vor.u32 %v1823_v27, %v1636_v26 }
  0x31   :  { %672 = vmatmul.bf16.gmra.mxu0 %v1469_v36  ;;  %752 = vmatmul.bf16.gmra.mxu2 %v1597_v37  ;;  %v1877_v36 = vmov 0.0   ;;  %v1516_v37 = vld [vmem:[%s2853_s0 + $0x70] sm:$0xf] }
  0x32   :  { %841 = vmatmul.bf16.gmra.mxu1 %v1473_v38  ;;  %921 = vmatmul.bf16.gmra.mxu3 %v1601_v39  ;;  %19 = vst.msk [vmem:[#allocation2] sm:$0xff] %vm18_vm0, %v1877_v36  ;;  %v1793_v38 = vld [vmem:[%s2853_s0 + $0x74] sm:$0xf0]  ;;  %v1644_v39 = vld [vmem:[%s2853_s0 + $0x170] sm:$0xf] }
  0x33   :  { %20 = vst.msk [vmem:[#allocation2 + $0x8] sm:$0xff] %vm18_vm0, %v1877_v36  ;;  %v1517_v45 = vor.u32 %v1793_v38, %v1516_v37  ;;  %v1645_v46 = vor.u32 %v1825_v40, %v1644_v39  ;;  %v1798_v39 = vld [vmem:[%s2853_s0 + $0xa4] sm:$0xf]  ;;  %v1542_v40 = vld [vmem:[%s2853_s0 + $0xa8] sm:$0xf0] }
  0x34   :  { %21 = vst.msk [vmem:[#allocation2 + $0x10] sm:$0xff] %vm18_vm0, %v1877_v36 }
  0x35   :  { %22 = vst.msk [vmem:[#allocation2 + $0x18] sm:$0xff] %vm18_vm0, %v1877_v36 }
  0x36   :  { %23 = vst.msk [vmem:[#allocation2 + $0x20] sm:$0xff] %vm18_vm0, %v1877_v36 }
  0x37   :  { %24 = vst.msk [vmem:[#allocation2 + $0x28] sm:$0xff] %vm18_vm0, %v1877_v36 }
  0x38   :  { %25 = vst.msk [vmem:[#allocation2 + $0x30] sm:$0xff] %vm18_vm0, %v1877_v36 }
  0x39   :  { %26 = vst.msk [vmem:[#allocation2 + $0x38] sm:$0xff] %vm18_vm0, %v1877_v36 }
  0x3a   :  { %27 = vst.msk [vmem:[#allocation2 + $0x40] sm:$0xff] %vm18_vm0, %v1877_v36  ;;  %v84_v41 = vld [vmem:[#allocation2 + $0x8] sm:$0xff] }
  0x3b   :  { %28 = vst.msk [vmem:[#allocation2 + $0x48] sm:$0xff] %vm18_vm0, %v1877_v36 }
  0x3c   :  { %29 = vst.msk [vmem:[#allocation2 + $0x50] sm:$0xff] %vm18_vm0, %v1877_v36 }
  0x3d   :  { %30 = vst.msk [vmem:[#allocation2 + $0x58] sm:$0xff] %vm18_vm0, %v1877_v36 }
  0x3e   :  { %31 = vst.msk [vmem:[#allocation2 + $0x60] sm:$0xff] %vm18_vm0, %v1877_v36 }
  0x3f   :  { %32 = vst.msk [vmem:[#allocation2 + $0x68] sm:$0xff] %vm18_vm0, %v1877_v36 }
  0x40   :  { %33 = vst.msk [vmem:[#allocation2 + $0x70] sm:$0xff] %vm18_vm0, %v1877_v36 }
  0x41   :  { %677 = vmatmul.bf16.gmra.mxu0 %v1477_v48  ;;  %757 = vmatmul.bf16.gmra.mxu2 %v1605_v49  ;;  %v1649_v48 = vor.u32 %v1824_v43, %v1646_v44  ;;  %34 = vst.msk [vmem:[#allocation2 + $0x78] sm:$0xff] %vm18_vm0, %v1877_v36  ;;  %v1524_v49 = vld [vmem:[%s2853_s0 + $0x80] sm:$0xf]  ;;  %v1830_v43 = vld [vmem:[%s2853_s0 + $0x1a4] sm:$0xf] }
  0x42   :  { %846 = vmatmul.bf16.gmra.mxu1 %v1481_v50  ;;  %926 = vmatmul.bf16.gmra.mxu3 %v1609_v51  ;;  %35 = vst.msk [vmem:[#allocation2 + $0x80] sm:$0xff] %vm18_vm0, %v1877_v36  ;;  %v1795_v50 = vld [vmem:[%s2853_s0 + $0x84] sm:$0xf0]  ;;  %v1652_v51 = vld [vmem:[%s2853_s0 + $0x180] sm:$0xf] }
  0x43   :  { %36 = vst.msk [vmem:[#allocation2 + $0x88] sm:$0xff] %vm18_vm0, %v1877_v36  ;;  %v1525_v57 = vor.u32 %v1795_v50, %v1524_v49  ;;  %v1653_v58 = vor.u32 %v1827_v52, %v1652_v51  ;;  %v1670_v44 = vld [vmem:[%s2853_s0 + $0x1a8] sm:$0xf0]  ;;  %v85_v49 = vld [vmem:[#allocation2 + $0x10] sm:$0xff] }
  0x44   :  { %37 = vst.msk [vmem:[#allocation2 + $0x90] sm:$0xff] %vm18_vm0, %v1877_v36 }
  0x45   :  { %38 = vst.msk [vmem:[#allocation2 + $0x98] sm:$0xff] %vm18_vm0, %v1877_v36 }
  0x46   :  { %39 = vst.msk [vmem:[#allocation2 + $0xa0] sm:$0xff] %vm18_vm0, %v1877_v36 }
  0x47   :  { %40 = vst.msk [vmem:[#allocation2 + $0xa8] sm:$0xff] %vm18_vm0, %v1877_v36 }
  0x48   :  { %41 = vst.msk [vmem:[#allocation2 + $0xb0] sm:$0xff] %vm18_vm0, %v1877_v36 }
  0x49   :  { %42 = vst.msk [vmem:[#allocation2 + $0xb8] sm:$0xff] %vm18_vm0, %v1877_v36 }
  0x4a   :  { %43 = vst.msk [vmem:[#allocation2 + $0xc0] sm:$0xff] %vm18_vm0, %v1877_v36 }
  0x4b   :  { %44 = vst.msk [vmem:[#allocation2 + $0xc8] sm:$0xff] %vm18_vm0, %v1877_v36 }
  0x4c   :  { %45 = vst.msk [vmem:[#allocation2 + $0xd0] sm:$0xff] %vm18_vm0, %v1877_v36 }
  0x4d   :  { %46 = vst.msk [vmem:[#allocation2 + $0xd8] sm:$0xff] %vm18_vm0, %v1877_v36 }
  0x4e   :  { %47 = vst.msk [vmem:[#allocation2 + $0xe0] sm:$0xff] %vm18_vm0, %v1877_v36 }
  0x4f   :  { %48 = vst.msk [vmem:[#allocation2 + $0xe8] sm:$0xff] %vm18_vm0, %v1877_v36 }
  0x50   :  { %49 = vst.msk [vmem:[#allocation2 + $0xf0] sm:$0xff] %vm18_vm0, %v1877_v36 }
  0x51   :  { %682 = vmatmul.bf16.gmra.mxu0 %v1485_v60  ;;  %762 = vmatmul.bf16.gmra.mxu2 %v1613_v61  ;;  %50 = vst.msk [vmem:[#allocation2 + $0xf8] sm:$0xff] %vm18_vm0, %v1877_v36  ;;  %v1529_v60 = vor.u32 %v1794_v53, %v1526_v54  ;;  %v1657_v61 = vor.u32 %v1826_v55, %v1654_v56 }
  0x52   :  { %851 = vmatmul.bf16.gmra.mxu1 %v1489_v62  ;;  %931 = vmatmul.bf16.gmra.mxu3 %v1617_v63  ;;  %v83_v62 = vld [vmem:[#allocation2] sm:$0xff]  ;;  %51 = vst.msk [vmem:[#allocation2 + $0x100] sm:$0xff] %vm18_vm0, %v1877_v36 }
  0x53   :  { %52 = vst.msk [vmem:[#allocation2 + $0x108] sm:$0xff] %vm18_vm0, %v1877_v36 }
  0x54   :  { %53 = vst.msk [vmem:[#allocation2 + $0x110] sm:$0xff] %vm18_vm0, %v1877_v36 }
  0x55   :  { %54 = vst.msk [vmem:[#allocation2 + $0x118] sm:$0xff] %vm18_vm0, %v1877_v36 }
  0x56   :  { %55 = vst.msk [vmem:[#allocation2 + $0x120] sm:$0xff] %vm18_vm0, %v1877_v36 }
  0x57   :  { %56 = vst.msk [vmem:[#allocation2 + $0x128] sm:$0xff] %vm18_vm0, %v1877_v36 }
  0x58   :  { %57 = vst.msk [vmem:[#allocation2 + $0x130] sm:$0xff] %vm18_vm0, %v1877_v36 }
  0x59   :  { %58 = vst.msk [vmem:[#allocation2 + $0x138] sm:$0xff] %vm18_vm0, %v1877_v36  ;;  %v115_v37 = vld [vmem:[#allocation2 + $0x100] sm:$0xff] }
  0x5a   :  { %59 = vst.msk [vmem:[#allocation2 + $0x140] sm:$0xff] %vm18_vm0, %v1877_v36 }
  0x5b   :  { %60 = vst.msk [vmem:[#allocation2 + $0x148] sm:$0xff] %vm18_vm0, %v1877_v36  ;;  %v117_v55 = vld [vmem:[#allocation2 + $0x110] sm:$0xff] }
  0x5c   :  { %61 = vst.msk [vmem:[#allocation2 + $0x150] sm:$0xff] %vm18_vm0, %v1877_v36 }
  0x5d   :  { %62 = vst.msk [vmem:[#allocation2 + $0x158] sm:$0xff] %vm18_vm0, %v1877_v36 }
  0x5e   :  { %63 = vst.msk [vmem:[#allocation2 + $0x160] sm:$0xff] %vm18_vm0, %v1877_v36 }
  0x5f   :  { %64 = vst.msk [vmem:[#allocation2 + $0x168] sm:$0xff] %vm18_vm0, %v1877_v36 }
  0x60   :  { %65 = vst.msk [vmem:[#allocation2 + $0x170] sm:$0xff] %vm18_vm0, %v1877_v36 }
  0x61   :  { %687 = vmatmul.bf16.gmra.mxu0 %v1493_v8  ;;  %767 = vmatmul.bf16.gmra.mxu2 %v1621_v9  ;;  %v1797_v8 = vld [vmem:[%s2853_s0 + $0x94] sm:$0xf0]  ;;  %v1660_v9 = vld [vmem:[%s2853_s0 + $0x190] sm:$0xf]  ;;  %66 = vst.msk [vmem:[#allocation2 + $0x178] sm:$0xff] %vm18_vm0, %v1877_v36 }
  0x62   :  { %856 = vmatmul.bf16.gmra.mxu1 %v1497_v10  ;;  %936 = vmatmul.bf16.gmra.mxu3 %v1625_v11  ;;  %v1829_v10 = vld [vmem:[%s2853_s0 + $0x194] sm:$0xf0]  ;;  %v1796_v11 = vld [vmem:[%s2853_s0 + $0x94] sm:$0xf]  ;;  %v1533_v19 = vor.u32 %v1797_v8, %v1532_v7  ;;  %67 = vst.msk [vmem:[#allocation2 + $0x180] sm:$0xff] %vm18_vm0, %v1877_v36 }
  0x63   :  { %68 = vst.msk [vmem:[#allocation2 + $0x188] sm:$0xff] %vm18_vm0, %v1877_v36 }
  0x64   :  { %69 = vst.msk [vmem:[#allocation2 + $0x190] sm:$0xff] %vm18_vm0, %v1877_v36 }
  0x65   :  { %70 = vst.msk [vmem:[#allocation2 + $0x198] sm:$0xff] %vm18_vm0, %v1877_v36 }
  0x66   :  { %71 = vst.msk [vmem:[#allocation2 + $0x1a0] sm:$0xff] %vm18_vm0, %v1877_v36 }
  0x67   :  { %72 = vst.msk [vmem:[#allocation2 + $0x1a8] sm:$0xff] %vm18_vm0, %v1877_v36 }
  0x68   :  { %73 = vst.msk [vmem:[#allocation2 + $0x1b0] sm:$0xff] %vm18_vm0, %v1877_v36 }
  0x69   :  { %74 = vst.msk [vmem:[#allocation2 + $0x1b8] sm:$0xff] %vm18_vm0, %v1877_v36 }
  0x6a   :  { %75 = vst.msk [vmem:[#allocation2 + $0x1c0] sm:$0xff] %vm18_vm0, %v1877_v36 }
  0x6b   :  { %76 = vst.msk [vmem:[#allocation2 + $0x1c8] sm:$0xff] %vm18_vm0, %v1877_v36 }
  0x6c   :  { %77 = vst.msk [vmem:[#allocation2 + $0x1d0] sm:$0xff] %vm18_vm0, %v1877_v36 }
  0x6d   :  { %78 = vst.msk [vmem:[#allocation2 + $0x1d8] sm:$0xff] %vm18_vm0, %v1877_v36 }
  0x6e   :  { %79 = vst.msk [vmem:[#allocation2 + $0x1e0] sm:$0xff] %vm18_vm0, %v1877_v36 }
  0x6f   :  { %80 = vst.msk [vmem:[#allocation2 + $0x1e8] sm:$0xff] %vm18_vm0, %v1877_v36 }
  0x70   :  { %81 = vst.msk [vmem:[#allocation2 + $0x1f0] sm:$0xff] %vm18_vm0, %v1877_v36 }
  0x71   :  { %692 = vmatmul.bf16.gmra.mxu0 %v1501_v20  ;;  %772 = vmatmul.bf16.gmra.mxu2 %v1629_v21  ;;  %v1661_v20 = vor.u32 %v1829_v10, %v1660_v9  ;;  %82 = vst.msk [vmem:[#allocation2 + $0x1f8] sm:$0xff] %vm18_vm0, %v1877_v36  ;;  %v119_v9 = vld [vmem:[#allocation2 + $0x120] sm:$0xff] }
  0x72   :  { %861 = vmatmul.bf16.gmra.mxu1 %v1505_v22  ;;  %941 = vmatmul.bf16.gmra.mxu3 %v1633_v23  ;;  %v1537_v23 = vor.u32 %v1796_v11, %v1534_v12 }
  0x81   :  { %697 = vmatmul.bf16.gmra.mxu0 %v1509_v32  ;;  %777 = vmatmul.bf16.gmra.mxu2 %v1637_v33  ;;  %v1799_v32 = vld [vmem:[%s2853_s0 + $0xa4] sm:$0xf0] }
  0x82   :  { %866 = vmatmul.bf16.gmra.mxu1 %v1513_v34  ;;  %946 = vmatmul.bf16.gmra.mxu3 %v1641_v35  ;;  %v1668_v34 = vld [vmem:[%s2853_s0 + $0x1a0] sm:$0xf]  ;;  %v1831_v35 = vld [vmem:[%s2853_s0 + $0x1a4] sm:$0xf0]  ;;  %v1541_v52 = vor.u32 %v1799_v32, %v1540_v31  ;;  %v1832_v32 = vld [vmem:[%s2853_s0 + $0x1b4] sm:$0xf] }
  0x83   :  { %v1669_v53 = vor.u32 %v1831_v35, %v1668_v34 }
  0x91   :  { %702 = vmatmul.bf16.gmra.mxu0 %v1517_v45  ;;  %782 = vmatmul.bf16.gmra.mxu2 %v1645_v46  ;;  %v116_v45 = vld [vmem:[#allocation2 + $0x108] sm:$0xff] }
  0x92   :  { %871 = vmatmul.bf16.gmra.mxu1 %v1521_v47  ;;  %951 = vmatmul.bf16.gmra.mxu3 %v1649_v48 }
  0x9e   :  { %v668_v59 = vpop.f32.mrf.mxu0 }
  0x9f   :  { %v837_v63 = vpop.f32.mrf.mxu1 }
  0xa0   :  { %v838_v0 = vadd.f32 %v837_v63, %v668_v59  ;;  %v1673_v59 = vor.u32 %v1830_v43, %v1670_v44 }
  0xa1   :  { %707 = vmatmul.bf16.gmra.mxu0 %v1525_v57  ;;  %787 = vmatmul.bf16.gmra.mxu2 %v1653_v58  ;;  %v1545_v58 = vor.u32 %v1798_v39, %v1542_v40 }
  0xa2   :  { %v997_v1 = vadd.f32 %v838_v0, %v83_v62  ;;  %876 = vmatmul.bf16.gmra.mxu1 %v1529_v60  ;;  %956 = vmatmul.bf16.gmra.mxu3 %v1657_v61  ;;  %v86_v61 = vld [vmem:[#allocation2 + $0x18] sm:$0xff] }
  0xa4   :  { %1062 = vst.msk [vmem:[#allocation2] sm:$0xff] %vm18_vm0, %v997_v1  ;;  %v748_v2 = vpop.f32.mrf.mxu2  ;;  %v118_v1 = vld [vmem:[#allocation2 + $0x118] sm:$0xff] }
  0xa5   :  { %v917_v3 = vpop.f32.mrf.mxu3 }
  0xa6   :  { %v670_v4 = vpop.f32.mrf.mxu0  ;;  %v918_v33 = vadd.f32 %v917_v3, %v748_v2 }
  0xa7   :  { %v839_v6 = vpop.f32.mrf.mxu1 }
  0xa8   :  { %v840_v38 = vadd.f32 %v839_v6, %v670_v4  ;;  %v1029_v48 = vadd.f32 %v918_v33, %v115_v37  ;;  %v87_v4 = vld [vmem:[#allocation2 + $0x20] sm:$0xff]  ;;  %v1678_v33 = vld [vmem:[%s2853_s0 + $0x1b8] sm:$0xf0] }
  0xaa   :  { %v998_v54 = vadd.f32 %v840_v38, %v84_v41  ;;  %1094 = vst.msk [vmem:[#allocation2 + $0x100] sm:$0xff] %vm18_vm0, %v1029_v48 }
  0xab   :  { %v1129_v13 = vld [vmem:[#allocation2] sm:$0xff] }
  0xac   :  { %v1197_v16 = vadd.f32 %v2244_v5, %v1129_v13  ;;  %v750_v17 = vpop.f32.mrf.mxu2  ;;  %1063 = vst.msk [vmem:[#allocation2 + $0x8] sm:$0xff] %vm18_vm0, %v998_v54  ;;  %v88_v13 = vld [vmem:[#allocation2 + $0x28] sm:$0xff] }
  0xad   :  { %v919_v18 = vpop.f32.mrf.mxu3 }
  0xae   :  { %v1261_v21 = vmax.f32 %v1197_v16, 0.0  ;;  %v673_v22 = vpop.f32.mrf.mxu0  ;;  %v920_v42 = vadd.f32 %v919_v18, %v750_v17  ;;  %v1548_v18 = vld [vmem:[%s2853_s0 + $0xb0] sm:$0xf] }
  0xaf   :  { %v842_v25 = vpop.f32.mrf.mxu1 }
  0xb0   :  { %v1325_v26 = vpack.c.bf16 %v1261_v21, %v1261_v21  ;;  %v843_v46 = vadd.f32 %v842_v25, %v673_v22  ;;  %v1030_v60 = vadd.f32 %v920_v42, %v116_v45  ;;  %v1676_v22 = vld [vmem:[%s2853_s0 + $0x1b0] sm:$0xf] }
  0xb1   :  { %712 = vmatmul.bf16.gmra.mxu0 %v1533_v19  ;;  %792 = vmatmul.bf16.gmra.mxu2 %v1661_v20  ;;  %v1161_v15 = vld [vmem:[#allocation2 + $0x100] sm:$0xff]  ;;  %v1801_v19 = vld [vmem:[%s2853_s0 + $0xb4] sm:$0xf0] }
  0xb2   :  { %1390 = vst.msk [vmem:[%s2855_s3] sm:$0xf] %vm1389_vm1, %v1325_v26  ;;  %881 = vmatmul.bf16.gmra.mxu1 %v1537_v23  ;;  %961 = vmatmul.bf16.gmra.mxu3 %v1665_v24  ;;  %v999_v0 = vadd.f32 %v843_v46, %v85_v49  ;;  %v1229_v20 = vadd.f32 %v2244_v5, %v1161_v15  ;;  %v1833_v23 = vld [vmem:[%s2853_s0 + $0x1b4] sm:$0xf0]  ;;  %v121_v15 = vld [vmem:[#allocation2 + $0x130] sm:$0xff] }
  0xb3   :  { %1095 = vst.msk [vmem:[#allocation2 + $0x108] sm:$0xff] %vm18_vm0, %v1030_v60  ;;  %v1130_v21 = vld [vmem:[#allocation2 + $0x8] sm:$0xff]  ;;  %v1549_v39 = vor.u32 %v1801_v19, %v1548_v18  ;;  %v1677_v40 = vor.u32 %v1833_v23, %v1676_v22 }
  0xb4   :  { %v753_v27 = vpop.f32.mrf.mxu2  ;;  %1064 = vst.msk [vmem:[#allocation2 + $0x10] sm:$0xff] %vm18_vm0, %v999_v0  ;;  %v1198_v24 = vadd.f32 %v2244_v5, %v1130_v21  ;;  %v90_v21 = vld [vmem:[#allocation2 + $0x38] sm:$0xff] }
  0xb5   :  { %v922_v28 = vpop.f32.mrf.mxu3 }
  0xb6   :  { %v675_v29 = vpop.f32.mrf.mxu0  ;;  %v923_v50 = vadd.f32 %v922_v28, %v753_v27  ;;  %v1800_v27 = vld [vmem:[%s2853_s0 + $0xb4] sm:$0xf]  ;;  %v1550_v28 = vld [vmem:[%s2853_s0 + $0xb8] sm:$0xf0]  ;;  %v1262_v34 = vmax.f32 %v1198_v24, 0.0 }
  0xb7   :  { %v844_v30 = vpop.f32.mrf.mxu1  ;;  %v1553_v46 = vor.u32 %v1800_v27, %v1550_v28  ;;  %v1803_v27 = vld [vmem:[%s2853_s0 + $0xc4] sm:$0xf0]  ;;  %v1684_v28 = vld [vmem:[%s2853_s0 + $0x1c0] sm:$0xf] }
  0xb8   :  { %v845_v56 = vadd.f32 %v844_v30, %v675_v29  ;;  %v1031_v3 = vadd.f32 %v923_v50, %v117_v55  ;;  %v1293_v29 = vmax.f32 %v1229_v20, 0.0 }
  0xba   :  { %v1000_v6 = vadd.f32 %v845_v56, %v86_v61  ;;  %1096 = vst.msk [vmem:[#allocation2 + $0x110] sm:$0xff] %vm18_vm0, %v1031_v3  ;;  %v1162_v25 = vld [vmem:[#allocation2 + $0x108] sm:$0xff]  ;;  %v1357_v41 = vpack.c.bf16 %v1293_v29, %v1293_v29 }
  0xbb   :  { %v1230_v30 = vadd.f32 %v2244_v5, %v1162_v25  ;;  %v1131_v31 = vld [vmem:[#allocation2 + $0x10] sm:$0xff]  ;;  %v1835_v29 = vld [vmem:[%s2853_s0 + $0x1c4] sm:$0xf0] }
  0xbc   :  { %v755_v47 = vpop.f32.mrf.mxu2  ;;  %1065 = vst.msk [vmem:[#allocation2 + $0x18] sm:$0xff] %vm18_vm0, %v1000_v6  ;;  %v1199_v35 = vadd.f32 %v2244_v5, %v1131_v31  ;;  %v1802_v31 = vld [vmem:[%s2853_s0 + $0xc4] sm:$0xf] }
  0xbd   :  { %v924_v51 = vpop.f32.mrf.mxu3  ;;  %v1294_v42 = vmax.f32 %v1230_v30, 0.0  ;;  %1422 = vst.msk [vmem:[%s2855_s3 + $0x80] sm:$0xf] %vm1389_vm1, %v1357_v41 }
  0xbe   :  { %v678_v57 = vpop.f32.mrf.mxu0  ;;  %v925_v62 = vadd.f32 %v924_v51, %v755_v47  ;;  %v1326_v47 = vpack.c.bf16 %v1262_v34, %v1262_v34  ;;  %v1263_v48 = vmax.f32 %v1199_v35, 0.0  ;;  %v1686_v34 = vld [vmem:[%s2853_s0 + $0x1c8] sm:$0xf0] }
  0xbf   :  { %v847_v63 = vpop.f32.mrf.mxu1 }
  0xc0   :  { %v848_v2 = vadd.f32 %v847_v63, %v678_v57  ;;  %v1032_v7 = vadd.f32 %v925_v62, %v118_v1  ;;  %1391 = vst.msk [vmem:[%s2855_s3 + $0x4] sm:$0xf] %vm1389_vm1, %v1326_v47  ;;  %v120_v62 = vld [vmem:[#allocation2 + $0x128] sm:$0xff]  ;;  %v91_v47 = vld [vmem:[#allocation2 + $0x40] sm:$0xff] }
  0xc1   :  { %717 = vmatmul.bf16.gmra.mxu0 %v1541_v52  ;;  %797 = vmatmul.bf16.gmra.mxu2 %v1669_v53  ;;  %v1163_v37 = vld [vmem:[#allocation2 + $0x110] sm:$0xff]  ;;  %v1681_v52 = vor.u32 %v1832_v32, %v1678_v33  ;;  %v1358_v53 = vpack.c.bf16 %v1294_v42, %v1294_v42  ;;  %v1558_v32 = vld [vmem:[%s2853_s0 + $0xc8] sm:$0xf0]  ;;  %v1834_v33 = vld [vmem:[%s2853_s0 + $0x1c4] sm:$0xf] }
  0xc2   :  { %886 = vmatmul.bf16.gmra.mxu1 %v1545_v58  ;;  %966 = vmatmul.bf16.gmra.mxu3 %v1673_v59  ;;  %v1001_v36 = vadd.f32 %v848_v2, %v87_v4  ;;  %1097 = vst.msk [vmem:[#allocation2 + $0x118] sm:$0xff] %vm18_vm0, %v1032_v7  ;;  %v1231_v43 = vadd.f32 %v2244_v5, %v1163_v37  ;;  %v89_v7 = vld [vmem:[#allocation2 + $0x30] sm:$0xff]  ;;  %v122_v37 = vld [vmem:[#allocation2 + $0x138] sm:$0xff] }
  0xc3   :  { %v1132_v44 = vld [vmem:[#allocation2 + $0x18] sm:$0xff]  ;;  %v1327_v59 = vpack.c.bf16 %v1263_v48, %v1263_v48  ;;  %1423 = vst.msk [vmem:[%s2855_s3 + $0x84] sm:$0xf] %vm1389_vm1, %v1358_v53 }
  0xc4   :  { %v758_v8 = vpop.f32.mrf.mxu2  ;;  %1066 = vst.msk [vmem:[#allocation2 + $0x20] sm:$0xff] %vm18_vm0, %v1001_v36  ;;  %v1200_v49 = vadd.f32 %v2244_v5, %v1132_v44  ;;  %v1295_v54 = vmax.f32 %v1231_v43, 0.0  ;;  %v1561_v44 = vor.u32 %v1802_v31, %v1558_v32 }
  0xc5   :  { %v927_v10 = vpop.f32.mrf.mxu3  ;;  %1392 = vst.msk [vmem:[%s2855_s3 + $0x8] sm:$0xf] %vm1389_vm1, %v1327_v59 }
  0xc6   :  { %v928_v11 = vadd.f32 %v927_v10, %v758_v8  ;;  %v680_v12 = vpop.f32.mrf.mxu0  ;;  %v1264_v60 = vmax.f32 %v1200_v49, 0.0  ;;  %v1359_v63 = vpack.c.bf16 %v1295_v54, %v1295_v54 }
  0xc7   :  { %v849_v14 = vpop.f32.mrf.mxu1 }
  0xc8   :  { %v1033_v16 = vadd.f32 %v928_v11, %v119_v9  ;;  %v850_v17 = vadd.f32 %v849_v14, %v680_v12  ;;  %v1328_v3 = vpack.c.bf16 %v1264_v60, %v1264_v60  ;;  %1424 = vst.msk [vmem:[%s2855_s3 + $0x88] sm:$0xf] %vm1389_vm1, %v1359_v63 }
  0xc9   :  { %v1164_v50 = vld [vmem:[#allocation2 + $0x118] sm:$0xff] }
  0xca   :  { %1098 = vst.msk [vmem:[#allocation2 + $0x120] sm:$0xff] %vm18_vm0, %v1033_v16  ;;  %v1002_v26 = vadd.f32 %v850_v17, %v88_v13  ;;  %v1232_v55 = vadd.f32 %v2244_v5, %v1164_v50 }
  0xcb   :  { %v1133_v56 = vld [vmem:[#allocation2 + $0x20] sm:$0xff]  ;;  %1393 = vst.msk [vmem:[%s2855_s3 + $0xc] sm:$0xf] %vm1389_vm1, %v1328_v3 }
  0xcc   :  { %1067 = vst.msk [vmem:[#allocation2 + $0x28] sm:$0xff] %vm18_vm0, %v1002_v26  ;;  %v760_v38 = vpop.f32.mrf.mxu2  ;;  %v1201_v61 = vadd.f32 %v2244_v5, %v1133_v56  ;;  %v1296_v0 = vmax.f32 %v1232_v55, 0.0  ;;  %v1556_v26 = vld [vmem:[%s2853_s0 + $0xc0] sm:$0xf] }
  0xcd   :  { %v929_v45 = vpop.f32.mrf.mxu3 }
  0xce   :  { %v683_v51 = vpop.f32.mrf.mxu0  ;;  %v930_v57 = vadd.f32 %v929_v45, %v760_v38  ;;  %v1265_v4 = vmax.f32 %v1201_v61, 0.0  ;;  %v1360_v36 = vpack.c.bf16 %v1296_v0, %v1296_v0  ;;  %v1689_v45 = vor.u32 %v1834_v33, %v1686_v34  ;;  %v123_v0 = vld [vmem:[#allocation2 + $0x140] sm:$0xff] }
  0xcf   :  { %v852_v58 = vpop.f32.mrf.mxu1 }
  0xd0   :  { %v853_v2 = vadd.f32 %v852_v58, %v683_v51  ;;  %v1034_v9 = vadd.f32 %v930_v57, %v120_v62  ;;  %v1329_v10 = vpack.c.bf16 %v1265_v4, %v1265_v4  ;;  %1425 = vst.msk [vmem:[%s2855_s3 + $0x8c] sm:$0xf] %vm1389_vm1, %v1360_v36 }
  0xd1   :  { %v1165_v1 = vld [vmem:[#allocation2 + $0x120] sm:$0xff]  ;;  %722 = vmatmul.bf16.gmra.mxu0 %v1549_v39  ;;  %802 = vmatmul.bf16.gmra.mxu2 %v1677_v40  ;;  %v1557_v39 = vor.u32 %v1803_v27, %v1556_v26  ;;  %v1685_v40 = vor.u32 %v1835_v29, %v1684_v28  ;;  %v124_v26 = vld [vmem:[#allocation2 + $0x148] sm:$0xff] }
  0xd2   :  { %v1233_v6 = vadd.f32 %v2244_v5, %v1165_v1  ;;  %891 = vmatmul.bf16.gmra.mxu1 %v1553_v46  ;;  %971 = vmatmul.bf16.gmra.mxu3 %v1681_v52  ;;  %v1003_v14 = vadd.f32 %v853_v2, %v89_v7  ;;  %1394 = vst.msk [vmem:[%s2855_s3 + $0x10] sm:$0xf] %vm1389_vm1, %v1329_v10  ;;  %v92_v7 = vld [vmem:[#allocation2 + $0x48] sm:$0xff] }
  0xd3   :  { %v1134_v8 = vld [vmem:[#allocation2 + $0x28] sm:$0xff]  ;;  %1099 = vst.msk [vmem:[#allocation2 + $0x128] sm:$0xff] %vm18_vm0, %v1034_v9 }
  0xd4   :  { %v1297_v11 = vmax.f32 %v1233_v6, 0.0  ;;  %v1202_v12 = vadd.f32 %v2244_v5, %v1134_v8  ;;  %v763_v13 = vpop.f32.mrf.mxu2  ;;  %1068 = vst.msk [vmem:[#allocation2 + $0x30] sm:$0xff] %vm18_vm0, %v1003_v14 }
  0xd5   :  { %v932_v16 = vpop.f32.mrf.mxu3 }
  0xd6   :  { %v1361_v17 = vpack.c.bf16 %v1297_v11, %v1297_v11  ;;  %v1266_v18 = vmax.f32 %v1202_v12, 0.0  ;;  %v933_v19 = vadd.f32 %v932_v16, %v763_v13  ;;  %v685_v20 = vpop.f32.mrf.mxu0  ;;  %v1564_v11 = vld [vmem:[%s2853_s0 + $0xd0] sm:$0xf]  ;;  %v1805_v12 = vld [vmem:[%s2853_s0 + $0xd4] sm:$0xf0] }
  0xd7   :  { %v854_v22 = vpop.f32.mrf.mxu1  ;;  %v1692_v13 = vld [vmem:[%s2853_s0 + $0x1d0] sm:$0xf]  ;;  %v1565_v28 = vor.u32 %v1805_v12, %v1564_v11  ;;  %v126_v11 = vld [vmem:[#allocation2 + $0x158] sm:$0xff] }
  0xd8   :  { %1426 = vst.msk [vmem:[%s2855_s3 + $0x90] sm:$0xf] %vm1389_vm1, %v1361_v17  ;;  %v1330_v23 = vpack.c.bf16 %v1266_v18, %v1266_v18  ;;  %v1035_v24 = vadd.f32 %v933_v19, %v121_v15  ;;  %v855_v25 = vadd.f32 %v854_v22, %v685_v20  ;;  %v1837_v15 = vld [vmem:[%s2853_s0 + $0x1d4] sm:$0xf0]  ;;  %v1804_v18 = vld [vmem:[%s2853_s0 + $0xd4] sm:$0xf] }
  0xd9   :  { %v1566_v19 = vld [vmem:[%s2853_s0 + $0xd8] sm:$0xf0]  ;;  %v1693_v29 = vor.u32 %v1837_v15, %v1692_v13 }
  0xda   :  { %1395 = vst.msk [vmem:[%s2855_s3 + $0x14] sm:$0xf] %vm1389_vm1, %v1330_v23  ;;  %v1004_v30 = vadd.f32 %v855_v25, %v90_v21  ;;  %v1166_v41 = vld [vmem:[#allocation2 + $0x128] sm:$0xff]  ;;  %v1836_v21 = vld [vmem:[%s2853_s0 + $0x1d4] sm:$0xf] }
  0xdb   :  { %1100 = vst.msk [vmem:[#allocation2 + $0x130] sm:$0xff] %vm18_vm0, %v1035_v24  ;;  %v1234_v46 = vadd.f32 %v2244_v5, %v1166_v41  ;;  %v1135_v49 = vld [vmem:[#allocation2 + $0x30] sm:$0xff]  ;;  %v1694_v22 = vld [vmem:[%s2853_s0 + $0x1d8] sm:$0xf0] }
  0xdc   :  { %1069 = vst.msk [vmem:[#allocation2 + $0x38] sm:$0xff] %vm18_vm0, %v1004_v30  ;;  %v765_v35 = vpop.f32.mrf.mxu2  ;;  %v1203_v53 = vadd.f32 %v2244_v5, %v1135_v49  ;;  %v1569_v30 = vor.u32 %v1804_v18, %v1566_v19  ;;  %v125_v49 = vld [vmem:[#allocation2 + $0x150] sm:$0xff] }
  0xdd   :  { %v934_v38 = vpop.f32.mrf.mxu3  ;;  %v1298_v52 = vmax.f32 %v1234_v46, 0.0 }
  0xde   :  { %v935_v42 = vadd.f32 %v934_v38, %v765_v35  ;;  %v688_v43 = vpop.f32.mrf.mxu0  ;;  %v1267_v57 = vmax.f32 %v1203_v53, 0.0  ;;  %v1697_v35 = vor.u32 %v1836_v21, %v1694_v22  ;;  %v95_v21 = vld [vmem:[#allocation2 + $0x60] sm:$0xff] }
  0xdf   :  { %v857_v48 = vpop.f32.mrf.mxu1  ;;  %v1362_v56 = vpack.c.bf16 %v1298_v52, %v1298_v52 }
  0xe0   :  { %v1036_v50 = vadd.f32 %v935_v42, %v122_v37  ;;  %v858_v51 = vadd.f32 %v857_v48, %v688_v43  ;;  %v1331_v62 = vpack.c.bf16 %v1267_v57, %v1267_v57  ;;  %v93_v37 = vld [vmem:[#allocation2 + $0x50] sm:$0xff] }
  0xe1   :  { %727 = vmatmul.bf16.gmra.mxu0 %v1557_v39  ;;  %807 = vmatmul.bf16.gmra.mxu2 %v1685_v40  ;;  %1427 = vst.msk [vmem:[%s2855_s3 + $0x94] sm:$0xf] %vm1389_vm1, %v1362_v56 }
  0xe2   :  { %v1167_v54 = vld [vmem:[#allocation2 + $0x130] sm:$0xff]  ;;  %1101 = vst.msk [vmem:[#allocation2 + $0x138] sm:$0xff] %vm18_vm0, %v1036_v50  ;;  %v1005_v55 = vadd.f32 %v858_v51, %v91_v47  ;;  %896 = vmatmul.bf16.gmra.mxu1 %v1561_v44  ;;  %976 = vmatmul.bf16.gmra.mxu3 %v1689_v45 }
  0xe3   :  { %v1235_v58 = vadd.f32 %v2244_v5, %v1167_v54  ;;  %v1136_v59 = vld [vmem:[#allocation2 + $0x38] sm:$0xff]  ;;  %1396 = vst.msk [vmem:[%s2855_s3 + $0x18] sm:$0xf] %vm1389_vm1, %v1331_v62  ;;  %v1700_v62 = vld [vmem:[%s2853_s0 + $0x1e0] sm:$0xf] }
  0xe4   :  { %v1204_v60 = vadd.f32 %v2244_v5, %v1136_v59  ;;  %1070 = vst.msk [vmem:[#allocation2 + $0x40] sm:$0xff] %vm18_vm0, %v1005_v55  ;;  %v768_v61 = vpop.f32.mrf.mxu2  ;;  %v94_v55 = vld [vmem:[#allocation2 + $0x58] sm:$0xff] }
  0xe5   :  { %v1299_v63 = vmax.f32 %v1235_v58, 0.0  ;;  %v937_v1 = vpop.f32.mrf.mxu3 }
  0xe6   :  { %v1268_v2 = vmax.f32 %v1204_v60, 0.0  ;;  %v938_v3 = vadd.f32 %v937_v1, %v768_v61  ;;  %v690_v4 = vpop.f32.mrf.mxu0  ;;  %v1572_v60 = vld [vmem:[%s2853_s0 + $0xe0] sm:$0xf]  ;;  %v1807_v61 = vld [vmem:[%s2853_s0 + $0xe4] sm:$0xf0] }
  0xe7   :  { %v1363_v6 = vpack.c.bf16 %v1299_v63, %v1299_v63  ;;  %v859_v36 = vpop.f32.mrf.mxu1  ;;  %v1839_v63 = vld [vmem:[%s2853_s0 + $0x1e4] sm:$0xf0]  ;;  %v1573_v13 = vor.u32 %v1807_v61, %v1572_v60 }
  0xe8   :  { %v1332_v8 = vpack.c.bf16 %v1268_v2, %v1268_v2  ;;  %v1037_v9 = vadd.f32 %v938_v3, %v123_v0  ;;  %v860_v10 = vadd.f32 %v859_v36, %v690_v4  ;;  %v1806_v0 = vld [vmem:[%s2853_s0 + $0xe4] sm:$0xf]  ;;  %v1574_v3 = vld [vmem:[%s2853_s0 + $0xe8] sm:$0xf0] }
  0xe9   :  { %1428 = vst.msk [vmem:[%s2855_s3 + $0x98] sm:$0xf] %vm1389_vm1, %v1363_v6  ;;  %v1168_v14 = vld [vmem:[#allocation2 + $0x138] sm:$0xff]  ;;  %v1702_v36 = vld [vmem:[%s2853_s0 + $0x1e8] sm:$0xf0]  ;;  %v1577_v18 = vor.u32 %v1806_v0, %v1574_v3 }
  0xea   :  { %1397 = vst.msk [vmem:[%s2855_s3 + $0x1c] sm:$0xf] %vm1389_vm1, %v1332_v8  ;;  %v1236_v16 = vadd.f32 %v2244_v5, %v1168_v14  ;;  %v1006_v17 = vadd.f32 %v860_v10, %v92_v7  ;;  %v1838_v7 = vld [vmem:[%s2853_s0 + $0x1e4] sm:$0xf]  ;;  %v1701_v14 = vor.u32 %v1839_v63, %v1700_v62  ;;  %v128_v60 = vld [vmem:[#allocation2 + $0x168] sm:$0xff] }
  0xeb   :  { %v1137_v20 = vld [vmem:[#allocation2 + $0x40] sm:$0xff]  ;;  %1102 = vst.msk [vmem:[#allocation2 + $0x140] sm:$0xff] %vm18_vm0, %v1037_v9  ;;  %v1705_v19 = vor.u32 %v1838_v7, %v1702_v36  ;;  %v97_v7 = vld [vmem:[#allocation2 + $0x70] sm:$0xff] }
  0xec   :  { %v1300_v23 = vmax.f32 %v1236_v16, 0.0  ;;  %v1205_v24 = vadd.f32 %v2244_v5, %v1137_v20  ;;  %1071 = vst.msk [vmem:[#allocation2 + $0x48] sm:$0xff] %vm18_vm0, %v1006_v17  ;;  %v770_v25 = vpop.f32.mrf.mxu2 }
  0xed   :  { %v939_v27 = vpop.f32.mrf.mxu3 }
  0xee   :  { %v1364_v31 = vpack.c.bf16 %v1300_v23, %v1300_v23  ;;  %v1269_v32 = vmax.f32 %v1205_v24, 0.0  ;;  %v940_v33 = vadd.f32 %v939_v27, %v770_v25  ;;  %v693_v34 = vpop.f32.mrf.mxu0 }
  0xef   :  { %v862_v38 = vpop.f32.mrf.mxu1 }
  0xf0   :  { %1429 = vst.msk [vmem:[%s2855_s3 + $0x9c] sm:$0xf] %vm1389_vm1, %v1364_v31  ;;  %v1333_v39 = vpack.c.bf16 %v1269_v32, %v1269_v32  ;;  %v1038_v40 = vadd.f32 %v940_v33, %v124_v26  ;;  %v863_v41 = vadd.f32 %v862_v38, %v693_v34  ;;  %v127_v33 = vld [vmem:[#allocation2 + $0x160] sm:$0xff] }
  0xf1   :  { %732 = vmatmul.bf16.gmra.mxu0 %v1565_v28  ;;  %812 = vmatmul.bf16.gmra.mxu2 %v1693_v29 }
  0xf2   :  { %1398 = vst.msk [vmem:[%s2855_s3 + $0x20] sm:$0xf] %vm1389_vm1, %v1333_v39  ;;  %v1169_v42 = vld [vmem:[#allocation2 + $0x140] sm:$0xff]  ;;  %v1007_v43 = vadd.f32 %v863_v41, %v93_v37  ;;  %901 = vmatmul.bf16.gmra.mxu1 %v1569_v30  ;;  %981 = vmatmul.bf16.gmra.mxu3 %v1697_v35 }
  0xf3   :  { %v1237_v44 = vadd.f32 %v2244_v5, %v1169_v42  ;;  %v1138_v45 = vld [vmem:[#allocation2 + $0x48] sm:$0xff]  ;;  %1103 = vst.msk [vmem:[#allocation2 + $0x148] sm:$0xff] %vm18_vm0, %v1038_v40 }
  0xf4   :  { %v1206_v46 = vadd.f32 %v2244_v5, %v1138_v45  ;;  %1072 = vst.msk [vmem:[#allocation2 + $0x50] sm:$0xff] %vm18_vm0, %v1007_v43  ;;  %v773_v47 = vpop.f32.mrf.mxu2  ;;  %v96_v40 = vld [vmem:[#allocation2 + $0x68] sm:$0xff]  ;;  %v1580_v45 = vld [vmem:[%s2853_s0 + $0xf0] sm:$0xf] }
  0xf5   :  { %v1301_v48 = vmax.f32 %v1237_v44, 0.0  ;;  %v942_v50 = vpop.f32.mrf.mxu3 }
  0xf6   :  { %v1270_v51 = vmax.f32 %v1206_v46, 0.0  ;;  %v943_v52 = vadd.f32 %v942_v50, %v773_v47  ;;  %v695_v53 = vpop.f32.mrf.mxu0  ;;  %v1809_v46 = vld [vmem:[%s2853_s0 + $0xf4] sm:$0xf0]  ;;  %v1708_v47 = vld [vmem:[%s2853_s0 + $0x1f0] sm:$0xf] }
  0xf7   :  { %v1365_v54 = vpack.c.bf16 %v1301_v48, %v1301_v48  ;;  %v864_v56 = vpop.f32.mrf.mxu1  ;;  %v1841_v48 = vld [vmem:[%s2853_s0 + $0x1f4] sm:$0xf0]  ;;  %v1581_v62 = vor.u32 %v1809_v46, %v1580_v45 }
  0xf8   :  { %v1334_v57 = vpack.c.bf16 %v1270_v51, %v1270_v51  ;;  %v1039_v58 = vadd.f32 %v943_v52, %v125_v49  ;;  %v865_v59 = vadd.f32 %v864_v56, %v695_v53  ;;  %v1808_v49 = vld [vmem:[%s2853_s0 + $0xf4] sm:$0xf]  ;;  %v1582_v52 = vld [vmem:[%s2853_s0 + $0xf8] sm:$0xf0]  ;;  %v1709_v63 = vor.u32 %v1841_v48, %v1708_v47 }
  0xf9   :  { %1430 = vst.msk [vmem:[%s2855_s3 + $0xa0] sm:$0xf] %vm1389_vm1, %v1365_v54  ;;  %v1710_v56 = vld [vmem:[%s2853_s0 + $0x1f8] sm:$0xf0]  ;;  %v1585_v3 = vor.u32 %v1808_v49, %v1582_v52 }
  0xfa   :  { %1399 = vst.msk [vmem:[%s2855_s3 + $0x24] sm:$0xf] %vm1389_vm1, %v1334_v57  ;;  %v1170_v1 = vld [vmem:[#allocation2 + $0x148] sm:$0xff]  ;;  %v1008_v2 = vadd.f32 %v865_v59, %v94_v55  ;;  %v1840_v55 = vld [vmem:[%s2853_s0 + $0x1f4] sm:$0xf] }
  0xfb   :  { %v1238_v4 = vadd.f32 %v2244_v5, %v1170_v1  ;;  %v1139_v6 = vld [vmem:[#allocation2 + $0x50] sm:$0xff]  ;;  %1104 = vst.msk [vmem:[#allocation2 + $0x150] sm:$0xff] %vm18_vm0, %v1039_v58 }
  0xfc   :  { %v1207_v8 = vadd.f32 %v2244_v5, %v1139_v6  ;;  %1073 = vst.msk [vmem:[#allocation2 + $0x58] sm:$0xff] %vm18_vm0, %v1008_v2  ;;  %v775_v9 = vpop.f32.mrf.mxu2 }
  0xfd   :  { %v1302_v10 = vmax.f32 %v1238_v4, 0.0  ;;  %v944_v12 = vpop.f32.mrf.mxu3  ;;  %v1713_v4 = vor.u32 %v1840_v55, %v1710_v56  ;;  %v131_v55 = vld [vmem:[#allocation2 + $0x180] sm:$0xff] }
  0xfe   :  { %v1271_v15 = vmax.f32 %v1207_v8, 0.0  ;;  %v945_v16 = vadd.f32 %v944_v12, %v775_v9  ;;  %v698_v17 = vpop.f32.mrf.mxu0 }
  0xff   :  { %v1366_v20 = vpack.c.bf16 %v1302_v10, %v1302_v10  ;;  %v867_v22 = vpop.f32.mrf.mxu1 }
 0x100   :  { %v1335_v23 = vpack.c.bf16 %v1271_v15, %v1271_v15  ;;  %v1040_v24 = vadd.f32 %v945_v16, %v126_v11  ;;  %v868_v25 = vadd.f32 %v867_v22, %v698_v17 }
 0x101   :  { %1431 = vst.msk [vmem:[%s2855_s3 + $0xa4] sm:$0xf] %vm1389_vm1, %v1366_v20  ;;  %737 = vmatmul.bf16.gmra.mxu0 %v1573_v13  ;;  %817 = vmatmul.bf16.gmra.mxu2 %v1701_v14 }
 0x102   :  { %1400 = vst.msk [vmem:[%s2855_s3 + $0x28] sm:$0xf] %vm1389_vm1, %v1335_v23  ;;  %v1171_v26 = vld [vmem:[#allocation2 + $0x150] sm:$0xff]  ;;  %v1009_v27 = vadd.f32 %v868_v25, %v95_v21  ;;  %906 = vmatmul.bf16.gmra.mxu1 %v1577_v18  ;;  %986 = vmatmul.bf16.gmra.mxu3 %v1705_v19 }
 0x103   :  { %v1239_v28 = vadd.f32 %v2244_v5, %v1171_v26  ;;  %v1140_v29 = vld [vmem:[#allocation2 + $0x58] sm:$0xff]  ;;  %1105 = vst.msk [vmem:[#allocation2 + $0x158] sm:$0xff] %vm18_vm0, %v1040_v24  ;;  %v129_v18 = vld [vmem:[#allocation2 + $0x170] sm:$0xff] }
 0x104   :  { %v1208_v30 = vadd.f32 %v2244_v5, %v1140_v29  ;;  %1074 = vst.msk [vmem:[#allocation2 + $0x60] sm:$0xff] %vm18_vm0, %v1009_v27  ;;  %v778_v31 = vpop.f32.mrf.mxu2  ;;  %v98_v24 = vld [vmem:[#allocation2 + $0x78] sm:$0xff] }
 0x105   :  { %v1303_v32 = vmax.f32 %v1239_v28, 0.0  ;;  %v947_v34 = vpop.f32.mrf.mxu3 }
 0x106   :  { %v1272_v35 = vmax.f32 %v1208_v30, 0.0  ;;  %v948_v37 = vadd.f32 %v947_v34, %v778_v31  ;;  %v700_v38 = vpop.f32.mrf.mxu0 }
 0x107   :  { %v1367_v39 = vpack.c.bf16 %v1303_v32, %v1303_v32  ;;  %v869_v41 = vpop.f32.mrf.mxu1 }
 0x108   :  { %v1336_v42 = vpack.c.bf16 %v1272_v35, %v1272_v35  ;;  %v1041_v43 = vadd.f32 %v948_v37, %v127_v33  ;;  %v870_v44 = vadd.f32 %v869_v41, %v700_v38  ;;  %v130_v37 = vld [vmem:[#allocation2 + $0x178] sm:$0xff] }
 0x109   :  { %1432 = vst.msk [vmem:[%s2855_s3 + $0xa8] sm:$0xf] %vm1389_vm1, %v1367_v39 }
 0x10a   :  { %1401 = vst.msk [vmem:[%s2855_s3 + $0x2c] sm:$0xf] %vm1389_vm1, %v1336_v42  ;;  %v1172_v50 = vld [vmem:[#allocation2 + $0x158] sm:$0xff]  ;;  %v1010_v51 = vadd.f32 %v870_v44, %v96_v40 }
 0x10b   :  { %v1240_v53 = vadd.f32 %v2244_v5, %v1172_v50  ;;  %v1141_v54 = vld [vmem:[#allocation2 + $0x60] sm:$0xff]  ;;  %1106 = vst.msk [vmem:[#allocation2 + $0x160] sm:$0xff] %vm18_vm0, %v1041_v43 }
 0x10c   :  { %v1209_v57 = vadd.f32 %v2244_v5, %v1141_v54  ;;  %1075 = vst.msk [vmem:[#allocation2 + $0x68] sm:$0xff] %vm18_vm0, %v1010_v51  ;;  %v780_v58 = vpop.f32.mrf.mxu2  ;;  %v99_v43 = vld [vmem:[#allocation2 + $0x80] sm:$0xff] }
 0x10d   :  { %v1304_v59 = vmax.f32 %v1240_v53, 0.0  ;;  %v949_v61 = vpop.f32.mrf.mxu3 }
 0x10e   :  { %v1273_v0 = vmax.f32 %v1209_v57, 0.0  ;;  %v950_v1 = vadd.f32 %v949_v61, %v780_v58  ;;  %v703_v2 = vpop.f32.mrf.mxu0  ;;  %v100_v61 = vld [vmem:[#allocation2 + $0x88] sm:$0xff] }
 0x10f   :  { %v1368_v6 = vpack.c.bf16 %v1304_v59, %v1304_v59  ;;  %v872_v36 = vpop.f32.mrf.mxu1 }
 0x110   :  { %v1337_v8 = vpack.c.bf16 %v1273_v0, %v1273_v0  ;;  %v1042_v9 = vadd.f32 %v950_v1, %v128_v60  ;;  %v873_v10 = vadd.f32 %v872_v36, %v703_v2 }
 0x111   :  { %1433 = vst.msk [vmem:[%s2855_s3 + $0xac] sm:$0xf] %vm1389_vm1, %v1368_v6  ;;  %742 = vmatmul.bf16.gmra.mxu0 %v1581_v62  ;;  %822 = vmatmul.bf16.gmra.mxu2 %v1709_v63 }
 0x112   :  { %1402 = vst.msk [vmem:[%s2855_s3 + $0x30] sm:$0xf] %vm1389_vm1, %v1337_v8  ;;  %v1173_v11 = vld [vmem:[#allocation2 + $0x160] sm:$0xff]  ;;  %v1011_v12 = vadd.f32 %v873_v10, %v97_v7  ;;  %911 = vmatmul.bf16.gmra.mxu1 %v1585_v3  ;;  %991 = vmatmul.bf16.gmra.mxu3 %v1713_v4 }
 0x113   :  { %v1241_v13 = vadd.f32 %v2244_v5, %v1173_v11  ;;  %v1142_v14 = vld [vmem:[#allocation2 + $0x68] sm:$0xff]  ;;  %1107 = vst.msk [vmem:[#allocation2 + $0x168] sm:$0xff] %vm18_vm0, %v1042_v9 }
 0x114   :  { %v1210_v15 = vadd.f32 %v2244_v5, %v1142_v14  ;;  %1076 = vst.msk [vmem:[#allocation2 + $0x70] sm:$0xff] %vm18_vm0, %v1011_v12  ;;  %v783_v16 = vpop.f32.mrf.mxu2  ;;  %v132_v9 = vld [vmem:[#allocation2 + $0x188] sm:$0xff] }
 0x115   :  { %v1305_v17 = vmax.f32 %v1241_v13, 0.0  ;;  %v952_v19 = vpop.f32.mrf.mxu3 }
 0x116   :  { %v1274_v20 = vmax.f32 %v1210_v15, 0.0  ;;  %v953_v21 = vadd.f32 %v952_v19, %v783_v16  ;;  %v705_v22 = vpop.f32.mrf.mxu0  ;;  %v101_v15 = vld [vmem:[#allocation2 + $0x90] sm:$0xff] }
 0x117   :  { %v1369_v23 = vpack.c.bf16 %v1305_v17, %v1305_v17  ;;  %v874_v25 = vpop.f32.mrf.mxu1 }
 0x118   :  { %v1338_v26 = vpack.c.bf16 %v1274_v20, %v1274_v20  ;;  %v1043_v27 = vadd.f32 %v953_v21, %v129_v18  ;;  %v875_v28 = vadd.f32 %v874_v25, %v705_v22  ;;  %v2666_v21 = vld [vmem:[%s2854_s2] ss:$0 sm:$0xff] }
 0x119   :  { %1434 = vst.msk [vmem:[%s2855_s3 + $0xb0] sm:$0xf] %vm1389_vm1, %v1369_v23 }
 0x11a   :  { %1403 = vst.msk [vmem:[%s2855_s3 + $0x34] sm:$0xf] %vm1389_vm1, %v1338_v26  ;;  %v1174_v29 = vld [vmem:[#allocation2 + $0x168] sm:$0xff]  ;;  %v1012_v30 = vadd.f32 %v875_v28, %v98_v24 }
 0x11b   :  { %v1242_v31 = vadd.f32 %v2244_v5, %v1174_v29  ;;  %v1143_v32 = vld [vmem:[#allocation2 + $0x70] sm:$0xff]  ;;  %1108 = vst.msk [vmem:[#allocation2 + $0x170] sm:$0xff] %vm18_vm0, %v1043_v27 }
 0x11c   :  { %v1211_v33 = vadd.f32 %v2244_v5, %v1143_v32  ;;  %1077 = vst.msk [vmem:[#allocation2 + $0x78] sm:$0xff] %vm18_vm0, %v1012_v30  ;;  %v785_v34 = vpop.f32.mrf.mxu2  ;;  %v133_v27 = vld [vmem:[#allocation2 + $0x190] sm:$0xff] }
 0x11d   :  { %v1306_v35 = vmax.f32 %v1242_v31, 0.0  ;;  %v954_v38 = vpop.f32.mrf.mxu3 }
 0x11e   :  { %v1275_v39 = vmax.f32 %v1211_v33, 0.0  ;;  %v955_v40 = vadd.f32 %v954_v38, %v785_v34  ;;  %v708_v41 = vpop.f32.mrf.mxu0  ;;  %v102_v33 = vld [vmem:[#allocation2 + $0x98] sm:$0xff] }
 0x11f   :  { %v1370_v42 = vpack.c.bf16 %v1306_v35, %v1306_v35  ;;  %v877_v44 = vpop.f32.mrf.mxu1 }
 0x120   :  { %v1339_v45 = vpack.c.bf16 %v1275_v39, %v1275_v39  ;;  %v1044_v46 = vadd.f32 %v955_v40, %v130_v37  ;;  %v878_v47 = vadd.f32 %v877_v44, %v708_v41 }
 0x121   :  { %1435 = vst.msk [vmem:[%s2855_s3 + $0xb4] sm:$0xf] %vm1389_vm1, %v1370_v42 }
 0x122   :  { %1404 = vst.msk [vmem:[%s2855_s3 + $0x38] sm:$0xf] %vm1389_vm1, %v1339_v45  ;;  %v1175_v48 = vld [vmem:[#allocation2 + $0x170] sm:$0xff]  ;;  %v1013_v49 = vadd.f32 %v878_v47, %v99_v43 }
 0x123   :  { %v1243_v50 = vadd.f32 %v2244_v5, %v1175_v48  ;;  %v1144_v51 = vld [vmem:[#allocation2 + $0x78] sm:$0xff]  ;;  %1109 = vst.msk [vmem:[#allocation2 + $0x178] sm:$0xff] %vm18_vm0, %v1044_v46 }
 0x124   :  { %v1212_v52 = vadd.f32 %v2244_v5, %v1144_v51  ;;  %1078 = vst.msk [vmem:[#allocation2 + $0x80] sm:$0xff] %vm18_vm0, %v1013_v49  ;;  %v788_v53 = vpop.f32.mrf.mxu2  ;;  %v134_v46 = vld [vmem:[#allocation2 + $0x198] sm:$0xff] }
 0x125   :  { %v1307_v54 = vmax.f32 %v1243_v50, 0.0  ;;  %v957_v56 = vpop.f32.mrf.mxu3 }
 0x126   :  { %v1276_v57 = vmax.f32 %v1212_v52, 0.0  ;;  %v958_v58 = vadd.f32 %v957_v56, %v788_v53  ;;  %v710_v59 = vpop.f32.mrf.mxu0  ;;  %v103_v52 = vld [vmem:[#allocation2 + $0xa0] sm:$0xff] }
 0x127   :  { %v1371_v60 = vpack.c.bf16 %v1307_v54, %v1307_v54  ;;  %v879_v62 = vpop.f32.mrf.mxu1 }
 0x128   :  { %v1340_v63 = vpack.c.bf16 %v1276_v57, %v1276_v57  ;;  %v1045_v0 = vadd.f32 %v958_v58, %v131_v55  ;;  %v880_v1 = vadd.f32 %v879_v62, %v710_v59 }
 0x129   :  { %1436 = vst.msk [vmem:[%s2855_s3 + $0xb8] sm:$0xf] %vm1389_vm1, %v1371_v60 }
 0x12a   :  { %1405 = vst.msk [vmem:[%s2855_s3 + $0x3c] sm:$0xf] %vm1389_vm1, %v1340_v63  ;;  %v1176_v2 = vld [vmem:[#allocation2 + $0x178] sm:$0xff]  ;;  %v1014_v3 = vadd.f32 %v880_v1, %v100_v61 }
 0x12b   :  { %v1244_v4 = vadd.f32 %v2244_v5, %v1176_v2  ;;  %v1145_v6 = vld [vmem:[#allocation2 + $0x80] sm:$0xff]  ;;  %1110 = vst.msk [vmem:[#allocation2 + $0x180] sm:$0xff] %vm18_vm0, %v1045_v0 }
 0x12c   :  { %v1213_v7 = vadd.f32 %v2244_v5, %v1145_v6  ;;  %1079 = vst.msk [vmem:[#allocation2 + $0x88] sm:$0xff] %vm18_vm0, %v1014_v3  ;;  %v790_v36 = vpop.f32.mrf.mxu2  ;;  %v135_v0 = vld [vmem:[#allocation2 + $0x1a0] sm:$0xff] }
 0x12d   :  { %v1308_v8 = vmax.f32 %v1244_v4, 0.0  ;;  %v959_v10 = vpop.f32.mrf.mxu3 }
 0x12e   :  { %v1277_v11 = vmax.f32 %v1213_v7, 0.0  ;;  %v960_v12 = vadd.f32 %v959_v10, %v790_v36  ;;  %v713_v13 = vpop.f32.mrf.mxu0  ;;  %v104_v7 = vld [vmem:[#allocation2 + $0xa8] sm:$0xff] }
 0x12f   :  { %v1372_v14 = vpack.c.bf16 %v1308_v8, %v1308_v8  ;;  %v882_v16 = vpop.f32.mrf.mxu1 }
 0x130   :  { %v1341_v17 = vpack.c.bf16 %v1277_v11, %v1277_v11  ;;  %v1046_v18 = vadd.f32 %v960_v12, %v132_v9  ;;  %v883_v19 = vadd.f32 %v882_v16, %v713_v13 }
 0x131   :  { %1437 = vst.msk [vmem:[%s2855_s3 + $0xbc] sm:$0xf] %vm1389_vm1, %v1372_v14 }
 0x132   :  { %1406 = vst.msk [vmem:[%s2855_s3 + $0x40] sm:$0xf] %vm1389_vm1, %v1341_v17  ;;  %v1177_v5 = vld [vmem:[#allocation2 + $0x180] sm:$0xff]  ;;  %v1015_v20 = vadd.f32 %v883_v19, %v101_v15 }
 0x133   :  { %v1245_v22 = vadd.f32 %v2666_v21, %v1177_v5  ;;  %v1146_v23 = vld [vmem:[#allocation2 + $0x88] sm:$0xff]  ;;  %1111 = vst.msk [vmem:[#allocation2 + $0x188] sm:$0xff] %vm18_vm0, %v1046_v18 }
 0x134   :  { %v1214_v24 = vadd.f32 %v2666_v21, %v1146_v23  ;;  %1080 = vst.msk [vmem:[#allocation2 + $0x90] sm:$0xff] %vm18_vm0, %v1015_v20  ;;  %v793_v25 = vpop.f32.mrf.mxu2  ;;  %v136_v18 = vld [vmem:[#allocation2 + $0x1a8] sm:$0xff] }
 0x135   :  { %v1309_v26 = vmax.f32 %v1245_v22, 0.0  ;;  %v962_v28 = vpop.f32.mrf.mxu3 }
 0x136   :  { %v1278_v29 = vmax.f32 %v1214_v24, 0.0  ;;  %v963_v30 = vadd.f32 %v962_v28, %v793_v25  ;;  %v715_v31 = vpop.f32.mrf.mxu0  ;;  %v105_v24 = vld [vmem:[#allocation2 + $0xb0] sm:$0xff] }
 0x137   :  { %v1373_v32 = vpack.c.bf16 %v1309_v26, %v1309_v26  ;;  %v884_v34 = vpop.f32.mrf.mxu1 }
 0x138   :  { %v1342_v35 = vpack.c.bf16 %v1278_v29, %v1278_v29  ;;  %v1047_v37 = vadd.f32 %v963_v30, %v133_v27  ;;  %v885_v38 = vadd.f32 %v884_v34, %v715_v31 }
 0x139   :  { %1438 = vst.msk [vmem:[%s2855_s3 + $0xc0] sm:$0xf] %vm1389_vm1, %v1373_v32 }
 0x13a   :  { %1407 = vst.msk [vmem:[%s2855_s3 + $0x44] sm:$0xf] %vm1389_vm1, %v1342_v35  ;;  %v1178_v39 = vld [vmem:[#allocation2 + $0x188] sm:$0xff]  ;;  %v1016_v40 = vadd.f32 %v885_v38, %v102_v33 }
 0x13b   :  { %v1246_v41 = vadd.f32 %v2666_v21, %v1178_v39  ;;  %v1147_v42 = vld [vmem:[#allocation2 + $0x90] sm:$0xff]  ;;  %1112 = vst.msk [vmem:[#allocation2 + $0x190] sm:$0xff] %vm18_vm0, %v1047_v37 }
 0x13c   :  { %v1215_v43 = vadd.f32 %v2666_v21, %v1147_v42  ;;  %1081 = vst.msk [vmem:[#allocation2 + $0x98] sm:$0xff] %vm18_vm0, %v1016_v40  ;;  %v795_v44 = vpop.f32.mrf.mxu2  ;;  %v137_v37 = vld [vmem:[#allocation2 + $0x1b0] sm:$0xff] }
 0x13d   :  { %v1310_v45 = vmax.f32 %v1246_v41, 0.0  ;;  %v964_v47 = vpop.f32.mrf.mxu3 }
 0x13e   :  { %v1279_v48 = vmax.f32 %v1215_v43, 0.0  ;;  %v965_v49 = vadd.f32 %v964_v47, %v795_v44  ;;  %v718_v50 = vpop.f32.mrf.mxu0  ;;  %v106_v43 = vld [vmem:[#allocation2 + $0xb8] sm:$0xff] }
 0x13f   :  { %v1374_v51 = vpack.c.bf16 %v1310_v45, %v1310_v45  ;;  %v887_v53 = vpop.f32.mrf.mxu1 }
 0x140   :  { %v1343_v54 = vpack.c.bf16 %v1279_v48, %v1279_v48  ;;  %v1048_v55 = vadd.f32 %v965_v49, %v134_v46  ;;  %v888_v56 = vadd.f32 %v887_v53, %v718_v50 }
 0x141   :  { %1439 = vst.msk [vmem:[%s2855_s3 + $0xc4] sm:$0xf] %vm1389_vm1, %v1374_v51 }
 0x142   :  { %1408 = vst.msk [vmem:[%s2855_s3 + $0x48] sm:$0xf] %vm1389_vm1, %v1343_v54  ;;  %v1179_v57 = vld [vmem:[#allocation2 + $0x190] sm:$0xff]  ;;  %v1017_v58 = vadd.f32 %v888_v56, %v103_v52 }
 0x143   :  { %v1247_v59 = vadd.f32 %v2666_v21, %v1179_v57  ;;  %v1148_v60 = vld [vmem:[#allocation2 + $0x98] sm:$0xff]  ;;  %1113 = vst.msk [vmem:[#allocation2 + $0x198] sm:$0xff] %vm18_vm0, %v1048_v55 }
 0x144   :  { %v1216_v61 = vadd.f32 %v2666_v21, %v1148_v60  ;;  %1082 = vst.msk [vmem:[#allocation2 + $0xa0] sm:$0xff] %vm18_vm0, %v1017_v58  ;;  %v798_v62 = vpop.f32.mrf.mxu2  ;;  %v138_v55 = vld [vmem:[#allocation2 + $0x1b8] sm:$0xff] }
 0x145   :  { %v1311_v63 = vmax.f32 %v1247_v59, 0.0  ;;  %v967_v1 = vpop.f32.mrf.mxu3 }
 0x146   :  { %v1280_v2 = vmax.f32 %v1216_v61, 0.0  ;;  %v968_v3 = vadd.f32 %v967_v1, %v798_v62  ;;  %v720_v4 = vpop.f32.mrf.mxu0  ;;  %v107_v61 = vld [vmem:[#allocation2 + $0xc0] sm:$0xff] }
 0x147   :  { %v1375_v6 = vpack.c.bf16 %v1311_v63, %v1311_v63  ;;  %v889_v36 = vpop.f32.mrf.mxu1 }
 0x148   :  { %v1344_v8 = vpack.c.bf16 %v1280_v2, %v1280_v2  ;;  %v1049_v9 = vadd.f32 %v968_v3, %v135_v0  ;;  %v890_v10 = vadd.f32 %v889_v36, %v720_v4 }
 0x149   :  { %1440 = vst.msk [vmem:[%s2855_s3 + $0xc8] sm:$0xf] %vm1389_vm1, %v1375_v6 }
 0x14a   :  { %1409 = vst.msk [vmem:[%s2855_s3 + $0x4c] sm:$0xf] %vm1389_vm1, %v1344_v8  ;;  %v1180_v11 = vld [vmem:[#allocation2 + $0x198] sm:$0xff]  ;;  %v1018_v12 = vadd.f32 %v890_v10, %v104_v7 }
 0x14b   :  { %v1248_v13 = vadd.f32 %v2666_v21, %v1180_v11  ;;  %v1149_v14 = vld [vmem:[#allocation2 + $0xa0] sm:$0xff]  ;;  %1114 = vst.msk [vmem:[#allocation2 + $0x1a0] sm:$0xff] %vm18_vm0, %v1049_v9 }
 0x14c   :  { %v1217_v15 = vadd.f32 %v2666_v21, %v1149_v14  ;;  %1083 = vst.msk [vmem:[#allocation2 + $0xa8] sm:$0xff] %vm18_vm0, %v1018_v12  ;;  %v800_v16 = vpop.f32.mrf.mxu2  ;;  %v139_v9 = vld [vmem:[#allocation2 + $0x1c0] sm:$0xff] }
 0x14d   :  { %v1312_v17 = vmax.f32 %v1248_v13, 0.0  ;;  %v969_v19 = vpop.f32.mrf.mxu3 }
 0x14e   :  { %v1281_v5 = vmax.f32 %v1217_v15, 0.0  ;;  %v970_v20 = vadd.f32 %v969_v19, %v800_v16  ;;  %v723_v22 = vpop.f32.mrf.mxu0  ;;  %v108_v15 = vld [vmem:[#allocation2 + $0xc8] sm:$0xff] }
 0x14f   :  { %v1376_v23 = vpack.c.bf16 %v1312_v17, %v1312_v17  ;;  %v892_v25 = vpop.f32.mrf.mxu1 }
 0x150   :  { %v1345_v26 = vpack.c.bf16 %v1281_v5, %v1281_v5  ;;  %v1050_v27 = vadd.f32 %v970_v20, %v136_v18  ;;  %v893_v28 = vadd.f32 %v892_v25, %v723_v22 }
 0x151   :  { %1441 = vst.msk [vmem:[%s2855_s3 + $0xcc] sm:$0xf] %vm1389_vm1, %v1376_v23 }
 0x152   :  { %1410 = vst.msk [vmem:[%s2855_s3 + $0x50] sm:$0xf] %vm1389_vm1, %v1345_v26  ;;  %v1181_v29 = vld [vmem:[#allocation2 + $0x1a0] sm:$0xff]  ;;  %v1019_v30 = vadd.f32 %v893_v28, %v105_v24 }
 0x153   :  { %v1249_v31 = vadd.f32 %v2666_v21, %v1181_v29  ;;  %v1150_v32 = vld [vmem:[#allocation2 + $0xa8] sm:$0xff]  ;;  %1115 = vst.msk [vmem:[#allocation2 + $0x1a8] sm:$0xff] %vm18_vm0, %v1050_v27 }
 0x154   :  { %v1218_v33 = vadd.f32 %v2666_v21, %v1150_v32  ;;  %1084 = vst.msk [vmem:[#allocation2 + $0xb0] sm:$0xff] %vm18_vm0, %v1019_v30  ;;  %v803_v34 = vpop.f32.mrf.mxu2  ;;  %v140_v27 = vld [vmem:[#allocation2 + $0x1c8] sm:$0xff] }
 0x155   :  { %v1313_v35 = vmax.f32 %v1249_v31, 0.0  ;;  %v972_v38 = vpop.f32.mrf.mxu3 }
 0x156   :  { %v1282_v39 = vmax.f32 %v1218_v33, 0.0  ;;  %v973_v40 = vadd.f32 %v972_v38, %v803_v34  ;;  %v725_v41 = vpop.f32.mrf.mxu0  ;;  %v109_v33 = vld [vmem:[#allocation2 + $0xd0] sm:$0xff] }
 0x157   :  { %v1377_v42 = vpack.c.bf16 %v1313_v35, %v1313_v35  ;;  %v894_v44 = vpop.f32.mrf.mxu1 }
 0x158   :  { %v1346_v45 = vpack.c.bf16 %v1282_v39, %v1282_v39  ;;  %v1051_v46 = vadd.f32 %v973_v40, %v137_v37  ;;  %v895_v47 = vadd.f32 %v894_v44, %v725_v41 }
 0x159   :  { %1442 = vst.msk [vmem:[%s2855_s3 + $0xd0] sm:$0xf] %vm1389_vm1, %v1377_v42 }
 0x15a   :  { %1411 = vst.msk [vmem:[%s2855_s3 + $0x54] sm:$0xf] %vm1389_vm1, %v1346_v45  ;;  %v1182_v48 = vld [vmem:[#allocation2 + $0x1a8] sm:$0xff]  ;;  %v1020_v49 = vadd.f32 %v895_v47, %v106_v43 }
 0x15b   :  { %v1250_v50 = vadd.f32 %v2666_v21, %v1182_v48  ;;  %v1151_v51 = vld [vmem:[#allocation2 + $0xb0] sm:$0xff]  ;;  %1116 = vst.msk [vmem:[#allocation2 + $0x1b0] sm:$0xff] %vm18_vm0, %v1051_v46 }
 0x15c   :  { %v1219_v52 = vadd.f32 %v2666_v21, %v1151_v51  ;;  %1085 = vst.msk [vmem:[#allocation2 + $0xb8] sm:$0xff] %vm18_vm0, %v1020_v49  ;;  %v805_v53 = vpop.f32.mrf.mxu2  ;;  %v141_v46 = vld [vmem:[#allocation2 + $0x1d0] sm:$0xff] }
 0x15d   :  { %v1314_v54 = vmax.f32 %v1250_v50, 0.0  ;;  %v974_v56 = vpop.f32.mrf.mxu3 }
 0x15e   :  { %v1283_v57 = vmax.f32 %v1219_v52, 0.0  ;;  %v975_v58 = vadd.f32 %v974_v56, %v805_v53  ;;  %v728_v59 = vpop.f32.mrf.mxu0  ;;  %v110_v52 = vld [vmem:[#allocation2 + $0xd8] sm:$0xff] }
 0x15f   :  { %v1378_v60 = vpack.c.bf16 %v1314_v54, %v1314_v54  ;;  %v897_v62 = vpop.f32.mrf.mxu1 }
 0x160   :  { %v1347_v63 = vpack.c.bf16 %v1283_v57, %v1283_v57  ;;  %v1052_v0 = vadd.f32 %v975_v58, %v138_v55  ;;  %v898_v1 = vadd.f32 %v897_v62, %v728_v59 }
 0x161   :  { %1443 = vst.msk [vmem:[%s2855_s3 + $0xd4] sm:$0xf] %vm1389_vm1, %v1378_v60 }
 0x162   :  { %1412 = vst.msk [vmem:[%s2855_s3 + $0x58] sm:$0xf] %vm1389_vm1, %v1347_v63  ;;  %v1183_v2 = vld [vmem:[#allocation2 + $0x1b0] sm:$0xff]  ;;  %v1021_v3 = vadd.f32 %v898_v1, %v107_v61 }
 0x163   :  { %v1251_v4 = vadd.f32 %v2666_v21, %v1183_v2  ;;  %v1152_v6 = vld [vmem:[#allocation2 + $0xb8] sm:$0xff]  ;;  %1117 = vst.msk [vmem:[#allocation2 + $0x1b8] sm:$0xff] %vm18_vm0, %v1052_v0 }
 0x164   :  { %v1220_v7 = vadd.f32 %v2666_v21, %v1152_v6  ;;  %1086 = vst.msk [vmem:[#allocation2 + $0xc0] sm:$0xff] %vm18_vm0, %v1021_v3  ;;  %v808_v36 = vpop.f32.mrf.mxu2  ;;  %v142_v0 = vld [vmem:[#allocation2 + $0x1d8] sm:$0xff] }
 0x165   :  { %v1315_v8 = vmax.f32 %v1251_v4, 0.0  ;;  %v977_v10 = vpop.f32.mrf.mxu3 }
 0x166   :  { %v1284_v11 = vmax.f32 %v1220_v7, 0.0  ;;  %v978_v12 = vadd.f32 %v977_v10, %v808_v36  ;;  %v730_v13 = vpop.f32.mrf.mxu0  ;;  %v111_v7 = vld [vmem:[#allocation2 + $0xe0] sm:$0xff] }
 0x167   :  { %v1379_v14 = vpack.c.bf16 %v1315_v8, %v1315_v8  ;;  %v899_v16 = vpop.f32.mrf.mxu1 }
 0x168   :  { %v1348_v17 = vpack.c.bf16 %v1284_v11, %v1284_v11  ;;  %v1053_v18 = vadd.f32 %v978_v12, %v139_v9  ;;  %v900_v19 = vadd.f32 %v899_v16, %v730_v13 }
 0x169   :  { %1444 = vst.msk [vmem:[%s2855_s3 + $0xd8] sm:$0xf] %vm1389_vm1, %v1379_v14 }
 0x16a   :  { %1413 = vst.msk [vmem:[%s2855_s3 + $0x5c] sm:$0xf] %vm1389_vm1, %v1348_v17  ;;  %v1184_v5 = vld [vmem:[#allocation2 + $0x1b8] sm:$0xff]  ;;  %v1022_v20 = vadd.f32 %v900_v19, %v108_v15 }
 0x16b   :  { %v1252_v22 = vadd.f32 %v2666_v21, %v1184_v5  ;;  %v1153_v23 = vld [vmem:[#allocation2 + $0xc0] sm:$0xff]  ;;  %1118 = vst.msk [vmem:[#allocation2 + $0x1c0] sm:$0xff] %vm18_vm0, %v1053_v18 }
 0x16c   :  { %v1221_v24 = vadd.f32 %v2666_v21, %v1153_v23  ;;  %1087 = vst.msk [vmem:[#allocation2 + $0xc8] sm:$0xff] %vm18_vm0, %v1022_v20  ;;  %v810_v25 = vpop.f32.mrf.mxu2  ;;  %v143_v18 = vld [vmem:[#allocation2 + $0x1e0] sm:$0xff] }
 0x16d   :  { %v1316_v26 = vmax.f32 %v1252_v22, 0.0  ;;  %v979_v28 = vpop.f32.mrf.mxu3 }
 0x16e   :  { %v1285_v29 = vmax.f32 %v1221_v24, 0.0  ;;  %v980_v30 = vadd.f32 %v979_v28, %v810_v25  ;;  %v733_v31 = vpop.f32.mrf.mxu0  ;;  %v112_v24 = vld [vmem:[#allocation2 + $0xe8] sm:$0xff] }
 0x16f   :  { %v1380_v32 = vpack.c.bf16 %v1316_v26, %v1316_v26  ;;  %v902_v34 = vpop.f32.mrf.mxu1 }
 0x170   :  { %v1349_v35 = vpack.c.bf16 %v1285_v29, %v1285_v29  ;;  %v1054_v37 = vadd.f32 %v980_v30, %v140_v27  ;;  %v903_v38 = vadd.f32 %v902_v34, %v733_v31 }
 0x171   :  { %1445 = vst.msk [vmem:[%s2855_s3 + $0xdc] sm:$0xf] %vm1389_vm1, %v1380_v32 }
 0x172   :  { %1414 = vst.msk [vmem:[%s2855_s3 + $0x60] sm:$0xf] %vm1389_vm1, %v1349_v35  ;;  %v1185_v39 = vld [vmem:[#allocation2 + $0x1c0] sm:$0xff]  ;;  %v1023_v40 = vadd.f32 %v903_v38, %v109_v33 }
 0x173   :  { %v1253_v41 = vadd.f32 %v2666_v21, %v1185_v39  ;;  %v1154_v42 = vld [vmem:[#allocation2 + $0xc8] sm:$0xff]  ;;  %1119 = vst.msk [vmem:[#allocation2 + $0x1c8] sm:$0xff] %vm18_vm0, %v1054_v37 }
 0x174   :  { %v1222_v43 = vadd.f32 %v2666_v21, %v1154_v42  ;;  %1088 = vst.msk [vmem:[#allocation2 + $0xd0] sm:$0xff] %vm18_vm0, %v1023_v40  ;;  %v813_v44 = vpop.f32.mrf.mxu2  ;;  %v144_v37 = vld [vmem:[#allocation2 + $0x1e8] sm:$0xff] }
 0x175   :  { %v1317_v45 = vmax.f32 %v1253_v41, 0.0  ;;  %v982_v47 = vpop.f32.mrf.mxu3 }
 0x176   :  { %v1286_v48 = vmax.f32 %v1222_v43, 0.0  ;;  %v983_v49 = vadd.f32 %v982_v47, %v813_v44  ;;  %v735_v50 = vpop.f32.mrf.mxu0  ;;  %v113_v43 = vld [vmem:[#allocation2 + $0xf0] sm:$0xff] }
 0x177   :  { %v1381_v51 = vpack.c.bf16 %v1317_v45, %v1317_v45  ;;  %v904_v53 = vpop.f32.mrf.mxu1 }
 0x178   :  { %v1350_v54 = vpack.c.bf16 %v1286_v48, %v1286_v48  ;;  %v1055_v55 = vadd.f32 %v983_v49, %v141_v46  ;;  %v905_v56 = vadd.f32 %v904_v53, %v735_v50 }
 0x179   :  { %1446 = vst.msk [vmem:[%s2855_s3 + $0xe0] sm:$0xf] %vm1389_vm1, %v1381_v51 }
 0x17a   :  { %1415 = vst.msk [vmem:[%s2855_s3 + $0x64] sm:$0xf] %vm1389_vm1, %v1350_v54  ;;  %v1186_v57 = vld [vmem:[#allocation2 + $0x1c8] sm:$0xff]  ;;  %v1024_v58 = vadd.f32 %v905_v56, %v110_v52 }
 0x17b   :  { %v1254_v59 = vadd.f32 %v2666_v21, %v1186_v57  ;;  %v1155_v60 = vld [vmem:[#allocation2 + $0xd0] sm:$0xff]  ;;  %1120 = vst.msk [vmem:[#allocation2 + $0x1d0] sm:$0xff] %vm18_vm0, %v1055_v55 }
 0x17c   :  { %v1223_v61 = vadd.f32 %v2666_v21, %v1155_v60  ;;  %1089 = vst.msk [vmem:[#allocation2 + $0xd8] sm:$0xff] %vm18_vm0, %v1024_v58  ;;  %v815_v62 = vpop.f32.mrf.mxu2  ;;  %v145_v55 = vld [vmem:[#allocation2 + $0x1f0] sm:$0xff] }
 0x17d   :  { %v1318_v63 = vmax.f32 %v1254_v59, 0.0  ;;  %v984_v1 = vpop.f32.mrf.mxu3 }
 0x17e   :  { %v1287_v2 = vmax.f32 %v1223_v61, 0.0  ;;  %v985_v3 = vadd.f32 %v984_v1, %v815_v62  ;;  %v738_v4 = vpop.f32.mrf.mxu0  ;;  %v114_v61 = vld [vmem:[#allocation2 + $0xf8] sm:$0xff] }
 0x17f   :  { %v1382_v6 = vpack.c.bf16 %v1318_v63, %v1318_v63  ;;  %v907_v36 = vpop.f32.mrf.mxu1 }
 0x180   :  { %v1351_v8 = vpack.c.bf16 %v1287_v2, %v1287_v2  ;;  %v1056_v9 = vadd.f32 %v985_v3, %v142_v0  ;;  %v908_v10 = vadd.f32 %v907_v36, %v738_v4 }
 0x181   :  { %1447 = vst.msk [vmem:[%s2855_s3 + $0xe4] sm:$0xf] %vm1389_vm1, %v1382_v6 }
 0x182   :  { %1416 = vst.msk [vmem:[%s2855_s3 + $0x68] sm:$0xf] %vm1389_vm1, %v1351_v8  ;;  %v1187_v11 = vld [vmem:[#allocation2 + $0x1d0] sm:$0xff]  ;;  %v1025_v12 = vadd.f32 %v908_v10, %v111_v7 }
 0x183   :  { %v1255_v13 = vadd.f32 %v2666_v21, %v1187_v11  ;;  %v1156_v14 = vld [vmem:[#allocation2 + $0xd8] sm:$0xff]  ;;  %1121 = vst.msk [vmem:[#allocation2 + $0x1d8] sm:$0xff] %vm18_vm0, %v1056_v9 }
 0x184   :  { %v1224_v15 = vadd.f32 %v2666_v21, %v1156_v14  ;;  %1090 = vst.msk [vmem:[#allocation2 + $0xe0] sm:$0xff] %vm18_vm0, %v1025_v12  ;;  %v818_v16 = vpop.f32.mrf.mxu2  ;;  %v146_v9 = vld [vmem:[#allocation2 + $0x1f8] sm:$0xff] }
 0x185   :  { %v1319_v17 = vmax.f32 %v1255_v13, 0.0  ;;  %v987_v19 = vpop.f32.mrf.mxu3 }
 0x186   :  { %v1288_v5 = vmax.f32 %v1224_v15, 0.0  ;;  %v988_v20 = vadd.f32 %v987_v19, %v818_v16  ;;  %v740_v22 = vpop.f32.mrf.mxu0 }
 0x187   :  { %v1383_v23 = vpack.c.bf16 %v1319_v17, %v1319_v17  ;;  %v909_v25 = vpop.f32.mrf.mxu1 }
 0x188   :  { %v1352_v26 = vpack.c.bf16 %v1288_v5, %v1288_v5  ;;  %v1057_v27 = vadd.f32 %v988_v20, %v143_v18  ;;  %v910_v28 = vadd.f32 %v909_v25, %v740_v22 }
 0x189   :  { %1448 = vst.msk [vmem:[%s2855_s3 + $0xe8] sm:$0xf] %vm1389_vm1, %v1383_v23 }
 0x18a   :  { %1417 = vst.msk [vmem:[%s2855_s3 + $0x6c] sm:$0xf] %vm1389_vm1, %v1352_v26  ;;  %v1188_v29 = vld [vmem:[#allocation2 + $0x1d8] sm:$0xff]  ;;  %v1026_v30 = vadd.f32 %v910_v28, %v112_v24 }
 0x18b   :  { %v1256_v31 = vadd.f32 %v2666_v21, %v1188_v29  ;;  %v1157_v32 = vld [vmem:[#allocation2 + $0xe0] sm:$0xff]  ;;  %1122 = vst.msk [vmem:[#allocation2 + $0x1e0] sm:$0xff] %vm18_vm0, %v1057_v27 }
 0x18c   :  { %v1225_v33 = vadd.f32 %v2666_v21, %v1157_v32  ;;  %1091 = vst.msk [vmem:[#allocation2 + $0xe8] sm:$0xff] %vm18_vm0, %v1026_v30  ;;  %v820_v34 = vpop.f32.mrf.mxu2 }
 0x18d   :  { %v1320_v35 = vmax.f32 %v1256_v31, 0.0  ;;  %v989_v38 = vpop.f32.mrf.mxu3 }
 0x18e   :  { %v1289_v39 = vmax.f32 %v1225_v33, 0.0  ;;  %v990_v40 = vadd.f32 %v989_v38, %v820_v34  ;;  %v743_v41 = vpop.f32.mrf.mxu0 }
 0x18f   :  { %v1384_v42 = vpack.c.bf16 %v1320_v35, %v1320_v35  ;;  %v912_v44 = vpop.f32.mrf.mxu1 }
 0x190   :  { %v1353_v45 = vpack.c.bf16 %v1289_v39, %v1289_v39  ;;  %v1058_v46 = vadd.f32 %v990_v40, %v144_v37  ;;  %v913_v47 = vadd.f32 %v912_v44, %v743_v41 }
 0x191   :  { %1449 = vst.msk [vmem:[%s2855_s3 + $0xec] sm:$0xf] %vm1389_vm1, %v1384_v42 }
 0x192   :  { %1418 = vst.msk [vmem:[%s2855_s3 + $0x70] sm:$0xf] %vm1389_vm1, %v1353_v45  ;;  %v1189_v48 = vld [vmem:[#allocation2 + $0x1e0] sm:$0xff]  ;;  %v1027_v49 = vadd.f32 %v913_v47, %v113_v43 }
 0x193   :  { %v1257_v50 = vadd.f32 %v2666_v21, %v1189_v48  ;;  %v1158_v51 = vld [vmem:[#allocation2 + $0xe8] sm:$0xff]  ;;  %1123 = vst.msk [vmem:[#allocation2 + $0x1e8] sm:$0xff] %vm18_vm0, %v1058_v46 }
 0x194   :  { %v1226_v52 = vadd.f32 %v2666_v21, %v1158_v51  ;;  %1092 = vst.msk [vmem:[#allocation2 + $0xf0] sm:$0xff] %vm18_vm0, %v1027_v49  ;;  %v823_v53 = vpop.f32.mrf.mxu2 }
 0x195   :  { %v1321_v54 = vmax.f32 %v1257_v50, 0.0  ;;  %v992_v56 = vpop.f32.mrf.mxu3 }
 0x196   :  { %v1290_v57 = vmax.f32 %v1226_v52, 0.0  ;;  %v993_v58 = vadd.f32 %v992_v56, %v823_v53  ;;  %v745_v59 = vpop.f32.mrf.mxu0 }
 0x197   :  { %v1385_v60 = vpack.c.bf16 %v1321_v54, %v1321_v54  ;;  %v914_v62 = vpop.f32.mrf.mxu1 }
 0x198   :  { %v1354_v63 = vpack.c.bf16 %v1290_v57, %v1290_v57  ;;  %v1059_v0 = vadd.f32 %v993_v58, %v145_v55  ;;  %v915_v1 = vadd.f32 %v914_v62, %v745_v59 }
 0x199   :  { %1450 = vst.msk [vmem:[%s2855_s3 + $0xf0] sm:$0xf] %vm1389_vm1, %v1385_v60 }
 0x19a   :  { %1419 = vst.msk [vmem:[%s2855_s3 + $0x74] sm:$0xf] %vm1389_vm1, %v1354_v63  ;;  %v1190_v2 = vld [vmem:[#allocation2 + $0x1e8] sm:$0xff]  ;;  %v1028_v3 = vadd.f32 %v915_v1, %v114_v61 }
 0x19b   :  { %v1258_v4 = vadd.f32 %v2666_v21, %v1190_v2  ;;  %v1159_v6 = vld [vmem:[#allocation2 + $0xf0] sm:$0xff]  ;;  %1124 = vst.msk [vmem:[#allocation2 + $0x1f0] sm:$0xff] %vm18_vm0, %v1059_v0 }
 0x19c   :  { %v1227_v7 = vadd.f32 %v2666_v21, %v1159_v6  ;;  %1093 = vst.msk [vmem:[#allocation2 + $0xf8] sm:$0xff] %vm18_vm0, %v1028_v3  ;;  %v825_v36 = vpop.f32.mrf.mxu2 }
 0x19d   :  { %v1322_v8 = vmax.f32 %v1258_v4, 0.0  ;;  %v994_v10 = vpop.f32.mrf.mxu3 }
 0x19e   :  { %v1291_v11 = vmax.f32 %v1227_v7, 0.0  ;;  %v995_v12 = vadd.f32 %v994_v10, %v825_v36 }
 0x19f   :  { %v1386_v13 = vpack.c.bf16 %v1322_v8, %v1322_v8 }
 0x1a0   :  { %v1355_v14 = vpack.c.bf16 %v1291_v11, %v1291_v11  ;;  %v1060_v15 = vadd.f32 %v995_v12, %v146_v9 }
 0x1a1   :  { %1451 = vst.msk [vmem:[%s2855_s3 + $0xf4] sm:$0xf] %vm1389_vm1, %v1386_v13 }
 0x1a2   :  { %1420 = vst.msk [vmem:[%s2855_s3 + $0x78] sm:$0xf] %vm1389_vm1, %v1355_v14  ;;  %v1191_v16 = vld [vmem:[#allocation2 + $0x1f0] sm:$0xff] }
 0x1a3   :  { %v1259_v17 = vadd.f32 %v2666_v21, %v1191_v16  ;;  %v1160_v18 = vld [vmem:[#allocation2 + $0xf8] sm:$0xff]  ;;  %1125 = vst.msk [vmem:[#allocation2 + $0x1f8] sm:$0xff] %vm18_vm0, %v1060_v15 }
 0x1a4   :  { %v1228_v19 = vadd.f32 %v2666_v21, %v1160_v18 }
 0x1a5   :  { %v1323_v5 = vmax.f32 %v1259_v17, 0.0 }
 0x1a6   :  { %v1292_v20 = vmax.f32 %v1228_v19, 0.0 }
 0x1a7   :  { %v1387_v22 = vpack.c.bf16 %v1323_v5, %v1323_v5 }
 0x1a8   :  { %v1356_v23 = vpack.c.bf16 %v1292_v20, %v1292_v20 }
 0x1a9   :  { %1452 = vst.msk [vmem:[%s2855_s3 + $0xf8] sm:$0xf] %vm1389_vm1, %v1387_v22 }
 0x1aa   :  { %1421 = vst.msk [vmem:[%s2855_s3 + $0x7c] sm:$0xf] %vm1389_vm1, %v1356_v23  ;;  %v1192_v24 = vld [vmem:[#allocation2 + $0x1f8] sm:$0xff] }
 0x1ab   :  { %v1260_v25 = vadd.f32 %v2666_v21, %v1192_v24 }
 0x1ad   :  { %v1324_v26 = vmax.f32 %v1260_v25, 0.0 }
 0x1af   :  { %v1388_v27 = vpack.c.bf16 %v1324_v26, %v1324_v26 }
 0x1b1   :  { %1453 = vst.msk [vmem:[%s2855_s3 + $0xfc] sm:$0xf] %vm1389_vm1, %v1388_v27 }

// kernel: _resnet_forward.15
= control target key start
LH: loop header
LB: loop body
LE: loop exit
PB: predicated region body
PF: predicated region fallthrough
CT: control target
= control target key end

     0   :  { %s568_s0 = inlined_call_operand.vmem [shape: bf16[9,64,128], index: 0, kind: input, shape index: {}]   ;;  %s569_s1 = inlined_call_operand.vmem [shape: bf16[64,128], index: 1, kind: output, shape index: {}]  }
   0x1   :  { %v237_v0 = vld [vmem:[%s568_s0] sm:$0xff]   ;;  %v400_v16 = vld [vmem:[%s568_s0 + $0x8] sm:$0xff]   ;;  %v401_v55 = vld [vmem:[%s568_s0 + $0x10] sm:$0xff]  }
   0x2   :  { %v403_v1 = vld [vmem:[%s568_s0 + $0x20] sm:$0xff]   ;;  %v238_v3 = vunpack.c.l.bf16 %v237_v0  ;;  %v239_v4 = vunpack.c.h.bf16 %v237_v0  ;;  %v404_v17 = vld [vmem:[%s568_s0 + $0x28] sm:$0xff]   ;;  %v242_v27 = vunpack.c.l.bf16 %v400_v16  ;;  %v243_v28 = vunpack.c.h.bf16 %v400_v16  ;;  %v405_v60 = vld [vmem:[%s568_s0 + $0x30] sm:$0xff]  }
   0x3   :  { %v407_v2 = vld [vmem:[%s568_s0 + $0x40] sm:$0xff]   ;;  %v254_v5 = vunpack.c.l.bf16 %v403_v1  ;;  %v255_v6 = vunpack.c.h.bf16 %v403_v1  ;;  %v408_v25 = vld [vmem:[%s568_s0 + $0x48] sm:$0xff]   ;;  %v258_v29 = vunpack.c.l.bf16 %v404_v17  ;;  %v259_v30 = vunpack.c.h.bf16 %v404_v17 }
   0x4   :  { %v411_v7 = vld [vmem:[%s568_s0 + $0x60] sm:$0xff]   ;;  %v270_v8 = vunpack.c.l.bf16 %v407_v2  ;;  %v271_v9 = vunpack.c.h.bf16 %v407_v2  ;;  %v412_v35 = vld [vmem:[%s568_s0 + $0x68] sm:$0xff]   ;;  %v274_v38 = vunpack.c.l.bf16 %v408_v25  ;;  %v275_v39 = vunpack.c.h.bf16 %v408_v25  ;;  %v417_v25 = vld [vmem:[%s568_s0 + $0x90] sm:$0xff]  }
   0x5   :  { %v415_v10 = vld [vmem:[%s568_s0 + $0x80] sm:$0xff]   ;;  %v286_v12 = vunpack.c.l.bf16 %v411_v7  ;;  %v287_v13 = vunpack.c.h.bf16 %v411_v7  ;;  %v152_v14 = vmax.f32 %v238_v3, %v254_v5  ;;  %v160_v15 = vmax.f32 %v239_v4, %v255_v6  ;;  %v416_v40 = vld [vmem:[%s568_s0 + $0x88] sm:$0xff]   ;;  %v409_v6 = vld [vmem:[%s568_s0 + $0x50] sm:$0xff]  }
   0x6   :  { %v419_v11 = vld [vmem:[%s568_s0 + $0xa0] sm:$0xff]   ;;  %v302_v18 = vunpack.c.l.bf16 %v415_v10  ;;  %v303_v20 = vunpack.c.h.bf16 %v415_v10  ;;  %v420_v45 = vld [vmem:[%s568_s0 + $0xa8] sm:$0xff]   ;;  %v290_v46 = vunpack.c.l.bf16 %v412_v35  ;;  %v291_v47 = vunpack.c.h.bf16 %v412_v35  ;;  %v402_v35 = vld [vmem:[%s568_s0 + $0x18] sm:$0xff]  }
   0x7   :  { %v423_v19 = vld [vmem:[%s568_s0 + $0xc0] sm:$0xff]   ;;  %v318_v21 = vunpack.c.l.bf16 %v419_v11  ;;  %v153_v23 = vmax.f32 %v152_v14, %v270_v8  ;;  %v161_v24 = vmax.f32 %v160_v15, %v271_v9  ;;  %v319_v31 = vunpack.c.h.bf16 %v419_v11  ;;  %v424_v48 = vld [vmem:[%s568_s0 + $0xc8] sm:$0xff]   ;;  %v413_v11 = vld [vmem:[%s568_s0 + $0x70] sm:$0xff]  }
   0x8   :  { %v427_v22 = vld [vmem:[%s568_s0 + $0xe0] sm:$0xff]   ;;  %v334_v32 = vunpack.c.l.bf16 %v423_v19  ;;  %v335_v36 = vunpack.c.h.bf16 %v423_v19  ;;  %v168_v49 = vmax.f32 %v242_v27, %v258_v29  ;;  %v176_v50 = vmax.f32 %v243_v28, %v259_v30  ;;  %v428_v1 = vld [vmem:[%s568_s0 + $0xe8] sm:$0xff]   ;;  %v421_v28 = vld [vmem:[%s568_s0 + $0xb0] sm:$0xff]  }
   0x9   :  { %v431_v26 = vld [vmem:[%s568_s0 + $0x100] sm:$0xff]   ;;  %v154_v33 = vmax.f32 %v153_v23, %v286_v12  ;;  %v162_v34 = vmax.f32 %v161_v24, %v287_v13  ;;  %v350_v37 = vunpack.c.l.bf16 %v427_v22  ;;  %v351_v41 = vunpack.c.h.bf16 %v427_v22 }
   0xa   :  { %v366_v42 = vunpack.c.l.bf16 %v431_v26  ;;  %v367_v51 = vunpack.c.h.bf16 %v431_v26  ;;  %v306_v54 = vunpack.c.l.bf16 %v416_v40  ;;  %v307_v56 = vunpack.c.h.bf16 %v416_v40  ;;  %v406_v40 = vld [vmem:[%s568_s0 + $0x38] sm:$0xff]  }
   0xb   :  { %v155_v43 = vmax.f32 %v154_v33, %v302_v18  ;;  %v163_v44 = vmax.f32 %v162_v34, %v303_v20  ;;  %v322_v57 = vunpack.c.l.bf16 %v420_v45  ;;  %v169_v58 = vmax.f32 %v168_v49, %v274_v38  ;;  %v432_v18 = vld [vmem:[%s568_s0 + $0x108] sm:$0xff]  }
   0xc   :  { %v177_v59 = vmax.f32 %v176_v50, %v275_v39  ;;  %v323_v63 = vunpack.c.h.bf16 %v420_v45  ;;  %v338_v0 = vunpack.c.l.bf16 %v424_v48  ;;  %v246_v4 = vunpack.c.l.bf16 %v401_v55  ;;  %v425_v45 = vld [vmem:[%s568_s0 + $0xd0] sm:$0xff]   ;;  %v410_v50 = vld [vmem:[%s568_s0 + $0x58] sm:$0xff]  }
   0xd   :  { %v156_v52 = vmax.f32 %v155_v43, %v318_v21  ;;  %v164_v53 = vmax.f32 %v163_v44, %v319_v31  ;;  %v170_v2 = vmax.f32 %v169_v58, %v290_v46  ;;  %v247_v5 = vunpack.c.h.bf16 %v401_v55 }
   0xe   :  { %v178_v3 = vmax.f32 %v177_v59, %v291_v47  ;;  %v262_v9 = vunpack.c.l.bf16 %v405_v60  ;;  %v263_v10 = vunpack.c.h.bf16 %v405_v60  ;;  %v339_v12 = vunpack.c.h.bf16 %v424_v48  ;;  %v414_v60 = vld [vmem:[%s568_s0 + $0x78] sm:$0xff]  }
   0xf   :  { %v157_v61 = vmax.f32 %v156_v52, %v334_v32  ;;  %v165_v62 = vmax.f32 %v164_v53, %v335_v36  ;;  %v354_v13 = vunpack.c.l.bf16 %v428_v1  ;;  %v171_v14 = vmax.f32 %v170_v2, %v306_v54  ;;  %v429_v53 = vld [vmem:[%s568_s0 + $0xf0] sm:$0xff]  }
  0x10   :  { %v179_v15 = vmax.f32 %v178_v3, %v307_v56  ;;  %v278_v19 = vunpack.c.l.bf16 %v409_v6  ;;  %v279_v20 = vunpack.c.h.bf16 %v409_v6  ;;  %v355_v21 = vunpack.c.h.bf16 %v428_v1 }
  0x11   :  { %v158_v7 = vmax.f32 %v157_v61, %v350_v37  ;;  %v166_v8 = vmax.f32 %v165_v62, %v351_v41  ;;  %v172_v22 = vmax.f32 %v171_v14, %v322_v57  ;;  %v294_v24 = vunpack.c.l.bf16 %v413_v11  ;;  %v433_v62 = vld [vmem:[%s568_s0 + $0x110] sm:$0xff]   ;;  %v422_v14 = vld [vmem:[%s568_s0 + $0xb8] sm:$0xff]  }
  0x12   :  { %v180_v23 = vmax.f32 %v179_v15, %v323_v63  ;;  %v295_v27 = vunpack.c.h.bf16 %v413_v11  ;;  %v184_v29 = vmax.f32 %v246_v4, %v262_v9  ;;  %v192_v30 = vmax.f32 %v247_v5, %v263_v10  ;;  %v418_v5 = vld [vmem:[%s568_s0 + $0x98] sm:$0xff]  }
  0x13   :  { %v159_v16 = vmax.f32 %v158_v7, %v366_v42  ;;  %v167_v17 = vmax.f32 %v166_v8, %v367_v51  ;;  %v370_v31 = vunpack.c.l.bf16 %v432_v18  ;;  %v371_v32 = vunpack.c.h.bf16 %v432_v18 }
  0x14   :  { %v173_v33 = vmax.f32 %v172_v22, %v338_v0  ;;  %v181_v34 = vmax.f32 %v180_v23, %v339_v12  ;;  %v310_v36 = vunpack.c.l.bf16 %v417_v25  ;;  %v311_v37 = vunpack.c.h.bf16 %v417_v25 }
  0x15   :  { %v383_v26 = vpack.c.bf16 %v167_v17, %v159_v16  ;;  %v185_v38 = vmax.f32 %v184_v29, %v278_v19  ;;  %v193_v39 = vmax.f32 %v192_v30, %v279_v20  ;;  %v326_v43 = vunpack.c.l.bf16 %v421_v28 }
  0x16   :  { %v174_v41 = vmax.f32 %v173_v33, %v354_v13  ;;  %v182_v42 = vmax.f32 %v181_v34, %v355_v21  ;;  %v327_v44 = vunpack.c.h.bf16 %v421_v28  ;;  %v250_v48 = vunpack.c.l.bf16 %v402_v35  ;;  %v426_v21 = vld [vmem:[%s568_s0 + $0xd8] sm:$0xff]  }
  0x17   :  { %384 = vst [vmem:[%s569_s1] sm:$0xff] %v383_v26   ;;  %v186_v46 = vmax.f32 %v185_v38, %v294_v24  ;;  %v194_v47 = vmax.f32 %v193_v39, %v295_v27  ;;  %v251_v49 = vunpack.c.h.bf16 %v402_v35  ;;  %v266_v54 = vunpack.c.l.bf16 %v406_v40  ;;  %v430_v28 = vld [vmem:[%s568_s0 + $0xf8] sm:$0xff]  }
  0x18   :  { %v175_v51 = vmax.f32 %v174_v41, %v370_v31  ;;  %v183_v52 = vmax.f32 %v182_v42, %v371_v32  ;;  %v267_v55 = vunpack.c.h.bf16 %v406_v40  ;;  %v342_v56 = vunpack.c.l.bf16 %v425_v45  ;;  %v434_v34 = vld [vmem:[%s568_s0 + $0x118] sm:$0xff]  }
  0x19   :  { %v343_v57 = vunpack.c.h.bf16 %v425_v45  ;;  %v187_v58 = vmax.f32 %v186_v46, %v310_v36  ;;  %v195_v59 = vmax.f32 %v194_v47, %v311_v37  ;;  %v282_v63 = vunpack.c.l.bf16 %v410_v50 }
  0x1a   :  { %v388_v61 = vpack.c.bf16 %v183_v52, %v175_v51  ;;  %v283_v0 = vunpack.c.h.bf16 %v410_v50  ;;  %v358_v1 = vunpack.c.l.bf16 %v429_v53  ;;  %v359_v2 = vunpack.c.h.bf16 %v429_v53 }
  0x1b   :  { %v188_v3 = vmax.f32 %v187_v58, %v326_v43  ;;  %v196_v4 = vmax.f32 %v195_v59, %v327_v44  ;;  %v298_v6 = vunpack.c.l.bf16 %v414_v60  ;;  %v299_v7 = vunpack.c.h.bf16 %v414_v60 }
  0x1c   :  { %435 = vst [vmem:[%s569_s1 + $0x8] sm:$0xff] %v388_v61   ;;  %v200_v8 = vmax.f32 %v250_v48, %v266_v54  ;;  %v208_v9 = vmax.f32 %v251_v49, %v267_v55  ;;  %v374_v10 = vunpack.c.l.bf16 %v433_v62  ;;  %v375_v11 = vunpack.c.h.bf16 %v433_v62 }
  0x1d   :  { %v189_v12 = vmax.f32 %v188_v3, %v342_v56  ;;  %v197_v13 = vmax.f32 %v196_v4, %v343_v57  ;;  %v314_v15 = vunpack.c.l.bf16 %v418_v5  ;;  %v315_v16 = vunpack.c.h.bf16 %v418_v5 }
  0x1e   :  { %v201_v17 = vmax.f32 %v200_v8, %v282_v63  ;;  %v209_v18 = vmax.f32 %v208_v9, %v283_v0  ;;  %v330_v22 = vunpack.c.l.bf16 %v422_v14  ;;  %v331_v23 = vunpack.c.h.bf16 %v422_v14 }
  0x1f   :  { %v190_v19 = vmax.f32 %v189_v12, %v358_v1  ;;  %v198_v20 = vmax.f32 %v197_v13, %v359_v2  ;;  %v346_v29 = vunpack.c.l.bf16 %v426_v21  ;;  %v347_v30 = vunpack.c.h.bf16 %v426_v21 }
  0x20   :  { %v202_v24 = vmax.f32 %v201_v17, %v298_v6  ;;  %v210_v25 = vmax.f32 %v209_v18, %v299_v7  ;;  %v362_v35 = vunpack.c.l.bf16 %v430_v28  ;;  %v363_v36 = vunpack.c.h.bf16 %v430_v28 }
  0x21   :  { %v191_v26 = vmax.f32 %v190_v19, %v374_v10  ;;  %v199_v27 = vmax.f32 %v198_v20, %v375_v11  ;;  %v378_v39 = vunpack.c.l.bf16 %v434_v34  ;;  %v379_v40 = vunpack.c.h.bf16 %v434_v34 }
  0x22   :  { %v203_v31 = vmax.f32 %v202_v24, %v314_v15  ;;  %v211_v32 = vmax.f32 %v210_v25, %v315_v16 }
  0x23   :  { %v393_v33 = vpack.c.bf16 %v199_v27, %v191_v26 }
  0x24   :  { %v204_v37 = vmax.f32 %v203_v31, %v330_v22  ;;  %v212_v38 = vmax.f32 %v211_v32, %v331_v23 }
  0x25   :  { %436 = vst [vmem:[%s569_s1 + $0x10] sm:$0xff] %v393_v33  }
  0x26   :  { %v205_v41 = vmax.f32 %v204_v37, %v346_v29  ;;  %v213_v42 = vmax.f32 %v212_v38, %v347_v30 }
  0x28   :  { %v206_v43 = vmax.f32 %v205_v41, %v362_v35  ;;  %v214_v44 = vmax.f32 %v213_v42, %v363_v36 }
  0x2a   :  { %v207_v45 = vmax.f32 %v206_v43, %v378_v39  ;;  %v215_v46 = vmax.f32 %v214_v44, %v379_v40 }
  0x2c   :  { %v398_v47 = vpack.c.bf16 %v215_v46, %v207_v45 }
  0x2e   :  { %437 = vst [vmem:[%s569_s1 + $0x18] sm:$0xff] %v398_v47  }

// kernel: _resnet_forward.16
= control target key start
LH: loop header
LB: loop body
LE: loop exit
PB: predicated region body
PF: predicated region fallthrough
CT: control target
= control target key end

     0   :  { %vm18_vm0 = vcmask 523264   ;;  %vm976_vm1 = vcmask 519168   ;;  %s1957_s1 = inlined_call_operand.vmem [shape: bf16[640,64], index: 1, kind: input, shape index: {}]   ;;  %s1958_s0 = inlined_call_operand.vmem [shape: bf16[128,640], index: 0, kind: input, shape index: {}]   ;;  %s1959_s2 = inlined_call_operand.vmem [shape: f32[1,64], index: 2, kind: input, shape index: {}]   ;;  %s1960_s3 = inlined_call_operand.vmem [shape: bf16[128,64], index: 3, kind: output, shape index: {}]  }
   0x1   :  { %v1364_v0 = vld [vmem:[%s1957_s1 + $0x38] sm:$0xff]  ;;  %v1363_v1 = vld [vmem:[%s1957_s1 + $0x30] sm:$0xff]  ;;  %v1362_v2 = vld [vmem:[%s1957_s1 + $0x28] sm:$0xff] }
   0x2   :  { %1397 = vmatpush.bf16.msra.mxu1 %v1364_v0  ;;  %1398 = vmatpush.bf16.msra.mxu2 %v1364_v0  ;;  %v1361_v3 = vld [vmem:[%s1957_s1 + $0x20] sm:$0xff]  ;;  %v1360_v4 = vld [vmem:[%s1957_s1 + $0x18] sm:$0xff]  ;;  %v1359_v5 = vld [vmem:[%s1957_s1 + $0x10] sm:$0xff] }
   0x3   :  { %1399 = vmatpush.bf16.msra.mxu3 %v1364_v0  ;;  %627 = vmatpush.bf16.msra.mxu0 %v1364_v0  ;;  %v1358_v6 = vld [vmem:[%s1957_s1 + $0x8] sm:$0xff]  ;;  %v1357_v7 = vld [vmem:[%s1957_s1] sm:$0xff]  ;;  %v1039_v8 = vld [vmem:[%s1958_s0 + $0x50] sm:$0xf] }
   0x4   :  { %v1329_v9 = vld [vmem:[%s1958_s0 + $0x60] sm:$0xf0]  ;;  %v1079_v10 = vld [vmem:[%s1958_s0 + $0xa0] sm:$0xf]  ;;  %v1339_v11 = vld [vmem:[%s1958_s0 + $0xb0] sm:$0xf0] }
   0x5   :  { %v1119_v12 = vld [vmem:[%s1958_s0 + $0xf0] sm:$0xf]  ;;  %v1349_v13 = vld [vmem:[%s1958_s0 + $0x100] sm:$0xf0]  ;;  %v999_v14 = vld [vmem:[%s1958_s0] sm:$0xf]  ;;  %v1040_v18 = vor.u32 %v1329_v9, %v1039_v8  ;;  %v1080_v19 = vor.u32 %v1339_v11, %v1079_v10 }
   0x6   :  { %1400 = vmatpush.bf16.msra.mxu1 %v1363_v1  ;;  %1401 = vmatpush.bf16.msra.mxu2 %v1363_v1  ;;  %v1319_v15 = vld [vmem:[%s1958_s0 + $0x10] sm:$0xf0]  ;;  %v1380_v16 = vld [vmem:[%s1957_s1 + $0xb8] sm:$0xff]  ;;  %v1120_v20 = vor.u32 %v1349_v13, %v1119_v12  ;;  %v1378_v28 = vld [vmem:[%s1957_s1 + $0xa8] sm:$0xff] }
   0x7   :  { %1402 = vmatpush.bf16.msra.mxu3 %v1363_v1  ;;  %628 = vmatpush.bf16.msra.mxu0 %v1363_v1  ;;  %v1372_v17 = vld [vmem:[%s1957_s1 + $0x78] sm:$0xff]  ;;  %v1000_v21 = vor.u32 %v1319_v15, %v999_v14  ;;  %v1379_v24 = vld [vmem:[%s1957_s1 + $0xb0] sm:$0xff]  ;;  %v1370_v29 = vld [vmem:[%s1957_s1 + $0x68] sm:$0xff] }
   0x8   :  { %v1388_v22 = vld [vmem:[%s1957_s1 + $0xf8] sm:$0xff]  ;;  %v1371_v25 = vld [vmem:[%s1957_s1 + $0x70] sm:$0xff]  ;;  %v1386_v30 = vld [vmem:[%s1957_s1 + $0xe8] sm:$0xff] }
   0x9   :  { %v1396_v23 = vld [vmem:[%s1957_s1 + $0x138] sm:$0xff]  ;;  %v1387_v26 = vld [vmem:[%s1957_s1 + $0xf0] sm:$0xff]  ;;  %v1394_v31 = vld [vmem:[%s1957_s1 + $0x128] sm:$0xff] }
   0xa   :  { %1403 = vmatpush.bf16.msra.mxu1 %v1362_v2  ;;  %1404 = vmatpush.bf16.msra.mxu2 %v1362_v2  ;;  %v1395_v27 = vld [vmem:[%s1957_s1 + $0x130] sm:$0xff]  ;;  %v1377_v32 = vld [vmem:[%s1957_s1 + $0xa0] sm:$0xff]  ;;  %v1059_v36 = vld [vmem:[%s1958_s0 + $0x78] sm:$0xf] }
   0xb   :  { %1405 = vmatpush.bf16.msra.mxu3 %v1362_v2  ;;  %629 = vmatpush.bf16.msra.mxu0 %v1362_v2  ;;  %v1369_v33 = vld [vmem:[%s1957_s1 + $0x60] sm:$0xff]  ;;  %v1334_v37 = vld [vmem:[%s1958_s0 + $0x88] sm:$0xf0]  ;;  %v1099_v38 = vld [vmem:[%s1958_s0 + $0xc8] sm:$0xf] }
   0xc   :  { %v1385_v34 = vld [vmem:[%s1957_s1 + $0xe0] sm:$0xff]  ;;  %v1344_v39 = vld [vmem:[%s1958_s0 + $0xd8] sm:$0xf0]  ;;  %v1139_v40 = vld [vmem:[%s1958_s0 + $0x118] sm:$0xf]  ;;  %v1060_v46 = vor.u32 %v1334_v37, %v1059_v36 }
   0xd   :  { %v1393_v35 = vld [vmem:[%s1957_s1 + $0x120] sm:$0xff]  ;;  %v1354_v41 = vld [vmem:[%s1958_s0 + $0x128] sm:$0xf0]  ;;  %v1019_v42 = vld [vmem:[%s1958_s0 + $0x28] sm:$0xf]  ;;  %v1100_v47 = vor.u32 %v1344_v39, %v1099_v38 }
   0xe   :  { %1406 = vmatpush.bf16.msra.mxu1 %v1361_v3  ;;  %1407 = vmatpush.bf16.msra.mxu2 %v1361_v3  ;;  %v1324_v43 = vld [vmem:[%s1958_s0 + $0x38] sm:$0xf0]  ;;  %v1140_v48 = vor.u32 %v1354_v41, %v1139_v40  ;;  %v1375_v52 = vld [vmem:[%s1957_s1 + $0x90] sm:$0xff]  ;;  %v1374_v56 = vld [vmem:[%s1957_s1 + $0x88] sm:$0xff] }
   0xf   :  { %1408 = vmatpush.bf16.msra.mxu3 %v1361_v3  ;;  %630 = vmatpush.bf16.msra.mxu0 %v1361_v3  ;;  %v1376_v44 = vld [vmem:[%s1957_s1 + $0x98] sm:$0xff]  ;;  %v1020_v49 = vor.u32 %v1324_v43, %v1019_v42  ;;  %v1367_v53 = vld [vmem:[%s1957_s1 + $0x50] sm:$0xff]  ;;  %v1366_v57 = vld [vmem:[%s1957_s1 + $0x48] sm:$0xff] }
  0x10   :  { %v1368_v45 = vld [vmem:[%s1957_s1 + $0x58] sm:$0xff]  ;;  %v1383_v54 = vld [vmem:[%s1957_s1 + $0xd0] sm:$0xff]  ;;  %v1382_v58 = vld [vmem:[%s1957_s1 + $0xc8] sm:$0xff] }
  0x11   :  { %v1384_v50 = vld [vmem:[%s1957_s1 + $0xd8] sm:$0xff]  ;;  %v1391_v55 = vld [vmem:[%s1957_s1 + $0x110] sm:$0xff]  ;;  %v1390_v59 = vld [vmem:[%s1957_s1 + $0x108] sm:$0xff] }
  0x12   :  { %1409 = vmatpush.bf16.msra.mxu1 %v1360_v4  ;;  %1410 = vmatpush.bf16.msra.mxu2 %v1360_v4  ;;  %v1392_v51 = vld [vmem:[%s1957_s1 + $0x118] sm:$0xff]  ;;  %v1373_v60 = vld [vmem:[%s1957_s1 + $0x80] sm:$0xff]  ;;  %v1007_v2 = vld [vmem:[%s1958_s0 + $0x8] sm:$0xf] }
  0x13   :  { %1411 = vmatpush.bf16.msra.mxu3 %v1360_v4  ;;  %631 = vmatpush.bf16.msra.mxu0 %v1360_v4  ;;  %v1365_v61 = vld [vmem:[%s1957_s1 + $0x40] sm:$0xff]  ;;  %v1001_v1 = vld [vmem:[%s1958_s0 + $0x14] sm:$0xf0]  ;;  %v1320_v3 = vld [vmem:[%s1958_s0 + $0x18] sm:$0xf0] }
  0x14   :  { %v1381_v62 = vld [vmem:[%s1957_s1 + $0xc0] sm:$0xff]  ;;  %v1318_v4 = vld [vmem:[%s1958_s0 + $0xc] sm:$0xf]  ;;  %v1008_v9 = vor.u32 %v1320_v3, %v1007_v2  ;;  %v1027_v14 = vld [vmem:[%s1958_s0 + $0x30] sm:$0xf] }
  0x15   :  { %v1389_v63 = vld [vmem:[%s1957_s1 + $0x100] sm:$0xff]  ;;  %v1322_v12 = vld [vmem:[%s1958_s0 + $0x2c] sm:$0xf]  ;;  %v1332_v36 = vld [vmem:[%s1958_s0 + $0x7c] sm:$0xf] }
  0x16   :  { %1412 = vmatpush.bf16.msra.mxu1 %v1359_v5  ;;  %1413 = vmatpush.bf16.msra.mxu2 %v1359_v5  ;;  %v1317_v0 = vld [vmem:[%s1958_s0 + $0x4] sm:$0xf]  ;;  %v1021_v13 = vld [vmem:[%s1958_s0 + $0x3c] sm:$0xf0]  ;;  %v1061_v37 = vld [vmem:[%s1958_s0 + $0x8c] sm:$0xf0] }
  0x17   :  { %1414 = vmatpush.bf16.msra.mxu3 %v1359_v5  ;;  %632 = vmatpush.bf16.msra.mxu0 %v1359_v5  ;;  %v1009_v5 = vld [vmem:[%s1958_s0 + $0x1c] sm:$0xf0]  ;;  %v1004_v8 = vor.u32 %v1317_v0, %v1001_v1  ;;  %v1325_v15 = vld [vmem:[%s1958_s0 + $0x40] sm:$0xf0]  ;;  %v1335_v39 = vld [vmem:[%s1958_s0 + $0x90] sm:$0xf0] }
  0x18   :  { %v1012_v10 = vor.u32 %v1318_v4, %v1009_v5  ;;  %v1067_v38 = vld [vmem:[%s1958_s0 + $0x80] sm:$0xf]  ;;  %v1333_v40 = vld [vmem:[%s1958_s0 + $0x84] sm:$0xf]  ;;  %v1069_v41 = vld [vmem:[%s1958_s0 + $0x94] sm:$0xf0] }
  0x19   :  { %v1075_v42 = vld [vmem:[%s1958_s0 + $0x88] sm:$0xf]  ;;  %v1336_v43 = vld [vmem:[%s1958_s0 + $0x98] sm:$0xf0]  ;;  %v1343_v0 = vld [vmem:[%s1958_s0 + $0xd4] sm:$0xf] }
  0x1a   :  { %1415 = vmatpush.bf16.msra.mxu1 %v1358_v6  ;;  %1416 = vmatpush.bf16.msra.mxu2 %v1358_v6  ;;  %v1109_v1 = vld [vmem:[%s1958_s0 + $0xe4] sm:$0xf0]  ;;  %v1115_v2 = vld [vmem:[%s1958_s0 + $0xd8] sm:$0xf]  ;;  %v1346_v3 = vld [vmem:[%s1958_s0 + $0xe8] sm:$0xf0] }
  0x1b   :  { %1417 = vmatpush.bf16.msra.mxu3 %v1358_v6  ;;  %633 = vmatpush.bf16.msra.mxu0 %v1358_v6  ;;  %v1015_v6 = vld [vmem:[%s1958_s0 + $0x10] sm:$0xf] }
  0x1e   :  { %1418 = vmatpush.bf16.msra.mxu1 %v1357_v7  ;;  %1419 = vmatpush.bf16.msra.mxu2 %v1357_v7 }
  0x1f   :  { %1420 = vmatpush.bf16.msra.mxu3 %v1357_v7  ;;  %634 = vmatpush.bf16.msra.mxu0 %v1357_v7  ;;  %v1321_v7 = vld [vmem:[%s1958_s0 + $0x20] sm:$0xf0] }
  0x20   :  { %v1016_v11 = vor.u32 %v1321_v7, %v1015_v6  ;;  %v1112_v6 = vor.u32 %v1343_v0, %v1109_v1  ;;  %v1116_v7 = vor.u32 %v1346_v3, %v1115_v2 }
  0x21   :  { %645 = vmatmul.bf16.vlgmr.msra.gmra.mxu1 %v1040_v18  ;;  %655 = vmatmul.bf16.vlgmr.msra.gmra.mxu2 %v1080_v19  ;;  %v1035_v18 = vld [vmem:[%s1958_s0 + $0x38] sm:$0xf]  ;;  %v1326_v19 = vld [vmem:[%s1958_s0 + $0x48] sm:$0xf0] }
  0x22   :  { %725 = vmatpush.bf16.msrb.mxu2 %v1380_v16  ;;  %676 = vmatpush.bf16.msrb.mxu1 %v1372_v17  ;;  %v1323_v16 = vld [vmem:[%s1958_s0 + $0x34] sm:$0xf]  ;;  %v1029_v17 = vld [vmem:[%s1958_s0 + $0x44] sm:$0xf0] }
  0x23   :  { %665 = vmatmul.bf16.vlgmr.msra.gmra.mxu3 %v1120_v20  ;;  %635 = vmatmul.bf16.vlgmr.msra.gmra.mxu0 %v1000_v21  ;;  %v1024_v20 = vor.u32 %v1322_v12, %v1021_v13  ;;  %v1028_v21 = vor.u32 %v1325_v15, %v1027_v14  ;;  %v1348_v12 = vld [vmem:[%s1958_s0 + $0xfc] sm:$0xf]  ;;  %v1129_v13 = vld [vmem:[%s1958_s0 + $0x10c] sm:$0xf0]  ;;  %v1135_v14 = vld [vmem:[%s1958_s0 + $0x100] sm:$0xf] }
  0x24   :  { %774 = vmatpush.bf16.msrb.mxu3 %v1388_v22  ;;  %823 = vmatpush.bf16.msrb.mxu0 %v1396_v23  ;;  %v1032_v22 = vor.u32 %v1323_v16, %v1029_v17  ;;  %v1036_v23 = vor.u32 %v1326_v19, %v1035_v18  ;;  %v1351_v15 = vld [vmem:[%s1958_s0 + $0x110] sm:$0xf0]  ;;  %v1132_v19 = vor.u32 %v1348_v12, %v1129_v13 }
  0x26   :  { %726 = vmatpush.bf16.msrb.mxu2 %v1379_v24  ;;  %677 = vmatpush.bf16.msrb.mxu1 %v1371_v25  ;;  %v1327_v24 = vld [vmem:[%s1958_s0 + $0x54] sm:$0xf]  ;;  %v1041_v25 = vld [vmem:[%s1958_s0 + $0x64] sm:$0xf0] }
  0x28   :  { %775 = vmatpush.bf16.msrb.mxu3 %v1387_v26  ;;  %824 = vmatpush.bf16.msrb.mxu0 %v1395_v27  ;;  %v1047_v26 = vld [vmem:[%s1958_s0 + $0x58] sm:$0xf]  ;;  %v1330_v27 = vld [vmem:[%s1958_s0 + $0x68] sm:$0xf0] }
  0x2a   :  { %727 = vmatpush.bf16.msrb.mxu2 %v1378_v28  ;;  %678 = vmatpush.bf16.msrb.mxu1 %v1370_v29  ;;  %v1328_v28 = vld [vmem:[%s1958_s0 + $0x5c] sm:$0xf]  ;;  %v1049_v29 = vld [vmem:[%s1958_s0 + $0x6c] sm:$0xf0] }
  0x2c   :  { %776 = vmatpush.bf16.msrb.mxu3 %v1386_v30  ;;  %825 = vmatpush.bf16.msrb.mxu0 %v1394_v31  ;;  %v1055_v30 = vld [vmem:[%s1958_s0 + $0x60] sm:$0xf]  ;;  %v1331_v31 = vld [vmem:[%s1958_s0 + $0x70] sm:$0xf0] }
  0x2e   :  { %728 = vmatpush.bf16.msrb.mxu2 %v1377_v32  ;;  %679 = vmatpush.bf16.msrb.mxu1 %v1369_v33  ;;  %v1044_v32 = vor.u32 %v1327_v24, %v1041_v25  ;;  %v1048_v33 = vor.u32 %v1330_v27, %v1047_v26  ;;  %v1352_v27 = vld [vmem:[%s1958_s0 + $0x11c] sm:$0xf] }
  0x30   :  { %777 = vmatpush.bf16.msrb.mxu3 %v1385_v34  ;;  %826 = vmatpush.bf16.msrb.mxu0 %v1393_v35  ;;  %v1052_v34 = vor.u32 %v1328_v28, %v1049_v29  ;;  %v1056_v35 = vor.u32 %v1331_v31, %v1055_v30  ;;  %v1141_v28 = vld [vmem:[%s1958_s0 + $0x12c] sm:$0xf0]  ;;  %v1147_v29 = vld [vmem:[%s1958_s0 + $0x120] sm:$0xf]  ;;  %v1355_v30 = vld [vmem:[%s1958_s0 + $0x130] sm:$0xf0] }
  0x31   :  { %650 = vmatmul.bf16.gmra.mxu1 %v1060_v46  ;;  %660 = vmatmul.bf16.gmra.mxu2 %v1100_v47  ;;  %v1072_v46 = vor.u32 %v1333_v40, %v1069_v41  ;;  %v1076_v47 = vor.u32 %v1336_v43, %v1075_v42  ;;  %v1353_v31 = vld [vmem:[%s1958_s0 + $0x124] sm:$0xf] }
  0x32   :  { %729 = vmatpush.bf16.msrb.mxu2 %v1376_v44  ;;  %680 = vmatpush.bf16.msrb.mxu1 %v1368_v45  ;;  %v1064_v44 = vor.u32 %v1332_v36, %v1061_v37  ;;  %v1068_v45 = vor.u32 %v1335_v39, %v1067_v38  ;;  %v1144_v37 = vor.u32 %v1352_v27, %v1141_v28 }
  0x33   :  { %670 = vmatmul.bf16.gmra.mxu3 %v1140_v48  ;;  %640 = vmatmul.bf16.gmra.mxu0 %v1020_v49  ;;  %v1337_v48 = vld [vmem:[%s1958_s0 + $0xa4] sm:$0xf]  ;;  %v1081_v49 = vld [vmem:[%s1958_s0 + $0xb4] sm:$0xf0]  ;;  %v1148_v38 = vor.u32 %v1355_v30, %v1147_v29 }
  0x34   :  { %778 = vmatpush.bf16.msrb.mxu3 %v1384_v50  ;;  %827 = vmatpush.bf16.msrb.mxu0 %v1392_v51  ;;  %v1087_v50 = vld [vmem:[%s1958_s0 + $0xa8] sm:$0xf]  ;;  %v1340_v51 = vld [vmem:[%s1958_s0 + $0xb8] sm:$0xf0] }
  0x36   :  { %730 = vmatpush.bf16.msrb.mxu2 %v1375_v52  ;;  %681 = vmatpush.bf16.msrb.mxu1 %v1367_v53  ;;  %v1338_v52 = vld [vmem:[%s1958_s0 + $0xac] sm:$0xf]  ;;  %v1089_v53 = vld [vmem:[%s1958_s0 + $0xbc] sm:$0xf0] }
  0x38   :  { %779 = vmatpush.bf16.msrb.mxu3 %v1383_v54  ;;  %828 = vmatpush.bf16.msrb.mxu0 %v1391_v55  ;;  %v1095_v54 = vld [vmem:[%s1958_s0 + $0xb0] sm:$0xf]  ;;  %v1341_v55 = vld [vmem:[%s1958_s0 + $0xc0] sm:$0xf0] }
  0x3a   :  { %731 = vmatpush.bf16.msrb.mxu2 %v1374_v56  ;;  %682 = vmatpush.bf16.msrb.mxu1 %v1366_v57  ;;  %v1084_v56 = vor.u32 %v1337_v48, %v1081_v49  ;;  %v1088_v57 = vor.u32 %v1340_v51, %v1087_v50 }
  0x3c   :  { %780 = vmatpush.bf16.msrb.mxu3 %v1382_v58  ;;  %829 = vmatpush.bf16.msrb.mxu0 %v1390_v59  ;;  %v1092_v58 = vor.u32 %v1338_v52, %v1089_v53  ;;  %v1096_v59 = vor.u32 %v1341_v55, %v1095_v54 }
  0x3e   :  { %732 = vmatpush.bf16.msrb.mxu2 %v1373_v60  ;;  %683 = vmatpush.bf16.msrb.mxu1 %v1365_v61  ;;  %v1342_v60 = vld [vmem:[%s1958_s0 + $0xcc] sm:$0xf]  ;;  %v1101_v61 = vld [vmem:[%s1958_s0 + $0xdc] sm:$0xf0] }
  0x3f   :  { %v1104_v4 = vor.u32 %v1342_v60, %v1101_v61 }
  0x40   :  { %781 = vmatpush.bf16.msrb.mxu3 %v1381_v62  ;;  %830 = vmatpush.bf16.msrb.mxu0 %v1389_v63  ;;  %v1107_v62 = vld [vmem:[%s1958_s0 + $0xd0] sm:$0xf]  ;;  %v1345_v63 = vld [vmem:[%s1958_s0 + $0xe0] sm:$0xf0] }
  0x41   :  { %684 = vmatmul.bf16.vlgmr.msrb.gmra.mxu1 %v1004_v8  ;;  %733 = vmatmul.bf16.vlgmr.msrb.gmra.mxu2 %v1008_v9  ;;  %v1108_v5 = vor.u32 %v1345_v63, %v1107_v62  ;;  %v1347_v8 = vld [vmem:[%s1958_s0 + $0xf4] sm:$0xf]  ;;  %v1121_v9 = vld [vmem:[%s1958_s0 + $0x104] sm:$0xf0] }
  0x42   :  { %v1124_v16 = vor.u32 %v1347_v8, %v1121_v9 }
  0x43   :  { %782 = vmatmul.bf16.vlgmr.msrb.gmra.mxu3 %v1012_v10  ;;  %831 = vmatmul.bf16.vlgmr.msrb.gmra.mxu0 %v1016_v11  ;;  %v1127_v10 = vld [vmem:[%s1958_s0 + $0xf8] sm:$0xf]  ;;  %v1350_v11 = vld [vmem:[%s1958_s0 + $0x108] sm:$0xf0] }
  0x44   :  { %v1128_v17 = vor.u32 %v1350_v11, %v1127_v10 }
  0x51   :  { %689 = vmatmul.bf16.gmra.mxu1 %v1024_v20  ;;  %738 = vmatmul.bf16.gmra.mxu2 %v1028_v21  ;;  %v1136_v20 = vor.u32 %v1351_v15, %v1135_v14 }
  0x53   :  { %787 = vmatmul.bf16.gmra.mxu3 %v1032_v22  ;;  %836 = vmatmul.bf16.gmra.mxu0 %v1036_v23  ;;  %v1423_v23 = vmov 0.0  }
  0x54   :  { %19 = vst.msk [vmem:[#allocation2] sm:$0xff] %vm18_vm0, %v1423_v23 }
  0x55   :  { %20 = vst.msk [vmem:[#allocation2 + $0x8] sm:$0xff] %vm18_vm0, %v1423_v23 }
  0x56   :  { %21 = vst.msk [vmem:[#allocation2 + $0x10] sm:$0xff] %vm18_vm0, %v1423_v23 }
  0x57   :  { %22 = vst.msk [vmem:[#allocation2 + $0x18] sm:$0xff] %vm18_vm0, %v1423_v23 }
  0x58   :  { %23 = vst.msk [vmem:[#allocation2 + $0x20] sm:$0xff] %vm18_vm0, %v1423_v23 }
  0x59   :  { %24 = vst.msk [vmem:[#allocation2 + $0x28] sm:$0xff] %vm18_vm0, %v1423_v23 }
  0x5a   :  { %25 = vst.msk [vmem:[#allocation2 + $0x30] sm:$0xff] %vm18_vm0, %v1423_v23 }
  0x5b   :  { %26 = vst.msk [vmem:[#allocation2 + $0x38] sm:$0xff] %vm18_vm0, %v1423_v23 }
  0x5c   :  { %27 = vst.msk [vmem:[#allocation2 + $0x40] sm:$0xff] %vm18_vm0, %v1423_v23 }
  0x5d   :  { %28 = vst.msk [vmem:[#allocation2 + $0x48] sm:$0xff] %vm18_vm0, %v1423_v23 }
  0x5e   :  { %29 = vst.msk [vmem:[#allocation2 + $0x50] sm:$0xff] %vm18_vm0, %v1423_v23 }
  0x5f   :  { %30 = vst.msk [vmem:[#allocation2 + $0x58] sm:$0xff] %vm18_vm0, %v1423_v23 }
  0x60   :  { %31 = vst.msk [vmem:[#allocation2 + $0x60] sm:$0xff] %vm18_vm0, %v1423_v23 }
  0x61   :  { %694 = vmatmul.bf16.gmra.mxu1 %v1044_v32  ;;  %743 = vmatmul.bf16.gmra.mxu2 %v1048_v33  ;;  %v1149_v32 = vld [vmem:[%s1958_s0 + $0x134] sm:$0xf0]  ;;  %v1155_v33 = vld [vmem:[%s1958_s0 + $0x128] sm:$0xf]  ;;  %32 = vst.msk [vmem:[#allocation2 + $0x68] sm:$0xff] %vm18_vm0, %v1423_v23 }
  0x62   :  { %v1152_v40 = vor.u32 %v1353_v31, %v1149_v32  ;;  %33 = vst.msk [vmem:[#allocation2 + $0x70] sm:$0xff] %vm18_vm0, %v1423_v23 }
  0x63   :  { %792 = vmatmul.bf16.gmra.mxu3 %v1052_v34  ;;  %841 = vmatmul.bf16.gmra.mxu0 %v1056_v35  ;;  %v1356_v34 = vld [vmem:[%s1958_s0 + $0x138] sm:$0xf0]  ;;  %34 = vst.msk [vmem:[#allocation2 + $0x78] sm:$0xff] %vm18_vm0, %v1423_v23 }
  0x64   :  { %v1156_v41 = vor.u32 %v1356_v34, %v1155_v33 }
  0x71   :  { %699 = vmatmul.bf16.gmra.mxu1 %v1064_v44  ;;  %748 = vmatmul.bf16.gmra.mxu2 %v1068_v45 }
  0x73   :  { %797 = vmatmul.bf16.gmra.mxu3 %v1072_v46  ;;  %846 = vmatmul.bf16.gmra.mxu0 %v1076_v47 }
  0x81   :  { %704 = vmatmul.bf16.gmra.mxu1 %v1084_v56  ;;  %753 = vmatmul.bf16.gmra.mxu2 %v1088_v57 }
  0x83   :  { %802 = vmatmul.bf16.gmra.mxu3 %v1092_v58  ;;  %851 = vmatmul.bf16.gmra.mxu0 %v1096_v59  ;;  %v35_v58 = vld [vmem:[#allocation2] sm:$0xff] }
  0x91   :  { %709 = vmatmul.bf16.gmra.mxu1 %v1104_v4  ;;  %758 = vmatmul.bf16.gmra.mxu2 %v1108_v5  ;;  %v36_v4 = vld [vmem:[#allocation2 + $0x8] sm:$0xff]  ;;  %v1848_v5 = vld [vmem:[%s1959_s2] ss:$0 sm:$0xff] }
  0x93   :  { %807 = vmatmul.bf16.gmra.mxu3 %v1112_v6  ;;  %856 = vmatmul.bf16.gmra.mxu0 %v1116_v7 }
  0x9e   :  { %v1780_v18 = vpop.f32.mrf.mxu1 }
  0xa0   :  { %v636_v21 = vpop.f32.mrf.mxu0 }
  0xa1   :  { %714 = vmatmul.bf16.gmra.mxu1 %v1124_v16  ;;  %763 = vmatmul.bf16.gmra.mxu2 %v1128_v17 }
  0xa3   :  { %812 = vmatmul.bf16.gmra.mxu3 %v1132_v19  ;;  %861 = vmatmul.bf16.gmra.mxu0 %v1136_v20  ;;  %v37_v19 = vld [vmem:[#allocation2 + $0x10] sm:$0xff] }
  0xa4   :  { %v1782_v22 = vpop.f32.mrf.mxu2 }
  0xa6   :  { %v1785_v24 = vpop.f32.mrf.mxu3  ;;  %v1788_v25 = vpop.f32.mrf.mxu1 }
  0xa8   :  { %v638_v26 = vpop.f32.mrf.mxu0 }
  0xac   :  { %v1820_v35 = vpop.f32.mrf.mxu2 }
  0xae   :  { %v1823_v36 = vpop.f32.mrf.mxu3  ;;  %v1826_v39 = vpop.f32.mrf.mxu1 }
  0xb0   :  { %v641_v42 = vpop.f32.mrf.mxu0 }
  0xb1   :  { %719 = vmatmul.bf16.gmra.mxu1 %v1144_v37  ;;  %768 = vmatmul.bf16.gmra.mxu2 %v1148_v38  ;;  %v38_v38 = vld [vmem:[#allocation2 + $0x18] sm:$0xff] }
  0xb3   :  { %817 = vmatmul.bf16.gmra.mxu3 %v1152_v40  ;;  %866 = vmatmul.bf16.gmra.mxu0 %v1156_v41 }
  0xb4   :  { %v1834_v43 = vpop.f32.mrf.mxu2 }
  0xb6   :  { %v1836_v44 = vpop.f32.mrf.mxu3  ;;  %v1838_v45 = vpop.f32.mrf.mxu1 }
  0xb8   :  { %v643_v46 = vpop.f32.mrf.mxu0 }
  0xbc   :  { %v1840_v47 = vpop.f32.mrf.mxu2 }
  0xbe   :  { %v1842_v48 = vpop.f32.mrf.mxu3  ;;  %v685_v49 = vpop.f32.mrf.mxu1 }
  0xbf   :  { %v686_v51 = vadd.f32 %v685_v49, %v636_v21 }
  0xc0   :  { %v832_v50 = vpop.f32.mrf.mxu0 }
  0xc4   :  { %v734_v52 = vpop.f32.mrf.mxu2 }
  0xc5   :  { %v735_v53 = vadd.f32 %v734_v52, %v686_v51 }
  0xc6   :  { %v783_v54 = vpop.f32.mrf.mxu3  ;;  %v687_v55 = vpop.f32.mrf.mxu1 }
  0xc7   :  { %v784_v56 = vadd.f32 %v783_v54, %v735_v53  ;;  %v688_v61 = vadd.f32 %v687_v55, %v638_v26 }
  0xc8   :  { %v834_v57 = vpop.f32.mrf.mxu0 }
  0xc9   :  { %v833_v59 = vadd.f32 %v832_v50, %v784_v56 }
  0xcb   :  { %v872_v60 = vadd.f32 %v833_v59, %v35_v58  ;;  %v39_v58 = vld [vmem:[#allocation2 + $0x20] sm:$0xff] }
  0xcc   :  { %v736_v62 = vpop.f32.mrf.mxu2 }
  0xcd   :  { %889 = vst.msk [vmem:[#allocation2] sm:$0xff] %vm18_vm0, %v872_v60  ;;  %v737_v63 = vadd.f32 %v736_v62, %v688_v61 }
  0xce   :  { %v785_v0 = vpop.f32.mrf.mxu3  ;;  %v690_v1 = vpop.f32.mrf.mxu1 }
  0xcf   :  { %v786_v2 = vadd.f32 %v785_v0, %v737_v63  ;;  %v691_v8 = vadd.f32 %v690_v1, %v641_v42 }
  0xd0   :  { %v837_v3 = vpop.f32.mrf.mxu0 }
  0xd1   :  { %v835_v6 = vadd.f32 %v834_v57, %v786_v2 }
  0xd3   :  { %v873_v7 = vadd.f32 %v835_v6, %v36_v4 }
  0xd4   :  { %v908_v9 = vld [vmem:[#allocation2] sm:$0xff]  ;;  %v739_v10 = vpop.f32.mrf.mxu2 }
  0xd5   :  { %v928_v11 = vadd.f32 %v1848_v5, %v908_v9  ;;  %890 = vst.msk [vmem:[#allocation2 + $0x8] sm:$0xff] %vm18_vm0, %v873_v7  ;;  %v740_v12 = vadd.f32 %v739_v10, %v691_v8  ;;  %v40_v8 = vld [vmem:[#allocation2 + $0x28] sm:$0xff] }
  0xd6   :  { %v788_v13 = vpop.f32.mrf.mxu3  ;;  %v692_v14 = vpop.f32.mrf.mxu1 }
  0xd7   :  { %v944_v15 = vmax.f32 %v928_v11, 0.0  ;;  %v789_v16 = vadd.f32 %v788_v13, %v740_v12  ;;  %v693_v26 = vadd.f32 %v692_v14, %v643_v46 }
  0xd8   :  { %v839_v17 = vpop.f32.mrf.mxu0 }
  0xd9   :  { %v960_v20 = vpack.c.bf16 %v944_v15, %v944_v15  ;;  %v838_v21 = vadd.f32 %v837_v3, %v789_v16 }
  0xdb   :  { %977 = vst.msk [vmem:[%s1960_s3] sm:$0xf] %vm976_vm1, %v960_v20  ;;  %v874_v23 = vadd.f32 %v838_v21, %v37_v19 }
  0xdc   :  { %v909_v27 = vld [vmem:[#allocation2 + $0x8] sm:$0xff]  ;;  %v741_v28 = vpop.f32.mrf.mxu2 }
  0xdd   :  { %v929_v29 = vadd.f32 %v1848_v5, %v909_v27  ;;  %891 = vst.msk [vmem:[#allocation2 + $0x10] sm:$0xff] %vm18_vm0, %v874_v23  ;;  %v742_v30 = vadd.f32 %v741_v28, %v693_v26  ;;  %v41_v23 = vld [vmem:[#allocation2 + $0x30] sm:$0xff] }
  0xde   :  { %v790_v31 = vpop.f32.mrf.mxu3  ;;  %v695_v32 = vpop.f32.mrf.mxu1 }
  0xdf   :  { %v945_v33 = vmax.f32 %v929_v29, 0.0  ;;  %v791_v34 = vadd.f32 %v790_v31, %v742_v30  ;;  %v696_v46 = vadd.f32 %v695_v32, %v1780_v18 }
  0xe0   :  { %v842_v37 = vpop.f32.mrf.mxu0 }
  0xe1   :  { %v961_v40 = vpack.c.bf16 %v945_v33, %v945_v33  ;;  %v840_v41 = vadd.f32 %v839_v17, %v791_v34 }
  0xe3   :  { %978 = vst.msk [vmem:[%s1960_s3 + $0x4] sm:$0xf] %vm976_vm1, %v961_v40  ;;  %v875_v42 = vadd.f32 %v840_v41, %v38_v38  ;;  %v42_v41 = vld [vmem:[#allocation2 + $0x38] sm:$0xff] }
  0xe4   :  { %v910_v49 = vld [vmem:[#allocation2 + $0x10] sm:$0xff]  ;;  %v744_v50 = vpop.f32.mrf.mxu2 }
  0xe5   :  { %v930_v51 = vadd.f32 %v1848_v5, %v910_v49  ;;  %892 = vst.msk [vmem:[#allocation2 + $0x18] sm:$0xff] %vm18_vm0, %v875_v42  ;;  %v745_v52 = vadd.f32 %v744_v50, %v696_v46 }
  0xe6   :  { %v793_v53 = vpop.f32.mrf.mxu3  ;;  %v697_v54 = vpop.f32.mrf.mxu1 }
  0xe7   :  { %v946_v55 = vmax.f32 %v930_v51, 0.0  ;;  %v794_v56 = vadd.f32 %v793_v53, %v745_v52  ;;  %v698_v61 = vadd.f32 %v697_v54, %v1788_v25 }
  0xe8   :  { %v844_v57 = vpop.f32.mrf.mxu0 }
  0xe9   :  { %v962_v59 = vpack.c.bf16 %v946_v55, %v946_v55  ;;  %v843_v60 = vadd.f32 %v842_v37, %v794_v56 }
  0xeb   :  { %979 = vst.msk [vmem:[%s1960_s3 + $0x8] sm:$0xf] %vm976_vm1, %v962_v59  ;;  %v876_v18 = vadd.f32 %v843_v60, %v39_v58  ;;  %v43_v59 = vld [vmem:[#allocation2 + $0x40] sm:$0xff] }
  0xec   :  { %v911_v62 = vld [vmem:[#allocation2 + $0x18] sm:$0xff]  ;;  %v746_v63 = vpop.f32.mrf.mxu2 }
  0xed   :  { %v931_v0 = vadd.f32 %v1848_v5, %v911_v62  ;;  %893 = vst.msk [vmem:[#allocation2 + $0x20] sm:$0xff] %vm18_vm0, %v876_v18  ;;  %v747_v1 = vadd.f32 %v746_v63, %v698_v61 }
  0xee   :  { %v795_v2 = vpop.f32.mrf.mxu3  ;;  %v700_v3 = vpop.f32.mrf.mxu1 }
  0xef   :  { %v947_v4 = vmax.f32 %v931_v0, 0.0  ;;  %v796_v6 = vadd.f32 %v795_v2, %v747_v1  ;;  %v701_v11 = vadd.f32 %v700_v3, %v1826_v39 }
  0xf0   :  { %v847_v7 = vpop.f32.mrf.mxu0 }
  0xf1   :  { %v963_v9 = vpack.c.bf16 %v947_v4, %v947_v4  ;;  %v845_v10 = vadd.f32 %v844_v57, %v796_v6 }
  0xf3   :  { %980 = vst.msk [vmem:[%s1960_s3 + $0xc] sm:$0xf] %vm976_vm1, %v963_v9  ;;  %v877_v25 = vadd.f32 %v845_v10, %v40_v8  ;;  %v44_v8 = vld [vmem:[#allocation2 + $0x48] sm:$0xff] }
  0xf4   :  { %v912_v12 = vld [vmem:[#allocation2 + $0x20] sm:$0xff]  ;;  %v749_v13 = vpop.f32.mrf.mxu2 }
  0xf5   :  { %v932_v14 = vadd.f32 %v1848_v5, %v912_v12  ;;  %894 = vst.msk [vmem:[#allocation2 + $0x28] sm:$0xff] %vm18_vm0, %v877_v25  ;;  %v750_v15 = vadd.f32 %v749_v13, %v701_v11 }
  0xf6   :  { %v798_v16 = vpop.f32.mrf.mxu3  ;;  %v702_v17 = vpop.f32.mrf.mxu1 }
  0xf7   :  { %v948_v19 = vmax.f32 %v932_v14, 0.0  ;;  %v799_v20 = vadd.f32 %v798_v16, %v750_v15  ;;  %v703_v28 = vadd.f32 %v702_v17, %v1838_v45 }
  0xf8   :  { %v849_v21 = vpop.f32.mrf.mxu0 }
  0xf9   :  { %v964_v26 = vpack.c.bf16 %v948_v19, %v948_v19  ;;  %v848_v27 = vadd.f32 %v847_v7, %v799_v20  ;;  %v45_v20 = vld [vmem:[#allocation2 + $0x50] sm:$0xff] }
  0xfb   :  { %981 = vst.msk [vmem:[%s1960_s3 + $0x10] sm:$0xf] %vm976_vm1, %v964_v26  ;;  %v878_v39 = vadd.f32 %v848_v27, %v41_v23 }
  0xfc   :  { %v913_v29 = vld [vmem:[#allocation2 + $0x28] sm:$0xff]  ;;  %v751_v30 = vpop.f32.mrf.mxu2 }
  0xfd   :  { %v933_v31 = vadd.f32 %v1848_v5, %v913_v29  ;;  %895 = vst.msk [vmem:[#allocation2 + $0x30] sm:$0xff] %vm18_vm0, %v878_v39  ;;  %v752_v32 = vadd.f32 %v751_v30, %v703_v28 }
  0xfe   :  { %v800_v33 = vpop.f32.mrf.mxu3  ;;  %v705_v34 = vpop.f32.mrf.mxu1 }
  0xff   :  { %v949_v37 = vmax.f32 %v933_v31, 0.0  ;;  %v801_v38 = vadd.f32 %v800_v33, %v752_v32  ;;  %v706_v49 = vadd.f32 %v705_v34, %v1782_v22 }
 0x100   :  { %v852_v40 = vpop.f32.mrf.mxu0 }
 0x101   :  { %v965_v42 = vpack.c.bf16 %v949_v37, %v949_v37  ;;  %v850_v46 = vadd.f32 %v849_v21, %v801_v38  ;;  %v46_v37 = vld [vmem:[#allocation2 + $0x58] sm:$0xff] }
 0x103   :  { %982 = vst.msk [vmem:[%s1960_s3 + $0x14] sm:$0xf] %vm976_vm1, %v965_v42  ;;  %v879_v45 = vadd.f32 %v850_v46, %v42_v41 }
 0x104   :  { %v914_v50 = vld [vmem:[#allocation2 + $0x30] sm:$0xff]  ;;  %v754_v51 = vpop.f32.mrf.mxu2 }
 0x105   :  { %v934_v52 = vadd.f32 %v1848_v5, %v914_v50  ;;  %896 = vst.msk [vmem:[#allocation2 + $0x38] sm:$0xff] %vm18_vm0, %v879_v45  ;;  %v755_v53 = vadd.f32 %v754_v51, %v706_v49 }
 0x106   :  { %v803_v54 = vpop.f32.mrf.mxu3  ;;  %v707_v55 = vpop.f32.mrf.mxu1 }
 0x107   :  { %v950_v56 = vmax.f32 %v934_v52, 0.0  ;;  %v804_v57 = vadd.f32 %v803_v54, %v755_v53  ;;  %v708_v61 = vadd.f32 %v707_v55, %v1820_v35  ;;  %v47_v55 = vld [vmem:[#allocation2 + $0x60] sm:$0xff] }
 0x108   :  { %v854_v58 = vpop.f32.mrf.mxu0 }
 0x109   :  { %v966_v60 = vpack.c.bf16 %v950_v56, %v950_v56  ;;  %v853_v18 = vadd.f32 %v852_v40, %v804_v57 }
 0x10b   :  { %983 = vst.msk [vmem:[%s1960_s3 + $0x18] sm:$0xf] %vm976_vm1, %v966_v60  ;;  %v880_v22 = vadd.f32 %v853_v18, %v43_v59 }
 0x10c   :  { %v915_v62 = vld [vmem:[#allocation2 + $0x38] sm:$0xff]  ;;  %v756_v63 = vpop.f32.mrf.mxu2 }
 0x10d   :  { %v935_v0 = vadd.f32 %v1848_v5, %v915_v62  ;;  %897 = vst.msk [vmem:[#allocation2 + $0x40] sm:$0xff] %vm18_vm0, %v880_v22  ;;  %v757_v1 = vadd.f32 %v756_v63, %v708_v61 }
 0x10e   :  { %v805_v2 = vpop.f32.mrf.mxu3  ;;  %v710_v3 = vpop.f32.mrf.mxu1 }
 0x10f   :  { %v951_v4 = vmax.f32 %v935_v0, 0.0  ;;  %v806_v6 = vadd.f32 %v805_v2, %v757_v1  ;;  %v711_v25 = vadd.f32 %v710_v3, %v1834_v43  ;;  %v48_v2 = vld [vmem:[#allocation2 + $0x68] sm:$0xff] }
 0x110   :  { %v857_v7 = vpop.f32.mrf.mxu0 }
 0x111   :  { %v967_v9 = vpack.c.bf16 %v951_v4, %v951_v4  ;;  %v855_v10 = vadd.f32 %v854_v58, %v806_v6 }
 0x113   :  { %984 = vst.msk [vmem:[%s1960_s3 + $0x1c] sm:$0xf] %vm976_vm1, %v967_v9  ;;  %v881_v35 = vadd.f32 %v855_v10, %v44_v8 }
 0x114   :  { %v916_v11 = vld [vmem:[#allocation2 + $0x40] sm:$0xff]  ;;  %v759_v12 = vpop.f32.mrf.mxu2 }
 0x115   :  { %v936_v13 = vadd.f32 %v1848_v5, %v916_v11  ;;  %898 = vst.msk [vmem:[#allocation2 + $0x48] sm:$0xff] %vm18_vm0, %v881_v35  ;;  %v760_v14 = vadd.f32 %v759_v12, %v711_v25 }
 0x116   :  { %v808_v15 = vpop.f32.mrf.mxu3  ;;  %v712_v16 = vpop.f32.mrf.mxu1 }
 0x117   :  { %v952_v17 = vmax.f32 %v936_v13, 0.0  ;;  %v809_v19 = vadd.f32 %v808_v15, %v760_v14  ;;  %v713_v27 = vadd.f32 %v712_v16, %v1840_v47  ;;  %v49_v13 = vld [vmem:[#allocation2 + $0x70] sm:$0xff] }
 0x118   :  { %v859_v21 = vpop.f32.mrf.mxu0 }
 0x119   :  { %v968_v23 = vpack.c.bf16 %v952_v17, %v952_v17  ;;  %v858_v26 = vadd.f32 %v857_v7, %v809_v19 }
 0x11b   :  { %985 = vst.msk [vmem:[%s1960_s3 + $0x20] sm:$0xf] %vm976_vm1, %v968_v23  ;;  %v882_v43 = vadd.f32 %v858_v26, %v45_v20 }
 0x11c   :  { %v917_v39 = vld [vmem:[#allocation2 + $0x48] sm:$0xff]  ;;  %v761_v28 = vpop.f32.mrf.mxu2 }
 0x11d   :  { %v937_v29 = vadd.f32 %v1848_v5, %v917_v39  ;;  %899 = vst.msk [vmem:[#allocation2 + $0x50] sm:$0xff] %vm18_vm0, %v882_v43  ;;  %v762_v30 = vadd.f32 %v761_v28, %v713_v27  ;;  %v50_v28 = vld [vmem:[#allocation2 + $0x78] sm:$0xff] }
 0x11e   :  { %v810_v31 = vpop.f32.mrf.mxu3  ;;  %v715_v32 = vpop.f32.mrf.mxu1 }
 0x11f   :  { %v953_v33 = vmax.f32 %v937_v29, 0.0  ;;  %v811_v34 = vadd.f32 %v810_v31, %v762_v30  ;;  %v716_v42 = vadd.f32 %v715_v32, %v1785_v24 }
 0x120   :  { %v862_v41 = vpop.f32.mrf.mxu0 }
 0x121   :  { %v969_v38 = vpack.c.bf16 %v953_v33, %v953_v33  ;;  %v860_v40 = vadd.f32 %v859_v21, %v811_v34 }
 0x123   :  { %986 = vst.msk [vmem:[%s1960_s3 + $0x24] sm:$0xf] %vm976_vm1, %v969_v38  ;;  %v883_v47 = vadd.f32 %v860_v40, %v46_v37 }
 0x124   :  { %v918_v46 = vld [vmem:[#allocation2 + $0x50] sm:$0xff]  ;;  %v764_v45 = vpop.f32.mrf.mxu2 }
 0x125   :  { %v938_v49 = vadd.f32 %v1848_v5, %v918_v46  ;;  %900 = vst.msk [vmem:[#allocation2 + $0x58] sm:$0xff] %vm18_vm0, %v883_v47  ;;  %v765_v50 = vadd.f32 %v764_v45, %v716_v42 }
 0x126   :  { %v813_v51 = vpop.f32.mrf.mxu3  ;;  %v717_v52 = vpop.f32.mrf.mxu1 }
 0x127   :  { %v954_v53 = vmax.f32 %v938_v49, 0.0  ;;  %v814_v54 = vadd.f32 %v813_v51, %v765_v50  ;;  %v718_v58 = vadd.f32 %v717_v52, %v1823_v36 }
 0x128   :  { %v864_v60 = vpop.f32.mrf.mxu0 }
 0x129   :  { %v970_v56 = vpack.c.bf16 %v954_v53, %v954_v53  ;;  %v863_v57 = vadd.f32 %v862_v41, %v814_v54 }
 0x12b   :  { %987 = vst.msk [vmem:[%s1960_s3 + $0x28] sm:$0xf] %vm976_vm1, %v970_v56  ;;  %v884_v24 = vadd.f32 %v863_v57, %v47_v55 }
 0x12c   :  { %v919_v59 = vld [vmem:[#allocation2 + $0x58] sm:$0xff]  ;;  %v766_v18 = vpop.f32.mrf.mxu2 }
 0x12d   :  { %v939_v22 = vadd.f32 %v1848_v5, %v919_v59  ;;  %901 = vst.msk [vmem:[#allocation2 + $0x60] sm:$0xff] %vm18_vm0, %v884_v24  ;;  %v767_v61 = vadd.f32 %v766_v18, %v718_v58 }
 0x12e   :  { %v815_v62 = vpop.f32.mrf.mxu3  ;;  %v720_v63 = vpop.f32.mrf.mxu1 }
 0x12f   :  { %v955_v0 = vmax.f32 %v939_v22, 0.0  ;;  %v816_v1 = vadd.f32 %v815_v62, %v767_v61  ;;  %v721_v6 = vadd.f32 %v720_v63, %v1836_v44 }
 0x130   :  { %v867_v25 = vpop.f32.mrf.mxu0 }
 0x131   :  { %v971_v3 = vpack.c.bf16 %v955_v0, %v955_v0  ;;  %v865_v4 = vadd.f32 %v864_v60, %v816_v1 }
 0x133   :  { %988 = vst.msk [vmem:[%s1960_s3 + $0x2c] sm:$0xf] %vm976_vm1, %v971_v3  ;;  %v885_v36 = vadd.f32 %v865_v4, %v48_v2 }
 0x134   :  { %v920_v7 = vld [vmem:[#allocation2 + $0x60] sm:$0xff]  ;;  %v769_v8 = vpop.f32.mrf.mxu2 }
 0x135   :  { %v940_v9 = vadd.f32 %v1848_v5, %v920_v7  ;;  %902 = vst.msk [vmem:[#allocation2 + $0x68] sm:$0xff] %vm18_vm0, %v885_v36  ;;  %v770_v10 = vadd.f32 %v769_v8, %v721_v6 }
 0x136   :  { %v818_v35 = vpop.f32.mrf.mxu3  ;;  %v722_v14 = vpop.f32.mrf.mxu1 }
 0x137   :  { %v956_v11 = vmax.f32 %v940_v9, 0.0  ;;  %v819_v12 = vadd.f32 %v818_v35, %v770_v10  ;;  %v723_v17 = vadd.f32 %v722_v14, %v1842_v48 }
 0x138   :  { %v869_v39 = vpop.f32.mrf.mxu0 }
 0x139   :  { %v972_v15 = vpack.c.bf16 %v956_v11, %v956_v11  ;;  %v868_v16 = vadd.f32 %v867_v25, %v819_v12 }
 0x13b   :  { %989 = vst.msk [vmem:[%s1960_s3 + $0x30] sm:$0xf] %vm976_vm1, %v972_v15  ;;  %v886_v44 = vadd.f32 %v868_v16, %v49_v13 }
 0x13c   :  { %v921_v19 = vld [vmem:[#allocation2 + $0x68] sm:$0xff]  ;;  %v771_v20 = vpop.f32.mrf.mxu2 }
 0x13d   :  { %v941_v21 = vadd.f32 %v1848_v5, %v921_v19  ;;  %903 = vst.msk [vmem:[#allocation2 + $0x70] sm:$0xff] %vm18_vm0, %v886_v44  ;;  %v772_v23 = vadd.f32 %v771_v20, %v723_v17 }
 0x13e   :  { %v820_v26 = vpop.f32.mrf.mxu3 }
 0x13f   :  { %v957_v43 = vmax.f32 %v941_v21, 0.0  ;;  %v821_v27 = vadd.f32 %v820_v26, %v772_v23 }
 0x141   :  { %v973_v29 = vpack.c.bf16 %v957_v43, %v957_v43  ;;  %v870_v30 = vadd.f32 %v869_v39, %v821_v27 }
 0x143   :  { %990 = vst.msk [vmem:[%s1960_s3 + $0x34] sm:$0xf] %vm976_vm1, %v973_v29  ;;  %v887_v48 = vadd.f32 %v870_v30, %v50_v28 }
 0x144   :  { %v922_v31 = vld [vmem:[#allocation2 + $0x70] sm:$0xff] }
 0x145   :  { %v942_v32 = vadd.f32 %v1848_v5, %v922_v31  ;;  %904 = vst.msk [vmem:[#allocation2 + $0x78] sm:$0xff] %vm18_vm0, %v887_v48 }
 0x147   :  { %v958_v33 = vmax.f32 %v942_v32, 0.0 }
 0x149   :  { %v974_v34 = vpack.c.bf16 %v958_v33, %v958_v33 }
 0x14b   :  { %991 = vst.msk [vmem:[%s1960_s3 + $0x38] sm:$0xf] %vm976_vm1, %v974_v34 }
 0x14c   :  { %v923_v37 = vld [vmem:[#allocation2 + $0x78] sm:$0xff] }
 0x14d   :  { %v943_v38 = vadd.f32 %v1848_v5, %v923_v37 }
 0x14f   :  { %v959_v40 = vmax.f32 %v943_v38, 0.0 }
 0x151   :  { %v975_v41 = vpack.c.bf16 %v959_v40, %v959_v40 }
 0x153   :  { %992 = vst.msk [vmem:[%s1960_s3 + $0x3c] sm:$0xf] %vm976_vm1, %v975_v41 }

// kernel: _resnet_forward.17
= control target key start
LH: loop header
LB: loop body
LE: loop exit
PB: predicated region body
PF: predicated region fallthrough
CT: control target
= control target key end

     0   :  { %vm21_vm0 = vcmask 523264   ;;  %vm1027_vm1 = vcmask 519168   ;;  %s2076_s1 = inlined_call_operand.vmem [shape: bf16[640,64], index: 1, kind: input, shape index: {}]   ;;  %s2077_s0 = inlined_call_operand.vmem [shape: bf16[128,640], index: 0, kind: input, shape index: {}]   ;;  %s2078_s2 = inlined_call_operand.vmem [shape: f32[1,64], index: 2, kind: input, shape index: {}]   ;;  %s2079_s3 = inlined_call_operand.vmem [shape: bf16[128,64], index: 3, kind: input, shape index: {}]   ;;  %s2080_s4 = inlined_call_operand.vmem [shape: bf16[128,64], index: 4, kind: output, shape index: {}]  }
   0x1   :  { %v1415_v0 = vld [vmem:[%s2076_s1 + $0x38] sm:$0xff]  ;;  %v1414_v1 = vld [vmem:[%s2076_s1 + $0x30] sm:$0xff]  ;;  %v1413_v2 = vld [vmem:[%s2076_s1 + $0x28] sm:$0xff] }
   0x2   :  { %1487 = vmatpush.bf16.msra.mxu1 %v1415_v0  ;;  %1488 = vmatpush.bf16.msra.mxu2 %v1415_v0  ;;  %v1412_v3 = vld [vmem:[%s2076_s1 + $0x20] sm:$0xff]  ;;  %v1411_v4 = vld [vmem:[%s2076_s1 + $0x18] sm:$0xff]  ;;  %v1410_v5 = vld [vmem:[%s2076_s1 + $0x10] sm:$0xff] }
   0x3   :  { %1489 = vmatpush.bf16.msra.mxu3 %v1415_v0  ;;  %630 = vmatpush.bf16.msra.mxu0 %v1415_v0  ;;  %v1409_v6 = vld [vmem:[%s2076_s1 + $0x8] sm:$0xff]  ;;  %v1408_v7 = vld [vmem:[%s2076_s1] sm:$0xff]  ;;  %v1090_v8 = vld [vmem:[%s2077_s0 + $0x50] sm:$0xf] }
   0x4   :  { %v1380_v9 = vld [vmem:[%s2077_s0 + $0x60] sm:$0xf0]  ;;  %v1130_v10 = vld [vmem:[%s2077_s0 + $0xa0] sm:$0xf]  ;;  %v1390_v11 = vld [vmem:[%s2077_s0 + $0xb0] sm:$0xf0] }
   0x5   :  { %v1170_v12 = vld [vmem:[%s2077_s0 + $0xf0] sm:$0xf]  ;;  %v1400_v13 = vld [vmem:[%s2077_s0 + $0x100] sm:$0xf0]  ;;  %v1050_v14 = vld [vmem:[%s2077_s0] sm:$0xf]  ;;  %v1091_v18 = vor.u32 %v1380_v9, %v1090_v8  ;;  %v1131_v19 = vor.u32 %v1390_v11, %v1130_v10 }
   0x6   :  { %1490 = vmatpush.bf16.msra.mxu1 %v1414_v1  ;;  %1491 = vmatpush.bf16.msra.mxu2 %v1414_v1  ;;  %v1370_v15 = vld [vmem:[%s2077_s0 + $0x10] sm:$0xf0]  ;;  %v1431_v16 = vld [vmem:[%s2076_s1 + $0xb8] sm:$0xff]  ;;  %v1171_v20 = vor.u32 %v1400_v13, %v1170_v12  ;;  %v1429_v28 = vld [vmem:[%s2076_s1 + $0xa8] sm:$0xff] }
   0x7   :  { %1492 = vmatpush.bf16.msra.mxu3 %v1414_v1  ;;  %631 = vmatpush.bf16.msra.mxu0 %v1414_v1  ;;  %v1423_v17 = vld [vmem:[%s2076_s1 + $0x78] sm:$0xff]  ;;  %v1051_v21 = vor.u32 %v1370_v15, %v1050_v14  ;;  %v1430_v24 = vld [vmem:[%s2076_s1 + $0xb0] sm:$0xff]  ;;  %v1421_v29 = vld [vmem:[%s2076_s1 + $0x68] sm:$0xff] }
   0x8   :  { %v1439_v22 = vld [vmem:[%s2076_s1 + $0xf8] sm:$0xff]  ;;  %v1422_v25 = vld [vmem:[%s2076_s1 + $0x70] sm:$0xff]  ;;  %v1437_v30 = vld [vmem:[%s2076_s1 + $0xe8] sm:$0xff] }
   0x9   :  { %v1447_v23 = vld [vmem:[%s2076_s1 + $0x138] sm:$0xff]  ;;  %v1438_v26 = vld [vmem:[%s2076_s1 + $0xf0] sm:$0xff]  ;;  %v1445_v31 = vld [vmem:[%s2076_s1 + $0x128] sm:$0xff] }
   0xa   :  { %1493 = vmatpush.bf16.msra.mxu1 %v1413_v2  ;;  %1494 = vmatpush.bf16.msra.mxu2 %v1413_v2  ;;  %v1446_v27 = vld [vmem:[%s2076_s1 + $0x130] sm:$0xff]  ;;  %v1428_v32 = vld [vmem:[%s2076_s1 + $0xa0] sm:$0xff]  ;;  %v1110_v36 = vld [vmem:[%s2077_s0 + $0x78] sm:$0xf] }
   0xb   :  { %1495 = vmatpush.bf16.msra.mxu3 %v1413_v2  ;;  %632 = vmatpush.bf16.msra.mxu0 %v1413_v2  ;;  %v1420_v33 = vld [vmem:[%s2076_s1 + $0x60] sm:$0xff]  ;;  %v1385_v37 = vld [vmem:[%s2077_s0 + $0x88] sm:$0xf0]  ;;  %v1150_v38 = vld [vmem:[%s2077_s0 + $0xc8] sm:$0xf] }
   0xc   :  { %v1436_v34 = vld [vmem:[%s2076_s1 + $0xe0] sm:$0xff]  ;;  %v1395_v39 = vld [vmem:[%s2077_s0 + $0xd8] sm:$0xf0]  ;;  %v1190_v40 = vld [vmem:[%s2077_s0 + $0x118] sm:$0xf]  ;;  %v1111_v46 = vor.u32 %v1385_v37, %v1110_v36 }
   0xd   :  { %v1444_v35 = vld [vmem:[%s2076_s1 + $0x120] sm:$0xff]  ;;  %v1405_v41 = vld [vmem:[%s2077_s0 + $0x128] sm:$0xf0]  ;;  %v1070_v42 = vld [vmem:[%s2077_s0 + $0x28] sm:$0xf]  ;;  %v1151_v47 = vor.u32 %v1395_v39, %v1150_v38 }
   0xe   :  { %1496 = vmatpush.bf16.msra.mxu1 %v1412_v3  ;;  %1497 = vmatpush.bf16.msra.mxu2 %v1412_v3  ;;  %v1375_v43 = vld [vmem:[%s2077_s0 + $0x38] sm:$0xf0]  ;;  %v1191_v48 = vor.u32 %v1405_v41, %v1190_v40  ;;  %v1426_v52 = vld [vmem:[%s2076_s1 + $0x90] sm:$0xff]  ;;  %v1425_v56 = vld [vmem:[%s2076_s1 + $0x88] sm:$0xff] }
   0xf   :  { %1498 = vmatpush.bf16.msra.mxu3 %v1412_v3  ;;  %633 = vmatpush.bf16.msra.mxu0 %v1412_v3  ;;  %v1427_v44 = vld [vmem:[%s2076_s1 + $0x98] sm:$0xff]  ;;  %v1071_v49 = vor.u32 %v1375_v43, %v1070_v42  ;;  %v1418_v53 = vld [vmem:[%s2076_s1 + $0x50] sm:$0xff]  ;;  %v1417_v57 = vld [vmem:[%s2076_s1 + $0x48] sm:$0xff] }
  0x10   :  { %v1419_v45 = vld [vmem:[%s2076_s1 + $0x58] sm:$0xff]  ;;  %v1434_v54 = vld [vmem:[%s2076_s1 + $0xd0] sm:$0xff]  ;;  %v1433_v58 = vld [vmem:[%s2076_s1 + $0xc8] sm:$0xff] }
  0x11   :  { %v1435_v50 = vld [vmem:[%s2076_s1 + $0xd8] sm:$0xff]  ;;  %v1442_v55 = vld [vmem:[%s2076_s1 + $0x110] sm:$0xff]  ;;  %v1441_v59 = vld [vmem:[%s2076_s1 + $0x108] sm:$0xff] }
  0x12   :  { %1499 = vmatpush.bf16.msra.mxu1 %v1411_v4  ;;  %1500 = vmatpush.bf16.msra.mxu2 %v1411_v4  ;;  %v1443_v51 = vld [vmem:[%s2076_s1 + $0x118] sm:$0xff]  ;;  %v1424_v60 = vld [vmem:[%s2076_s1 + $0x80] sm:$0xff]  ;;  %v1058_v2 = vld [vmem:[%s2077_s0 + $0x8] sm:$0xf] }
  0x13   :  { %1501 = vmatpush.bf16.msra.mxu3 %v1411_v4  ;;  %634 = vmatpush.bf16.msra.mxu0 %v1411_v4  ;;  %v1416_v61 = vld [vmem:[%s2076_s1 + $0x40] sm:$0xff]  ;;  %v1052_v1 = vld [vmem:[%s2077_s0 + $0x14] sm:$0xf0]  ;;  %v1371_v3 = vld [vmem:[%s2077_s0 + $0x18] sm:$0xf0] }
  0x14   :  { %v1432_v62 = vld [vmem:[%s2076_s1 + $0xc0] sm:$0xff]  ;;  %v1369_v4 = vld [vmem:[%s2077_s0 + $0xc] sm:$0xf]  ;;  %v1059_v9 = vor.u32 %v1371_v3, %v1058_v2  ;;  %v1078_v14 = vld [vmem:[%s2077_s0 + $0x30] sm:$0xf] }
  0x15   :  { %v1440_v63 = vld [vmem:[%s2076_s1 + $0x100] sm:$0xff]  ;;  %v1373_v12 = vld [vmem:[%s2077_s0 + $0x2c] sm:$0xf]  ;;  %v1383_v36 = vld [vmem:[%s2077_s0 + $0x7c] sm:$0xf] }
  0x16   :  { %1502 = vmatpush.bf16.msra.mxu1 %v1410_v5  ;;  %1503 = vmatpush.bf16.msra.mxu2 %v1410_v5  ;;  %v1368_v0 = vld [vmem:[%s2077_s0 + $0x4] sm:$0xf]  ;;  %v1072_v13 = vld [vmem:[%s2077_s0 + $0x3c] sm:$0xf0]  ;;  %v1112_v37 = vld [vmem:[%s2077_s0 + $0x8c] sm:$0xf0] }
  0x17   :  { %1504 = vmatpush.bf16.msra.mxu3 %v1410_v5  ;;  %635 = vmatpush.bf16.msra.mxu0 %v1410_v5  ;;  %v1060_v5 = vld [vmem:[%s2077_s0 + $0x1c] sm:$0xf0]  ;;  %v1055_v8 = vor.u32 %v1368_v0, %v1052_v1  ;;  %v1376_v15 = vld [vmem:[%s2077_s0 + $0x40] sm:$0xf0]  ;;  %v1386_v39 = vld [vmem:[%s2077_s0 + $0x90] sm:$0xf0] }
  0x18   :  { %v1063_v10 = vor.u32 %v1369_v4, %v1060_v5  ;;  %v1118_v38 = vld [vmem:[%s2077_s0 + $0x80] sm:$0xf]  ;;  %v1384_v40 = vld [vmem:[%s2077_s0 + $0x84] sm:$0xf]  ;;  %v1120_v41 = vld [vmem:[%s2077_s0 + $0x94] sm:$0xf0] }
  0x19   :  { %v1126_v42 = vld [vmem:[%s2077_s0 + $0x88] sm:$0xf]  ;;  %v1387_v43 = vld [vmem:[%s2077_s0 + $0x98] sm:$0xf0]  ;;  %v1394_v0 = vld [vmem:[%s2077_s0 + $0xd4] sm:$0xf] }
  0x1a   :  { %1505 = vmatpush.bf16.msra.mxu1 %v1409_v6  ;;  %1506 = vmatpush.bf16.msra.mxu2 %v1409_v6  ;;  %v1160_v1 = vld [vmem:[%s2077_s0 + $0xe4] sm:$0xf0]  ;;  %v1166_v2 = vld [vmem:[%s2077_s0 + $0xd8] sm:$0xf]  ;;  %v1397_v3 = vld [vmem:[%s2077_s0 + $0xe8] sm:$0xf0] }
  0x1b   :  { %1507 = vmatpush.bf16.msra.mxu3 %v1409_v6  ;;  %636 = vmatpush.bf16.msra.mxu0 %v1409_v6  ;;  %v1066_v6 = vld [vmem:[%s2077_s0 + $0x10] sm:$0xf] }
  0x1e   :  { %1508 = vmatpush.bf16.msra.mxu1 %v1408_v7  ;;  %1509 = vmatpush.bf16.msra.mxu2 %v1408_v7 }
  0x1f   :  { %1510 = vmatpush.bf16.msra.mxu3 %v1408_v7  ;;  %637 = vmatpush.bf16.msra.mxu0 %v1408_v7  ;;  %v1372_v7 = vld [vmem:[%s2077_s0 + $0x20] sm:$0xf0] }
  0x20   :  { %v1067_v11 = vor.u32 %v1372_v7, %v1066_v6  ;;  %v1163_v6 = vor.u32 %v1394_v0, %v1160_v1  ;;  %v1167_v7 = vor.u32 %v1397_v3, %v1166_v2 }
  0x21   :  { %648 = vmatmul.bf16.vlgmr.msra.gmra.mxu1 %v1091_v18  ;;  %658 = vmatmul.bf16.vlgmr.msra.gmra.mxu2 %v1131_v19  ;;  %v1086_v18 = vld [vmem:[%s2077_s0 + $0x38] sm:$0xf]  ;;  %v1377_v19 = vld [vmem:[%s2077_s0 + $0x48] sm:$0xf0] }
  0x22   :  { %728 = vmatpush.bf16.msrb.mxu2 %v1431_v16  ;;  %679 = vmatpush.bf16.msrb.mxu1 %v1423_v17  ;;  %v1374_v16 = vld [vmem:[%s2077_s0 + $0x34] sm:$0xf]  ;;  %v1080_v17 = vld [vmem:[%s2077_s0 + $0x44] sm:$0xf0] }
  0x23   :  { %668 = vmatmul.bf16.vlgmr.msra.gmra.mxu3 %v1171_v20  ;;  %638 = vmatmul.bf16.vlgmr.msra.gmra.mxu0 %v1051_v21  ;;  %v1075_v20 = vor.u32 %v1373_v12, %v1072_v13  ;;  %v1079_v21 = vor.u32 %v1376_v15, %v1078_v14  ;;  %v1399_v12 = vld [vmem:[%s2077_s0 + $0xfc] sm:$0xf]  ;;  %v1180_v13 = vld [vmem:[%s2077_s0 + $0x10c] sm:$0xf0]  ;;  %v1186_v14 = vld [vmem:[%s2077_s0 + $0x100] sm:$0xf] }
  0x24   :  { %777 = vmatpush.bf16.msrb.mxu3 %v1439_v22  ;;  %826 = vmatpush.bf16.msrb.mxu0 %v1447_v23  ;;  %v1083_v22 = vor.u32 %v1374_v16, %v1080_v17  ;;  %v1087_v23 = vor.u32 %v1377_v19, %v1086_v18  ;;  %v1402_v15 = vld [vmem:[%s2077_s0 + $0x110] sm:$0xf0]  ;;  %v1183_v19 = vor.u32 %v1399_v12, %v1180_v13 }
  0x26   :  { %729 = vmatpush.bf16.msrb.mxu2 %v1430_v24  ;;  %680 = vmatpush.bf16.msrb.mxu1 %v1422_v25  ;;  %v1378_v24 = vld [vmem:[%s2077_s0 + $0x54] sm:$0xf]  ;;  %v1092_v25 = vld [vmem:[%s2077_s0 + $0x64] sm:$0xf0] }
  0x28   :  { %778 = vmatpush.bf16.msrb.mxu3 %v1438_v26  ;;  %827 = vmatpush.bf16.msrb.mxu0 %v1446_v27  ;;  %v1098_v26 = vld [vmem:[%s2077_s0 + $0x58] sm:$0xf]  ;;  %v1381_v27 = vld [vmem:[%s2077_s0 + $0x68] sm:$0xf0] }
  0x2a   :  { %730 = vmatpush.bf16.msrb.mxu2 %v1429_v28  ;;  %681 = vmatpush.bf16.msrb.mxu1 %v1421_v29  ;;  %v1379_v28 = vld [vmem:[%s2077_s0 + $0x5c] sm:$0xf]  ;;  %v1100_v29 = vld [vmem:[%s2077_s0 + $0x6c] sm:$0xf0] }
  0x2c   :  { %779 = vmatpush.bf16.msrb.mxu3 %v1437_v30  ;;  %828 = vmatpush.bf16.msrb.mxu0 %v1445_v31  ;;  %v1106_v30 = vld [vmem:[%s2077_s0 + $0x60] sm:$0xf]  ;;  %v1382_v31 = vld [vmem:[%s2077_s0 + $0x70] sm:$0xf0] }
  0x2e   :  { %731 = vmatpush.bf16.msrb.mxu2 %v1428_v32  ;;  %682 = vmatpush.bf16.msrb.mxu1 %v1420_v33  ;;  %v1095_v32 = vor.u32 %v1378_v24, %v1092_v25  ;;  %v1099_v33 = vor.u32 %v1381_v27, %v1098_v26  ;;  %v1403_v27 = vld [vmem:[%s2077_s0 + $0x11c] sm:$0xf] }
  0x30   :  { %780 = vmatpush.bf16.msrb.mxu3 %v1436_v34  ;;  %829 = vmatpush.bf16.msrb.mxu0 %v1444_v35  ;;  %v1103_v34 = vor.u32 %v1379_v28, %v1100_v29  ;;  %v1107_v35 = vor.u32 %v1382_v31, %v1106_v30  ;;  %v1192_v28 = vld [vmem:[%s2077_s0 + $0x12c] sm:$0xf0]  ;;  %v1198_v29 = vld [vmem:[%s2077_s0 + $0x120] sm:$0xf]  ;;  %v1406_v30 = vld [vmem:[%s2077_s0 + $0x130] sm:$0xf0] }
  0x31   :  { %653 = vmatmul.bf16.gmra.mxu1 %v1111_v46  ;;  %663 = vmatmul.bf16.gmra.mxu2 %v1151_v47  ;;  %v1123_v46 = vor.u32 %v1384_v40, %v1120_v41  ;;  %v1127_v47 = vor.u32 %v1387_v43, %v1126_v42  ;;  %v1404_v31 = vld [vmem:[%s2077_s0 + $0x124] sm:$0xf] }
  0x32   :  { %732 = vmatpush.bf16.msrb.mxu2 %v1427_v44  ;;  %683 = vmatpush.bf16.msrb.mxu1 %v1419_v45  ;;  %v1115_v44 = vor.u32 %v1383_v36, %v1112_v37  ;;  %v1119_v45 = vor.u32 %v1386_v39, %v1118_v38  ;;  %v1195_v37 = vor.u32 %v1403_v27, %v1192_v28 }
  0x33   :  { %673 = vmatmul.bf16.gmra.mxu3 %v1191_v48  ;;  %643 = vmatmul.bf16.gmra.mxu0 %v1071_v49  ;;  %v1388_v48 = vld [vmem:[%s2077_s0 + $0xa4] sm:$0xf]  ;;  %v1132_v49 = vld [vmem:[%s2077_s0 + $0xb4] sm:$0xf0]  ;;  %v1199_v38 = vor.u32 %v1406_v30, %v1198_v29 }
  0x34   :  { %781 = vmatpush.bf16.msrb.mxu3 %v1435_v50  ;;  %830 = vmatpush.bf16.msrb.mxu0 %v1443_v51  ;;  %v1138_v50 = vld [vmem:[%s2077_s0 + $0xa8] sm:$0xf]  ;;  %v1391_v51 = vld [vmem:[%s2077_s0 + $0xb8] sm:$0xf0] }
  0x36   :  { %733 = vmatpush.bf16.msrb.mxu2 %v1426_v52  ;;  %684 = vmatpush.bf16.msrb.mxu1 %v1418_v53  ;;  %v1389_v52 = vld [vmem:[%s2077_s0 + $0xac] sm:$0xf]  ;;  %v1140_v53 = vld [vmem:[%s2077_s0 + $0xbc] sm:$0xf0] }
  0x38   :  { %782 = vmatpush.bf16.msrb.mxu3 %v1434_v54  ;;  %831 = vmatpush.bf16.msrb.mxu0 %v1442_v55  ;;  %v1146_v54 = vld [vmem:[%s2077_s0 + $0xb0] sm:$0xf]  ;;  %v1392_v55 = vld [vmem:[%s2077_s0 + $0xc0] sm:$0xf0] }
  0x3a   :  { %734 = vmatpush.bf16.msrb.mxu2 %v1425_v56  ;;  %685 = vmatpush.bf16.msrb.mxu1 %v1417_v57  ;;  %v1135_v56 = vor.u32 %v1388_v48, %v1132_v49  ;;  %v1139_v57 = vor.u32 %v1391_v51, %v1138_v50 }
  0x3c   :  { %783 = vmatpush.bf16.msrb.mxu3 %v1433_v58  ;;  %832 = vmatpush.bf16.msrb.mxu0 %v1441_v59  ;;  %v1143_v58 = vor.u32 %v1389_v52, %v1140_v53  ;;  %v1147_v59 = vor.u32 %v1392_v55, %v1146_v54 }
  0x3e   :  { %735 = vmatpush.bf16.msrb.mxu2 %v1424_v60  ;;  %686 = vmatpush.bf16.msrb.mxu1 %v1416_v61  ;;  %v1393_v60 = vld [vmem:[%s2077_s0 + $0xcc] sm:$0xf]  ;;  %v1152_v61 = vld [vmem:[%s2077_s0 + $0xdc] sm:$0xf0] }
  0x3f   :  { %v1155_v4 = vor.u32 %v1393_v60, %v1152_v61 }
  0x40   :  { %784 = vmatpush.bf16.msrb.mxu3 %v1432_v62  ;;  %833 = vmatpush.bf16.msrb.mxu0 %v1440_v63  ;;  %v1158_v62 = vld [vmem:[%s2077_s0 + $0xd0] sm:$0xf]  ;;  %v1396_v63 = vld [vmem:[%s2077_s0 + $0xe0] sm:$0xf0] }
  0x41   :  { %687 = vmatmul.bf16.vlgmr.msrb.gmra.mxu1 %v1055_v8  ;;  %736 = vmatmul.bf16.vlgmr.msrb.gmra.mxu2 %v1059_v9  ;;  %v1159_v5 = vor.u32 %v1396_v63, %v1158_v62  ;;  %v1398_v8 = vld [vmem:[%s2077_s0 + $0xf4] sm:$0xf]  ;;  %v1172_v9 = vld [vmem:[%s2077_s0 + $0x104] sm:$0xf0] }
  0x42   :  { %v1175_v16 = vor.u32 %v1398_v8, %v1172_v9 }
  0x43   :  { %785 = vmatmul.bf16.vlgmr.msrb.gmra.mxu3 %v1063_v10  ;;  %834 = vmatmul.bf16.vlgmr.msrb.gmra.mxu0 %v1067_v11  ;;  %v1178_v10 = vld [vmem:[%s2077_s0 + $0xf8] sm:$0xf]  ;;  %v1401_v11 = vld [vmem:[%s2077_s0 + $0x108] sm:$0xf0] }
  0x44   :  { %v1179_v17 = vor.u32 %v1401_v11, %v1178_v10 }
  0x51   :  { %692 = vmatmul.bf16.gmra.mxu1 %v1075_v20  ;;  %741 = vmatmul.bf16.gmra.mxu2 %v1079_v21  ;;  %v1187_v20 = vor.u32 %v1402_v15, %v1186_v14 }
  0x53   :  { %790 = vmatmul.bf16.gmra.mxu3 %v1083_v22  ;;  %839 = vmatmul.bf16.gmra.mxu0 %v1087_v23  ;;  %v1513_v23 = vmov 0.0  }
  0x54   :  { %22 = vst.msk [vmem:[#allocation2] sm:$0xff] %vm21_vm0, %v1513_v23 }
  0x55   :  { %23 = vst.msk [vmem:[#allocation2 + $0x8] sm:$0xff] %vm21_vm0, %v1513_v23 }
  0x56   :  { %24 = vst.msk [vmem:[#allocation2 + $0x10] sm:$0xff] %vm21_vm0, %v1513_v23 }
  0x57   :  { %25 = vst.msk [vmem:[#allocation2 + $0x18] sm:$0xff] %vm21_vm0, %v1513_v23 }
  0x58   :  { %26 = vst.msk [vmem:[#allocation2 + $0x20] sm:$0xff] %vm21_vm0, %v1513_v23 }
  0x59   :  { %27 = vst.msk [vmem:[#allocation2 + $0x28] sm:$0xff] %vm21_vm0, %v1513_v23 }
  0x5a   :  { %28 = vst.msk [vmem:[#allocation2 + $0x30] sm:$0xff] %vm21_vm0, %v1513_v23 }
  0x5b   :  { %29 = vst.msk [vmem:[#allocation2 + $0x38] sm:$0xff] %vm21_vm0, %v1513_v23 }
  0x5c   :  { %30 = vst.msk [vmem:[#allocation2 + $0x40] sm:$0xff] %vm21_vm0, %v1513_v23 }
  0x5d   :  { %31 = vst.msk [vmem:[#allocation2 + $0x48] sm:$0xff] %vm21_vm0, %v1513_v23 }
  0x5e   :  { %32 = vst.msk [vmem:[#allocation2 + $0x50] sm:$0xff] %vm21_vm0, %v1513_v23 }
  0x5f   :  { %33 = vst.msk [vmem:[#allocation2 + $0x58] sm:$0xff] %vm21_vm0, %v1513_v23 }
  0x60   :  { %34 = vst.msk [vmem:[#allocation2 + $0x60] sm:$0xff] %vm21_vm0, %v1513_v23 }
  0x61   :  { %697 = vmatmul.bf16.gmra.mxu1 %v1095_v32  ;;  %746 = vmatmul.bf16.gmra.mxu2 %v1099_v33  ;;  %v1200_v32 = vld [vmem:[%s2077_s0 + $0x134] sm:$0xf0]  ;;  %v1206_v33 = vld [vmem:[%s2077_s0 + $0x128] sm:$0xf]  ;;  %35 = vst.msk [vmem:[#allocation2 + $0x68] sm:$0xff] %vm21_vm0, %v1513_v23 }
  0x62   :  { %v1203_v40 = vor.u32 %v1404_v31, %v1200_v32  ;;  %36 = vst.msk [vmem:[#allocation2 + $0x70] sm:$0xff] %vm21_vm0, %v1513_v23 }
  0x63   :  { %795 = vmatmul.bf16.gmra.mxu3 %v1103_v34  ;;  %844 = vmatmul.bf16.gmra.mxu0 %v1107_v35  ;;  %v1407_v34 = vld [vmem:[%s2077_s0 + $0x138] sm:$0xf0]  ;;  %37 = vst.msk [vmem:[#allocation2 + $0x78] sm:$0xff] %vm21_vm0, %v1513_v23 }
  0x64   :  { %v1207_v41 = vor.u32 %v1407_v34, %v1206_v33 }
  0x71   :  { %702 = vmatmul.bf16.gmra.mxu1 %v1115_v44  ;;  %751 = vmatmul.bf16.gmra.mxu2 %v1119_v45 }
  0x73   :  { %800 = vmatmul.bf16.gmra.mxu3 %v1123_v46  ;;  %849 = vmatmul.bf16.gmra.mxu0 %v1127_v47 }
  0x81   :  { %707 = vmatmul.bf16.gmra.mxu1 %v1135_v56  ;;  %756 = vmatmul.bf16.gmra.mxu2 %v1139_v57 }
  0x83   :  { %805 = vmatmul.bf16.gmra.mxu3 %v1143_v58  ;;  %854 = vmatmul.bf16.gmra.mxu0 %v1147_v59  ;;  %v38_v58 = vld [vmem:[#allocation2] sm:$0xff] }
  0x91   :  { %712 = vmatmul.bf16.gmra.mxu1 %v1155_v4  ;;  %761 = vmatmul.bf16.gmra.mxu2 %v1159_v5  ;;  %v1449_v4 = vld [vmem:[%s2079_s3] sm:$0xff]   ;;  %v39_v5 = vld [vmem:[#allocation2 + $0x8] sm:$0xff] }
  0x92   :  { %v1450_v8 = vunpack.c.l.bf16 %v1449_v4  ;;  %v1451_v28 = vunpack.c.h.bf16 %v1449_v4 }
  0x93   :  { %810 = vmatmul.bf16.gmra.mxu3 %v1163_v6  ;;  %859 = vmatmul.bf16.gmra.mxu0 %v1167_v7  ;;  %v1946_v6 = vld [vmem:[%s2078_s2] ss:$0 sm:$0xff] }
  0x9e   :  { %v1875_v18 = vpop.f32.mrf.mxu1 }
  0xa0   :  { %v639_v21 = vpop.f32.mrf.mxu0 }
  0xa1   :  { %717 = vmatmul.bf16.gmra.mxu1 %v1175_v16  ;;  %766 = vmatmul.bf16.gmra.mxu2 %v1179_v17 }
  0xa3   :  { %815 = vmatmul.bf16.gmra.mxu3 %v1183_v19  ;;  %864 = vmatmul.bf16.gmra.mxu0 %v1187_v20 }
  0xa4   :  { %v1877_v22 = vpop.f32.mrf.mxu2 }
  0xa6   :  { %v1880_v24 = vpop.f32.mrf.mxu3  ;;  %v1883_v25 = vpop.f32.mrf.mxu1 }
  0xa8   :  { %v641_v26 = vpop.f32.mrf.mxu0 }
  0xac   :  { %v1915_v35 = vpop.f32.mrf.mxu2 }
  0xae   :  { %v1918_v36 = vpop.f32.mrf.mxu3  ;;  %v1921_v39 = vpop.f32.mrf.mxu1 }
  0xb0   :  { %v644_v42 = vpop.f32.mrf.mxu0 }
  0xb1   :  { %722 = vmatmul.bf16.gmra.mxu1 %v1195_v37  ;;  %771 = vmatmul.bf16.gmra.mxu2 %v1199_v38 }
  0xb3   :  { %820 = vmatmul.bf16.gmra.mxu3 %v1203_v40  ;;  %869 = vmatmul.bf16.gmra.mxu0 %v1207_v41 }
  0xb4   :  { %v1929_v43 = vpop.f32.mrf.mxu2 }
  0xb6   :  { %v1931_v44 = vpop.f32.mrf.mxu3  ;;  %v1933_v45 = vpop.f32.mrf.mxu1 }
  0xb8   :  { %v646_v46 = vpop.f32.mrf.mxu0 }
  0xbc   :  { %v1935_v47 = vpop.f32.mrf.mxu2 }
  0xbe   :  { %v1937_v48 = vpop.f32.mrf.mxu3  ;;  %v688_v49 = vpop.f32.mrf.mxu1 }
  0xbf   :  { %v689_v51 = vadd.f32 %v688_v49, %v639_v21  ;;  %v40_v21 = vld [vmem:[#allocation2 + $0x10] sm:$0xff]  ;;  %v41_v49 = vld [vmem:[#allocation2 + $0x18] sm:$0xff] }
  0xc0   :  { %v835_v50 = vpop.f32.mrf.mxu0 }
  0xc4   :  { %v737_v52 = vpop.f32.mrf.mxu2 }
  0xc5   :  { %v738_v53 = vadd.f32 %v737_v52, %v689_v51 }
  0xc6   :  { %v786_v54 = vpop.f32.mrf.mxu3  ;;  %v690_v55 = vpop.f32.mrf.mxu1 }
  0xc7   :  { %v787_v56 = vadd.f32 %v786_v54, %v738_v53  ;;  %v691_v61 = vadd.f32 %v690_v55, %v641_v26 }
  0xc8   :  { %v837_v57 = vpop.f32.mrf.mxu0 }
  0xc9   :  { %v836_v59 = vadd.f32 %v835_v50, %v787_v56 }
  0xcb   :  { %v875_v60 = vadd.f32 %v836_v59, %v38_v58 }
  0xcc   :  { %v739_v62 = vpop.f32.mrf.mxu2 }
  0xcd   :  { %892 = vst.msk [vmem:[#allocation2] sm:$0xff] %vm21_vm0, %v875_v60  ;;  %v740_v63 = vadd.f32 %v739_v62, %v691_v61 }
  0xce   :  { %v788_v0 = vpop.f32.mrf.mxu3  ;;  %v693_v1 = vpop.f32.mrf.mxu1 }
  0xcf   :  { %v789_v2 = vadd.f32 %v788_v0, %v740_v63  ;;  %v694_v10 = vadd.f32 %v693_v1, %v644_v42  ;;  %v42_v1 = vld [vmem:[#allocation2 + $0x20] sm:$0xff] }
  0xd0   :  { %v840_v3 = vpop.f32.mrf.mxu0 }
  0xd1   :  { %v838_v7 = vadd.f32 %v837_v57, %v789_v2 }
  0xd3   :  { %v876_v9 = vadd.f32 %v838_v7, %v39_v5 }
  0xd4   :  { %v911_v11 = vld [vmem:[#allocation2] sm:$0xff]  ;;  %v742_v12 = vpop.f32.mrf.mxu2 }
  0xd5   :  { %v931_v13 = vadd.f32 %v1946_v6, %v911_v11  ;;  %893 = vst.msk [vmem:[#allocation2 + $0x8] sm:$0xff] %vm21_vm0, %v876_v9  ;;  %v743_v14 = vadd.f32 %v742_v12, %v694_v10 }
  0xd6   :  { %v791_v15 = vpop.f32.mrf.mxu3  ;;  %v695_v16 = vpop.f32.mrf.mxu1 }
  0xd7   :  { %v979_v17 = vadd.f32 %v1450_v8, %v931_v13  ;;  %v792_v19 = vadd.f32 %v791_v15, %v743_v14  ;;  %v696_v30 = vadd.f32 %v695_v16, %v646_v46  ;;  %v1480_v46 = vld [vmem:[%s2079_s3 + $0x8] sm:$0xff]  }
  0xd8   :  { %v842_v20 = vpop.f32.mrf.mxu0  ;;  %v1454_v55 = vunpack.c.l.bf16 %v1480_v46  ;;  %v1455_v7 = vunpack.c.h.bf16 %v1480_v46 }
  0xd9   :  { %v995_v23 = vmax.f32 %v979_v17, 0.0  ;;  %v841_v26 = vadd.f32 %v840_v3, %v792_v19  ;;  %v43_v17 = vld [vmem:[#allocation2 + $0x28] sm:$0xff] }
  0xdb   :  { %v1011_v27 = vpack.c.bf16 %v995_v23, %v995_v23  ;;  %v877_v29 = vadd.f32 %v841_v26, %v40_v21 }
  0xdc   :  { %v912_v31 = vld [vmem:[#allocation2 + $0x8] sm:$0xff]  ;;  %v744_v32 = vpop.f32.mrf.mxu2 }
  0xdd   :  { %1028 = vst.msk [vmem:[%s2080_s4] sm:$0xf] %vm1027_vm1, %v1011_v27  ;;  %v932_v33 = vadd.f32 %v1946_v6, %v912_v31  ;;  %v745_v34 = vadd.f32 %v744_v32, %v696_v30 }
  0xde   :  { %v793_v37 = vpop.f32.mrf.mxu3  ;;  %894 = vst.msk [vmem:[#allocation2 + $0x10] sm:$0xff] %vm21_vm0, %v877_v29  ;;  %v698_v38 = vpop.f32.mrf.mxu1 }
  0xdf   :  { %v980_v40 = vadd.f32 %v1451_v28, %v932_v33  ;;  %v794_v41 = vadd.f32 %v793_v37, %v745_v34  ;;  %v699_v54 = vadd.f32 %v698_v38, %v1875_v18 }
  0xe0   :  { %v845_v42 = vpop.f32.mrf.mxu0 }
  0xe1   :  { %v996_v50 = vmax.f32 %v980_v40, 0.0  ;;  %v843_v51 = vadd.f32 %v842_v20, %v794_v41  ;;  %v44_v40 = vld [vmem:[#allocation2 + $0x30] sm:$0xff] }
  0xe3   :  { %v1012_v52 = vpack.c.bf16 %v996_v50, %v996_v50  ;;  %v878_v53 = vadd.f32 %v843_v51, %v41_v49 }
  0xe4   :  { %v747_v56 = vpop.f32.mrf.mxu2 }
  0xe5   :  { %1029 = vst.msk [vmem:[%s2080_s4 + $0x4] sm:$0xf] %vm1027_vm1, %v1012_v52  ;;  %v913_v57 = vld [vmem:[#allocation2 + $0x10] sm:$0xff]  ;;  %v748_v58 = vadd.f32 %v747_v56, %v699_v54 }
  0xe6   :  { %v796_v59 = vpop.f32.mrf.mxu3  ;;  %v933_v60 = vadd.f32 %v1946_v6, %v913_v57  ;;  %895 = vst.msk [vmem:[#allocation2 + $0x18] sm:$0xff] %vm21_vm0, %v878_v53  ;;  %v700_v61 = vpop.f32.mrf.mxu1 }
  0xe7   :  { %v797_v62 = vadd.f32 %v796_v59, %v748_v58  ;;  %v701_v4 = vadd.f32 %v700_v61, %v1883_v25  ;;  %v1481_v25 = vld [vmem:[%s2079_s3 + $0x10] sm:$0xff]  }
  0xe8   :  { %v847_v63 = vpop.f32.mrf.mxu0  ;;  %v981_v0 = vadd.f32 %v1454_v55, %v933_v60  ;;  %v1458_v21 = vunpack.c.l.bf16 %v1481_v25  ;;  %v1459_v49 = vunpack.c.h.bf16 %v1481_v25  ;;  %v45_v60 = vld [vmem:[#allocation2 + $0x38] sm:$0xff] }
  0xe9   :  { %v846_v18 = vadd.f32 %v845_v42, %v797_v62 }
  0xea   :  { %v997_v2 = vmax.f32 %v981_v0, 0.0 }
  0xeb   :  { %v879_v3 = vadd.f32 %v846_v18, %v42_v1 }
  0xec   :  { %v1013_v5 = vpack.c.bf16 %v997_v2, %v997_v2  ;;  %v749_v8 = vpop.f32.mrf.mxu2 }
  0xed   :  { %v914_v9 = vld [vmem:[#allocation2 + $0x18] sm:$0xff]  ;;  %896 = vst.msk [vmem:[#allocation2 + $0x20] sm:$0xff] %vm21_vm0, %v879_v3  ;;  %v750_v10 = vadd.f32 %v749_v8, %v701_v4 }
  0xee   :  { %v798_v11 = vpop.f32.mrf.mxu3  ;;  %1030 = vst.msk [vmem:[%s2080_s4 + $0x8] sm:$0xf] %vm1027_vm1, %v1013_v5  ;;  %v934_v12 = vadd.f32 %v1946_v6, %v914_v9  ;;  %v703_v13 = vpop.f32.mrf.mxu1 }
  0xef   :  { %v799_v14 = vadd.f32 %v798_v11, %v750_v10  ;;  %v704_v26 = vadd.f32 %v703_v13, %v1921_v39 }
  0xf0   :  { %v850_v15 = vpop.f32.mrf.mxu0  ;;  %v982_v16 = vadd.f32 %v1455_v7, %v934_v12  ;;  %v46_v12 = vld [vmem:[#allocation2 + $0x40] sm:$0xff] }
  0xf1   :  { %v848_v19 = vadd.f32 %v847_v63, %v799_v14 }
  0xf2   :  { %v998_v20 = vmax.f32 %v982_v16, 0.0 }
  0xf3   :  { %v880_v23 = vadd.f32 %v848_v19, %v43_v17 }
  0xf4   :  { %v1014_v27 = vpack.c.bf16 %v998_v20, %v998_v20  ;;  %v915_v28 = vld [vmem:[#allocation2 + $0x20] sm:$0xff]  ;;  %v752_v29 = vpop.f32.mrf.mxu2 }
  0xf5   :  { %v935_v30 = vadd.f32 %v1946_v6, %v915_v28  ;;  %897 = vst.msk [vmem:[#allocation2 + $0x28] sm:$0xff] %vm21_vm0, %v880_v23  ;;  %v753_v31 = vadd.f32 %v752_v29, %v704_v26 }
  0xf6   :  { %v801_v32 = vpop.f32.mrf.mxu3  ;;  %1031 = vst.msk [vmem:[%s2080_s4 + $0xc] sm:$0xf] %vm1027_vm1, %v1014_v27  ;;  %v705_v33 = vpop.f32.mrf.mxu1 }
  0xf7   :  { %v983_v34 = vadd.f32 %v1458_v21, %v935_v30  ;;  %v802_v37 = vadd.f32 %v801_v32, %v753_v31  ;;  %v706_v46 = vadd.f32 %v705_v33, %v1933_v45  ;;  %v1482_v45 = vld [vmem:[%s2079_s3 + $0x18] sm:$0xff]   ;;  %v47_v30 = vld [vmem:[#allocation2 + $0x48] sm:$0xff] }
  0xf8   :  { %v852_v38 = vpop.f32.mrf.mxu0  ;;  %v1462_v18 = vunpack.c.l.bf16 %v1482_v45  ;;  %v1463_v25 = vunpack.c.h.bf16 %v1482_v45 }
  0xf9   :  { %v999_v39 = vmax.f32 %v983_v34, 0.0  ;;  %v851_v41 = vadd.f32 %v850_v15, %v802_v37 }
  0xfb   :  { %v1015_v42 = vpack.c.bf16 %v999_v39, %v999_v39  ;;  %v881_v50 = vadd.f32 %v851_v41, %v44_v40 }
  0xfc   :  { %v916_v51 = vld [vmem:[#allocation2 + $0x28] sm:$0xff]  ;;  %v754_v52 = vpop.f32.mrf.mxu2 }
  0xfd   :  { %1032 = vst.msk [vmem:[%s2080_s4 + $0x10] sm:$0xf] %vm1027_vm1, %v1015_v42  ;;  %v936_v53 = vadd.f32 %v1946_v6, %v916_v51  ;;  %v755_v54 = vadd.f32 %v754_v52, %v706_v46  ;;  %v48_v52 = vld [vmem:[#allocation2 + $0x50] sm:$0xff] }
  0xfe   :  { %v803_v55 = vpop.f32.mrf.mxu3  ;;  %898 = vst.msk [vmem:[#allocation2 + $0x30] sm:$0xff] %vm21_vm0, %v881_v50  ;;  %v708_v56 = vpop.f32.mrf.mxu1 }
  0xff   :  { %v984_v57 = vadd.f32 %v1459_v49, %v936_v53  ;;  %v804_v58 = vadd.f32 %v803_v55, %v755_v54  ;;  %v709_v1 = vadd.f32 %v708_v56, %v1877_v22 }
 0x100   :  { %v855_v59 = vpop.f32.mrf.mxu0 }
 0x101   :  { %v1000_v61 = vmax.f32 %v984_v57, 0.0  ;;  %v853_v62 = vadd.f32 %v852_v38, %v804_v58 }
 0x103   :  { %v1016_v63 = vpack.c.bf16 %v1000_v61, %v1000_v61  ;;  %v882_v0 = vadd.f32 %v853_v62, %v45_v60 }
 0x104   :  { %v757_v2 = vpop.f32.mrf.mxu2 }
 0x105   :  { %1033 = vst.msk [vmem:[%s2080_s4 + $0x14] sm:$0xf] %vm1027_vm1, %v1016_v63  ;;  %v917_v3 = vld [vmem:[#allocation2 + $0x30] sm:$0xff]  ;;  %v758_v4 = vadd.f32 %v757_v2, %v709_v1 }
 0x106   :  { %v806_v5 = vpop.f32.mrf.mxu3  ;;  %v937_v7 = vadd.f32 %v1946_v6, %v917_v3  ;;  %899 = vst.msk [vmem:[#allocation2 + $0x38] sm:$0xff] %vm21_vm0, %v882_v0  ;;  %v710_v8 = vpop.f32.mrf.mxu1 }
 0x107   :  { %v807_v9 = vadd.f32 %v806_v5, %v758_v4  ;;  %v711_v15 = vadd.f32 %v710_v8, %v1915_v35  ;;  %v1483_v35 = vld [vmem:[%s2079_s3 + $0x20] sm:$0xff]  }
 0x108   :  { %v857_v10 = vpop.f32.mrf.mxu0  ;;  %v985_v11 = vadd.f32 %v1462_v18, %v937_v7  ;;  %v1466_v33 = vunpack.c.l.bf16 %v1483_v35  ;;  %v1467_v56 = vunpack.c.h.bf16 %v1483_v35  ;;  %v49_v18 = vld [vmem:[#allocation2 + $0x58] sm:$0xff] }
 0x109   :  { %v856_v22 = vadd.f32 %v855_v59, %v807_v9 }
 0x10a   :  { %v1001_v13 = vmax.f32 %v985_v11, 0.0 }
 0x10b   :  { %v883_v14 = vadd.f32 %v856_v22, %v46_v12 }
 0x10c   :  { %v1017_v16 = vpack.c.bf16 %v1001_v13, %v1001_v13  ;;  %v759_v17 = vpop.f32.mrf.mxu2 }
 0x10d   :  { %v918_v19 = vld [vmem:[#allocation2 + $0x38] sm:$0xff]  ;;  %900 = vst.msk [vmem:[#allocation2 + $0x40] sm:$0xff] %vm21_vm0, %v883_v14  ;;  %v760_v20 = vadd.f32 %v759_v17, %v711_v15 }
 0x10e   :  { %v808_v21 = vpop.f32.mrf.mxu3  ;;  %1034 = vst.msk [vmem:[%s2080_s4 + $0x18] sm:$0xf] %vm1027_vm1, %v1017_v16  ;;  %v938_v23 = vadd.f32 %v1946_v6, %v918_v19  ;;  %v713_v26 = vpop.f32.mrf.mxu1 }
 0x10f   :  { %v809_v27 = vadd.f32 %v808_v21, %v760_v20  ;;  %v714_v37 = vadd.f32 %v713_v26, %v1929_v43 }
 0x110   :  { %v860_v28 = vpop.f32.mrf.mxu0  ;;  %v986_v29 = vadd.f32 %v1463_v25, %v938_v23  ;;  %v50_v25 = vld [vmem:[#allocation2 + $0x60] sm:$0xff] }
 0x111   :  { %v858_v31 = vadd.f32 %v857_v10, %v809_v27 }
 0x112   :  { %v1002_v32 = vmax.f32 %v986_v29, 0.0 }
 0x113   :  { %v884_v34 = vadd.f32 %v858_v31, %v47_v30 }
 0x114   :  { %v1018_v38 = vpack.c.bf16 %v1002_v32, %v1002_v32  ;;  %v919_v40 = vld [vmem:[#allocation2 + $0x40] sm:$0xff]  ;;  %v762_v39 = vpop.f32.mrf.mxu2 }
 0x115   :  { %v939_v41 = vadd.f32 %v1946_v6, %v919_v40  ;;  %901 = vst.msk [vmem:[#allocation2 + $0x48] sm:$0xff] %vm21_vm0, %v884_v34  ;;  %v763_v42 = vadd.f32 %v762_v39, %v714_v37  ;;  %v51_v34 = vld [vmem:[#allocation2 + $0x68] sm:$0xff] }
 0x116   :  { %v811_v49 = vpop.f32.mrf.mxu3  ;;  %1035 = vst.msk [vmem:[%s2080_s4 + $0x1c] sm:$0xf] %vm1027_vm1, %v1018_v38  ;;  %v715_v50 = vpop.f32.mrf.mxu1 }
 0x117   :  { %v987_v46 = vadd.f32 %v1466_v33, %v939_v41  ;;  %v812_v51 = vadd.f32 %v811_v49, %v763_v42  ;;  %v716_v58 = vadd.f32 %v715_v50, %v1935_v47  ;;  %v1484_v47 = vld [vmem:[%s2079_s3 + $0x28] sm:$0xff]  }
 0x118   :  { %v862_v53 = vpop.f32.mrf.mxu0  ;;  %v1470_v9 = vunpack.c.l.bf16 %v1484_v47  ;;  %v1471_v23 = vunpack.c.h.bf16 %v1484_v47 }
 0x119   :  { %v1003_v43 = vmax.f32 %v987_v46, 0.0  ;;  %v861_v54 = vadd.f32 %v860_v28, %v812_v51 }
 0x11b   :  { %v1019_v55 = vpack.c.bf16 %v1003_v43, %v1003_v43  ;;  %v885_v57 = vadd.f32 %v861_v54, %v48_v52 }
 0x11c   :  { %v920_v59 = vld [vmem:[#allocation2 + $0x48] sm:$0xff]  ;;  %v764_v60 = vpop.f32.mrf.mxu2 }
 0x11d   :  { %1036 = vst.msk [vmem:[%s2080_s4 + $0x20] sm:$0xf] %vm1027_vm1, %v1019_v55  ;;  %v940_v61 = vadd.f32 %v1946_v6, %v920_v59  ;;  %v765_v45 = vadd.f32 %v764_v60, %v716_v58  ;;  %v52_v55 = vld [vmem:[#allocation2 + $0x70] sm:$0xff] }
 0x11e   :  { %v813_v62 = vpop.f32.mrf.mxu3  ;;  %902 = vst.msk [vmem:[#allocation2 + $0x50] sm:$0xff] %vm21_vm0, %v885_v57  ;;  %v718_v63 = vpop.f32.mrf.mxu1 }
 0x11f   :  { %v988_v0 = vadd.f32 %v1467_v56, %v940_v61  ;;  %v814_v1 = vadd.f32 %v813_v62, %v765_v45  ;;  %v719_v8 = vadd.f32 %v718_v63, %v1880_v24 }
 0x120   :  { %v865_v4 = vpop.f32.mrf.mxu0 }
 0x121   :  { %v1004_v2 = vmax.f32 %v988_v0, 0.0  ;;  %v863_v3 = vadd.f32 %v862_v53, %v814_v1 }
 0x123   :  { %v1020_v5 = vpack.c.bf16 %v1004_v2, %v1004_v2  ;;  %v886_v7 = vadd.f32 %v863_v3, %v49_v18  ;;  %v53_v3 = vld [vmem:[#allocation2 + $0x78] sm:$0xff] }
 0x124   :  { %v767_v10 = vpop.f32.mrf.mxu2 }
 0x125   :  { %1037 = vst.msk [vmem:[%s2080_s4 + $0x24] sm:$0xf] %vm1027_vm1, %v1020_v5  ;;  %v921_v11 = vld [vmem:[#allocation2 + $0x50] sm:$0xff]  ;;  %v768_v12 = vadd.f32 %v767_v10, %v719_v8 }
 0x126   :  { %v816_v22 = vpop.f32.mrf.mxu3  ;;  %v941_v13 = vadd.f32 %v1946_v6, %v921_v11  ;;  %903 = vst.msk [vmem:[#allocation2 + $0x58] sm:$0xff] %vm21_vm0, %v886_v7  ;;  %v720_v14 = vpop.f32.mrf.mxu1 }
 0x127   :  { %v817_v15 = vadd.f32 %v816_v22, %v768_v12  ;;  %v721_v20 = vadd.f32 %v720_v14, %v1918_v36  ;;  %v1485_v36 = vld [vmem:[%s2079_s3 + $0x30] sm:$0xff]  }
 0x128   :  { %v989_v16 = vadd.f32 %v1470_v9, %v941_v13  ;;  %v867_v26 = vpop.f32.mrf.mxu0  ;;  %v1474_v40 = vunpack.c.l.bf16 %v1485_v36  ;;  %v1475_v59 = vunpack.c.h.bf16 %v1485_v36 }
 0x129   :  { %v866_v17 = vadd.f32 %v865_v4, %v817_v15 }
 0x12a   :  { %v1005_v24 = vmax.f32 %v989_v16, 0.0 }
 0x12b   :  { %v887_v19 = vadd.f32 %v866_v17, %v50_v25 }
 0x12c   :  { %v1021_v21 = vpack.c.bf16 %v1005_v24, %v1005_v24  ;;  %v769_v27 = vpop.f32.mrf.mxu2 }
 0x12d   :  { %v922_v28 = vld [vmem:[#allocation2 + $0x58] sm:$0xff]  ;;  %904 = vst.msk [vmem:[#allocation2 + $0x60] sm:$0xff] %vm21_vm0, %v887_v19  ;;  %v770_v29 = vadd.f32 %v769_v27, %v721_v20 }
 0x12e   :  { %v818_v35 = vpop.f32.mrf.mxu3  ;;  %1038 = vst.msk [vmem:[%s2080_s4 + $0x28] sm:$0xf] %vm1027_vm1, %v1021_v21  ;;  %v942_v30 = vadd.f32 %v1946_v6, %v922_v28  ;;  %v723_v31 = vpop.f32.mrf.mxu1 }
 0x12f   :  { %v819_v32 = vadd.f32 %v818_v35, %v770_v29  ;;  %v724_v41 = vadd.f32 %v723_v31, %v1931_v44 }
 0x130   :  { %v990_v33 = vadd.f32 %v1471_v23, %v942_v30  ;;  %v870_v53 = vpop.f32.mrf.mxu0 }
 0x131   :  { %v868_v37 = vadd.f32 %v867_v26, %v819_v32 }
 0x132   :  { %v1006_v38 = vmax.f32 %v990_v33, 0.0 }
 0x133   :  { %v888_v39 = vadd.f32 %v868_v37, %v51_v34 }
 0x134   :  { %v1022_v42 = vpack.c.bf16 %v1006_v38, %v1006_v38  ;;  %v923_v49 = vld [vmem:[#allocation2 + $0x60] sm:$0xff]  ;;  %v772_v50 = vpop.f32.mrf.mxu2 }
 0x135   :  { %v943_v46 = vadd.f32 %v1946_v6, %v923_v49  ;;  %905 = vst.msk [vmem:[#allocation2 + $0x68] sm:$0xff] %vm21_vm0, %v888_v39  ;;  %v773_v51 = vadd.f32 %v772_v50, %v724_v41 }
 0x136   :  { %v821_v52 = vpop.f32.mrf.mxu3  ;;  %1039 = vst.msk [vmem:[%s2080_s4 + $0x2c] sm:$0xf] %vm1027_vm1, %v1022_v42  ;;  %v725_v56 = vpop.f32.mrf.mxu1 }
 0x137   :  { %v991_v43 = vadd.f32 %v1474_v40, %v943_v46  ;;  %v822_v54 = vadd.f32 %v821_v52, %v773_v51  ;;  %v726_v61 = vadd.f32 %v725_v56, %v1937_v48  ;;  %v1486_v48 = vld [vmem:[%s2079_s3 + $0x38] sm:$0xff]  }
 0x138   :  { %v872_v47 = vpop.f32.mrf.mxu0  ;;  %v1478_v9 = vunpack.c.l.bf16 %v1486_v48  ;;  %v1479_v14 = vunpack.c.h.bf16 %v1486_v48 }
 0x139   :  { %v1007_v44 = vmax.f32 %v991_v43, 0.0  ;;  %v871_v57 = vadd.f32 %v870_v53, %v822_v54 }
 0x13b   :  { %v1023_v58 = vpack.c.bf16 %v1007_v44, %v1007_v44  ;;  %v889_v60 = vadd.f32 %v871_v57, %v52_v55 }
 0x13c   :  { %v924_v45 = vld [vmem:[#allocation2 + $0x68] sm:$0xff]  ;;  %v774_v62 = vpop.f32.mrf.mxu2 }
 0x13d   :  { %1040 = vst.msk [vmem:[%s2080_s4 + $0x30] sm:$0xf] %vm1027_vm1, %v1023_v58  ;;  %v944_v63 = vadd.f32 %v1946_v6, %v924_v45  ;;  %v775_v0 = vadd.f32 %v774_v62, %v726_v61 }
 0x13e   :  { %906 = vst.msk [vmem:[#allocation2 + $0x70] sm:$0xff] %vm21_vm0, %v889_v60  ;;  %v823_v1 = vpop.f32.mrf.mxu3 }
 0x13f   :  { %v992_v18 = vadd.f32 %v1475_v59, %v944_v63  ;;  %v824_v2 = vadd.f32 %v823_v1, %v775_v0 }
 0x141   :  { %v1008_v4 = vmax.f32 %v992_v18, 0.0  ;;  %v873_v5 = vadd.f32 %v872_v47, %v824_v2 }
 0x143   :  { %v1024_v7 = vpack.c.bf16 %v1008_v4, %v1008_v4  ;;  %v890_v8 = vadd.f32 %v873_v5, %v53_v3 }
 0x145   :  { %1041 = vst.msk [vmem:[%s2080_s4 + $0x34] sm:$0xf] %vm1027_vm1, %v1024_v7  ;;  %v925_v10 = vld [vmem:[#allocation2 + $0x70] sm:$0xff] }
 0x146   :  { %v945_v11 = vadd.f32 %v1946_v6, %v925_v10  ;;  %907 = vst.msk [vmem:[#allocation2 + $0x78] sm:$0xff] %vm21_vm0, %v890_v8 }
 0x148   :  { %v993_v12 = vadd.f32 %v1478_v9, %v945_v11 }
 0x14a   :  { %v1009_v22 = vmax.f32 %v993_v12, 0.0 }
 0x14c   :  { %v1025_v13 = vpack.c.bf16 %v1009_v22, %v1009_v22 }
 0x14d   :  { %v926_v15 = vld [vmem:[#allocation2 + $0x78] sm:$0xff] }
 0x14e   :  { %1042 = vst.msk [vmem:[%s2080_s4 + $0x38] sm:$0xf] %vm1027_vm1, %v1025_v13  ;;  %v946_v16 = vadd.f32 %v1946_v6, %v926_v15 }
 0x150   :  { %v994_v25 = vadd.f32 %v1479_v14, %v946_v16 }
 0x152   :  { %v1010_v17 = vmax.f32 %v994_v25, 0.0 }
 0x154   :  { %v1026_v24 = vpack.c.bf16 %v1010_v17, %v1010_v17 }
 0x156   :  { %1043 = vst.msk [vmem:[%s2080_s4 + $0x3c] sm:$0xf] %vm1027_vm1, %v1026_v24 }

// kernel: _resnet_forward.19
= control target key start
LH: loop header
LB: loop body
LE: loop exit
PB: predicated region body
PF: predicated region fallthrough
CT: control target
= control target key end

     0   :  { %s1023_s1 = inlined_call_operand.vmem [shape: bf16[640,128], index: 1, kind: input, shape index: {}]   ;;  %s1024_s0 = inlined_call_operand.vmem [shape: bf16[32,640], index: 0, kind: input, shape index: {}]   ;;  %s1025_s2 = inlined_call_operand.vmem [shape: f32[1,128], index: 2, kind: input, shape index: {}]   ;;  %s1026_s3 = inlined_call_operand.vmem [shape: bf16[32,128], index: 3, kind: output, shape index: {}]  }
   0x1   :  { %v761_v0 = vld [vmem:[%s1023_s1 + $0x38] sm:$0xff]  ;;  %v760_v4 = vld [vmem:[%s1023_s1 + $0x30] sm:$0xff]  ;;  %v759_v8 = vld [vmem:[%s1023_s1 + $0x28] sm:$0xff] }
   0x2   :  { %v769_v1 = vld [vmem:[%s1023_s1 + $0x78] sm:$0xff]  ;;  %410 = vmatpush.bf16.msra.mxu0 %v761_v0  ;;  %v768_v5 = vld [vmem:[%s1023_s1 + $0x70] sm:$0xff]  ;;  %v767_v9 = vld [vmem:[%s1023_s1 + $0x68] sm:$0xff] }
   0x3   :  { %v777_v2 = vld [vmem:[%s1023_s1 + $0xb8] sm:$0xff]  ;;  %429 = vmatpush.bf16.msra.mxu1 %v769_v1  ;;  %v776_v6 = vld [vmem:[%s1023_s1 + $0xb0] sm:$0xff]  ;;  %v775_v10 = vld [vmem:[%s1023_s1 + $0xa8] sm:$0xff] }
   0x4   :  { %v785_v3 = vld [vmem:[%s1023_s1 + $0xf8] sm:$0xff]  ;;  %448 = vmatpush.bf16.msra.mxu2 %v777_v2  ;;  %v784_v7 = vld [vmem:[%s1023_s1 + $0xf0] sm:$0xff]  ;;  %v783_v11 = vld [vmem:[%s1023_s1 + $0xe8] sm:$0xff] }
   0x5   :  { %467 = vmatpush.bf16.msra.mxu3 %v785_v3  ;;  %v758_v12 = vld [vmem:[%s1023_s1 + $0x20] sm:$0xff]  ;;  %v757_v16 = vld [vmem:[%s1023_s1 + $0x18] sm:$0xff]  ;;  %v756_v20 = vld [vmem:[%s1023_s1 + $0x10] sm:$0xff] }
   0x6   :  { %411 = vmatpush.bf16.msra.mxu0 %v760_v4  ;;  %v766_v13 = vld [vmem:[%s1023_s1 + $0x60] sm:$0xff]  ;;  %v765_v17 = vld [vmem:[%s1023_s1 + $0x58] sm:$0xff]  ;;  %v764_v21 = vld [vmem:[%s1023_s1 + $0x50] sm:$0xff] }
   0x7   :  { %430 = vmatpush.bf16.msra.mxu1 %v768_v5  ;;  %v774_v14 = vld [vmem:[%s1023_s1 + $0xa0] sm:$0xff]  ;;  %v773_v18 = vld [vmem:[%s1023_s1 + $0x98] sm:$0xff]  ;;  %v772_v22 = vld [vmem:[%s1023_s1 + $0x90] sm:$0xff] }
   0x8   :  { %449 = vmatpush.bf16.msra.mxu2 %v776_v6  ;;  %v782_v15 = vld [vmem:[%s1023_s1 + $0xe0] sm:$0xff]  ;;  %v781_v19 = vld [vmem:[%s1023_s1 + $0xd8] sm:$0xff]  ;;  %v780_v23 = vld [vmem:[%s1023_s1 + $0xd0] sm:$0xff] }
   0x9   :  { %468 = vmatpush.bf16.msra.mxu3 %v784_v7  ;;  %v755_v24 = vld [vmem:[%s1023_s1 + $0x8] sm:$0xff]  ;;  %v754_v28 = vld [vmem:[%s1023_s1] sm:$0xff]  ;;  %v746_v33 = vld [vmem:[%s1024_s0 + $0x10] sm:$0xf0] }
   0xa   :  { %412 = vmatpush.bf16.msra.mxu0 %v759_v8  ;;  %v763_v25 = vld [vmem:[%s1023_s1 + $0x48] sm:$0xff]  ;;  %v762_v29 = vld [vmem:[%s1023_s1 + $0x40] sm:$0xff]  ;;  %v548_v35 = vld [vmem:[%s1024_s0 + $0x14] sm:$0xf0] }
   0xb   :  { %431 = vmatpush.bf16.msra.mxu1 %v767_v9  ;;  %v771_v26 = vld [vmem:[%s1023_s1 + $0x88] sm:$0xff]  ;;  %v770_v30 = vld [vmem:[%s1023_s1 + $0x80] sm:$0xff]  ;;  %v747_v37 = vld [vmem:[%s1024_s0 + $0x18] sm:$0xf0] }
   0xc   :  { %450 = vmatpush.bf16.msra.mxu2 %v775_v10  ;;  %v779_v27 = vld [vmem:[%s1023_s1 + $0xc8] sm:$0xff]  ;;  %v778_v31 = vld [vmem:[%s1023_s1 + $0xc0] sm:$0xff]  ;;  %v793_v40 = vld [vmem:[%s1023_s1 + $0x138] sm:$0xff] }
   0xd   :  { %469 = vmatpush.bf16.msra.mxu3 %v783_v11  ;;  %v546_v32 = vld [vmem:[%s1024_s0] sm:$0xf]  ;;  %v744_v34 = vld [vmem:[%s1024_s0 + $0x4] sm:$0xf]  ;;  %v554_v36 = vld [vmem:[%s1024_s0 + $0x8] sm:$0xf] }
   0xe   :  { %413 = vmatpush.bf16.msra.mxu0 %v758_v12  ;;  %v745_v38 = vld [vmem:[%s1024_s0 + $0xc] sm:$0xf]  ;;  %v556_v39 = vld [vmem:[%s1024_s0 + $0x1c] sm:$0xf0]  ;;  %v547_v41 = vor.u32 %v746_v33, %v546_v32  ;;  %v551_v42 = vor.u32 %v744_v34, %v548_v35  ;;  %v555_v43 = vor.u32 %v747_v37, %v554_v36  ;;  %v792_v45 = vld [vmem:[%s1023_s1 + $0x130] sm:$0xff] }
   0xf   :  { %432 = vmatpush.bf16.msra.mxu1 %v766_v13  ;;  %v559_v44 = vor.u32 %v745_v38, %v556_v39  ;;  %v791_v46 = vld [vmem:[%s1023_s1 + $0x128] sm:$0xff]  ;;  %v790_v47 = vld [vmem:[%s1023_s1 + $0x120] sm:$0xff]  ;;  %v751_v49 = vld [vmem:[%s1024_s0 + $0x38] sm:$0xf0] }
  0x10   :  { %451 = vmatpush.bf16.msra.mxu2 %v774_v14  ;;  %v566_v48 = vld [vmem:[%s1024_s0 + $0x28] sm:$0xf]  ;;  %v749_v50 = vld [vmem:[%s1024_s0 + $0x2c] sm:$0xf]  ;;  %v568_v51 = vld [vmem:[%s1024_s0 + $0x3c] sm:$0xf0] }
  0x11   :  { %470 = vmatpush.bf16.msra.mxu3 %v782_v15  ;;  %v574_v52 = vld [vmem:[%s1024_s0 + $0x30] sm:$0xf]  ;;  %v752_v53 = vld [vmem:[%s1024_s0 + $0x40] sm:$0xf0]  ;;  %v750_v54 = vld [vmem:[%s1024_s0 + $0x34] sm:$0xf]  ;;  %v567_v57 = vor.u32 %v751_v49, %v566_v48  ;;  %v571_v58 = vor.u32 %v749_v50, %v568_v51 }
  0x12   :  { %414 = vmatpush.bf16.msra.mxu0 %v757_v16  ;;  %v576_v55 = vld [vmem:[%s1024_s0 + $0x44] sm:$0xf0]  ;;  %v789_v56 = vld [vmem:[%s1023_s1 + $0x118] sm:$0xff]  ;;  %v575_v59 = vor.u32 %v752_v53, %v574_v52  ;;  %v788_v61 = vld [vmem:[%s1023_s1 + $0x110] sm:$0xff] }
  0x13   :  { %433 = vmatpush.bf16.msra.mxu1 %v765_v17  ;;  %v579_v60 = vor.u32 %v750_v54, %v576_v55  ;;  %v787_v62 = vld [vmem:[%s1023_s1 + $0x108] sm:$0xff]  ;;  %v786_v63 = vld [vmem:[%s1023_s1 + $0x100] sm:$0xff]  ;;  %v562_v0 = vld [vmem:[%s1024_s0 + $0x10] sm:$0xf] }
  0x14   :  { %452 = vmatpush.bf16.msra.mxu2 %v773_v18  ;;  %v748_v1 = vld [vmem:[%s1024_s0 + $0x20] sm:$0xf0]  ;;  %v582_v2 = vld [vmem:[%s1024_s0 + $0x38] sm:$0xf]  ;;  %v753_v3 = vld [vmem:[%s1024_s0 + $0x48] sm:$0xf0] }
  0x15   :  { %471 = vmatpush.bf16.msra.mxu3 %v781_v19  ;;  %v563_v4 = vor.u32 %v748_v1, %v562_v0  ;;  %v583_v5 = vor.u32 %v753_v3, %v582_v2  ;;  %v813_v34 = vld [vmem:[%s1025_s2] ss:$0 sm:$0xff] }
  0x16   :  { %415 = vmatpush.bf16.msra.mxu0 %v756_v20 }
  0x17   :  { %434 = vmatpush.bf16.msra.mxu1 %v764_v21 }
  0x18   :  { %453 = vmatpush.bf16.msra.mxu2 %v772_v22 }
  0x19   :  { %472 = vmatpush.bf16.msra.mxu3 %v780_v23 }
  0x1a   :  { %416 = vmatpush.bf16.msra.mxu0 %v755_v24 }
  0x1b   :  { %435 = vmatpush.bf16.msra.mxu1 %v763_v25 }
  0x1c   :  { %454 = vmatpush.bf16.msra.mxu2 %v771_v26 }
  0x1d   :  { %473 = vmatpush.bf16.msra.mxu3 %v779_v27 }
  0x1e   :  { %417 = vmatpush.bf16.msra.mxu0 %v754_v28 }
  0x1f   :  { %436 = vmatpush.bf16.msra.mxu1 %v762_v29 }
  0x20   :  { %455 = vmatpush.bf16.msra.mxu2 %v770_v30 }
  0x21   :  { %474 = vmatpush.bf16.msra.mxu3 %v778_v31  ;;  %418 = vmatmul.bf16.vlgmr.msra.gmra.mxu0 %v547_v41 }
  0x22   :  { %486 = vmatpush.bf16.msrb.mxu0 %v793_v40  ;;  %437 = vmatmul.bf16.vlgmr.msra.gmra.mxu1 %v551_v42 }
  0x23   :  { %805 = vmatpush.bf16.msrb.mxu1 %v793_v40  ;;  %456 = vmatmul.bf16.vlgmr.msra.gmra.mxu2 %v555_v43 }
  0x24   :  { %475 = vmatmul.bf16.vlgmr.msra.gmra.mxu3 %v559_v44 }
  0x26   :  { %487 = vmatpush.bf16.msrb.mxu0 %v792_v45 }
  0x27   :  { %806 = vmatpush.bf16.msrb.mxu1 %v792_v45 }
  0x2a   :  { %488 = vmatpush.bf16.msrb.mxu0 %v791_v46 }
  0x2b   :  { %807 = vmatpush.bf16.msrb.mxu1 %v791_v46 }
  0x2e   :  { %489 = vmatpush.bf16.msrb.mxu0 %v790_v47 }
  0x2f   :  { %808 = vmatpush.bf16.msrb.mxu1 %v790_v47 }
  0x31   :  { %423 = vmatmul.bf16.gmra.mxu0 %v567_v57 }
  0x32   :  { %490 = vmatpush.bf16.msrb.mxu0 %v789_v56  ;;  %442 = vmatmul.bf16.gmra.mxu1 %v571_v58 }
  0x33   :  { %809 = vmatpush.bf16.msrb.mxu1 %v789_v56  ;;  %461 = vmatmul.bf16.gmra.mxu2 %v575_v59 }
  0x34   :  { %480 = vmatmul.bf16.gmra.mxu3 %v579_v60 }
  0x36   :  { %491 = vmatpush.bf16.msrb.mxu0 %v788_v61 }
  0x37   :  { %810 = vmatpush.bf16.msrb.mxu1 %v788_v61 }
  0x3a   :  { %492 = vmatpush.bf16.msrb.mxu0 %v787_v62 }
  0x3b   :  { %811 = vmatpush.bf16.msrb.mxu1 %v787_v62 }
  0x3e   :  { %493 = vmatpush.bf16.msrb.mxu0 %v786_v63 }
  0x3f   :  { %812 = vmatpush.bf16.msrb.mxu1 %v786_v63 }
  0x41   :  { %494 = vmatmul.bf16.vlgmr.msrb.gmra.mxu0 %v563_v4 }
  0x42   :  { %499 = vmatmul.bf16.vlgmr.msrb.gmra.mxu1 %v583_v5 }
  0x9e   :  { %v419_v6 = vpop.f32.mrf.mxu0 }
  0x9f   :  { %v438_v7 = vpop.f32.mrf.mxu1 }
  0xa0   :  { %v439_v20 = vadd.f32 %v438_v7, %v419_v6 }
  0xa6   :  { %v457_v8 = vpop.f32.mrf.mxu2  ;;  %v421_v10 = vpop.f32.mrf.mxu0 }
  0xa7   :  { %v476_v9 = vpop.f32.mrf.mxu3  ;;  %v440_v11 = vpop.f32.mrf.mxu1  ;;  %v458_v22 = vadd.f32 %v457_v8, %v439_v20 }
  0xa8   :  { %v441_v27 = vadd.f32 %v440_v11, %v421_v10 }
  0xa9   :  { %v477_v29 = vadd.f32 %v476_v9, %v458_v22 }
  0xae   :  { %v459_v12 = vpop.f32.mrf.mxu2  ;;  %v424_v13 = vpop.f32.mrf.mxu0 }
  0xaf   :  { %v443_v14 = vpop.f32.mrf.mxu1  ;;  %v478_v15 = vpop.f32.mrf.mxu3  ;;  %v460_v30 = vadd.f32 %v459_v12, %v441_v27 }
  0xb0   :  { %v444_v21 = vadd.f32 %v443_v14, %v424_v13 }
  0xb1   :  { %v479_v37 = vadd.f32 %v478_v15, %v460_v30 }
  0xb6   :  { %v462_v16 = vpop.f32.mrf.mxu2  ;;  %v426_v17 = vpop.f32.mrf.mxu0 }
  0xb7   :  { %v445_v18 = vpop.f32.mrf.mxu1  ;;  %v481_v19 = vpop.f32.mrf.mxu3  ;;  %v463_v23 = vadd.f32 %v462_v16, %v444_v21 }
  0xb8   :  { %v446_v28 = vadd.f32 %v445_v18, %v426_v17 }
  0xb9   :  { %v482_v31 = vadd.f32 %v481_v19, %v463_v23 }
  0xbe   :  { %v464_v24 = vpop.f32.mrf.mxu2  ;;  %v495_v25 = vpop.f32.mrf.mxu0 }
  0xbf   :  { %v500_v26 = vpop.f32.mrf.mxu1  ;;  %v465_v32 = vadd.f32 %v464_v24, %v446_v28  ;;  %v496_v33 = vadd.f32 %v495_v25, %v477_v29  ;;  %v483_v36 = vpop.f32.mrf.mxu3 }
  0xc0   :  { %v501_v35 = vadd.f32 %v500_v26, %v482_v31 }
  0xc1   :  { %v484_v38 = vadd.f32 %v483_v36, %v465_v32  ;;  %v524_v41 = vadd.f32 %v813_v34, %v496_v33 }
  0xc2   :  { %v526_v42 = vadd.f32 %v813_v34, %v501_v35 }
  0xc3   :  { %v528_v47 = vmax.f32 %v524_v41, 0.0 }
  0xc4   :  { %v530_v48 = vmax.f32 %v526_v42, 0.0 }
  0xc6   :  { %v497_v39 = vpop.f32.mrf.mxu0 }
  0xc7   :  { %v502_v40 = vpop.f32.mrf.mxu1  ;;  %v498_v43 = vadd.f32 %v497_v39, %v479_v37 }
  0xc8   :  { %v503_v44 = vadd.f32 %v502_v40, %v484_v38 }
  0xc9   :  { %v525_v45 = vadd.f32 %v813_v34, %v498_v43 }
  0xca   :  { %v527_v46 = vadd.f32 %v813_v34, %v503_v44 }
  0xcb   :  { %v529_v49 = vmax.f32 %v525_v45, 0.0 }
  0xcc   :  { %v531_v50 = vmax.f32 %v527_v46, 0.0 }
  0xcd   :  { %v797_v51 = vpack.c.bf16 %v529_v49, %v528_v47 }
  0xce   :  { %v802_v52 = vpack.c.bf16 %v531_v50, %v530_v48 }
  0xcf   :  { %798 = vst [vmem:[%s1026_s3] sm:$0xff] %v797_v51  }
  0xd0   :  { %804 = vst [vmem:[%s1026_s3 + $0x8] sm:$0xff] %v802_v52  }

// kernel: _resnet_forward.18
= control target key start
LH: loop header
LB: loop body
LE: loop exit
PB: predicated region body
PF: predicated region fallthrough
CT: control target
= control target key end

     0   :  { %s289_s1 = inlined_call_operand.vmem [shape: bf16[128,128], index: 1, kind: input, shape index: {}]   ;;  %s290_s2 = inlined_call_operand.vmem [shape: f32[1,128], index: 2, kind: input, shape index: {}]   ;;  %s291_s0 = inlined_call_operand.vmem [shape: bf16[32,128], index: 0, kind: input, shape index: {}]   ;;  %s292_s3 = inlined_call_operand.vmem [shape: bf16[32,128], index: 3, kind: output, shape index: {}]  }
   0x1   :  { %v209_v0 = vld [vmem:[%s289_s1 + $0x38] sm:$0xff]  ;;  %v208_v1 = vld [vmem:[%s289_s1 + $0x30] sm:$0xff]  ;;  %v207_v2 = vld [vmem:[%s289_s1 + $0x28] sm:$0xff] }
   0x2   :  { %106 = vmatpush.bf16.msra.mxu0 %v209_v0  ;;  %221 = vmatpush.bf16.msra.mxu1 %v209_v0  ;;  %v206_v3 = vld [vmem:[%s289_s1 + $0x20] sm:$0xff]  ;;  %v205_v4 = vld [vmem:[%s289_s1 + $0x18] sm:$0xff]  ;;  %v204_v5 = vld [vmem:[%s289_s1 + $0x10] sm:$0xff] }
   0x3   :  { %v203_v6 = vld [vmem:[%s289_s1 + $0x8] sm:$0xff]  ;;  %v202_v7 = vld [vmem:[%s289_s1] sm:$0xff] }
   0x4   :  { %v200_v8 = vld [vmem:[%s291_s0] sm:$0xff]  ;;  %v201_v9 = vld [vmem:[%s291_s0 + $0x8] sm:$0xff] }
   0x5   :  { %v229_v12 = vld [vmem:[%s290_s2] ss:$0 sm:$0xff] }
   0x6   :  { %107 = vmatpush.bf16.msra.mxu0 %v208_v1  ;;  %222 = vmatpush.bf16.msra.mxu1 %v208_v1 }
   0xa   :  { %108 = vmatpush.bf16.msra.mxu0 %v207_v2  ;;  %223 = vmatpush.bf16.msra.mxu1 %v207_v2 }
   0xe   :  { %109 = vmatpush.bf16.msra.mxu0 %v206_v3  ;;  %224 = vmatpush.bf16.msra.mxu1 %v206_v3 }
  0x12   :  { %110 = vmatpush.bf16.msra.mxu0 %v205_v4  ;;  %225 = vmatpush.bf16.msra.mxu1 %v205_v4 }
  0x16   :  { %111 = vmatpush.bf16.msra.mxu0 %v204_v5  ;;  %226 = vmatpush.bf16.msra.mxu1 %v204_v5 }
  0x1a   :  { %112 = vmatpush.bf16.msra.mxu0 %v203_v6  ;;  %227 = vmatpush.bf16.msra.mxu1 %v203_v6 }
  0x1e   :  { %113 = vmatpush.bf16.msra.mxu0 %v202_v7  ;;  %228 = vmatpush.bf16.msra.mxu1 %v202_v7 }
  0x21   :  { %114 = vmatmul.bf16.vlgmr.msra.gmra.mxu0 %v200_v8  ;;  %119 = vmatmul.bf16.vlgmr.msra.gmra.mxu1 %v201_v9 }
  0x9e   :  { %v115_v10 = vpop.f32.mrf.mxu0  ;;  %v120_v11 = vpop.f32.mrf.mxu1 }
  0x9f   :  { %v144_v15 = vadd.f32 %v229_v12, %v115_v10  ;;  %v146_v16 = vadd.f32 %v229_v12, %v120_v11 }
  0xa6   :  { %v117_v13 = vpop.f32.mrf.mxu0  ;;  %v122_v14 = vpop.f32.mrf.mxu1 }
  0xa7   :  { %v145_v17 = vadd.f32 %v229_v12, %v117_v13  ;;  %v147_v18 = vadd.f32 %v229_v12, %v122_v14 }
  0xa9   :  { %v213_v19 = vpack.c.bf16 %v145_v17, %v144_v15  ;;  %v218_v20 = vpack.c.bf16 %v147_v18, %v146_v16 }
  0xab   :  { %214 = vst [vmem:[%s292_s3] sm:$0xff] %v213_v19  }
  0xac   :  { %220 = vst [vmem:[%s292_s3 + $0x8] sm:$0xff] %v218_v20  }

// kernel: _resnet_forward.20
= control target key start
LH: loop header
LB: loop body
LE: loop exit
PB: predicated region body
PF: predicated region fallthrough
CT: control target
= control target key end

     0   :  { %s1782_s1 = inlined_call_operand.vmem [shape: bf16[1152,128], index: 1, kind: input, shape index: {}]   ;;  %s1783_s0 = inlined_call_operand.vmem [shape: bf16[32,1152], index: 0, kind: input, shape index: {}]   ;;  %s1784_s2 = inlined_call_operand.vmem [shape: f32[1,128], index: 2, kind: input, shape index: {}]   ;;  %s1785_s3 = inlined_call_operand.vmem [shape: bf16[32,128], index: 3, kind: input, shape index: {}]   ;;  %s1786_s4 = inlined_call_operand.vmem [shape: bf16[32,128], index: 4, kind: output, shape index: {}]  }
   0x1   :  { %v1324_v0 = vld [vmem:[%s1782_s1 + $0x38] sm:$0xff]  ;;  %v1323_v4 = vld [vmem:[%s1782_s1 + $0x30] sm:$0xff]  ;;  %v1322_v8 = vld [vmem:[%s1782_s1 + $0x28] sm:$0xff] }
   0x2   :  { %v1332_v1 = vld [vmem:[%s1782_s1 + $0x78] sm:$0xff]  ;;  %717 = vmatpush.bf16.msra.mxu0 %v1324_v0  ;;  %v1331_v5 = vld [vmem:[%s1782_s1 + $0x70] sm:$0xff]  ;;  %v1330_v9 = vld [vmem:[%s1782_s1 + $0x68] sm:$0xff] }
   0x3   :  { %v1340_v2 = vld [vmem:[%s1782_s1 + $0xb8] sm:$0xff]  ;;  %736 = vmatpush.bf16.msra.mxu1 %v1332_v1  ;;  %v1339_v6 = vld [vmem:[%s1782_s1 + $0xb0] sm:$0xff]  ;;  %v1338_v10 = vld [vmem:[%s1782_s1 + $0xa8] sm:$0xff] }
   0x4   :  { %v1348_v3 = vld [vmem:[%s1782_s1 + $0xf8] sm:$0xff]  ;;  %755 = vmatpush.bf16.msra.mxu2 %v1340_v2  ;;  %v1347_v7 = vld [vmem:[%s1782_s1 + $0xf0] sm:$0xff]  ;;  %v1346_v11 = vld [vmem:[%s1782_s1 + $0xe8] sm:$0xff] }
   0x5   :  { %774 = vmatpush.bf16.msra.mxu3 %v1348_v3  ;;  %v1321_v12 = vld [vmem:[%s1782_s1 + $0x20] sm:$0xff]  ;;  %v1320_v16 = vld [vmem:[%s1782_s1 + $0x18] sm:$0xff]  ;;  %v1319_v20 = vld [vmem:[%s1782_s1 + $0x10] sm:$0xff] }
   0x6   :  { %718 = vmatpush.bf16.msra.mxu0 %v1323_v4  ;;  %v1329_v13 = vld [vmem:[%s1782_s1 + $0x60] sm:$0xff]  ;;  %v1328_v17 = vld [vmem:[%s1782_s1 + $0x58] sm:$0xff]  ;;  %v1327_v21 = vld [vmem:[%s1782_s1 + $0x50] sm:$0xff] }
   0x7   :  { %737 = vmatpush.bf16.msra.mxu1 %v1331_v5  ;;  %v1337_v14 = vld [vmem:[%s1782_s1 + $0xa0] sm:$0xff]  ;;  %v1336_v18 = vld [vmem:[%s1782_s1 + $0x98] sm:$0xff]  ;;  %v1335_v22 = vld [vmem:[%s1782_s1 + $0x90] sm:$0xff] }
   0x8   :  { %756 = vmatpush.bf16.msra.mxu2 %v1339_v6  ;;  %v1345_v15 = vld [vmem:[%s1782_s1 + $0xe0] sm:$0xff]  ;;  %v1344_v19 = vld [vmem:[%s1782_s1 + $0xd8] sm:$0xff]  ;;  %v1343_v23 = vld [vmem:[%s1782_s1 + $0xd0] sm:$0xff] }
   0x9   :  { %775 = vmatpush.bf16.msra.mxu3 %v1347_v7  ;;  %v1318_v24 = vld [vmem:[%s1782_s1 + $0x8] sm:$0xff]  ;;  %v1317_v28 = vld [vmem:[%s1782_s1] sm:$0xff]  ;;  %v951_v39 = vld [vmem:[%s1783_s0 + $0x2c] sm:$0xf0] }
   0xa   :  { %719 = vmatpush.bf16.msra.mxu0 %v1322_v8  ;;  %v1326_v25 = vld [vmem:[%s1782_s1 + $0x48] sm:$0xff]  ;;  %v1325_v29 = vld [vmem:[%s1782_s1 + $0x40] sm:$0xff]  ;;  %v1356_v40 = vld [vmem:[%s1782_s1 + $0x138] sm:$0xff] }
   0xb   :  { %738 = vmatpush.bf16.msra.mxu1 %v1330_v9  ;;  %v1334_v26 = vld [vmem:[%s1782_s1 + $0x88] sm:$0xff]  ;;  %v1333_v30 = vld [vmem:[%s1782_s1 + $0x80] sm:$0xff]  ;;  %v1364_v41 = vld [vmem:[%s1782_s1 + $0x178] sm:$0xff] }
   0xc   :  { %757 = vmatpush.bf16.msra.mxu2 %v1338_v10  ;;  %v1342_v27 = vld [vmem:[%s1782_s1 + $0xc8] sm:$0xff]  ;;  %v1341_v31 = vld [vmem:[%s1782_s1 + $0xc0] sm:$0xff]  ;;  %v1372_v46 = vld [vmem:[%s1782_s1 + $0x1b8] sm:$0xff] }
   0xd   :  { %776 = vmatpush.bf16.msra.mxu3 %v1346_v11  ;;  %v941_v32 = vld [vmem:[%s1783_s0] sm:$0xf]  ;;  %v1303_v33 = vld [vmem:[%s1783_s0 + $0x20] sm:$0xf0]  ;;  %v943_v35 = vld [vmem:[%s1783_s0 + $0x24] sm:$0xf0] }
   0xe   :  { %720 = vmatpush.bf16.msra.mxu0 %v1321_v12  ;;  %v1299_v34 = vld [vmem:[%s1783_s0 + $0x4] sm:$0xf]  ;;  %v949_v36 = vld [vmem:[%s1783_s0 + $0x8] sm:$0xf]  ;;  %v1304_v37 = vld [vmem:[%s1783_s0 + $0x28] sm:$0xf0]  ;;  %v942_v42 = vor.u32 %v1303_v33, %v941_v32 }
   0xf   :  { %739 = vmatpush.bf16.msra.mxu1 %v1329_v13  ;;  %v1300_v38 = vld [vmem:[%s1783_s0 + $0xc] sm:$0xf]  ;;  %v946_v43 = vor.u32 %v1299_v34, %v943_v35  ;;  %v950_v44 = vor.u32 %v1304_v37, %v949_v36  ;;  %v1380_v47 = vld [vmem:[%s1782_s1 + $0x1f8] sm:$0xff]  ;;  %v1355_v48 = vld [vmem:[%s1782_s1 + $0x130] sm:$0xff] }
  0x10   :  { %758 = vmatpush.bf16.msra.mxu2 %v1337_v14  ;;  %v954_v45 = vor.u32 %v1300_v38, %v951_v39  ;;  %v1363_v49 = vld [vmem:[%s1782_s1 + $0x170] sm:$0xff]  ;;  %v1354_v52 = vld [vmem:[%s1782_s1 + $0x128] sm:$0xff]  ;;  %v1353_v56 = vld [vmem:[%s1782_s1 + $0x120] sm:$0xff] }
  0x11   :  { %777 = vmatpush.bf16.msra.mxu3 %v1345_v15  ;;  %v1371_v50 = vld [vmem:[%s1782_s1 + $0x1b0] sm:$0xff]  ;;  %v1362_v53 = vld [vmem:[%s1782_s1 + $0x168] sm:$0xff]  ;;  %v1361_v57 = vld [vmem:[%s1782_s1 + $0x160] sm:$0xff] }
  0x12   :  { %721 = vmatpush.bf16.msra.mxu0 %v1320_v16  ;;  %v1379_v51 = vld [vmem:[%s1782_s1 + $0x1f0] sm:$0xff]  ;;  %v1370_v54 = vld [vmem:[%s1782_s1 + $0x1a8] sm:$0xff]  ;;  %v1369_v58 = vld [vmem:[%s1782_s1 + $0x1a0] sm:$0xff] }
  0x13   :  { %740 = vmatpush.bf16.msra.mxu1 %v1328_v17  ;;  %v1378_v55 = vld [vmem:[%s1782_s1 + $0x1e8] sm:$0xff]  ;;  %v1377_v59 = vld [vmem:[%s1782_s1 + $0x1e0] sm:$0xff]  ;;  %v979_v63 = vld [vmem:[%s1783_s0 + $0x6c] sm:$0xf0] }
  0x14   :  { %759 = vmatpush.bf16.msra.mxu2 %v1336_v18  ;;  %v977_v60 = vld [vmem:[%s1783_s0 + $0x48] sm:$0xf]  ;;  %v1312_v61 = vld [vmem:[%s1783_s0 + $0x68] sm:$0xf0]  ;;  %v985_v0 = vld [vmem:[%s1783_s0 + $0x50] sm:$0xf] }
  0x15   :  { %778 = vmatpush.bf16.msra.mxu3 %v1344_v19  ;;  %v1308_v62 = vld [vmem:[%s1783_s0 + $0x4c] sm:$0xf]  ;;  %v1313_v1 = vld [vmem:[%s1783_s0 + $0x70] sm:$0xf0]  ;;  %v987_v3 = vld [vmem:[%s1783_s0 + $0x74] sm:$0xf0]  ;;  %v978_v6 = vor.u32 %v1312_v61, %v977_v60 }
  0x16   :  { %722 = vmatpush.bf16.msra.mxu0 %v1319_v20  ;;  %v1309_v2 = vld [vmem:[%s1783_s0 + $0x54] sm:$0xf]  ;;  %v1352_v4 = vld [vmem:[%s1782_s1 + $0x118] sm:$0xff]  ;;  %v982_v7 = vor.u32 %v1308_v62, %v979_v63  ;;  %v986_v8 = vor.u32 %v1313_v1, %v985_v0  ;;  %v1350_v16 = vld [vmem:[%s1782_s1 + $0x108] sm:$0xff] }
  0x17   :  { %741 = vmatpush.bf16.msra.mxu1 %v1327_v21  ;;  %v1360_v5 = vld [vmem:[%s1782_s1 + $0x158] sm:$0xff]  ;;  %v990_v9 = vor.u32 %v1309_v2, %v987_v3  ;;  %v1351_v12 = vld [vmem:[%s1782_s1 + $0x110] sm:$0xff]  ;;  %v1358_v17 = vld [vmem:[%s1782_s1 + $0x148] sm:$0xff] }
  0x18   :  { %760 = vmatpush.bf16.msra.mxu2 %v1335_v22  ;;  %v1368_v10 = vld [vmem:[%s1782_s1 + $0x198] sm:$0xff]  ;;  %v1359_v13 = vld [vmem:[%s1782_s1 + $0x150] sm:$0xff]  ;;  %v1366_v18 = vld [vmem:[%s1782_s1 + $0x188] sm:$0xff] }
  0x19   :  { %779 = vmatpush.bf16.msra.mxu3 %v1343_v23  ;;  %v1376_v11 = vld [vmem:[%s1782_s1 + $0x1d8] sm:$0xff]  ;;  %v1367_v14 = vld [vmem:[%s1782_s1 + $0x190] sm:$0xff]  ;;  %v1374_v19 = vld [vmem:[%s1782_s1 + $0x1c8] sm:$0xff] }
  0x1a   :  { %723 = vmatpush.bf16.msra.mxu0 %v1318_v24  ;;  %v1375_v15 = vld [vmem:[%s1782_s1 + $0x1d0] sm:$0xff]  ;;  %v1349_v20 = vld [vmem:[%s1782_s1 + $0x100] sm:$0xff]  ;;  %v1386_v38 = vld [vmem:[%s1782_s1 + $0x228] sm:$0xff] }
  0x1b   :  { %742 = vmatpush.bf16.msra.mxu1 %v1326_v25  ;;  %v1357_v21 = vld [vmem:[%s1782_s1 + $0x140] sm:$0xff]  ;;  %v957_v24 = vld [vmem:[%s1783_s0 + $0x10] sm:$0xf]  ;;  %v1305_v25 = vld [vmem:[%s1783_s0 + $0x30] sm:$0xf0] }
  0x1c   :  { %761 = vmatpush.bf16.msra.mxu2 %v1334_v26  ;;  %v1365_v22 = vld [vmem:[%s1782_s1 + $0x180] sm:$0xff]  ;;  %v1388_v26 = vld [vmem:[%s1782_s1 + $0x238] sm:$0xff]  ;;  %v958_v33 = vor.u32 %v1305_v25, %v957_v24  ;;  %v1387_v37 = vld [vmem:[%s1782_s1 + $0x230] sm:$0xff] }
  0x1d   :  { %780 = vmatpush.bf16.msra.mxu3 %v1342_v27  ;;  %v1373_v23 = vld [vmem:[%s1782_s1 + $0x1c0] sm:$0xff]  ;;  %v1301_v27 = vld [vmem:[%s1783_s0 + $0x14] sm:$0xf] }
  0x1e   :  { %724 = vmatpush.bf16.msra.mxu0 %v1317_v28  ;;  %v959_v28 = vld [vmem:[%s1783_s0 + $0x34] sm:$0xf0]  ;;  %v967_v32 = vld [vmem:[%s1783_s0 + $0x3c] sm:$0xf0] }
  0x1f   :  { %743 = vmatpush.bf16.msra.mxu1 %v1325_v29  ;;  %v965_v29 = vld [vmem:[%s1783_s0 + $0x18] sm:$0xf]  ;;  %v962_v34 = vor.u32 %v1301_v27, %v959_v28  ;;  %v1385_v39 = vld [vmem:[%s1782_s1 + $0x220] sm:$0xff] }
  0x20   :  { %762 = vmatpush.bf16.msra.mxu2 %v1333_v30  ;;  %v1306_v30 = vld [vmem:[%s1783_s0 + $0x38] sm:$0xf0] }
  0x21   :  { %781 = vmatpush.bf16.msra.mxu3 %v1341_v31  ;;  %725 = vmatmul.bf16.vlgmr.msra.gmra.mxu0 %v942_v42  ;;  %v1302_v31 = vld [vmem:[%s1783_s0 + $0x1c] sm:$0xf]  ;;  %v966_v35 = vor.u32 %v1306_v30, %v965_v29 }
  0x22   :  { %793 = vmatpush.bf16.msrb.mxu0 %v1356_v40  ;;  %744 = vmatmul.bf16.vlgmr.msra.gmra.mxu1 %v946_v43  ;;  %v970_v36 = vor.u32 %v1302_v31, %v967_v32  ;;  %v993_v40 = vld [vmem:[%s1783_s0 + $0x58] sm:$0xf]  ;;  %v1310_v42 = vld [vmem:[%s1783_s0 + $0x5c] sm:$0xf]  ;;  %v995_v43 = vld [vmem:[%s1783_s0 + $0x7c] sm:$0xf0] }
  0x23   :  { %812 = vmatpush.bf16.msrb.mxu1 %v1364_v41  ;;  %763 = vmatmul.bf16.vlgmr.msra.gmra.mxu2 %v950_v44  ;;  %v1314_v41 = vld [vmem:[%s1783_s0 + $0x78] sm:$0xf0]  ;;  %v1001_v44 = vld [vmem:[%s1783_s0 + $0x60] sm:$0xf] }
  0x24   :  { %782 = vmatmul.bf16.vlgmr.msra.gmra.mxu3 %v954_v45  ;;  %831 = vmatpush.bf16.msrb.mxu2 %v1372_v46  ;;  %v1315_v45 = vld [vmem:[%s1783_s0 + $0x80] sm:$0xf0] }
  0x25   :  { %850 = vmatpush.bf16.msrb.mxu3 %v1380_v47  ;;  %v1311_v46 = vld [vmem:[%s1783_s0 + $0x64] sm:$0xf]  ;;  %v1003_v47 = vld [vmem:[%s1783_s0 + $0x84] sm:$0xf0] }
  0x26   :  { %794 = vmatpush.bf16.msrb.mxu0 %v1355_v48  ;;  %v1384_v48 = vld [vmem:[%s1782_s1 + $0x218] sm:$0xff] }
  0x27   :  { %813 = vmatpush.bf16.msrb.mxu1 %v1363_v49  ;;  %v994_v49 = vor.u32 %v1314_v41, %v993_v40 }
  0x28   :  { %832 = vmatpush.bf16.msrb.mxu2 %v1371_v50  ;;  %v998_v50 = vor.u32 %v1310_v42, %v995_v43 }
  0x29   :  { %851 = vmatpush.bf16.msrb.mxu3 %v1379_v51  ;;  %v1002_v51 = vor.u32 %v1315_v45, %v1001_v44 }
  0x2a   :  { %795 = vmatpush.bf16.msrb.mxu0 %v1354_v52  ;;  %v1006_v52 = vor.u32 %v1311_v46, %v1003_v47 }
  0x2b   :  { %814 = vmatpush.bf16.msrb.mxu1 %v1362_v53  ;;  %v1383_v53 = vld [vmem:[%s1782_s1 + $0x210] sm:$0xff] }
  0x2c   :  { %833 = vmatpush.bf16.msrb.mxu2 %v1370_v54  ;;  %v1382_v54 = vld [vmem:[%s1782_s1 + $0x208] sm:$0xff] }
  0x2d   :  { %852 = vmatpush.bf16.msrb.mxu3 %v1378_v55  ;;  %v1381_v55 = vld [vmem:[%s1782_s1 + $0x200] sm:$0xff] }
  0x2e   :  { %796 = vmatpush.bf16.msrb.mxu0 %v1353_v56  ;;  %v973_v56 = vld [vmem:[%s1783_s0 + $0x20] sm:$0xf] }
  0x2f   :  { %815 = vmatpush.bf16.msrb.mxu1 %v1361_v57  ;;  %v1307_v57 = vld [vmem:[%s1783_s0 + $0x40] sm:$0xf0] }
  0x30   :  { %834 = vmatpush.bf16.msrb.mxu2 %v1369_v58  ;;  %v1009_v58 = vld [vmem:[%s1783_s0 + $0x68] sm:$0xf]  ;;  %v974_v60 = vor.u32 %v1307_v57, %v973_v56 }
  0x31   :  { %853 = vmatpush.bf16.msrb.mxu3 %v1377_v59  ;;  %730 = vmatmul.bf16.gmra.mxu0 %v978_v6  ;;  %v1316_v59 = vld [vmem:[%s1783_s0 + $0x88] sm:$0xf0] }
  0x32   :  { %797 = vmatpush.bf16.msrb.mxu0 %v1352_v4  ;;  %749 = vmatmul.bf16.gmra.mxu1 %v982_v7  ;;  %v1010_v61 = vor.u32 %v1316_v59, %v1009_v58  ;;  %v1417_v58 = vld [vmem:[%s1784_s2] ss:$0 sm:$0xff] }
  0x33   :  { %816 = vmatpush.bf16.msrb.mxu1 %v1360_v5  ;;  %768 = vmatmul.bf16.gmra.mxu2 %v986_v8  ;;  %v1390_v59 = vld [vmem:[%s1785_s3] sm:$0xff]  }
  0x34   :  { %787 = vmatmul.bf16.gmra.mxu3 %v990_v9  ;;  %835 = vmatpush.bf16.msrb.mxu2 %v1368_v10 }
  0x35   :  { %854 = vmatpush.bf16.msrb.mxu3 %v1376_v11 }
  0x36   :  { %798 = vmatpush.bf16.msrb.mxu0 %v1351_v12 }
  0x37   :  { %817 = vmatpush.bf16.msrb.mxu1 %v1359_v13 }
  0x38   :  { %836 = vmatpush.bf16.msrb.mxu2 %v1367_v14 }
  0x39   :  { %855 = vmatpush.bf16.msrb.mxu3 %v1375_v15 }
  0x3a   :  { %799 = vmatpush.bf16.msrb.mxu0 %v1350_v16 }
  0x3b   :  { %818 = vmatpush.bf16.msrb.mxu1 %v1358_v17 }
  0x3c   :  { %837 = vmatpush.bf16.msrb.mxu2 %v1366_v18 }
  0x3d   :  { %856 = vmatpush.bf16.msrb.mxu3 %v1374_v19 }
  0x3e   :  { %800 = vmatpush.bf16.msrb.mxu0 %v1349_v20 }
  0x3f   :  { %819 = vmatpush.bf16.msrb.mxu1 %v1357_v21 }
  0x40   :  { %838 = vmatpush.bf16.msrb.mxu2 %v1365_v22 }
  0x41   :  { %857 = vmatpush.bf16.msrb.mxu3 %v1373_v23  ;;  %801 = vmatmul.bf16.vlgmr.msrb.gmra.mxu0 %v958_v33 }
  0x42   :  { %869 = vmatpush.bf16.msra.mxu0 %v1388_v26  ;;  %820 = vmatmul.bf16.vlgmr.msrb.gmra.mxu1 %v962_v34 }
  0x43   :  { %1409 = vmatpush.bf16.msra.mxu1 %v1388_v26  ;;  %839 = vmatmul.bf16.vlgmr.msrb.gmra.mxu2 %v966_v35 }
  0x44   :  { %858 = vmatmul.bf16.vlgmr.msrb.gmra.mxu3 %v970_v36 }
  0x46   :  { %870 = vmatpush.bf16.msra.mxu0 %v1387_v37 }
  0x47   :  { %1410 = vmatpush.bf16.msra.mxu1 %v1387_v37 }
  0x4a   :  { %871 = vmatpush.bf16.msra.mxu0 %v1386_v38 }
  0x4b   :  { %1411 = vmatpush.bf16.msra.mxu1 %v1386_v38 }
  0x4e   :  { %872 = vmatpush.bf16.msra.mxu0 %v1385_v39 }
  0x4f   :  { %1412 = vmatpush.bf16.msra.mxu1 %v1385_v39 }
  0x51   :  { %806 = vmatmul.bf16.gmra.mxu0 %v994_v49 }
  0x52   :  { %873 = vmatpush.bf16.msra.mxu0 %v1384_v48  ;;  %825 = vmatmul.bf16.gmra.mxu1 %v998_v50 }
  0x53   :  { %1413 = vmatpush.bf16.msra.mxu1 %v1384_v48  ;;  %844 = vmatmul.bf16.gmra.mxu2 %v1002_v51 }
  0x54   :  { %863 = vmatmul.bf16.gmra.mxu3 %v1006_v52 }
  0x56   :  { %874 = vmatpush.bf16.msra.mxu0 %v1383_v53 }
  0x57   :  { %1414 = vmatpush.bf16.msra.mxu1 %v1383_v53 }
  0x5a   :  { %875 = vmatpush.bf16.msra.mxu0 %v1382_v54 }
  0x5b   :  { %1415 = vmatpush.bf16.msra.mxu1 %v1382_v54 }
  0x5e   :  { %876 = vmatpush.bf16.msra.mxu0 %v1381_v55 }
  0x5f   :  { %1416 = vmatpush.bf16.msra.mxu1 %v1381_v55 }
  0x61   :  { %877 = vmatmul.bf16.vlgmr.msra.gmra.mxu0 %v974_v60 }
  0x62   :  { %882 = vmatmul.bf16.vlgmr.msra.gmra.mxu1 %v1010_v61  ;;  %v1407_v61 = vld [vmem:[%s1785_s3 + $0x8] sm:$0xff]  }
  0x9e   :  { %v726_v62 = vpop.f32.mrf.mxu0 }
  0x9f   :  { %v745_v63 = vpop.f32.mrf.mxu1 }
  0xa0   :  { %v746_v20 = vadd.f32 %v745_v63, %v726_v62  ;;  %v1391_v63 = vunpack.c.l.bf16 %v1390_v59 }
  0xa6   :  { %v764_v0 = vpop.f32.mrf.mxu2  ;;  %v728_v2 = vpop.f32.mrf.mxu0 }
  0xa7   :  { %v783_v1 = vpop.f32.mrf.mxu3  ;;  %v747_v3 = vpop.f32.mrf.mxu1  ;;  %v765_v25 = vadd.f32 %v764_v0, %v746_v20  ;;  %v1395_v0 = vunpack.c.l.bf16 %v1407_v61 }
  0xa8   :  { %v748_v29 = vadd.f32 %v747_v3, %v728_v2 }
  0xa9   :  { %v784_v28 = vadd.f32 %v783_v1, %v765_v25 }
  0xae   :  { %v766_v4 = vpop.f32.mrf.mxu2  ;;  %v731_v6 = vpop.f32.mrf.mxu0 }
  0xaf   :  { %v785_v5 = vpop.f32.mrf.mxu3  ;;  %v750_v7 = vpop.f32.mrf.mxu1  ;;  %v767_v32 = vadd.f32 %v766_v4, %v748_v29 }
  0xb0   :  { %v751_v21 = vadd.f32 %v750_v7, %v731_v6 }
  0xb1   :  { %v786_v39 = vadd.f32 %v785_v5, %v767_v32 }
  0xb6   :  { %v769_v8 = vpop.f32.mrf.mxu2  ;;  %v733_v10 = vpop.f32.mrf.mxu0 }
  0xb7   :  { %v788_v9 = vpop.f32.mrf.mxu3  ;;  %v752_v11 = vpop.f32.mrf.mxu1  ;;  %v770_v26 = vadd.f32 %v769_v8, %v751_v21  ;;  %v1392_v8 = vunpack.c.h.bf16 %v1390_v59 }
  0xb8   :  { %v753_v31 = vadd.f32 %v752_v11, %v733_v10  ;;  %v1396_v10 = vunpack.c.h.bf16 %v1407_v61 }
  0xb9   :  { %v789_v30 = vadd.f32 %v788_v9, %v770_v26 }
  0xbe   :  { %v771_v12 = vpop.f32.mrf.mxu2  ;;  %v802_v14 = vpop.f32.mrf.mxu0 }
  0xbf   :  { %v790_v13 = vpop.f32.mrf.mxu3  ;;  %v821_v15 = vpop.f32.mrf.mxu1  ;;  %v772_v33 = vadd.f32 %v771_v12, %v753_v31  ;;  %v803_v34 = vadd.f32 %v802_v14, %v784_v28 }
  0xc1   :  { %v791_v40 = vadd.f32 %v790_v13, %v772_v33  ;;  %v822_v41 = vadd.f32 %v821_v15, %v803_v34 }
  0xc6   :  { %v840_v16 = vpop.f32.mrf.mxu2  ;;  %v804_v18 = vpop.f32.mrf.mxu0 }
  0xc7   :  { %v859_v17 = vpop.f32.mrf.mxu3  ;;  %v823_v19 = vpop.f32.mrf.mxu1  ;;  %v841_v44 = vadd.f32 %v840_v16, %v822_v41  ;;  %v805_v45 = vadd.f32 %v804_v18, %v786_v39 }
  0xc9   :  { %v860_v51 = vadd.f32 %v859_v17, %v841_v44  ;;  %v824_v52 = vadd.f32 %v823_v19, %v805_v45 }
  0xce   :  { %v842_v22 = vpop.f32.mrf.mxu2  ;;  %v807_v23 = vpop.f32.mrf.mxu0 }
  0xcf   :  { %v826_v24 = vpop.f32.mrf.mxu1  ;;  %v861_v27 = vpop.f32.mrf.mxu3  ;;  %v808_v35 = vadd.f32 %v807_v23, %v789_v30  ;;  %v843_v55 = vadd.f32 %v842_v22, %v824_v52 }
  0xd1   :  { %v827_v42 = vadd.f32 %v826_v24, %v808_v35  ;;  %v862_v1 = vadd.f32 %v861_v27, %v843_v55 }
  0xd6   :  { %v845_v36 = vpop.f32.mrf.mxu2  ;;  %v809_v37 = vpop.f32.mrf.mxu0 }
  0xd7   :  { %v828_v38 = vpop.f32.mrf.mxu1  ;;  %v864_v43 = vpop.f32.mrf.mxu3  ;;  %v846_v46 = vadd.f32 %v845_v36, %v827_v42  ;;  %v810_v47 = vadd.f32 %v809_v37, %v791_v40 }
  0xd9   :  { %v865_v53 = vadd.f32 %v864_v43, %v846_v46  ;;  %v829_v54 = vadd.f32 %v828_v38, %v810_v47 }
  0xde   :  { %v847_v48 = vpop.f32.mrf.mxu2  ;;  %v878_v49 = vpop.f32.mrf.mxu0 }
  0xdf   :  { %v883_v50 = vpop.f32.mrf.mxu1  ;;  %v848_v56 = vadd.f32 %v847_v48, %v829_v54  ;;  %v879_v57 = vadd.f32 %v878_v49, %v860_v51  ;;  %v866_v62 = vpop.f32.mrf.mxu3 }
  0xe0   :  { %v884_v60 = vadd.f32 %v883_v50, %v865_v53 }
  0xe1   :  { %v867_v2 = vadd.f32 %v866_v62, %v848_v56  ;;  %v907_v3 = vadd.f32 %v1417_v58, %v879_v57 }
  0xe2   :  { %v909_v4 = vadd.f32 %v1417_v58, %v884_v60 }
  0xe3   :  { %v919_v11 = vadd.f32 %v1391_v63, %v907_v3 }
  0xe4   :  { %v921_v12 = vadd.f32 %v1395_v0, %v909_v4 }
  0xe5   :  { %v923_v17 = vmax.f32 %v919_v11, 0.0 }
  0xe6   :  { %v880_v5 = vpop.f32.mrf.mxu0  ;;  %v925_v18 = vmax.f32 %v921_v12, 0.0 }
  0xe7   :  { %v885_v6 = vpop.f32.mrf.mxu1  ;;  %v881_v7 = vadd.f32 %v880_v5, %v862_v1 }
  0xe8   :  { %v886_v9 = vadd.f32 %v885_v6, %v867_v2 }
  0xe9   :  { %v908_v13 = vadd.f32 %v1417_v58, %v881_v7 }
  0xea   :  { %v910_v14 = vadd.f32 %v1417_v58, %v886_v9 }
  0xeb   :  { %v920_v15 = vadd.f32 %v1392_v8, %v908_v13 }
  0xec   :  { %v922_v16 = vadd.f32 %v1396_v10, %v910_v14 }
  0xed   :  { %v924_v19 = vmax.f32 %v920_v15, 0.0 }
  0xee   :  { %v926_v20 = vmax.f32 %v922_v16, 0.0 }
  0xef   :  { %v1400_v21 = vpack.c.bf16 %v924_v19, %v923_v17 }
  0xf0   :  { %v1405_v22 = vpack.c.bf16 %v926_v20, %v925_v18 }
  0xf1   :  { %1401 = vst [vmem:[%s1786_s4] sm:$0xff] %v1400_v21  }
  0xf2   :  { %1408 = vst [vmem:[%s1786_s4 + $0x8] sm:$0xff] %v1405_v22  }

// kernel: _resnet_forward.22
= control target key start
LH: loop header
LB: loop body
LE: loop exit
PB: predicated region body
PF: predicated region fallthrough
CT: control target
= control target key end

     0   :  { %s2983_s1 = inlined_call_operand.vmem [shape: bf16[1152,256], index: 1, kind: input, shape index: {}]   ;;  %s2984_s0 = inlined_call_operand.vmem [shape: bf16[16,1152], index: 0, kind: input, shape index: {}]   ;;  %s2985_s2 = inlined_call_operand.vmem [shape: f32[1,256], index: 2, kind: input, shape index: {}]   ;;  %s2986_s3 = inlined_call_operand.vmem [shape: bf16[16,256], index: 3, kind: output, shape index: {}]  }
   0x1   :  { %v1329_v0 = vld [vmem:[%s2983_s1 + $0x70] sm:$0xf]  ;;  %v1871_v1 = vld [vmem:[%s2983_s1 + $0x74] sm:$0xf0]  ;;  %v1321_v11 = vld [vmem:[%s2983_s1 + $0x60] sm:$0xf] }
   0x2   :  { %v1393_v2 = vld [vmem:[%s2983_s1 + $0xf0] sm:$0xf]  ;;  %v1330_v3 = vor.u32 %v1871_v1, %v1329_v0  ;;  %v1887_v4 = vld [vmem:[%s2983_s1 + $0xf4] sm:$0xf0]  ;;  %v1869_v13 = vld [vmem:[%s2983_s1 + $0x64] sm:$0xf0] }
   0x3   :  { %v1457_v5 = vld [vmem:[%s2983_s1 + $0x170] sm:$0xf]  ;;  %v1903_v6 = vld [vmem:[%s2983_s1 + $0x174] sm:$0xf0]  ;;  %v1394_v7 = vor.u32 %v1887_v4, %v1393_v2  ;;  %v1385_v14 = vld [vmem:[%s2983_s1 + $0xe0] sm:$0xf]  ;;  %v1322_v16 = vor.u32 %v1869_v13, %v1321_v11 }
   0x4   :  { %v1458_v8 = vor.u32 %v1903_v6, %v1457_v5  ;;  %v1521_v9 = vld [vmem:[%s2983_s1 + $0x1f0] sm:$0xf]  ;;  %v1919_v10 = vld [vmem:[%s2983_s1 + $0x1f4] sm:$0xf0]  ;;  %946 = vmatpush.bf16.msra.mxu0 %v1330_v3  ;;  %v1885_v15 = vld [vmem:[%s2983_s1 + $0xe4] sm:$0xf0] }
   0x5   :  { %v1522_v12 = vor.u32 %v1919_v10, %v1521_v9  ;;  %960 = vmatpush.bf16.msra.mxu1 %v1394_v7  ;;  %v1386_v17 = vor.u32 %v1885_v15, %v1385_v14  ;;  %v1449_v18 = vld [vmem:[%s2983_s1 + $0x160] sm:$0xf]  ;;  %v1901_v19 = vld [vmem:[%s2983_s1 + $0x164] sm:$0xf0]  ;;  %v1313_v23 = vld [vmem:[%s2983_s1 + $0x50] sm:$0xf] }
   0x6   :  { %974 = vmatpush.bf16.msra.mxu2 %v1458_v8  ;;  %v1513_v20 = vld [vmem:[%s2983_s1 + $0x1e0] sm:$0xf]  ;;  %v1450_v21 = vor.u32 %v1901_v19, %v1449_v18  ;;  %v1917_v22 = vld [vmem:[%s2983_s1 + $0x1e4] sm:$0xf0]  ;;  %v1867_v24 = vld [vmem:[%s2983_s1 + $0x54] sm:$0xf0] }
   0x7   :  { %988 = vmatpush.bf16.msra.mxu3 %v1522_v12  ;;  %v1514_v25 = vor.u32 %v1917_v22, %v1513_v20  ;;  %v1377_v26 = vld [vmem:[%s2983_s1 + $0xd0] sm:$0xf]  ;;  %v1883_v27 = vld [vmem:[%s2983_s1 + $0xd4] sm:$0xf0]  ;;  %v1314_v29 = vor.u32 %v1867_v24, %v1313_v23  ;;  %v1305_v35 = vld [vmem:[%s2983_s1 + $0x40] sm:$0xf] }
   0x8   :  { %v1441_v28 = vld [vmem:[%s2983_s1 + $0x150] sm:$0xf]  ;;  %947 = vmatpush.bf16.msra.mxu0 %v1322_v16  ;;  %v1899_v30 = vld [vmem:[%s2983_s1 + $0x154] sm:$0xf0]  ;;  %v1378_v33 = vor.u32 %v1883_v27, %v1377_v26  ;;  %v1865_v36 = vld [vmem:[%s2983_s1 + $0x44] sm:$0xf0] }
   0x9   :  { %v1505_v31 = vld [vmem:[%s2983_s1 + $0x1d0] sm:$0xf]  ;;  %v1915_v32 = vld [vmem:[%s2983_s1 + $0x1d4] sm:$0xf0]  ;;  %961 = vmatpush.bf16.msra.mxu1 %v1386_v17  ;;  %v1442_v34 = vor.u32 %v1899_v30, %v1441_v28  ;;  %v1369_v37 = vld [vmem:[%s2983_s1 + $0xc0] sm:$0xf]  ;;  %v1306_v44 = vor.u32 %v1865_v36, %v1305_v35 }
   0xa   :  { %975 = vmatpush.bf16.msra.mxu2 %v1450_v21  ;;  %v1506_v38 = vor.u32 %v1915_v32, %v1505_v31  ;;  %v1881_v39 = vld [vmem:[%s2983_s1 + $0xc4] sm:$0xf0]  ;;  %v1433_v40 = vld [vmem:[%s2983_s1 + $0x140] sm:$0xf]  ;;  %v1297_v47 = vld [vmem:[%s2983_s1 + $0x30] sm:$0xf] }
   0xb   :  { %989 = vmatpush.bf16.msra.mxu3 %v1514_v25  ;;  %v1897_v41 = vld [vmem:[%s2983_s1 + $0x144] sm:$0xf0]  ;;  %v1497_v42 = vld [vmem:[%s2983_s1 + $0x1c0] sm:$0xf]  ;;  %v1370_v45 = vor.u32 %v1881_v39, %v1369_v37  ;;  %v1863_v48 = vld [vmem:[%s2983_s1 + $0x34] sm:$0xf0] }
   0xc   :  { %v1913_v43 = vld [vmem:[%s2983_s1 + $0x1c4] sm:$0xf0]  ;;  %948 = vmatpush.bf16.msra.mxu0 %v1314_v29  ;;  %v1434_v46 = vor.u32 %v1897_v41, %v1433_v40  ;;  %v1361_v49 = vld [vmem:[%s2983_s1 + $0xb0] sm:$0xf]  ;;  %v1879_v51 = vld [vmem:[%s2983_s1 + $0xb4] sm:$0xf0]  ;;  %v1298_v56 = vor.u32 %v1863_v48, %v1297_v47 }
   0xd   :  { %962 = vmatpush.bf16.msra.mxu1 %v1378_v33  ;;  %v1498_v50 = vor.u32 %v1913_v43, %v1497_v42  ;;  %v1425_v52 = vld [vmem:[%s2983_s1 + $0x130] sm:$0xf]  ;;  %v1895_v53 = vld [vmem:[%s2983_s1 + $0x134] sm:$0xf0]  ;;  %v1362_v57 = vor.u32 %v1879_v51, %v1361_v49  ;;  %v1289_v59 = vld [vmem:[%s2983_s1 + $0x20] sm:$0xf] }
   0xe   :  { %976 = vmatpush.bf16.msra.mxu2 %v1442_v34  ;;  %v1489_v54 = vld [vmem:[%s2983_s1 + $0x1b0] sm:$0xf]  ;;  %v1911_v55 = vld [vmem:[%s2983_s1 + $0x1b4] sm:$0xf0]  ;;  %v1426_v58 = vor.u32 %v1895_v53, %v1425_v52  ;;  %v1861_v60 = vld [vmem:[%s2983_s1 + $0x24] sm:$0xf0] }
   0xf   :  { %990 = vmatpush.bf16.msra.mxu3 %v1506_v38  ;;  %v1353_v61 = vld [vmem:[%s2983_s1 + $0xa0] sm:$0xf]  ;;  %v1490_v62 = vor.u32 %v1911_v55, %v1489_v54  ;;  %v1877_v63 = vld [vmem:[%s2983_s1 + $0xa4] sm:$0xf0]  ;;  %v1290_v4 = vor.u32 %v1861_v60, %v1289_v59  ;;  %v1281_v7 = vld [vmem:[%s2983_s1 + $0x10] sm:$0xf] }
  0x10   :  { %949 = vmatpush.bf16.msra.mxu0 %v1306_v44  ;;  %v1417_v0 = vld [vmem:[%s2983_s1 + $0x120] sm:$0xf]  ;;  %v1893_v1 = vld [vmem:[%s2983_s1 + $0x124] sm:$0xf0]  ;;  %v1354_v5 = vor.u32 %v1877_v63, %v1353_v61  ;;  %v1859_v8 = vld [vmem:[%s2983_s1 + $0x14] sm:$0xf0] }
  0x11   :  { %963 = vmatpush.bf16.msra.mxu1 %v1370_v45  ;;  %v1481_v2 = vld [vmem:[%s2983_s1 + $0x1a0] sm:$0xf]  ;;  %v1909_v3 = vld [vmem:[%s2983_s1 + $0x1a4] sm:$0xf0]  ;;  %v1418_v6 = vor.u32 %v1893_v1, %v1417_v0  ;;  %v1345_v9 = vld [vmem:[%s2983_s1 + $0x90] sm:$0xf]  ;;  %v1282_v16 = vor.u32 %v1859_v8, %v1281_v7 }
  0x12   :  { %977 = vmatpush.bf16.msra.mxu2 %v1434_v46  ;;  %v1482_v10 = vor.u32 %v1909_v3, %v1481_v2  ;;  %v1875_v11 = vld [vmem:[%s2983_s1 + $0x94] sm:$0xf0]  ;;  %v1409_v12 = vld [vmem:[%s2983_s1 + $0x110] sm:$0xf]  ;;  %v1273_v17 = vld [vmem:[%s2983_s1] sm:$0xf] }
  0x13   :  { %991 = vmatpush.bf16.msra.mxu3 %v1498_v50  ;;  %v1891_v13 = vld [vmem:[%s2983_s1 + $0x114] sm:$0xf0]  ;;  %v1473_v14 = vld [vmem:[%s2983_s1 + $0x190] sm:$0xf]  ;;  %v1857_v18 = vld [vmem:[%s2983_s1 + $0x4] sm:$0xf0]  ;;  %v1346_v19 = vor.u32 %v1875_v11, %v1345_v9 }
  0x14   :  { %950 = vmatpush.bf16.msra.mxu0 %v1298_v56  ;;  %v1907_v15 = vld [vmem:[%s2983_s1 + $0x194] sm:$0xf0]  ;;  %v1410_v20 = vor.u32 %v1891_v13, %v1409_v12  ;;  %v1337_v21 = vld [vmem:[%s2983_s1 + $0x80] sm:$0xf]  ;;  %v1873_v22 = vld [vmem:[%s2983_s1 + $0x84] sm:$0xf0]  ;;  %v1274_v31 = vor.u32 %v1857_v18, %v1273_v17 }
  0x15   :  { %964 = vmatpush.bf16.msra.mxu1 %v1362_v57  ;;  %v1401_v23 = vld [vmem:[%s2983_s1 + $0x100] sm:$0xf]  ;;  %v1474_v24 = vor.u32 %v1907_v15, %v1473_v14  ;;  %v1889_v25 = vld [vmem:[%s2983_s1 + $0x104] sm:$0xf0]  ;;  %v1585_v26 = vld [vmem:[%s2983_s1 + $0x270] sm:$0xf]  ;;  %v1338_v35 = vor.u32 %v1873_v22, %v1337_v21 }
  0x16   :  { %978 = vmatpush.bf16.msra.mxu2 %v1426_v58  ;;  %v1935_v27 = vld [vmem:[%s2983_s1 + $0x274] sm:$0xf0]  ;;  %v1649_v28 = vld [vmem:[%s2983_s1 + $0x2f0] sm:$0xf]  ;;  %v1465_v33 = vld [vmem:[%s2983_s1 + $0x180] sm:$0xf]  ;;  %v1402_v36 = vor.u32 %v1889_v25, %v1401_v23 }
  0x17   :  { %992 = vmatpush.bf16.msra.mxu3 %v1490_v62  ;;  %v1951_v29 = vld [vmem:[%s2983_s1 + $0x2f4] sm:$0xf0]  ;;  %v1713_v30 = vld [vmem:[%s2983_s1 + $0x370] sm:$0xf]  ;;  %v1905_v34 = vld [vmem:[%s2983_s1 + $0x184] sm:$0xf0]  ;;  %v1586_v39 = vor.u32 %v1935_v27, %v1585_v26 }
  0x18   :  { %951 = vmatpush.bf16.msra.mxu0 %v1290_v4  ;;  %v1967_v32 = vld [vmem:[%s2983_s1 + $0x374] sm:$0xf0]  ;;  %v1777_v37 = vld [vmem:[%s2983_s1 + $0x3f0] sm:$0xf]  ;;  %v1650_v40 = vor.u32 %v1951_v29, %v1649_v28  ;;  %v1577_v41 = vld [vmem:[%s2983_s1 + $0x260] sm:$0xf]  ;;  %v1466_v44 = vor.u32 %v1905_v34, %v1465_v33 }
  0x19   :  { %965 = vmatpush.bf16.msra.mxu1 %v1354_v5  ;;  %v1983_v38 = vld [vmem:[%s2983_s1 + $0x3f4] sm:$0xf0]  ;;  %v1933_v42 = vld [vmem:[%s2983_s1 + $0x264] sm:$0xf0]  ;;  %v1714_v43 = vor.u32 %v1967_v32, %v1713_v30  ;;  %v1641_v45 = vld [vmem:[%s2983_s1 + $0x2e0] sm:$0xf] }
  0x1a   :  { %979 = vmatpush.bf16.msra.mxu2 %v1418_v6  ;;  %v1949_v46 = vld [vmem:[%s2983_s1 + $0x2e4] sm:$0xf0]  ;;  %v1705_v47 = vld [vmem:[%s2983_s1 + $0x360] sm:$0xf]  ;;  %v1778_v48 = vor.u32 %v1983_v38, %v1777_v37  ;;  %v1569_v52 = vld [vmem:[%s2983_s1 + $0x250] sm:$0xf]  ;;  %v1578_v56 = vor.u32 %v1933_v42, %v1577_v41 }
  0x1b   :  { %993 = vmatpush.bf16.msra.mxu3 %v1482_v10  ;;  %v1965_v49 = vld [vmem:[%s2983_s1 + $0x364] sm:$0xf0]  ;;  %v1769_v50 = vld [vmem:[%s2983_s1 + $0x3e0] sm:$0xf]  ;;  %v1851_v54 = vld [vmem:[%s2984_s0 + $0x20] sm:$0xf0]  ;;  %v1642_v57 = vor.u32 %v1949_v46, %v1641_v45 }
  0x1c   :  { %952 = vmatpush.bf16.msra.mxu0 %v1282_v16  ;;  %v1981_v51 = vld [vmem:[%s2983_s1 + $0x3e4] sm:$0xf0]  ;;  %v1237_v53 = vld [vmem:[%s2984_s0] sm:$0xf]  ;;  %v1931_v58 = vld [vmem:[%s2983_s1 + $0x254] sm:$0xf0]  ;;  %v1706_v62 = vor.u32 %v1965_v49, %v1705_v47 }
  0x1d   :  { %966 = vmatpush.bf16.msra.mxu1 %v1346_v19  ;;  %v1245_v55 = vld [vmem:[%s2984_s0 + $0x8] sm:$0xf]  ;;  %v1633_v59 = vld [vmem:[%s2983_s1 + $0x2d0] sm:$0xf]  ;;  %v2278_v60 = vor.u32 %v1851_v54, %v1237_v53  ;;  %v1852_v61 = vld [vmem:[%s2984_s0 + $0x28] sm:$0xf0]  ;;  %v1770_v3 = vor.u32 %v1981_v51, %v1769_v50  ;;  %v1570_v11 = vor.u32 %v1931_v58, %v1569_v52 }
  0x1e   :  { %980 = vmatpush.bf16.msra.mxu2 %v1410_v20  ;;  %v1947_v63 = vld [vmem:[%s2983_s1 + $0x2d4] sm:$0xf0]  ;;  %v1697_v0 = vld [vmem:[%s2983_s1 + $0x350] sm:$0xf]  ;;  %v2292_v2 = vor.u32 %v1852_v61, %v1245_v55  ;;  %v1847_v5 = vld [vmem:[%s2984_s0 + $0x4] sm:$0xf] }
  0x1f   :  { %994 = vmatpush.bf16.msra.mxu3 %v1474_v24  ;;  %v1963_v1 = vld [vmem:[%s2983_s1 + $0x354] sm:$0xf0]  ;;  %v1761_v4 = vld [vmem:[%s2983_s1 + $0x3d0] sm:$0xf]  ;;  %v1239_v6 = vld [vmem:[%s2984_s0 + $0x24] sm:$0xf0]  ;;  %v1634_v12 = vor.u32 %v1947_v63, %v1633_v59 }
  0x20   :  { %953 = vmatpush.bf16.msra.mxu0 %v1274_v31  ;;  %v1979_v7 = vld [vmem:[%s2983_s1 + $0x3d4] sm:$0xf0]  ;;  %v2308_v8 = vor.u32 %v1847_v5, %v1239_v6  ;;  %v1848_v9 = vld [vmem:[%s2984_s0 + $0xc] sm:$0xf]  ;;  %v1247_v10 = vld [vmem:[%s2984_s0 + $0x2c] sm:$0xf0]  ;;  %v1698_v15 = vor.u32 %v1963_v1, %v1697_v0 }
  0x21   :  { %967 = vmatpush.bf16.msra.mxu1 %v1338_v35  ;;  %v1561_v13 = vld [vmem:[%s2983_s1 + $0x240] sm:$0xf]  ;;  %v2319_v14 = vor.u32 %v1848_v9, %v1247_v10  ;;  %v1929_v16 = vld [vmem:[%s2983_s1 + $0x244] sm:$0xf0]  ;;  %v1762_v19 = vor.u32 %v1979_v7, %v1761_v4  ;;  %v1553_v26 = vld [vmem:[%s2983_s1 + $0x230] sm:$0xf] }
  0x22   :  { %981 = vmatpush.bf16.msra.mxu2 %v1402_v36  ;;  %v1625_v17 = vld [vmem:[%s2983_s1 + $0x2c0] sm:$0xf]  ;;  %v1945_v18 = vld [vmem:[%s2983_s1 + $0x2c4] sm:$0xf0]  ;;  %v1562_v24 = vor.u32 %v1929_v16, %v1561_v13  ;;  %v1927_v28 = vld [vmem:[%s2983_s1 + $0x234] sm:$0xf0] }
  0x23   :  { %995 = vmatpush.bf16.msra.mxu3 %v1466_v44  ;;  %954 = vmatmul.bf16.vlgmr.msra.gmra.mxu0 %v2278_v60  ;;  %v1689_v20 = vld [vmem:[%s2983_s1 + $0x340] sm:$0xf]  ;;  %v1961_v21 = vld [vmem:[%s2983_s1 + $0x344] sm:$0xf0]  ;;  %v1626_v25 = vor.u32 %v1945_v18, %v1625_v17  ;;  %v1617_v29 = vld [vmem:[%s2983_s1 + $0x2b0] sm:$0xf]  ;;  %v1554_v36 = vor.u32 %v1927_v28, %v1553_v26 }
  0x24   :  { %1002 = vmatpush.bf16.msrb.mxu0 %v1586_v39  ;;  %968 = vmatmul.bf16.vlgmr.msra.gmra.mxu1 %v2308_v8  ;;  %v1753_v22 = vld [vmem:[%s2983_s1 + $0x3c0] sm:$0xf]  ;;  %v1977_v23 = vld [vmem:[%s2983_s1 + $0x3c4] sm:$0xf0]  ;;  %v1690_v27 = vor.u32 %v1961_v21, %v1689_v20  ;;  %v1943_v30 = vld [vmem:[%s2983_s1 + $0x2b4] sm:$0xf0] }
  0x25   :  { %1016 = vmatpush.bf16.msrb.mxu1 %v1650_v40  ;;  %982 = vmatmul.bf16.vlgmr.msra.gmra.mxu2 %v2292_v2  ;;  %v1754_v31 = vor.u32 %v1977_v23, %v1753_v22  ;;  %v1681_v32 = vld [vmem:[%s2983_s1 + $0x330] sm:$0xf]  ;;  %v1959_v33 = vld [vmem:[%s2983_s1 + $0x334] sm:$0xf0]  ;;  %v1618_v37 = vor.u32 %v1943_v30, %v1617_v29  ;;  %v1545_v38 = vld [vmem:[%s2983_s1 + $0x220] sm:$0xf] }
  0x26   :  { %1030 = vmatpush.bf16.msrb.mxu2 %v1714_v43  ;;  %996 = vmatmul.bf16.vlgmr.msra.gmra.mxu3 %v2319_v14  ;;  %v1745_v34 = vld [vmem:[%s2983_s1 + $0x3b0] sm:$0xf]  ;;  %v1975_v35 = vld [vmem:[%s2983_s1 + $0x3b4] sm:$0xf0]  ;;  %v1682_v39 = vor.u32 %v1959_v33, %v1681_v32  ;;  %v1925_v40 = vld [vmem:[%s2983_s1 + $0x224] sm:$0xf0] }
  0x27   :  { %1044 = vmatpush.bf16.msrb.mxu3 %v1778_v48  ;;  %v1609_v41 = vld [vmem:[%s2983_s1 + $0x2a0] sm:$0xf]  ;;  %v1941_v42 = vld [vmem:[%s2983_s1 + $0x2a4] sm:$0xf0]  ;;  %v1746_v43 = vor.u32 %v1975_v35, %v1745_v34  ;;  %v1546_v48 = vor.u32 %v1925_v40, %v1545_v38  ;;  %v1537_v50 = vld [vmem:[%s2983_s1 + $0x210] sm:$0xf] }
  0x28   :  { %1003 = vmatpush.bf16.msrb.mxu0 %v1578_v56  ;;  %v1673_v44 = vld [vmem:[%s2983_s1 + $0x320] sm:$0xf]  ;;  %v1957_v45 = vld [vmem:[%s2983_s1 + $0x324] sm:$0xf0]  ;;  %v1610_v49 = vor.u32 %v1941_v42, %v1609_v41  ;;  %v1923_v51 = vld [vmem:[%s2983_s1 + $0x214] sm:$0xf0] }
  0x29   :  { %1017 = vmatpush.bf16.msrb.mxu1 %v1642_v57  ;;  %v1737_v46 = vld [vmem:[%s2983_s1 + $0x3a0] sm:$0xf]  ;;  %v1973_v47 = vld [vmem:[%s2983_s1 + $0x3a4] sm:$0xf0]  ;;  %v1674_v52 = vor.u32 %v1957_v45, %v1673_v44  ;;  %v1601_v53 = vld [vmem:[%s2983_s1 + $0x290] sm:$0xf]  ;;  %v1538_v1 = vor.u32 %v1923_v51, %v1537_v50 }
  0x2a   :  { %1031 = vmatpush.bf16.msrb.mxu2 %v1706_v62  ;;  %v1939_v54 = vld [vmem:[%s2983_s1 + $0x294] sm:$0xf0]  ;;  %v1665_v55 = vld [vmem:[%s2983_s1 + $0x310] sm:$0xf]  ;;  %v1738_v56 = vor.u32 %v1973_v47, %v1737_v46  ;;  %v1529_v61 = vld [vmem:[%s2983_s1 + $0x200] sm:$0xf] }
  0x2b   :  { %1045 = vmatpush.bf16.msrb.mxu3 %v1770_v3  ;;  %v1955_v57 = vld [vmem:[%s2983_s1 + $0x314] sm:$0xf0]  ;;  %v1729_v58 = vld [vmem:[%s2983_s1 + $0x390] sm:$0xf]  ;;  %v1921_v62 = vld [vmem:[%s2983_s1 + $0x204] sm:$0xf0]  ;;  %v1602_v3 = vor.u32 %v1939_v54, %v1601_v53 }
  0x2c   :  { %1004 = vmatpush.bf16.msrb.mxu0 %v1570_v11  ;;  %v1971_v59 = vld [vmem:[%s2983_s1 + $0x394] sm:$0xf0]  ;;  %v1593_v63 = vld [vmem:[%s2983_s1 + $0x280] sm:$0xf]  ;;  %v1937_v0 = vld [vmem:[%s2983_s1 + $0x284] sm:$0xf0]  ;;  %v1666_v7 = vor.u32 %v1955_v57, %v1665_v55  ;;  %v1530_v20 = vor.u32 %v1921_v62, %v1529_v61 }
  0x2d   :  { %1018 = vmatpush.bf16.msrb.mxu1 %v1634_v12  ;;  %v1657_v4 = vld [vmem:[%s2983_s1 + $0x300] sm:$0xf]  ;;  %v1953_v5 = vld [vmem:[%s2983_s1 + $0x304] sm:$0xf0]  ;;  %v1841_v6 = vld [vmem:[%s2983_s1 + $0x470] sm:$0xf]  ;;  %v1730_v12 = vor.u32 %v1971_v59, %v1729_v58  ;;  %v1594_v21 = vor.u32 %v1937_v0, %v1593_v63 }
  0x2e   :  { %1032 = vmatpush.bf16.msrb.mxu2 %v1698_v15  ;;  %v1999_v9 = vld [vmem:[%s2983_s1 + $0x474] sm:$0xf0]  ;;  %v1870_v10 = vld [vmem:[%s2983_s1 + $0x74] sm:$0xf]  ;;  %v1331_v11 = vld [vmem:[%s2983_s1 + $0x78] sm:$0xf0] }
  0x2f   :  { %1046 = vmatpush.bf16.msrb.mxu3 %v1762_v19  ;;  %v1886_v13 = vld [vmem:[%s2983_s1 + $0xf4] sm:$0xf]  ;;  %v1395_v15 = vld [vmem:[%s2983_s1 + $0xf8] sm:$0xf0]  ;;  %v1721_v16 = vld [vmem:[%s2983_s1 + $0x380] sm:$0xf]  ;;  %v1842_v26 = vor.u32 %v1999_v9, %v1841_v6  ;;  %v1334_v30 = vor.u32 %v1870_v10, %v1331_v11 }
  0x30   :  { %1005 = vmatpush.bf16.msrb.mxu0 %v1562_v24  ;;  %v1969_v17 = vld [vmem:[%s2983_s1 + $0x384] sm:$0xf0]  ;;  %v1253_v18 = vld [vmem:[%s2984_s0 + $0x10] sm:$0xf]  ;;  %v1853_v19 = vld [vmem:[%s2984_s0 + $0x30] sm:$0xf0] }
  0x31   :  { %1019 = vmatpush.bf16.msrb.mxu1 %v1626_v25  ;;  %v1261_v22 = vld [vmem:[%s2984_s0 + $0x18] sm:$0xf]  ;;  %v1854_v23 = vld [vmem:[%s2984_s0 + $0x38] sm:$0xf0]  ;;  %v1902_v24 = vld [vmem:[%s2983_s1 + $0x174] sm:$0xf]  ;;  %v1658_v25 = vor.u32 %v1953_v5, %v1657_v4  ;;  %v1722_v35 = vor.u32 %v1969_v17, %v1721_v16 }
  0x32   :  { %1033 = vmatpush.bf16.msrb.mxu2 %v1690_v27  ;;  %v1459_v27 = vld [vmem:[%s2983_s1 + $0x178] sm:$0xf0]  ;;  %v1849_v28 = vld [vmem:[%s2984_s0 + $0x14] sm:$0xf]  ;;  %v1255_v29 = vld [vmem:[%s2984_s0 + $0x34] sm:$0xf0]  ;;  %v2502_v40 = vor.u32 %v1854_v23, %v1261_v22 }
  0x33   :  { %1047 = vmatpush.bf16.msrb.mxu3 %v1754_v31  ;;  %v1398_v31 = vor.u32 %v1886_v13, %v1395_v15  ;;  %v1850_v32 = vld [vmem:[%s2984_s0 + $0x1c] sm:$0xf]  ;;  %v1833_v33 = vld [vmem:[%s2983_s1 + $0x460] sm:$0xf]  ;;  %v1997_v34 = vld [vmem:[%s2983_s1 + $0x464] sm:$0xf0]  ;;  %v1462_v41 = vor.u32 %v1902_v24, %v1459_v27  ;;  %v2510_v44 = vor.u32 %v1849_v28, %v1255_v29 }
  0x34   :  { %1006 = vmatpush.bf16.msrb.mxu0 %v1554_v36  ;;  %v2491_v36 = vor.u32 %v1853_v19, %v1253_v18  ;;  %v1868_v38 = vld [vmem:[%s2983_s1 + $0x64] sm:$0xf]  ;;  %v1834_v45 = vor.u32 %v1997_v34, %v1833_v33  ;;  %v1451_v47 = vld [vmem:[%s2983_s1 + $0x168] sm:$0xf0]  ;;  %v1825_v50 = vld [vmem:[%s2983_s1 + $0x450] sm:$0xf] }
  0x35   :  { %1020 = vmatpush.bf16.msrb.mxu1 %v1618_v37  ;;  %v1263_v37 = vld [vmem:[%s2984_s0 + $0x3c] sm:$0xf0]  ;;  %v1884_v42 = vld [vmem:[%s2983_s1 + $0xe4] sm:$0xf]  ;;  %v1995_v51 = vld [vmem:[%s2983_s1 + $0x454] sm:$0xf0] }
  0x36   :  { %1034 = vmatpush.bf16.msrb.mxu2 %v1682_v39  ;;  %v1323_v39 = vld [vmem:[%s2983_s1 + $0x68] sm:$0xf0]  ;;  %v1900_v46 = vld [vmem:[%s2983_s1 + $0x164] sm:$0xf]  ;;  %v1866_v53 = vld [vmem:[%s2983_s1 + $0x54] sm:$0xf]  ;;  %v1826_v58 = vor.u32 %v1995_v51, %v1825_v50 }
  0x37   :  { %1048 = vmatpush.bf16.msrb.mxu3 %v1746_v43  ;;  %v1387_v43 = vld [vmem:[%s2983_s1 + $0xe8] sm:$0xf0]  ;;  %v1315_v54 = vld [vmem:[%s2983_s1 + $0x58] sm:$0xf0]  ;;  %v1454_v55 = vor.u32 %v1900_v46, %v1451_v47  ;;  %v1898_v59 = vld [vmem:[%s2983_s1 + $0x154] sm:$0xf] }
  0x38   :  { %1007 = vmatpush.bf16.msrb.mxu0 %v1546_v48  ;;  %v2518_v48 = vor.u32 %v1850_v32, %v1263_v37  ;;  %v1379_v57 = vld [vmem:[%s2983_s1 + $0xd8] sm:$0xf0]  ;;  %v1318_v62 = vor.u32 %v1866_v53, %v1315_v54  ;;  %v1817_v63 = vld [vmem:[%s2983_s1 + $0x440] sm:$0xf]  ;;  %v1993_v0 = vld [vmem:[%s2983_s1 + $0x444] sm:$0xf0] }
  0x39   :  { %1021 = vmatpush.bf16.msrb.mxu1 %v1610_v49  ;;  %v1326_v49 = vor.u32 %v1868_v38, %v1323_v39  ;;  %v1443_v61 = vld [vmem:[%s2983_s1 + $0x158] sm:$0xf0]  ;;  %v1307_v4 = vld [vmem:[%s2983_s1 + $0x48] sm:$0xf0]  ;;  %v1880_v6 = vld [vmem:[%s2983_s1 + $0xc4] sm:$0xf]  ;;  %v1818_v9 = vor.u32 %v1993_v0, %v1817_v63 }
  0x3a   :  { %1035 = vmatpush.bf16.msrb.mxu2 %v1674_v52  ;;  %v1390_v52 = vor.u32 %v1884_v42, %v1387_v43  ;;  %v1446_v5 = vor.u32 %v1898_v59, %v1443_v61  ;;  %v1896_v10 = vld [vmem:[%s2983_s1 + $0x144] sm:$0xf]  ;;  %v1435_v11 = vld [vmem:[%s2983_s1 + $0x148] sm:$0xf0]  ;;  %v1809_v13 = vld [vmem:[%s2983_s1 + $0x430] sm:$0xf] }
  0x3b   :  { %1049 = vmatpush.bf16.msrb.mxu3 %v1738_v56  ;;  %v1882_v56 = vld [vmem:[%s2983_s1 + $0xd4] sm:$0xf]  ;;  %v1991_v15 = vld [vmem:[%s2983_s1 + $0x434] sm:$0xf0]  ;;  %v1299_v18 = vld [vmem:[%s2983_s1 + $0x38] sm:$0xf0]  ;;  %v1438_v19 = vor.u32 %v1896_v10, %v1435_v11 }
  0x3c   :  { %1008 = vmatpush.bf16.msrb.mxu0 %v1538_v1  ;;  %v1382_v1 = vor.u32 %v1882_v56, %v1379_v57  ;;  %v1862_v17 = vld [vmem:[%s2983_s1 + $0x34] sm:$0xf]  ;;  %v1810_v22 = vor.u32 %v1991_v15, %v1809_v13  ;;  %v1427_v24 = vld [vmem:[%s2983_s1 + $0x138] sm:$0xf0]  ;;  %v1989_v27 = vld [vmem:[%s2983_s1 + $0x424] sm:$0xf0] }
  0x3d   :  { %1022 = vmatpush.bf16.msrb.mxu1 %v1602_v3  ;;  %v1864_v3 = vld [vmem:[%s2983_s1 + $0x44] sm:$0xf]  ;;  %v1894_v23 = vld [vmem:[%s2983_s1 + $0x134] sm:$0xf]  ;;  %v1355_v33 = vld [vmem:[%s2983_s1 + $0xa8] sm:$0xf0] }
  0x3e   :  { %1036 = vmatpush.bf16.msrb.mxu2 %v1666_v7  ;;  %v1371_v7 = vld [vmem:[%s2983_s1 + $0xc8] sm:$0xf0]  ;;  %v1860_v29 = vld [vmem:[%s2983_s1 + $0x24] sm:$0xf]  ;;  %v1793_v39 = vld [vmem:[%s2983_s1 + $0x410] sm:$0xf] }
  0x3f   :  { %1050 = vmatpush.bf16.msrb.mxu3 %v1730_v12  ;;  %v1310_v12 = vor.u32 %v1864_v3, %v1307_v4  ;;  %v1374_v16 = vor.u32 %v1880_v6, %v1371_v7  ;;  %v1876_v32 = vld [vmem:[%s2983_s1 + $0xa4] sm:$0xf]  ;;  %v1419_v37 = vld [vmem:[%s2983_s1 + $0x128] sm:$0xf0]  ;;  %v1858_v43 = vld [vmem:[%s2983_s1 + $0x14] sm:$0xf] }
  0x40   :  { %1009 = vmatpush.bf16.msrb.mxu0 %v1530_v20  ;;  %v1878_v20 = vld [vmem:[%s2983_s1 + $0xb4] sm:$0xf]  ;;  %v1358_v42 = vor.u32 %v1876_v32, %v1355_v33  ;;  %v1411_v51 = vld [vmem:[%s2983_s1 + $0x118] sm:$0xf0]  ;;  %v1785_v53 = vld [vmem:[%s2983_s1 + $0x400] sm:$0xf] }
  0x41   :  { %1023 = vmatpush.bf16.msrb.mxu1 %v1594_v21  ;;  %v1363_v21 = vld [vmem:[%s2983_s1 + $0xb8] sm:$0xf0]  ;;  %v1874_v46 = vld [vmem:[%s2983_s1 + $0x94] sm:$0xf]  ;;  %v1985_v54 = vld [vmem:[%s2983_s1 + $0x404] sm:$0xf0] }
  0x42   :  { %1037 = vmatpush.bf16.msrb.mxu2 %v1658_v25  ;;  %v1302_v25 = vor.u32 %v1862_v17, %v1299_v18  ;;  %v1366_v28 = vor.u32 %v1878_v20, %v1363_v21  ;;  %v1890_v50 = vld [vmem:[%s2983_s1 + $0x114] sm:$0xf]  ;;  %v1275_v57 = vld [vmem:[%s2983_s1 + $0x8] sm:$0xf0]  ;;  %v1523_v63 = vld [vmem:[%s2983_s1 + $0x1f8] sm:$0xf0]  ;;  %v1786_v6 = vor.u32 %v1985_v54, %v1785_v53 }
  0x43   :  { %1051 = vmatpush.bf16.msrb.mxu3 %v1722_v35  ;;  %1010 = vmatmul.bf16.vlgmr.msrb.gmra.mxu0 %v2491_v36  ;;  %v1892_v35 = vld [vmem:[%s2983_s1 + $0x124] sm:$0xf]  ;;  %v1339_v59 = vld [vmem:[%s2983_s1 + $0x88] sm:$0xf0]  ;;  %v1934_v0 = vld [vmem:[%s2983_s1 + $0x274] sm:$0xf] }
  0x44   :  { %1058 = vmatpush.bf16.msra.mxu0 %v1842_v26  ;;  %1024 = vmatmul.bf16.vlgmr.msrb.gmra.mxu1 %v2510_v44  ;;  %v1801_v26 = vld [vmem:[%s2983_s1 + $0x420] sm:$0xf]  ;;  %v1422_v47 = vor.u32 %v1892_v35, %v1419_v37  ;;  %v1587_v3 = vld [vmem:[%s2983_s1 + $0x278] sm:$0xf0]  ;;  %v1950_v4 = vld [vmem:[%s2983_s1 + $0x2f4] sm:$0xf] }
  0x45   :  { %1072 = vmatpush.bf16.msra.mxu1 %v1334_v30  ;;  %1038 = vmatmul.bf16.vlgmr.msrb.gmra.mxu2 %v2502_v40  ;;  %v1291_v30 = vld [vmem:[%s2983_s1 + $0x28] sm:$0xf0]  ;;  %v1802_v34 = vor.u32 %v1989_v27, %v1801_v26  ;;  %v1888_v7 = vld [vmem:[%s2983_s1 + $0x104] sm:$0xf]  ;;  %v1269_v10 = vld [vmem:[%s2984_s0 + $0x20] sm:$0xf]  ;;  %v1590_v18 = vor.u32 %v1934_v0, %v1587_v3 }
  0x46   :  { %1086 = vmatpush.bf16.msra.mxu2 %v1398_v31  ;;  %1052 = vmatmul.bf16.vlgmr.msrb.gmra.mxu3 %v2518_v48  ;;  %v1430_v31 = vor.u32 %v1894_v23, %v1427_v24  ;;  %v1294_v38 = vor.u32 %v1860_v29, %v1291_v30  ;;  %v1855_v13 = vld [vmem:[%s2984_s0 + $0x40] sm:$0xf0]  ;;  %v1966_v15 = vld [vmem:[%s2983_s1 + $0x374] sm:$0xf]  ;;  %v1515_v20 = vld [vmem:[%s2983_s1 + $0x1e8] sm:$0xf0] }
  0x47   :  { %1100 = vmatpush.bf16.msra.mxu3 %v1462_v41  ;;  %v1987_v41 = vld [vmem:[%s2983_s1 + $0x414] sm:$0xf0]  ;;  %v1932_v23 = vld [vmem:[%s2983_s1 + $0x264] sm:$0xf]  ;;  %v1579_v24 = vld [vmem:[%s2983_s1 + $0x268] sm:$0xf0] }
  0x48   :  { %1059 = vmatpush.bf16.msra.mxu0 %v1834_v45  ;;  %v1283_v45 = vld [vmem:[%s2983_s1 + $0x18] sm:$0xf0]  ;;  %v1948_v27 = vld [vmem:[%s2983_s1 + $0x2e4] sm:$0xf]  ;;  %v1582_v32 = vor.u32 %v1932_v23, %v1579_v24  ;;  %v1914_v33 = vld [vmem:[%s2983_s1 + $0x1d4] sm:$0xf] }
  0x49   :  { %1073 = vmatpush.bf16.msra.mxu1 %v1326_v49  ;;  %v1347_v49 = vld [vmem:[%s2983_s1 + $0x98] sm:$0xf0]  ;;  %v1286_v56 = vor.u32 %v1858_v43, %v1283_v45  ;;  %v1964_v30 = vld [vmem:[%s2983_s1 + $0x364] sm:$0xf]  ;;  %v1930_v37 = vld [vmem:[%s2983_s1 + $0x254] sm:$0xf] }
  0x4a   :  { %1087 = vmatpush.bf16.msra.mxu2 %v1390_v52  ;;  %v1794_v52 = vor.u32 %v1987_v41, %v1793_v39  ;;  %v1350_v61 = vor.u32 %v1874_v46, %v1347_v49  ;;  %v1946_v41 = vld [vmem:[%s2983_s1 + $0x2d4] sm:$0xf]  ;;  %v1699_v46 = vld [vmem:[%s2983_s1 + $0x358] sm:$0xf0]  ;;  %v1912_v49 = vld [vmem:[%s2983_s1 + $0x1c4] sm:$0xf] }
  0x4b   :  { %1101 = vmatpush.bf16.msra.mxu3 %v1454_v55  ;;  %v1856_v55 = vld [vmem:[%s2983_s1 + $0x4] sm:$0xf]  ;;  %v1962_v45 = vld [vmem:[%s2983_s1 + $0x354] sm:$0xf]  ;;  %v1619_v3 = vld [vmem:[%s2983_s1 + $0x2b8] sm:$0xf0] }
  0x4c   :  { %1060 = vmatpush.bf16.msra.mxu0 %v1826_v58  ;;  %v1872_v58 = vld [vmem:[%s2983_s1 + $0x84] sm:$0xf]  ;;  %v1278_v11 = vor.u32 %v1856_v55, %v1275_v57  ;;  %v1702_v53 = vor.u32 %v1962_v45, %v1699_v46  ;;  %v1475_v23 = vld [vmem:[%s2983_s1 + $0x198] sm:$0xf0] }
  0x4d   :  { %1074 = vmatpush.bf16.msra.mxu1 %v1318_v62  ;;  %v1918_v62 = vld [vmem:[%s2983_s1 + $0x1f4] sm:$0xf]  ;;  %v1342_v17 = vor.u32 %v1872_v58, %v1339_v59  ;;  %v1944_v54 = vld [vmem:[%s2983_s1 + $0x2c4] sm:$0xf]  ;;  %v1491_v59 = vld [vmem:[%s2983_s1 + $0x1b8] sm:$0xf0] }
  0x4e   :  { %1088 = vmatpush.bf16.msra.mxu2 %v1382_v1  ;;  %v1414_v1 = vor.u32 %v1890_v50, %v1411_v51  ;;  %v1499_v50 = vld [vmem:[%s2983_s1 + $0x1c8] sm:$0xf0]  ;;  %v1910_v58 = vld [vmem:[%s2983_s1 + $0x1b4] sm:$0xf]  ;;  %v1779_v45 = vld [vmem:[%s2983_s1 + $0x3f8] sm:$0xf0] }
  0x4f   :  { %1102 = vmatpush.bf16.msra.mxu3 %v1446_v5  ;;  %v1651_v5 = vld [vmem:[%s2983_s1 + $0x2f8] sm:$0xf0]  ;;  %v1502_v55 = vor.u32 %v1912_v49, %v1499_v50  ;;  %v1998_v49 = vld [vmem:[%s2983_s1 + $0x474] sm:$0xf] }
  0x50   :  { %1061 = vmatpush.bf16.msra.mxu0 %v1818_v9  ;;  %v1403_v9 = vld [vmem:[%s2983_s1 + $0x108] sm:$0xf0]  ;;  %v1654_v21 = vor.u32 %v1950_v4, %v1651_v5  ;;  %v1494_v4 = vor.u32 %v1910_v58, %v1491_v59  ;;  %v1958_v5 = vld [vmem:[%s2983_s1 + $0x334] sm:$0xf]  ;;  %v1843_v50 = vld [vmem:[%s2983_s1 + $0x478] sm:$0xf0] }
  0x51   :  { %1075 = vmatpush.bf16.msra.mxu1 %v1310_v12  ;;  %v1526_v12 = vor.u32 %v1918_v62, %v1523_v63  ;;  %v1926_v62 = vld [vmem:[%s2983_s1 + $0x234] sm:$0xf]  ;;  %v1555_v63 = vld [vmem:[%s2983_s1 + $0x238] sm:$0xf0]  ;;  %v1996_v58 = vld [vmem:[%s2983_s1 + $0x464] sm:$0xf] }
  0x52   :  { %1089 = vmatpush.bf16.msra.mxu2 %v1374_v16  ;;  %v1715_v16 = vld [vmem:[%s2983_s1 + $0x378] sm:$0xf0]  ;;  %v1835_v59 = vld [vmem:[%s2983_s1 + $0x468] sm:$0xf0] }
  0x53   :  { %1103 = vmatpush.bf16.msra.mxu3 %v1438_v19  ;;  %v1916_v19 = vld [vmem:[%s2983_s1 + $0x1e4] sm:$0xf]  ;;  %v1718_v26 = vor.u32 %v1966_v15, %v1715_v16 }
  0x54   :  { %1062 = vmatpush.bf16.msra.mxu0 %v1810_v22  ;;  %v1406_v22 = vor.u32 %v1888_v7, %v1403_v9  ;;  %v1518_v29 = vor.u32 %v1916_v19, %v1515_v20  ;;  %v1558_v7 = vor.u32 %v1926_v62, %v1555_v63  ;;  %v1908_v9 = vld [vmem:[%s2983_s1 + $0x1a4] sm:$0xf]  ;;  %v1675_v20 = vld [vmem:[%s2983_s1 + $0x328] sm:$0xf0]  ;;  %v1838_v62 = vor.u32 %v1996_v58, %v1835_v59  ;;  %v1978_v63 = vld [vmem:[%s2983_s1 + $0x3d4] sm:$0xf] }
  0x55   :  { %1076 = vmatpush.bf16.msra.mxu1 %v1302_v25  ;;  %v2710_v25 = vor.u32 %v1855_v13, %v1269_v10  ;;  %v1483_v10 = vld [vmem:[%s2983_s1 + $0x1a8] sm:$0xf0]  ;;  %v1940_v16 = vld [vmem:[%s2983_s1 + $0x2a4] sm:$0xf] }
  0x56   :  { %1090 = vmatpush.bf16.msra.mxu2 %v1366_v28  ;;  %v1643_v28 = vld [vmem:[%s2983_s1 + $0x2e8] sm:$0xf0]  ;;  %v1956_v19 = vld [vmem:[%s2983_s1 + $0x324] sm:$0xf] }
  0x57   :  { %1104 = vmatpush.bf16.msra.mxu3 %v1430_v31  ;;  %v1707_v31 = vld [vmem:[%s2983_s1 + $0x368] sm:$0xf0]  ;;  %v1646_v35 = vor.u32 %v1948_v27, %v1643_v28  ;;  %v1539_v27 = vld [vmem:[%s2983_s1 + $0x218] sm:$0xf0]  ;;  %v1678_v28 = vor.u32 %v1956_v19, %v1675_v20 }
  0x58   :  { %1063 = vmatpush.bf16.msra.mxu0 %v1802_v34  ;;  %v1507_v34 = vld [vmem:[%s2983_s1 + $0x1d8] sm:$0xf0]  ;;  %v1710_v39 = vor.u32 %v1964_v30, %v1707_v31  ;;  %v1547_v13 = vld [vmem:[%s2983_s1 + $0x228] sm:$0xf0] }
  0x59   :  { %1077 = vmatpush.bf16.msra.mxu1 %v1294_v38  ;;  %v1571_v38 = vld [vmem:[%s2983_s1 + $0x258] sm:$0xf0]  ;;  %v1510_v43 = vor.u32 %v1914_v33, %v1507_v34  ;;  %v1904_v34 = vld [vmem:[%s2983_s1 + $0x184] sm:$0xf]  ;;  %v1803_v19 = vld [vmem:[%s2983_s1 + $0x428] sm:$0xf0] }
  0x5a   :  { %1091 = vmatpush.bf16.msra.mxu2 %v1358_v42  ;;  %v1635_v42 = vld [vmem:[%s2983_s1 + $0x2d8] sm:$0xf0] }
  0x5b   :  { %1105 = vmatpush.bf16.msra.mxu3 %v1422_v47  ;;  %v1574_v47 = vor.u32 %v1930_v37, %v1571_v38  ;;  %v1638_v51 = vor.u32 %v1946_v41, %v1635_v42  ;;  %v1603_v30 = vld [vmem:[%s2983_s1 + $0x298] sm:$0xf0]  ;;  %v1467_v37 = vld [vmem:[%s2983_s1 + $0x188] sm:$0xf0]  ;;  %v1920_v38 = vld [vmem:[%s2983_s1 + $0x204] sm:$0xf] }
  0x5c   :  { %1064 = vmatpush.bf16.msra.mxu0 %v1794_v52  ;;  %v1928_v52 = vld [vmem:[%s2983_s1 + $0x244] sm:$0xf]  ;;  %v1667_v33 = vld [vmem:[%s2983_s1 + $0x318] sm:$0xf0] }
  0x5d   :  { %1078 = vmatpush.bf16.msra.mxu1 %v1286_v56  ;;  %v1960_v56 = vld [vmem:[%s2983_s1 + $0x344] sm:$0xf] }
  0x5e   :  { %1092 = vmatpush.bf16.msra.mxu2 %v1350_v61  ;;  %v1936_v42 = vld [vmem:[%s2983_s1 + $0x284] sm:$0xf] }
  0x5f   :  { %1106 = vmatpush.bf16.msra.mxu3 %v1414_v1  ;;  %v1942_v1 = vld [vmem:[%s2983_s1 + $0x2b4] sm:$0xf] }
  0x60   :  { %1065 = vmatpush.bf16.msra.mxu0 %v1786_v6  ;;  %v1683_v6 = vld [vmem:[%s2983_s1 + $0x338] sm:$0xf0] }
  0x61   :  { %1079 = vmatpush.bf16.msra.mxu1 %v1278_v11  ;;  %v1622_v11 = vor.u32 %v1942_v1, %v1619_v3  ;;  %v1686_v15 = vor.u32 %v1958_v5, %v1683_v6  ;;  %v1994_v1 = vld [vmem:[%s2983_s1 + $0x454] sm:$0xf]  ;;  %v1827_v3 = vld [vmem:[%s2983_s1 + $0x458] sm:$0xf0]  ;;  %v1755_v6 = vld [vmem:[%s2983_s1 + $0x3c8] sm:$0xf0] }
  0x62   :  { %1093 = vmatpush.bf16.msra.mxu2 %v1342_v17  ;;  %v1611_v17 = vld [vmem:[%s2983_s1 + $0x2a8] sm:$0xf0]  ;;  %v1830_v5 = vor.u32 %v1994_v1, %v1827_v3 }
  0x63   :  { %1107 = vmatpush.bf16.msra.mxu3 %v1406_v22  ;;  %1066 = vmatmul.bf16.vlgmr.msra.gmra.mxu0 %v2710_v25  ;;  %v1906_v22 = vld [vmem:[%s2983_s1 + $0x194] sm:$0xf]  ;;  %v1614_v24 = vor.u32 %v1940_v16, %v1611_v17  ;;  %v1972_v16 = vld [vmem:[%s2983_s1 + $0x3a4] sm:$0xf]  ;;  %v1739_v17 = vld [vmem:[%s2983_s1 + $0x3a8] sm:$0xf0] }
  0x64   :  { %1114 = vmatpush.bf16.msrb.mxu0 %v1526_v12  ;;  %1080 = vmatmul.bf16.vlgmr.msra.gmra.mxu1 %v2278_v60  ;;  %v1691_v60 = vld [vmem:[%s2983_s1 + $0x348] sm:$0xf0]  ;;  %v1924_v12 = vld [vmem:[%s2983_s1 + $0x224] sm:$0xf]  ;;  %v1478_v31 = vor.u32 %v1906_v22, %v1475_v23  ;;  %v1742_v20 = vor.u32 %v1972_v16, %v1739_v17  ;;  %v1970_v22 = vld [vmem:[%s2983_s1 + $0x394] sm:$0xf] }
  0x65   :  { %1128 = vmatpush.bf16.msrb.mxu1 %v1590_v18  ;;  %1094 = vmatmul.bf16.vlgmr.msra.gmra.mxu2 %v2308_v8  ;;  %v1563_v8 = vld [vmem:[%s2983_s1 + $0x248] sm:$0xf0]  ;;  %v1694_v0 = vor.u32 %v1960_v56, %v1691_v60  ;;  %v1486_v18 = vor.u32 %v1908_v9, %v1483_v10  ;;  %v1980_v56 = vld [vmem:[%s2983_s1 + $0x3e4] sm:$0xf]  ;;  %v1974_v9 = vld [vmem:[%s2983_s1 + $0x3b4] sm:$0xf] }
  0x66   :  { %1142 = vmatpush.bf16.msrb.mxu2 %v1654_v21  ;;  %1108 = vmatmul.bf16.vlgmr.msra.gmra.mxu3 %v2292_v2  ;;  %v1627_v2 = vld [vmem:[%s2983_s1 + $0x2c8] sm:$0xf0]  ;;  %v1566_v57 = vor.u32 %v1928_v52, %v1563_v8  ;;  %v1550_v21 = vor.u32 %v1924_v12, %v1547_v13  ;;  %v1952_v52 = vld [vmem:[%s2983_s1 + $0x304] sm:$0xf]  ;;  %v1747_v10 = vld [vmem:[%s2983_s1 + $0x3b8] sm:$0xf0] }
  0x67   :  { %1156 = vmatpush.bf16.msrb.mxu3 %v1718_v26  ;;  %v1630_v61 = vor.u32 %v1944_v54, %v1627_v2  ;;  %v1922_v26 = vld [vmem:[%s2983_s1 + $0x214] sm:$0xf]  ;;  %v1659_v8 = vld [vmem:[%s2983_s1 + $0x308] sm:$0xf0]  ;;  %v1811_v12 = vld [vmem:[%s2983_s1 + $0x438] sm:$0xf0]  ;;  %v1750_v13 = vor.u32 %v1974_v9, %v1747_v10 }
  0x68   :  { %1115 = vmatpush.bf16.msrb.mxu0 %v1518_v29  ;;  %v1938_v29 = vld [vmem:[%s2983_s1 + $0x294] sm:$0xf]  ;;  %v1771_v60 = vld [vmem:[%s2983_s1 + $0x3e8] sm:$0xf0]  ;;  %v1731_v23 = vld [vmem:[%s2983_s1 + $0x398] sm:$0xf0] }
  0x69   :  { %1129 = vmatpush.bf16.msrb.mxu1 %v1582_v32  ;;  %v1954_v32 = vld [vmem:[%s2983_s1 + $0x314] sm:$0xf]  ;;  %v1606_v41 = vor.u32 %v1938_v29, %v1603_v30  ;;  %v1968_v29 = vld [vmem:[%s2983_s1 + $0x384] sm:$0xf]  ;;  %v1723_v30 = vld [vmem:[%s2983_s1 + $0x388] sm:$0xf0] }
  0x6a   :  { %1143 = vmatpush.bf16.msrb.mxu2 %v1646_v35  ;;  %v1542_v35 = vor.u32 %v1922_v26, %v1539_v27  ;;  %v1670_v46 = vor.u32 %v1954_v32, %v1667_v33  ;;  %v1795_v26 = vld [vmem:[%s2983_s1 + $0x418] sm:$0xf0]  ;;  %v1734_v27 = vor.u32 %v1970_v22, %v1731_v23  ;;  %v1787_v32 = vld [vmem:[%s2983_s1 + $0x408] sm:$0xf0]  ;;  %v1726_v33 = vor.u32 %v1968_v29, %v1723_v30  ;;  %v1213_v17 = vld [vmem:[%s2985_s2] sm:$0x3] }
  0x6b   :  { %1157 = vmatpush.bf16.msrb.mxu3 %v1710_v39  ;;  %v1531_v39 = vld [vmem:[%s2983_s1 + $0x208] sm:$0xf0]  ;;  %v1215_v22 = vperm.slane %v1213_v17, 0 }
  0x6c   :  { %1116 = vmatpush.bf16.msrb.mxu0 %v1510_v43  ;;  %v1982_v43 = vld [vmem:[%s2983_s1 + $0x3f4] sm:$0xf] }
  0x6d   :  { %1130 = vmatpush.bf16.msrb.mxu1 %v1574_v47  ;;  %v1595_v47 = vld [vmem:[%s2983_s1 + $0x288] sm:$0xf0]  ;;  %v1782_v54 = vor.u32 %v1982_v43, %v1779_v45 }
  0x6e   :  { %1144 = vmatpush.bf16.msrb.mxu2 %v1638_v51  ;;  %v1470_v51 = vor.u32 %v1904_v34, %v1467_v37  ;;  %v1598_v2 = vor.u32 %v1936_v42, %v1595_v47 }
  0x6f   :  { %1158 = vmatpush.bf16.msrb.mxu3 %v1702_v53  ;;  %v1534_v53 = vor.u32 %v1920_v38, %v1531_v39 }
  0x70   :  { %1117 = vmatpush.bf16.msrb.mxu0 %v1502_v55  ;;  %v1846_v55 = vor.u32 %v1998_v49, %v1843_v50 }
  0x71   :  { %1131 = vmatpush.bf16.msrb.mxu1 %v1566_v57  ;;  %v1662_v57 = vor.u32 %v1952_v52, %v1659_v8 }
  0x72   :  { %1145 = vmatpush.bf16.msrb.mxu2 %v1630_v61  ;;  %v1774_v61 = vor.u32 %v1980_v56, %v1771_v60 }
  0x73   :  { %1159 = vmatpush.bf16.msrb.mxu3 %v1694_v0  ;;  %v1763_v0 = vld [vmem:[%s2983_s1 + $0x3d8] sm:$0xf0] }
  0x74   :  { %1118 = vmatpush.bf16.msrb.mxu0 %v1494_v4  ;;  %v1766_v4 = vor.u32 %v1978_v63, %v1763_v0 }
  0x75   :  { %1132 = vmatpush.bf16.msrb.mxu1 %v1558_v7 }
  0x76   :  { %1146 = vmatpush.bf16.msrb.mxu2 %v1622_v11  ;;  %v1990_v11 = vld [vmem:[%s2983_s1 + $0x434] sm:$0xf] }
  0x77   :  { %1160 = vmatpush.bf16.msrb.mxu3 %v1686_v15  ;;  %v1814_v15 = vor.u32 %v1990_v11, %v1811_v12 }
  0x78   :  { %1119 = vmatpush.bf16.msrb.mxu0 %v1486_v18  ;;  %v1988_v18 = vld [vmem:[%s2983_s1 + $0x424] sm:$0xf] }
  0x79   :  { %1133 = vmatpush.bf16.msrb.mxu1 %v1550_v21  ;;  %v1806_v21 = vor.u32 %v1988_v18, %v1803_v19 }
  0x7a   :  { %1147 = vmatpush.bf16.msrb.mxu2 %v1614_v24  ;;  %v1986_v24 = vld [vmem:[%s2983_s1 + $0x414] sm:$0xf] }
  0x7b   :  { %1161 = vmatpush.bf16.msrb.mxu3 %v1678_v28  ;;  %v1798_v28 = vor.u32 %v1986_v24, %v1795_v26 }
  0x7c   :  { %1120 = vmatpush.bf16.msrb.mxu0 %v1478_v31  ;;  %v1984_v31 = vld [vmem:[%s2983_s1 + $0x404] sm:$0xf] }
  0x7d   :  { %1134 = vmatpush.bf16.msrb.mxu1 %v1542_v35  ;;  %v1790_v34 = vor.u32 %v1984_v31, %v1787_v32  ;;  %v1216_v31 = vperm.slane %v1213_v17, 1 }
  0x7e   :  { %1148 = vmatpush.bf16.msrb.mxu2 %v1606_v41 }
  0x7f   :  { %1162 = vmatpush.bf16.msrb.mxu3 %v1670_v46 }
  0x80   :  { %1121 = vmatpush.bf16.msrb.mxu0 %v1470_v51 }
  0x81   :  { %1135 = vmatpush.bf16.msrb.mxu1 %v1534_v53 }
  0x82   :  { %1149 = vmatpush.bf16.msrb.mxu2 %v1598_v2 }
  0x83   :  { %1163 = vmatpush.bf16.msrb.mxu3 %v1662_v57  ;;  %1122 = vmatmul.bf16.vlgmr.msrb.gmra.mxu0 %v2319_v14  ;;  %v1976_v14 = vld [vmem:[%s2983_s1 + $0x3c4] sm:$0xf] }
  0x84   :  { %1170 = vmatpush.bf16.msra.mxu0 %v1782_v54  ;;  %1136 = vmatmul.bf16.vlgmr.msrb.gmra.mxu1 %v2491_v36  ;;  %v1992_v36 = vld [vmem:[%s2983_s1 + $0x444] sm:$0xf] }
  0x85   :  { %1184 = vmatpush.bf16.msra.mxu1 %v1846_v55  ;;  %1150 = vmatmul.bf16.vlgmr.msrb.gmra.mxu2 %v2510_v44  ;;  %v1819_v44 = vld [vmem:[%s2983_s1 + $0x448] sm:$0xf0] }
  0x86   :  { %1164 = vmatmul.bf16.vlgmr.msrb.gmra.mxu3 %v2502_v40  ;;  %v1758_v40 = vor.u32 %v1976_v14, %v1755_v6  ;;  %v1822_v7 = vor.u32 %v1992_v36, %v1819_v44 }
  0x88   :  { %1171 = vmatpush.bf16.msra.mxu0 %v1774_v61 }
  0x89   :  { %1185 = vmatpush.bf16.msra.mxu1 %v1838_v62 }
  0x8c   :  { %1172 = vmatpush.bf16.msra.mxu0 %v1766_v4 }
  0x8d   :  { %1186 = vmatpush.bf16.msra.mxu1 %v1830_v5 }
  0x90   :  { %1173 = vmatpush.bf16.msra.mxu0 %v1758_v40 }
  0x91   :  { %1187 = vmatpush.bf16.msra.mxu1 %v1822_v7 }
  0x94   :  { %1174 = vmatpush.bf16.msra.mxu0 %v1750_v13 }
  0x95   :  { %1188 = vmatpush.bf16.msra.mxu1 %v1814_v15 }
  0x98   :  { %1175 = vmatpush.bf16.msra.mxu0 %v1742_v20 }
  0x99   :  { %1189 = vmatpush.bf16.msra.mxu1 %v1806_v21 }
  0x9c   :  { %1176 = vmatpush.bf16.msra.mxu0 %v1734_v27 }
  0x9d   :  { %1190 = vmatpush.bf16.msra.mxu1 %v1798_v28 }
  0xa0   :  { %1177 = vmatpush.bf16.msra.mxu0 %v1726_v33  ;;  %v955_v37 = vpop.f32.mrf.mxu0 }
  0xa1   :  { %1191 = vmatpush.bf16.msra.mxu1 %v1790_v34  ;;  %v969_v35 = vpop.f32.mrf.mxu1 }
  0xa3   :  { %1178 = vmatmul.bf16.vlgmr.msra.gmra.mxu0 %v2518_v48 }
  0xa4   :  { %1192 = vmatmul.bf16.vlgmr.msra.gmra.mxu1 %v2710_v25  ;;  %v970_v25 = vadd.f32 %v969_v35, %v955_v37 }
  0xa8   :  { %v983_v38 = vpop.f32.mrf.mxu2  ;;  %v957_v41 = vpop.f32.mrf.mxu0 }
  0xa9   :  { %v971_v39 = vpop.f32.mrf.mxu1  ;;  %v997_v42 = vpop.f32.mrf.mxu3  ;;  %v984_v57 = vadd.f32 %v983_v38, %v970_v25 }
  0xaa   :  { %v972_v3 = vadd.f32 %v971_v39, %v957_v41 }
  0xab   :  { %v998_v61 = vadd.f32 %v997_v42, %v984_v57 }
  0xb0   :  { %v985_v43 = vpop.f32.mrf.mxu2 }
  0xb1   :  { %v999_v46 = vpop.f32.mrf.mxu3  ;;  %v986_v14 = vadd.f32 %v985_v43, %v972_v3 }
  0xb3   :  { %v1000_v9 = vadd.f32 %v999_v46, %v986_v14 }
  0xc0   :  { %v1011_v47 = vpop.f32.mrf.mxu0 }
  0xc1   :  { %v1025_v45 = vpop.f32.mrf.mxu1  ;;  %v1012_v4 = vadd.f32 %v1011_v47, %v998_v61 }
  0xc3   :  { %v1026_v6 = vadd.f32 %v1025_v45, %v1012_v4 }
  0xc8   :  { %v1039_v49 = vpop.f32.mrf.mxu2  ;;  %v1013_v51 = vpop.f32.mrf.mxu0 }
  0xc9   :  { %v1027_v50 = vpop.f32.mrf.mxu1  ;;  %v1053_v52 = vpop.f32.mrf.mxu3  ;;  %v1040_v10 = vadd.f32 %v1039_v49, %v1026_v6  ;;  %v1014_v13 = vadd.f32 %v1013_v51, %v1000_v9 }
  0xcb   :  { %v1054_v18 = vadd.f32 %v1053_v52, %v1040_v10  ;;  %v1028_v20 = vadd.f32 %v1027_v50, %v1014_v13 }
  0xd0   :  { %v1041_v8 = vpop.f32.mrf.mxu2 }
  0xd1   :  { %v1055_v48 = vpop.f32.mrf.mxu3  ;;  %v1042_v27 = vadd.f32 %v1041_v8, %v1028_v20 }
  0xd3   :  { %v1056_v37 = vadd.f32 %v1055_v48, %v1042_v27 }
  0xe0   :  { %v1067_v54 = vpop.f32.mrf.mxu0 }
  0xe1   :  { %v1081_v53 = vpop.f32.mrf.mxu1  ;;  %v1068_v21 = vadd.f32 %v1067_v54, %v1054_v18 }
  0xe3   :  { %v1219_v32 = vadd.f32 %v1215_v22, %v1068_v21 }
  0xe5   :  { %v1223_v39 = vmax.f32 %v1219_v32, 0.0 }
  0xe8   :  { %v1095_v2 = vpop.f32.mrf.mxu2  ;;  %v1069_v56 = vpop.f32.mrf.mxu0 }
  0xe9   :  { %v1083_v55 = vpop.f32.mrf.mxu1  ;;  %v1109_v60 = vpop.f32.mrf.mxu3  ;;  %v1096_v58 = vadd.f32 %v1095_v2, %v1081_v53  ;;  %v1070_v41 = vadd.f32 %v1069_v56, %v1056_v37 }
  0xeb   :  { %v1110_v63 = vadd.f32 %v1109_v60, %v1096_v58  ;;  %v1221_v50 = vadd.f32 %v1215_v22, %v1070_v41 }
  0xed   :  { %v1225_v8 = vmax.f32 %v1221_v50, 0.0 }
  0xf0   :  { %v1097_v59 = vpop.f32.mrf.mxu2 }
  0xf1   :  { %v1111_v1 = vpop.f32.mrf.mxu3  ;;  %v1098_v44 = vadd.f32 %v1097_v59, %v1083_v55 }
  0xf3   :  { %v1112_v15 = vadd.f32 %v1111_v1, %v1098_v44 }
 0x100   :  { %v1123_v62 = vpop.f32.mrf.mxu0 }
 0x101   :  { %v1137_v0 = vpop.f32.mrf.mxu1  ;;  %v1124_v5 = vadd.f32 %v1123_v62, %v1110_v63 }
 0x103   :  { %v1138_v40 = vadd.f32 %v1137_v0, %v1124_v5 }
 0x108   :  { %v1151_v36 = vpop.f32.mrf.mxu2  ;;  %v1125_v7 = vpop.f32.mrf.mxu0 }
 0x109   :  { %v1139_v11 = vpop.f32.mrf.mxu1  ;;  %v1165_v12 = vpop.f32.mrf.mxu3  ;;  %v1152_v16 = vadd.f32 %v1151_v36, %v1138_v40  ;;  %v1126_v19 = vadd.f32 %v1125_v7, %v1112_v15 }
 0x10b   :  { %v1166_v23 = vadd.f32 %v1165_v12, %v1152_v16  ;;  %v1140_v28 = vadd.f32 %v1139_v11, %v1126_v19 }
 0x110   :  { %v1153_v24 = vpop.f32.mrf.mxu2 }
 0x111   :  { %v1154_v33 = vadd.f32 %v1153_v24, %v1140_v28  ;;  %v1167_v35 = vpop.f32.mrf.mxu3 }
 0x113   :  { %v1168_v42 = vadd.f32 %v1167_v35, %v1154_v33 }
 0x120   :  { %v1179_v26 = vpop.f32.mrf.mxu0 }
 0x121   :  { %v1180_v29 = vadd.f32 %v1179_v26, %v1166_v23  ;;  %v1193_v30 = vpop.f32.mrf.mxu1 }
 0x123   :  { %v1194_v34 = vadd.f32 %v1193_v30, %v1180_v29 }
 0x125   :  { %v1220_v38 = vadd.f32 %v1216_v31, %v1194_v34 }
 0x127   :  { %v1224_v43 = vmax.f32 %v1220_v38, 0.0 }
 0x128   :  { %v1181_v45 = vpop.f32.mrf.mxu0 }
 0x129   :  { %v1227_v46 = vpack.c.bf16 %v1224_v43, %v1223_v39  ;;  %v1182_v47 = vadd.f32 %v1181_v45, %v1168_v42  ;;  %v1195_v49 = vpop.f32.mrf.mxu1 }
 0x12b   :  { %1229 = vst [vmem:[%s2986_s3] sm:$0xff] %v1227_v46  ;;  %v1196_v51 = vadd.f32 %v1195_v49, %v1182_v47 }
 0x12d   :  { %v1222_v52 = vadd.f32 %v1216_v31, %v1196_v51 }
 0x12f   :  { %v1226_v53 = vmax.f32 %v1222_v52, 0.0 }
 0x131   :  { %v1228_v54 = vpack.c.bf16 %v1226_v53, %v1225_v8 }
 0x133   :  { %1230 = vst [vmem:[%s2986_s3 + $0x8] sm:$0xff] %v1228_v54 }

// kernel: _resnet_forward.21
= control target key start
LH: loop header
LB: loop body
LE: loop exit
PB: predicated region body
PF: predicated region fallthrough
CT: control target
= control target key end

     0   :  { %s404_s1 = inlined_call_operand.vmem [shape: bf16[128,256], index: 1, kind: input, shape index: {}]   ;;  %s405_s0 = inlined_call_operand.vmem [shape: bf16[16,128], index: 0, kind: input, shape index: {}]   ;;  %s406_s2 = inlined_call_operand.vmem [shape: f32[1,256], index: 2, kind: input, shape index: {}]   ;;  %s407_s3 = inlined_call_operand.vmem [shape: bf16[16,256], index: 3, kind: output, shape index: {}]  }
   0x1   :  { %v253_v0 = vld [vmem:[%s404_s1 + $0x70] sm:$0xf]  ;;  %v275_v1 = vld [vmem:[%s404_s1 + $0x74] sm:$0xf0]  ;;  %v274_v2 = vld [vmem:[%s404_s1 + $0x74] sm:$0xf] }
   0x2   :  { %v254_v3 = vor.u32 %v275_v1, %v253_v0  ;;  %v255_v4 = vld [vmem:[%s404_s1 + $0x78] sm:$0xf0]  ;;  %v245_v5 = vld [vmem:[%s404_s1 + $0x60] sm:$0xf]  ;;  %v273_v6 = vld [vmem:[%s404_s1 + $0x64] sm:$0xf0] }
   0x3   :  { %v258_v7 = vor.u32 %v274_v2, %v255_v4  ;;  %v272_v8 = vld [vmem:[%s404_s1 + $0x64] sm:$0xf]  ;;  %v247_v9 = vld [vmem:[%s404_s1 + $0x68] sm:$0xf0]  ;;  %v246_v10 = vor.u32 %v273_v6, %v245_v5  ;;  %v237_v12 = vld [vmem:[%s404_s1 + $0x50] sm:$0xf] }
   0x4   :  { %130 = vmatpush.bf16.msra.mxu0 %v254_v3  ;;  %v250_v11 = vor.u32 %v272_v8, %v247_v9  ;;  %v271_v13 = vld [vmem:[%s404_s1 + $0x54] sm:$0xf0]  ;;  %v270_v14 = vld [vmem:[%s404_s1 + $0x54] sm:$0xf]  ;;  %v239_v15 = vld [vmem:[%s404_s1 + $0x58] sm:$0xf0] }
   0x5   :  { %144 = vmatpush.bf16.msra.mxu1 %v258_v7  ;;  %v238_v16 = vor.u32 %v271_v13, %v237_v12  ;;  %v242_v17 = vor.u32 %v270_v14, %v239_v15  ;;  %v229_v18 = vld [vmem:[%s404_s1 + $0x40] sm:$0xf]  ;;  %v269_v19 = vld [vmem:[%s404_s1 + $0x44] sm:$0xf0]  ;;  %v268_v20 = vld [vmem:[%s404_s1 + $0x44] sm:$0xf] }
   0x6   :  { %v231_v21 = vld [vmem:[%s404_s1 + $0x48] sm:$0xf0]  ;;  %v230_v22 = vor.u32 %v269_v19, %v229_v18  ;;  %v221_v24 = vld [vmem:[%s404_s1 + $0x30] sm:$0xf]  ;;  %v267_v25 = vld [vmem:[%s404_s1 + $0x34] sm:$0xf0] }
   0x7   :  { %v234_v23 = vor.u32 %v268_v20, %v231_v21  ;;  %v266_v26 = vld [vmem:[%s404_s1 + $0x34] sm:$0xf]  ;;  %v223_v27 = vld [vmem:[%s404_s1 + $0x38] sm:$0xf0]  ;;  %v222_v28 = vor.u32 %v267_v25, %v221_v24  ;;  %v213_v30 = vld [vmem:[%s404_s1 + $0x20] sm:$0xf] }
   0x8   :  { %131 = vmatpush.bf16.msra.mxu0 %v246_v10  ;;  %v226_v29 = vor.u32 %v266_v26, %v223_v27  ;;  %v265_v31 = vld [vmem:[%s404_s1 + $0x24] sm:$0xf0]  ;;  %v264_v32 = vld [vmem:[%s404_s1 + $0x24] sm:$0xf]  ;;  %v215_v33 = vld [vmem:[%s404_s1 + $0x28] sm:$0xf0] }
   0x9   :  { %145 = vmatpush.bf16.msra.mxu1 %v250_v11  ;;  %v214_v34 = vor.u32 %v265_v31, %v213_v30  ;;  %v218_v35 = vor.u32 %v264_v32, %v215_v33  ;;  %v205_v36 = vld [vmem:[%s404_s1 + $0x10] sm:$0xf]  ;;  %v263_v37 = vld [vmem:[%s404_s1 + $0x14] sm:$0xf0]  ;;  %v262_v38 = vld [vmem:[%s404_s1 + $0x14] sm:$0xf] }
   0xa   :  { %v207_v39 = vld [vmem:[%s404_s1 + $0x18] sm:$0xf0]  ;;  %v206_v40 = vor.u32 %v263_v37, %v205_v36  ;;  %v197_v42 = vld [vmem:[%s404_s1] sm:$0xf]  ;;  %v261_v43 = vld [vmem:[%s404_s1 + $0x4] sm:$0xf0] }
   0xb   :  { %v210_v41 = vor.u32 %v262_v38, %v207_v39  ;;  %v260_v44 = vld [vmem:[%s404_s1 + $0x4] sm:$0xf]  ;;  %v199_v45 = vld [vmem:[%s404_s1 + $0x8] sm:$0xf0]  ;;  %v198_v46 = vor.u32 %v261_v43, %v197_v42  ;;  %v173_v49 = vld [vmem:[%s406_s2] sm:$0x3] }
   0xc   :  { %132 = vmatpush.bf16.msra.mxu0 %v238_v16  ;;  %v202_v47 = vor.u32 %v260_v44, %v199_v45  ;;  %v259_v48 = vld [vmem:[%s405_s0] sm:$0xff]  ;;  %v175_v50 = vperm.slane %v173_v49, 0  ;;  %v176_v51 = vperm.slane %v173_v49, 1 }
   0xd   :  { %146 = vmatpush.bf16.msra.mxu1 %v242_v17 }
  0x10   :  { %133 = vmatpush.bf16.msra.mxu0 %v230_v22 }
  0x11   :  { %147 = vmatpush.bf16.msra.mxu1 %v234_v23 }
  0x14   :  { %134 = vmatpush.bf16.msra.mxu0 %v222_v28 }
  0x15   :  { %148 = vmatpush.bf16.msra.mxu1 %v226_v29 }
  0x18   :  { %135 = vmatpush.bf16.msra.mxu0 %v214_v34 }
  0x19   :  { %149 = vmatpush.bf16.msra.mxu1 %v218_v35 }
  0x1c   :  { %136 = vmatpush.bf16.msra.mxu0 %v206_v40 }
  0x1d   :  { %150 = vmatpush.bf16.msra.mxu1 %v210_v41 }
  0x20   :  { %137 = vmatpush.bf16.msra.mxu0 %v198_v46 }
  0x21   :  { %151 = vmatpush.bf16.msra.mxu1 %v202_v47 }
  0x23   :  { %138 = vmatmul.bf16.vlgmr.msra.gmra.mxu0 %v259_v48 }
  0x24   :  { %152 = vmatmul.bf16.vlgmr.msra.gmra.mxu1 %v259_v48 }
  0xa0   :  { %v139_v52 = vpop.f32.mrf.mxu0 }
  0xa1   :  { %v179_v53 = vadd.f32 %v175_v50, %v139_v52  ;;  %v153_v54 = vpop.f32.mrf.mxu1 }
  0xa2   :  { %v180_v55 = vadd.f32 %v176_v51, %v153_v54 }
  0xa4   :  { %v183_v56 = vpack.c.bf16 %v180_v55, %v179_v53 }
  0xa6   :  { %185 = vst [vmem:[%s407_s3] sm:$0xff] %v183_v56 }
  0xa8   :  { %v141_v57 = vpop.f32.mrf.mxu0 }
  0xa9   :  { %v181_v58 = vadd.f32 %v175_v50, %v141_v57  ;;  %v155_v59 = vpop.f32.mrf.mxu1 }
  0xaa   :  { %v182_v60 = vadd.f32 %v176_v51, %v155_v59 }
  0xac   :  { %v184_v61 = vpack.c.bf16 %v182_v60, %v181_v58 }
  0xae   :  { %186 = vst [vmem:[%s407_s3 + $0x8] sm:$0xff] %v184_v61 }

// kernel: _resnet_forward.23
= control target key start
LH: loop header
LB: loop body
LE: loop exit
PB: predicated region body
PF: predicated region fallthrough
CT: control target
= control target key end

     0   :  { %s1985_s15 = smov 0   ;;  %s1987_s16 = smov 0   ;;  %s2299_s0 = inlined_call_operand.vmem [shape: bf16[16,2304], index: 0, kind: input, shape index: {}]   ;;  %s2300_s1 = inlined_call_operand.vmem [shape: bf16[2304,256], index: 1, kind: input, shape index: {}]   ;;  %s2301_s2 = inlined_call_operand.vmem [shape: f32[1,256], index: 2, kind: input, shape index: {}]   ;;  %s2302_s3 = inlined_call_operand.vmem [shape: bf16[16,256], index: 3, kind: input, shape index: {}]   ;;  %s2303_s4 = inlined_call_operand.vmem [shape: bf16[16,256], index: 4, kind: output, shape index: {}]  }
   0x1   :  { %s1989_s17 = smov 0   ;;  %s1991_s18 = smov 0  }
   0x2   :  { %s1993_s19 = smov 0  }
   0x3 LB: > { %s26_s20 = sadd.s32 1, %s1953_s18  ;;  %p49_p1 = scmp.ne.s32.totalorder %s1945_s16, %s1941_s15  ;;  %s1957_s19 = sphi %s1993_s19, %s14_s19   ;;  %s1953_s18 = sphi %s1991_s18, %s2307_s18   ;;  %s1949_s17 = sphi %s1989_s17, %s2306_s17   ;;  %s1945_s16 = sphi %s1987_s16, %s2305_s16   ;;  %s1941_s15 = sphi %s1985_s15, %s2304_s15  }
   0x4   : > { %p27_p0 = scmp.ge.s32.totalorder %s26_s20, 3  ;;  %p50_p2 = scmp.eq.s32.totalorder %s1957_s19, 0 }
   0x5   : > { %s42_s22 = sadd.s32 1, %s1945_s16  ;;  %p1353_p5 = scmp.ge.s32.totalorder %s1957_s19, 3 }
   0x6   : > { %s2309_s20 = smov (%p27_p0, %s26_s20), 0  ;;  %p51_p3 = por %p50_p2, %p49_p1 }
   0x7   : > { %s38_s21 = ssub.s32 %s1953_s18, %s2309_s20  ;;  %208 = sbr.rel (%p1353_p5) target bundleno = 23 (0x17), region = 24 }
   0x8   : > { %p40_p4 = scmp.eq.s32.totalorder %s38_s21, 0 }
   0xa   : > { %s2020_s23 = scalar_select %p40_p4, %s1945_s16, %s42_s22  }
   0xc   : > { %211 = sbr.rel (!%p51_p3) target bundleno = 23 (0x17), region = 28  ;;  %s213_s24 = sand.u32 (%p51_p3), 1, %s1945_s16  }
   0xd   : > { %s1772_s25 = smul.u32 (%p51_p3), 24, %s1953_s18 }
   0xe   : > { %s1876_s26 = smul.u32 (%p51_p3), 48, %s213_s24 }
   0xf   : > { %s221_s29 = scalar_lea.vmem (%p51_p3), %s2299_s0, %s1772_s25 }
  0x10   : > { %v234_v0 = vld [vmem:[%s221_s29] sm:$0xff] (%p51_p3)  ;;  %v236_v1 = vld [vmem:[%s221_s29 + $0x8] sm:$0xff] (%p51_p3)  ;;  %v238_v2 = vld [vmem:[%s221_s29 + $0x10] sm:$0xff] (%p51_p3)  ;;  %s215_s30 = scalar_lea.vmem (%p51_p3), [#allocation3], %s1876_s26 }
  0x11   : > { %235 = vst [vmem:[%s215_s30] sm:$0xff] %v234_v0  ;;  %v240_v3 = vld [vmem:[%s221_s29 + $0x48] sm:$0xff]  ;;  %v242_v4 = vld [vmem:[%s221_s29 + $0x50] sm:$0xff]  ;;  %v244_v5 = vld [vmem:[%s221_s29 + $0x58] sm:$0xff] }
  0x12   : > { %237 = vst [vmem:[%s215_s30 + $0x8] sm:$0xff] %v236_v1 }
  0x13   : > { %239 = vst [vmem:[%s215_s30 + $0x10] sm:$0xff] %v238_v2 }
  0x14   : > { %241 = vst [vmem:[%s215_s30 + $0x18] sm:$0xff] %v240_v3 }
  0x15   : > { %243 = vst [vmem:[%s215_s30 + $0x20] sm:$0xff] %v242_v4 }
  0x16   : > { %245 = vst [vmem:[%s215_s30 + $0x28] sm:$0xff] %v244_v5 }
  0x17 PF: > { %p1355_p6 = scmp.ge.s32.totalorder %s1957_s19, 1  ;;  %p265_p7 = scmp.lt.s32.totalorder %s1957_s19, 4 }
  0x19   : > { %p266_p8 = pnand %p1355_p6, %p265_p7 }
  0x1a   : > { %s272_s5 = sand.u32 (!%p266_p8), 1, %s1941_s15   ;;  %s328_s6 = smul.u32 (!%p266_p8), 96, %s1949_s17 }
  0x1b   : > { %269 = sbr.rel (%p266_p8) target bundleno = 305 (0x131), region = 55  ;;  %p1358_p10 = scmp.ne.s32.totalorder (!%p266_p8), %s1949_s17, 0 }
  0x1c   : > { %s1877_s7 = smul.u32 (!%p266_p8), 48, %s272_s5  ;;  %p330_p9 = scmp.lt.s32.totalorder (!%p266_p8), %s328_s6, 287 }
  0x1e   : > { %s2037_s12 = scalar_lea.vmem (!%p266_p8), [#allocation3], %s1877_s7 }
  0x20   : > { %s2311_s6 = smov (!%p330_p9, %s328_s6), 287  ;;  %372 = sbr.rel (%p1358_p10) target bundleno = 42 (0x2a), region = 63 }
  0x21   : > { %s1773_s8 = sshll.u32 %s2311_s6, 3 }
  0x22   : > { %s2035_s11 = scalar_lea.vmem %s2300_s1, %s1773_s8 }
  0x25   : > { %v1959_v6 = vmov 0.0  }
  0x26   : > { %373 = vst [vmem:[#allocation2 + $0x10] sm:$0xff] %v1959_v6 }
  0x27   : > { %374 = vst [vmem:[#allocation2] sm:$0xff] %v1959_v6 }
  0x28   : > { %375 = vst [vmem:[#allocation2 + $0x18] sm:$0xff] %v1959_v6 }
  0x29   : > { %376 = vst [vmem:[#allocation2 + $0x8] sm:$0xff] %v1959_v6 }
  0x2a PF: > { %v1441_v7 = vld [vmem:[%s2035_s11 + $0x70] sm:$0xf]  ;;  %v1795_v8 = vld [vmem:[%s2035_s11 + $0x74] sm:$0xf0]  ;;  %v1433_v18 = vld [vmem:[%s2035_s11 + $0x60] sm:$0xf] }
  0x2b   : > { %v1505_v9 = vld [vmem:[%s2035_s11 + $0xf0] sm:$0xf]  ;;  %v1442_v10 = vor.u32 %v1795_v8, %v1441_v7  ;;  %v1811_v11 = vld [vmem:[%s2035_s11 + $0xf4] sm:$0xf0]  ;;  %v1793_v20 = vld [vmem:[%s2035_s11 + $0x64] sm:$0xf0] }
  0x2c   : > { %v1569_v12 = vld [vmem:[%s2035_s11 + $0x170] sm:$0xf]  ;;  %v1827_v13 = vld [vmem:[%s2035_s11 + $0x174] sm:$0xf0]  ;;  %v1506_v14 = vor.u32 %v1811_v11, %v1505_v9  ;;  %v1497_v21 = vld [vmem:[%s2035_s11 + $0xe0] sm:$0xf]  ;;  %v1434_v23 = vor.u32 %v1793_v20, %v1433_v18 }
  0x2d   : > { %v1570_v15 = vor.u32 %v1827_v13, %v1569_v12  ;;  %v1633_v16 = vld [vmem:[%s2035_s11 + $0x1f0] sm:$0xf]  ;;  %v1843_v17 = vld [vmem:[%s2035_s11 + $0x1f4] sm:$0xf0]  ;;  %993 = vmatpush.bf16.msra.mxu0 %v1442_v10  ;;  %v1809_v22 = vld [vmem:[%s2035_s11 + $0xe4] sm:$0xf0] }
  0x2e   : > { %v1634_v19 = vor.u32 %v1843_v17, %v1633_v16  ;;  %1007 = vmatpush.bf16.msra.mxu1 %v1506_v14  ;;  %v1498_v24 = vor.u32 %v1809_v22, %v1497_v21  ;;  %v1561_v25 = vld [vmem:[%s2035_s11 + $0x160] sm:$0xf]  ;;  %v1825_v26 = vld [vmem:[%s2035_s11 + $0x164] sm:$0xf0]  ;;  %v1425_v30 = vld [vmem:[%s2035_s11 + $0x50] sm:$0xf] }
  0x2f   : > { %1021 = vmatpush.bf16.msra.mxu2 %v1570_v15  ;;  %v1625_v27 = vld [vmem:[%s2035_s11 + $0x1e0] sm:$0xf]  ;;  %v1562_v28 = vor.u32 %v1825_v26, %v1561_v25  ;;  %v1841_v29 = vld [vmem:[%s2035_s11 + $0x1e4] sm:$0xf0]  ;;  %v1791_v31 = vld [vmem:[%s2035_s11 + $0x54] sm:$0xf0] }
  0x30   : > { %1035 = vmatpush.bf16.msra.mxu3 %v1634_v19  ;;  %v1626_v32 = vor.u32 %v1841_v29, %v1625_v27  ;;  %v1489_v33 = vld [vmem:[%s2035_s11 + $0xd0] sm:$0xf]  ;;  %v1807_v34 = vld [vmem:[%s2035_s11 + $0xd4] sm:$0xf0]  ;;  %v1426_v36 = vor.u32 %v1791_v31, %v1425_v30  ;;  %v1417_v42 = vld [vmem:[%s2035_s11 + $0x40] sm:$0xf] }
  0x31   : > { %v1553_v35 = vld [vmem:[%s2035_s11 + $0x150] sm:$0xf]  ;;  %994 = vmatpush.bf16.msra.mxu0 %v1434_v23  ;;  %v1823_v37 = vld [vmem:[%s2035_s11 + $0x154] sm:$0xf0]  ;;  %v1490_v40 = vor.u32 %v1807_v34, %v1489_v33  ;;  %v1789_v43 = vld [vmem:[%s2035_s11 + $0x44] sm:$0xf0] }
  0x32   : > { %v1617_v38 = vld [vmem:[%s2035_s11 + $0x1d0] sm:$0xf]  ;;  %v1839_v39 = vld [vmem:[%s2035_s11 + $0x1d4] sm:$0xf0]  ;;  %1008 = vmatpush.bf16.msra.mxu1 %v1498_v24  ;;  %v1554_v41 = vor.u32 %v1823_v37, %v1553_v35  ;;  %v1481_v44 = vld [vmem:[%s2035_s11 + $0xc0] sm:$0xf]  ;;  %v1418_v51 = vor.u32 %v1789_v43, %v1417_v42 }
  0x33   : > { %1022 = vmatpush.bf16.msra.mxu2 %v1562_v28  ;;  %v1618_v45 = vor.u32 %v1839_v39, %v1617_v38  ;;  %v1805_v46 = vld [vmem:[%s2035_s11 + $0xc4] sm:$0xf0]  ;;  %v1545_v47 = vld [vmem:[%s2035_s11 + $0x140] sm:$0xf]  ;;  %v1409_v54 = vld [vmem:[%s2035_s11 + $0x30] sm:$0xf] }
  0x34   : > { %1036 = vmatpush.bf16.msra.mxu3 %v1626_v32  ;;  %v1821_v48 = vld [vmem:[%s2035_s11 + $0x144] sm:$0xf0]  ;;  %v1609_v49 = vld [vmem:[%s2035_s11 + $0x1c0] sm:$0xf]  ;;  %v1482_v52 = vor.u32 %v1805_v46, %v1481_v44  ;;  %v1787_v55 = vld [vmem:[%s2035_s11 + $0x34] sm:$0xf0] }
  0x35   : > { %v1837_v50 = vld [vmem:[%s2035_s11 + $0x1c4] sm:$0xf0]  ;;  %995 = vmatpush.bf16.msra.mxu0 %v1426_v36  ;;  %v1546_v53 = vor.u32 %v1821_v48, %v1545_v47  ;;  %v1473_v56 = vld [vmem:[%s2035_s11 + $0xb0] sm:$0xf]  ;;  %v1803_v58 = vld [vmem:[%s2035_s11 + $0xb4] sm:$0xf0]  ;;  %v1410_v63 = vor.u32 %v1787_v55, %v1409_v54 }
  0x36   : > { %1009 = vmatpush.bf16.msra.mxu1 %v1490_v40  ;;  %v1610_v57 = vor.u32 %v1837_v50, %v1609_v49  ;;  %v1537_v59 = vld [vmem:[%s2035_s11 + $0x130] sm:$0xf]  ;;  %v1819_v60 = vld [vmem:[%s2035_s11 + $0x134] sm:$0xf0]  ;;  %v1474_v0 = vor.u32 %v1803_v58, %v1473_v56  ;;  %v1401_v2 = vld [vmem:[%s2035_s11 + $0x20] sm:$0xf] }
  0x37   : > { %1023 = vmatpush.bf16.msra.mxu2 %v1554_v41  ;;  %v1601_v61 = vld [vmem:[%s2035_s11 + $0x1b0] sm:$0xf]  ;;  %v1835_v62 = vld [vmem:[%s2035_s11 + $0x1b4] sm:$0xf0]  ;;  %v1538_v1 = vor.u32 %v1819_v60, %v1537_v59  ;;  %v1785_v3 = vld [vmem:[%s2035_s11 + $0x24] sm:$0xf0] }
  0x38   : > { %1037 = vmatpush.bf16.msra.mxu3 %v1618_v45  ;;  %v1465_v4 = vld [vmem:[%s2035_s11 + $0xa0] sm:$0xf]  ;;  %v1602_v5 = vor.u32 %v1835_v62, %v1601_v61  ;;  %v1801_v6 = vld [vmem:[%s2035_s11 + $0xa4] sm:$0xf0]  ;;  %v1402_v11 = vor.u32 %v1785_v3, %v1401_v2  ;;  %v1393_v14 = vld [vmem:[%s2035_s11 + $0x10] sm:$0xf] }
  0x39   : > { %996 = vmatpush.bf16.msra.mxu0 %v1418_v51  ;;  %v1529_v7 = vld [vmem:[%s2035_s11 + $0x120] sm:$0xf]  ;;  %v1817_v8 = vld [vmem:[%s2035_s11 + $0x124] sm:$0xf0]  ;;  %v1466_v12 = vor.u32 %v1801_v6, %v1465_v4  ;;  %v1783_v15 = vld [vmem:[%s2035_s11 + $0x14] sm:$0xf0] }
  0x3a   : > { %1010 = vmatpush.bf16.msra.mxu1 %v1482_v52  ;;  %v1593_v9 = vld [vmem:[%s2035_s11 + $0x1a0] sm:$0xf]  ;;  %v1833_v10 = vld [vmem:[%s2035_s11 + $0x1a4] sm:$0xf0]  ;;  %v1530_v13 = vor.u32 %v1817_v8, %v1529_v7  ;;  %v1457_v16 = vld [vmem:[%s2035_s11 + $0x90] sm:$0xf]  ;;  %v1394_v23 = vor.u32 %v1783_v15, %v1393_v14 }
  0x3b   : > { %1024 = vmatpush.bf16.msra.mxu2 %v1546_v53  ;;  %v1594_v17 = vor.u32 %v1833_v10, %v1593_v9  ;;  %v1799_v18 = vld [vmem:[%s2035_s11 + $0x94] sm:$0xf0]  ;;  %v1521_v19 = vld [vmem:[%s2035_s11 + $0x110] sm:$0xf]  ;;  %v1385_v24 = vld [vmem:[%s2035_s11] sm:$0xf] }
  0x3c   : > { %1038 = vmatpush.bf16.msra.mxu3 %v1610_v57  ;;  %v1815_v20 = vld [vmem:[%s2035_s11 + $0x114] sm:$0xf0]  ;;  %v1585_v21 = vld [vmem:[%s2035_s11 + $0x190] sm:$0xf]  ;;  %v1781_v25 = vld [vmem:[%s2035_s11 + $0x4] sm:$0xf0]  ;;  %v1458_v26 = vor.u32 %v1799_v18, %v1457_v16 }
  0x3d   : > { %997 = vmatpush.bf16.msra.mxu0 %v1410_v63  ;;  %v1831_v22 = vld [vmem:[%s2035_s11 + $0x194] sm:$0xf0]  ;;  %v1522_v27 = vor.u32 %v1815_v20, %v1521_v19  ;;  %v1449_v28 = vld [vmem:[%s2035_s11 + $0x80] sm:$0xf]  ;;  %v1797_v29 = vld [vmem:[%s2035_s11 + $0x84] sm:$0xf0]  ;;  %v1386_v38 = vor.u32 %v1781_v25, %v1385_v24 }
  0x3e   : > { %1011 = vmatpush.bf16.msra.mxu1 %v1474_v0  ;;  %v1513_v30 = vld [vmem:[%s2035_s11 + $0x100] sm:$0xf]  ;;  %v1586_v31 = vor.u32 %v1831_v22, %v1585_v21  ;;  %v1813_v32 = vld [vmem:[%s2035_s11 + $0x104] sm:$0xf0]  ;;  %v1697_v35 = vld [vmem:[%s2035_s11 + $0x270] sm:$0xf]  ;;  %v1450_v42 = vor.u32 %v1797_v29, %v1449_v28 }
  0x3f   : > { %1025 = vmatpush.bf16.msra.mxu2 %v1538_v1  ;;  %v1577_v33 = vld [vmem:[%s2035_s11 + $0x180] sm:$0xf]  ;;  %v1829_v34 = vld [vmem:[%s2035_s11 + $0x184] sm:$0xf0]  ;;  %v1859_v36 = vld [vmem:[%s2035_s11 + $0x274] sm:$0xf0]  ;;  %v1514_v43 = vor.u32 %v1813_v32, %v1513_v30 }
  0x40   : > { %1039 = vmatpush.bf16.msra.mxu3 %v1602_v5  ;;  %v1761_v37 = vld [vmem:[%s2035_s11 + $0x2f0] sm:$0xf]  ;;  %v1875_v39 = vld [vmem:[%s2035_s11 + $0x2f4] sm:$0xf0]  ;;  %v1794_v40 = vld [vmem:[%s2035_s11 + $0x74] sm:$0xf]  ;;  %v1578_v46 = vor.u32 %v1829_v34, %v1577_v33  ;;  %v1698_v47 = vor.u32 %v1859_v36, %v1697_v35 }
  0x41   : > { %998 = vmatpush.bf16.msra.mxu0 %v1402_v11  ;;  %v1443_v41 = vld [vmem:[%s2035_s11 + $0x78] sm:$0xf0]  ;;  %v1810_v44 = vld [vmem:[%s2035_s11 + $0xf4] sm:$0xf]  ;;  %v1689_v48 = vld [vmem:[%s2035_s11 + $0x260] sm:$0xf]  ;;  %v1762_v50 = vor.u32 %v1875_v39, %v1761_v37 }
  0x42   : > { %1012 = vmatpush.bf16.msra.mxu1 %v1466_v12  ;;  %v1507_v45 = vld [vmem:[%s2035_s11 + $0xf8] sm:$0xf0]  ;;  %v1857_v49 = vld [vmem:[%s2035_s11 + $0x264] sm:$0xf0]  ;;  %v1446_v51 = vor.u32 %v1794_v40, %v1443_v41  ;;  %v1753_v52 = vld [vmem:[%s2035_s11 + $0x2e0] sm:$0xf] }
  0x43   : > { %1026 = vmatpush.bf16.msra.mxu2 %v1530_v13  ;;  %v1873_v53 = vld [vmem:[%s2035_s11 + $0x2e4] sm:$0xf0]  ;;  %v1792_v54 = vld [vmem:[%s2035_s11 + $0x64] sm:$0xf]  ;;  %v1510_v55 = vor.u32 %v1810_v44, %v1507_v45  ;;  %v1435_v56 = vld [vmem:[%s2035_s11 + $0x68] sm:$0xf0]  ;;  %v1690_v62 = vor.u32 %v1857_v49, %v1689_v48 }
  0x44   : > { %1040 = vmatpush.bf16.msra.mxu3 %v1594_v17  ;;  %v1808_v57 = vld [vmem:[%s2035_s11 + $0xe4] sm:$0xf]  ;;  %v1499_v58 = vld [vmem:[%s2035_s11 + $0xe8] sm:$0xf0]  ;;  %v1681_v59 = vld [vmem:[%s2035_s11 + $0x250] sm:$0xf]  ;;  %v1754_v3 = vor.u32 %v1873_v53, %v1753_v52  ;;  %v1438_v4 = vor.u32 %v1792_v54, %v1435_v56 }
  0x45   : > { %999 = vmatpush.bf16.msra.mxu0 %v1394_v23  ;;  %v1361_v60 = vld [vmem:[%s2037_s12] sm:$0xf]  ;;  %v1777_v61 = vld [vmem:[%s2037_s12 + $0x14] sm:$0xf0]  ;;  %v1790_v5 = vld [vmem:[%s2035_s11 + $0x54] sm:$0xf]  ;;  %v1502_v8 = vor.u32 %v1808_v57, %v1499_v58 }
  0x46   : > { %1013 = vmatpush.bf16.msra.mxu1 %v1458_v26  ;;  %v1855_v63 = vld [vmem:[%s2035_s11 + $0x254] sm:$0xf0]  ;;  %v1745_v0 = vld [vmem:[%s2035_s11 + $0x2d0] sm:$0xf]  ;;  %v2126_v2 = vor.u32 %v1777_v61, %v1361_v60  ;;  %v1427_v6 = vld [vmem:[%s2035_s11 + $0x58] sm:$0xf0] }
  0x47   : > { %1027 = vmatpush.bf16.msra.mxu2 %v1522_v27  ;;  %v1871_v1 = vld [vmem:[%s2035_s11 + $0x2d4] sm:$0xf0]  ;;  %v1806_v7 = vld [vmem:[%s2035_s11 + $0xd4] sm:$0xf]  ;;  %v1491_v9 = vld [vmem:[%s2035_s11 + $0xd8] sm:$0xf0]  ;;  %v1682_v16 = vor.u32 %v1855_v63, %v1681_v59  ;;  %v1430_v20 = vor.u32 %v1790_v5, %v1427_v6 }
  0x48   : > { %1041 = vmatpush.bf16.msra.mxu3 %v1586_v31  ;;  %v1774_v10 = vld [vmem:[%s2037_s12 + $0x4] sm:$0xf]  ;;  %v1363_v11 = vld [vmem:[%s2037_s12 + $0x18] sm:$0xf0]  ;;  %v1369_v13 = vld [vmem:[%s2037_s12 + $0x8] sm:$0xf]  ;;  %v1746_v19 = vor.u32 %v1871_v1, %v1745_v0  ;;  %v1494_v25 = vor.u32 %v1806_v7, %v1491_v9 }
  0x49   : > { %1000 = vmatpush.bf16.msra.mxu0 %v1386_v38  ;;  %v2135_v12 = vor.u32 %v1774_v10, %v1363_v11  ;;  %v1778_v14 = vld [vmem:[%s2037_s12 + $0x1c] sm:$0xf0]  ;;  %v1775_v15 = vld [vmem:[%s2037_s12 + $0xc] sm:$0xf]  ;;  %v1371_v18 = vld [vmem:[%s2037_s12 + $0x20] sm:$0xf0] }
  0x4a   : > { %1014 = vmatpush.bf16.msra.mxu1 %v1450_v42  ;;  %v2140_v17 = vor.u32 %v1778_v14, %v1369_v13  ;;  %v1673_v21 = vld [vmem:[%s2035_s11 + $0x240] sm:$0xf]  ;;  %v1853_v22 = vld [vmem:[%s2035_s11 + $0x244] sm:$0xf0]  ;;  %v2146_v24 = vor.u32 %v1775_v15, %v1371_v18  ;;  %v1788_v27 = vld [vmem:[%s2035_s11 + $0x44] sm:$0xf] }
  0x4b   : > { %1028 = vmatpush.bf16.msra.mxu2 %v1514_v43  ;;  %v1737_v23 = vld [vmem:[%s2035_s11 + $0x2c0] sm:$0xf]  ;;  %v1869_v26 = vld [vmem:[%s2035_s11 + $0x2c4] sm:$0xf0]  ;;  %v1419_v28 = vld [vmem:[%s2035_s11 + $0x48] sm:$0xf0]  ;;  %v1674_v31 = vor.u32 %v1853_v22, %v1673_v21 }
  0x4c   : > { %1042 = vmatpush.bf16.msra.mxu3 %v1578_v46  ;;  %1001 = vmatmul.bf16.vlgmr.msra.gmra.mxu0 %v2126_v2  ;;  %v1804_v29 = vld [vmem:[%s2035_s11 + $0xc4] sm:$0xf]  ;;  %v1483_v30 = vld [vmem:[%s2035_s11 + $0xc8] sm:$0xf0]  ;;  %v1738_v32 = vor.u32 %v1869_v26, %v1737_v23  ;;  %v1422_v33 = vor.u32 %v1788_v27, %v1419_v28  ;;  %v1665_v34 = vld [vmem:[%s2035_s11 + $0x230] sm:$0xf] }
  0x4d   : > { %1049 = vmatpush.bf16.msrb.mxu0 %v1698_v47  ;;  %1015 = vmatmul.bf16.vlgmr.msra.gmra.mxu1 %v2135_v12  ;;  %v1851_v35 = vld [vmem:[%s2035_s11 + $0x234] sm:$0xf0]  ;;  %v1729_v36 = vld [vmem:[%s2035_s11 + $0x2b0] sm:$0xf]  ;;  %v1486_v37 = vor.u32 %v1804_v29, %v1483_v30  ;;  %v1786_v39 = vld [vmem:[%s2035_s11 + $0x34] sm:$0xf] }
  0x4e   : > { %1063 = vmatpush.bf16.msrb.mxu1 %v1762_v50  ;;  %1029 = vmatmul.bf16.vlgmr.msra.gmra.mxu2 %v2140_v17  ;;  %v1867_v38 = vld [vmem:[%s2035_s11 + $0x2b4] sm:$0xf0]  ;;  %v1411_v40 = vld [vmem:[%s2035_s11 + $0x38] sm:$0xf0]  ;;  %v1802_v41 = vld [vmem:[%s2035_s11 + $0xb4] sm:$0xf]  ;;  %v1666_v43 = vor.u32 %v1851_v35, %v1665_v34 }
  0x4f   : > { %1077 = vmatpush.bf16.msrb.mxu2 %v1446_v51  ;;  %1043 = vmatmul.bf16.vlgmr.msra.gmra.mxu3 %v2146_v24  ;;  %v1475_v42 = vld [vmem:[%s2035_s11 + $0xb8] sm:$0xf0]  ;;  %v1730_v44 = vor.u32 %v1867_v38, %v1729_v36  ;;  %v1414_v45 = vor.u32 %v1786_v39, %v1411_v40  ;;  %v1657_v46 = vld [vmem:[%s2035_s11 + $0x220] sm:$0xf]  ;;  %v1849_v47 = vld [vmem:[%s2035_s11 + $0x224] sm:$0xf0] }
  0x50   : > { %1091 = vmatpush.bf16.msrb.mxu3 %v1510_v55  ;;  %v1721_v48 = vld [vmem:[%s2035_s11 + $0x2a0] sm:$0xf]  ;;  %v1478_v49 = vor.u32 %v1802_v41, %v1475_v42  ;;  %v1865_v50 = vld [vmem:[%s2035_s11 + $0x2a4] sm:$0xf0]  ;;  %v1784_v51 = vld [vmem:[%s2035_s11 + $0x24] sm:$0xf]  ;;  %v1658_v55 = vor.u32 %v1849_v47, %v1657_v46 }
  0x51   : > { %1050 = vmatpush.bf16.msrb.mxu0 %v1690_v62  ;;  %v1403_v52 = vld [vmem:[%s2035_s11 + $0x28] sm:$0xf0]  ;;  %v1800_v53 = vld [vmem:[%s2035_s11 + $0xa4] sm:$0xf]  ;;  %v1722_v56 = vor.u32 %v1865_v50, %v1721_v48  ;;  %v1649_v58 = vld [vmem:[%s2035_s11 + $0x210] sm:$0xf] }
  0x52   : > { %1064 = vmatpush.bf16.msrb.mxu1 %v1754_v3  ;;  %v1467_v54 = vld [vmem:[%s2035_s11 + $0xa8] sm:$0xf0]  ;;  %v1406_v57 = vor.u32 %v1784_v51, %v1403_v52  ;;  %v1847_v59 = vld [vmem:[%s2035_s11 + $0x214] sm:$0xf0]  ;;  %v1713_v60 = vld [vmem:[%s2035_s11 + $0x290] sm:$0xf] }
  0x53   : > { %1078 = vmatpush.bf16.msrb.mxu2 %v1438_v4  ;;  %v1470_v61 = vor.u32 %v1800_v53, %v1467_v54  ;;  %v1863_v62 = vld [vmem:[%s2035_s11 + $0x294] sm:$0xf0]  ;;  %v1782_v63 = vld [vmem:[%s2035_s11 + $0x14] sm:$0xf]  ;;  %v1395_v0 = vld [vmem:[%s2035_s11 + $0x18] sm:$0xf0]  ;;  %v1650_v4 = vor.u32 %v1847_v59, %v1649_v58 }
  0x54   : > { %1092 = vmatpush.bf16.msrb.mxu3 %v1502_v8  ;;  %v1798_v1 = vld [vmem:[%s2035_s11 + $0x94] sm:$0xf]  ;;  %v1459_v3 = vld [vmem:[%s2035_s11 + $0x98] sm:$0xf0]  ;;  %v1641_v5 = vld [vmem:[%s2035_s11 + $0x200] sm:$0xf]  ;;  %v1714_v8 = vor.u32 %v1863_v62, %v1713_v60  ;;  %v1398_v9 = vor.u32 %v1782_v63, %v1395_v0 }
  0x55   : > { %1051 = vmatpush.bf16.msrb.mxu0 %v1682_v16  ;;  %v1845_v6 = vld [vmem:[%s2035_s11 + $0x204] sm:$0xf0]  ;;  %v1705_v7 = vld [vmem:[%s2035_s11 + $0x280] sm:$0xf]  ;;  %v1780_v11 = vld [vmem:[%s2035_s11 + $0x4] sm:$0xf]  ;;  %v1462_v14 = vor.u32 %v1798_v1, %v1459_v3 }
  0x56   : > { %1065 = vmatpush.bf16.msrb.mxu1 %v1746_v19  ;;  %v1861_v10 = vld [vmem:[%s2035_s11 + $0x284] sm:$0xf0]  ;;  %v1387_v13 = vld [vmem:[%s2035_s11 + $0x8] sm:$0xf0]  ;;  %v1796_v15 = vld [vmem:[%s2035_s11 + $0x84] sm:$0xf]  ;;  %v1642_v22 = vor.u32 %v1845_v6, %v1641_v5 }
  0x57   : > { %1079 = vmatpush.bf16.msrb.mxu2 %v1430_v20  ;;  %v1451_v16 = vld [vmem:[%s2035_s11 + $0x88] sm:$0xf0]  ;;  %v1826_v18 = vld [vmem:[%s2035_s11 + $0x174] sm:$0xf]  ;;  %v1571_v19 = vld [vmem:[%s2035_s11 + $0x178] sm:$0xf0]  ;;  %v1706_v27 = vor.u32 %v1861_v10, %v1705_v7  ;;  %v1390_v28 = vor.u32 %v1780_v11, %v1387_v13 }
  0x58   : > { %1093 = vmatpush.bf16.msrb.mxu3 %v1494_v25  ;;  %v1842_v20 = vld [vmem:[%s2035_s11 + $0x1f4] sm:$0xf]  ;;  %v1635_v21 = vld [vmem:[%s2035_s11 + $0x1f8] sm:$0xf0]  ;;  %v1377_v30 = vld [vmem:[%s2037_s12 + $0x10] sm:$0xf] }
  0x59   : > { %1052 = vmatpush.bf16.msrb.mxu0 %v1674_v31  ;;  %v1858_v23 = vld [vmem:[%s2035_s11 + $0x274] sm:$0xf]  ;;  %v1699_v25 = vld [vmem:[%s2035_s11 + $0x278] sm:$0xf0]  ;;  %v1779_v31 = vld [vmem:[%s2037_s12 + $0x24] sm:$0xf0]  ;;  %v1638_v36 = vor.u32 %v1842_v20, %v1635_v21 }
  0x5a   : > { %1066 = vmatpush.bf16.msrb.mxu1 %v1738_v32  ;;  %v1874_v26 = vld [vmem:[%s2035_s11 + $0x2f4] sm:$0xf]  ;;  %v1763_v29 = vld [vmem:[%s2035_s11 + $0x2f8] sm:$0xf0]  ;;  %v1454_v32 = vor.u32 %v1796_v15, %v1451_v16  ;;  %v1824_v38 = vld [vmem:[%s2035_s11 + $0x164] sm:$0xf]  ;;  %v2203_v42 = vor.u32 %v1779_v31, %v1377_v30 }
  0x5b   : > { %1080 = vmatpush.bf16.msrb.mxu2 %v1422_v33  ;;  %v1574_v33 = vor.u32 %v1826_v18, %v1571_v19  ;;  %v1776_v34 = vld [vmem:[%s2037_s12 + $0x14] sm:$0xf]  ;;  %v1379_v35 = vld [vmem:[%s2037_s12 + $0x28] sm:$0xf0]  ;;  %v1766_v41 = vor.u32 %v1874_v26, %v1763_v29  ;;  %p1767_p11 = scmp.ne.s32.totalorder %s1949_s17, 2 }
  0x5c   : > { %1094 = vmatpush.bf16.msrb.mxu3 %v1486_v37  ;;  %v1702_v37 = vor.u32 %v1858_v23, %v1699_v25  ;;  %v1563_v39 = vld [vmem:[%s2035_s11 + $0x168] sm:$0xf0]  ;;  %v1840_v40 = vld [vmem:[%s2035_s11 + $0x1e4] sm:$0xf]  ;;  %v2208_v46 = vor.u32 %v1776_v34, %v1379_v35  ;;  %v1822_v52 = vld [vmem:[%s2035_s11 + $0x154] sm:$0xf] }
  0x5d   : > { %1053 = vmatpush.bf16.msrb.mxu0 %v1666_v43  ;;  %v1627_v43 = vld [vmem:[%s2035_s11 + $0x1e8] sm:$0xf0]  ;;  %v1872_v47 = vld [vmem:[%s2035_s11 + $0x2e4] sm:$0xf]  ;;  %v1555_v53 = vld [vmem:[%s2035_s11 + $0x158] sm:$0xf0] }
  0x5e   : > { %1067 = vmatpush.bf16.msrb.mxu1 %v1730_v44  ;;  %v1856_v44 = vld [vmem:[%s2035_s11 + $0x264] sm:$0xf]  ;;  %v1755_v48 = vld [vmem:[%s2035_s11 + $0x2e8] sm:$0xf0]  ;;  %v1630_v50 = vor.u32 %v1840_v40, %v1627_v43  ;;  %v1838_v54 = vld [vmem:[%s2035_s11 + $0x1d4] sm:$0xf] }
  0x5f   : > { %1081 = vmatpush.bf16.msrb.mxu2 %v1414_v45  ;;  %v1691_v45 = vld [vmem:[%s2035_s11 + $0x268] sm:$0xf0]  ;;  %v1683_v58 = vld [vmem:[%s2035_s11 + $0x258] sm:$0xf0]  ;;  %v1870_v59 = vld [vmem:[%s2035_s11 + $0x2d4] sm:$0xf] }
  0x60   : > { %1095 = vmatpush.bf16.msrb.mxu3 %v1478_v49  ;;  %v1566_v49 = vor.u32 %v1824_v38, %v1563_v39  ;;  %v1694_v51 = vor.u32 %v1856_v44, %v1691_v45  ;;  %v1747_v60 = vld [vmem:[%s2035_s11 + $0x2d8] sm:$0xf0]  ;;  %v1820_v0 = vld [vmem:[%s2035_s11 + $0x144] sm:$0xf]  ;;  %v1547_v1 = vld [vmem:[%s2035_s11 + $0x148] sm:$0xf0] }
  0x61   : > { %1054 = vmatpush.bf16.msrb.mxu0 %v1658_v55  ;;  %v1758_v55 = vor.u32 %v1872_v47, %v1755_v48  ;;  %v1836_v3 = vld [vmem:[%s2035_s11 + $0x1c4] sm:$0xf]  ;;  %v1675_v6 = vld [vmem:[%s2035_s11 + $0x248] sm:$0xf0]  ;;  %v1818_v11 = vld [vmem:[%s2035_s11 + $0x134] sm:$0xf] }
  0x62   : > { %1068 = vmatpush.bf16.msrb.mxu1 %v1722_v56  ;;  %v1619_v56 = vld [vmem:[%s2035_s11 + $0x1d8] sm:$0xf0]  ;;  %v1852_v5 = vld [vmem:[%s2035_s11 + $0x244] sm:$0xf]  ;;  %v1739_v7 = vld [vmem:[%s2035_s11 + $0x2c8] sm:$0xf0] }
  0x63   : > { %1082 = vmatpush.bf16.msrb.mxu2 %v1406_v57  ;;  %v1854_v57 = vld [vmem:[%s2035_s11 + $0x254] sm:$0xf]  ;;  %v1622_v62 = vor.u32 %v1838_v54, %v1619_v56  ;;  %v1678_v10 = vor.u32 %v1852_v5, %v1675_v6  ;;  %v1539_v13 = vld [vmem:[%s2035_s11 + $0x138] sm:$0xf0]  ;;  %v1816_v26 = vld [vmem:[%s2035_s11 + $0x124] sm:$0xf] }
  0x64   : > { %1096 = vmatpush.bf16.msrb.mxu3 %v1470_v61  ;;  %v1558_v61 = vor.u32 %v1822_v52, %v1555_v53  ;;  %v1686_v63 = vor.u32 %v1854_v57, %v1683_v58  ;;  %v1603_v16 = vld [vmem:[%s2035_s11 + $0x1b8] sm:$0xf0]  ;;  %v1850_v18 = vld [vmem:[%s2035_s11 + $0x234] sm:$0xf]  ;;  %v1595_v30 = vld [vmem:[%s2035_s11 + $0x1a8] sm:$0xf0] }
  0x65   : > { %1055 = vmatpush.bf16.msrb.mxu0 %v1650_v4  ;;  %v1611_v4 = vld [vmem:[%s2035_s11 + $0x1c8] sm:$0xf0]  ;;  %v1667_v19 = vld [vmem:[%s2035_s11 + $0x238] sm:$0xf0]  ;;  %v1866_v20 = vld [vmem:[%s2035_s11 + $0x2b4] sm:$0xf] }
  0x66   : > { %1069 = vmatpush.bf16.msrb.mxu1 %v1714_v8  ;;  %v1550_v8 = vor.u32 %v1820_v0, %v1547_v1  ;;  %v1731_v21 = vld [vmem:[%s2035_s11 + $0x2b8] sm:$0xf0]  ;;  %v1670_v25 = vor.u32 %v1850_v18, %v1667_v19  ;;  %v1848_v31 = vld [vmem:[%s2035_s11 + $0x224] sm:$0xf]  ;;  %v1723_v34 = vld [vmem:[%s2035_s11 + $0x2a8] sm:$0xf0] }
  0x67   : > { %1083 = vmatpush.bf16.msrb.mxu2 %v1398_v9  ;;  %v1614_v9 = vor.u32 %v1836_v3, %v1611_v4  ;;  %v1734_v29 = vor.u32 %v1866_v20, %v1731_v21  ;;  %v1814_v38 = vld [vmem:[%s2035_s11 + $0x114] sm:$0xf]  ;;  %v1523_v39 = vld [vmem:[%s2035_s11 + $0x118] sm:$0xf0]  ;;  %v1812_v52 = vld [vmem:[%s2035_s11 + $0x104] sm:$0xf] }
  0x68   : > { %1097 = vmatpush.bf16.msrb.mxu3 %v1462_v14  ;;  %v1834_v14 = vld [vmem:[%s2035_s11 + $0x1b4] sm:$0xf]  ;;  %v1587_v43 = vld [vmem:[%s2035_s11 + $0x198] sm:$0xf0]  ;;  %v1515_v53 = vld [vmem:[%s2035_s11 + $0x108] sm:$0xf0] }
  0x69   : > { %1056 = vmatpush.bf16.msrb.mxu0 %v1642_v22  ;;  %v1542_v22 = vor.u32 %v1818_v11, %v1539_v13  ;;  %v1606_v23 = vor.u32 %v1834_v14, %v1603_v16  ;;  %v1830_v40 = vld [vmem:[%s2035_s11 + $0x194] sm:$0xf]  ;;  %v1651_v45 = vld [vmem:[%s2035_s11 + $0x218] sm:$0xf0]  ;;  %v1828_v54 = vld [vmem:[%s2035_s11 + $0x184] sm:$0xf] }
  0x6a   : > { %1070 = vmatpush.bf16.msrb.mxu1 %v1706_v27  ;;  %v1531_v27 = vld [vmem:[%s2035_s11 + $0x128] sm:$0xf0]  ;;  %v1846_v44 = vld [vmem:[%s2035_s11 + $0x214] sm:$0xf]  ;;  %v1715_v48 = vld [vmem:[%s2035_s11 + $0x298] sm:$0xf0] }
  0x6b   : > { %1084 = vmatpush.bf16.msrb.mxu2 %v1390_v28  ;;  %v1832_v28 = vld [vmem:[%s2035_s11 + $0x1a4] sm:$0xf]  ;;  %v1534_v35 = vor.u32 %v1816_v26, %v1531_v27  ;;  %v1862_v47 = vld [vmem:[%s2035_s11 + $0x294] sm:$0xf]  ;;  %v1579_v56 = vld [vmem:[%s2035_s11 + $0x188] sm:$0xf0] }
  0x6c   : > { %1098 = vmatpush.bf16.msrb.mxu3 %v1454_v32  ;;  %1057 = vmatmul.bf16.vlgmr.msrb.gmra.mxu0 %v2203_v42  ;;  %v1659_v32 = vld [vmem:[%s2035_s11 + $0x228] sm:$0xf0]  ;;  %v1844_v57 = vld [vmem:[%s2035_s11 + $0x204] sm:$0xf]  ;;  %v377_v14 = vld [vmem:[#allocation2 + $0x10] sm:$0xff] }
  0x6d   : > { %1105 = vmatpush.bf16.msra.mxu0 %v1574_v33  ;;  %1071 = vmatmul.bf16.vlgmr.msrb.gmra.mxu1 %v2208_v46  ;;  %v1864_v33 = vld [vmem:[%s2035_s11 + $0x2a4] sm:$0xf]  ;;  %v1643_v58 = vld [vmem:[%s2035_s11 + $0x208] sm:$0xf0]  ;;  %v379_v21 = vld [vmem:[#allocation2 + $0x18] sm:$0xff] }
  0x6e   : > { %1119 = vmatpush.bf16.msra.mxu1 %v1638_v36  ;;  %1085 = vmatmul.bf16.vlgmr.msrb.gmra.mxu2 %v2126_v2  ;;  %v1750_v2 = vor.u32 %v1870_v59, %v1747_v60  ;;  %v1598_v36 = vor.u32 %v1832_v28, %v1595_v30  ;;  %v1860_v59 = vld [vmem:[%s2035_s11 + $0x284] sm:$0xf]  ;;  %v1707_v60 = vld [vmem:[%s2035_s11 + $0x288] sm:$0xf0] }
  0x6f   : > { %1133 = vmatpush.bf16.msra.mxu2 %v1702_v37  ;;  %1099 = vmatmul.bf16.vlgmr.msrb.gmra.mxu3 %v2135_v12  ;;  %v1868_v12 = vld [vmem:[%s2035_s11 + $0x2c4] sm:$0xf]  ;;  %v1662_v37 = vor.u32 %v1848_v31, %v1659_v32  ;;  %v1710_v0 = vor.u32 %v1860_v59, %v1707_v60 }
  0x70   : > { %1147 = vmatpush.bf16.msra.mxu3 %v1766_v41  ;;  %v1742_v15 = vor.u32 %v1868_v12, %v1739_v7  ;;  %v1726_v41 = vor.u32 %v1864_v33, %v1723_v34 }
  0x71   : > { %1106 = vmatpush.bf16.msra.mxu0 %v1566_v49  ;;  %v1526_v49 = vor.u32 %v1814_v38, %v1523_v39  ;;  %v378_v39 = vld [vmem:[#allocation2] sm:$0xff] }
  0x72   : > { %1120 = vmatpush.bf16.msra.mxu1 %v1630_v50  ;;  %v1590_v50 = vor.u32 %v1830_v40, %v1587_v43 }
  0x73   : > { %1134 = vmatpush.bf16.msra.mxu2 %v1694_v51  ;;  %v1654_v51 = vor.u32 %v1846_v44, %v1651_v45 }
  0x74   : > { %1148 = vmatpush.bf16.msra.mxu3 %v1758_v55  ;;  %v1718_v55 = vor.u32 %v1862_v47, %v1715_v48 }
  0x75   : > { %1107 = vmatpush.bf16.msra.mxu0 %v1558_v61  ;;  %v1518_v61 = vor.u32 %v1812_v52, %v1515_v53 }
  0x76   : > { %1121 = vmatpush.bf16.msra.mxu1 %v1622_v62  ;;  %v1582_v62 = vor.u32 %v1828_v54, %v1579_v56 }
  0x77   : > { %1135 = vmatpush.bf16.msra.mxu2 %v1686_v63  ;;  %v1646_v63 = vor.u32 %v1844_v57, %v1643_v58 }
  0x78   : > { %1149 = vmatpush.bf16.msra.mxu3 %v1750_v2 }
  0x79   : > { %1108 = vmatpush.bf16.msra.mxu0 %v1550_v8 }
  0x7a   : > { %1122 = vmatpush.bf16.msra.mxu1 %v1614_v9 }
  0x7b   : > { %1136 = vmatpush.bf16.msra.mxu2 %v1678_v10 }
  0x7c   : > { %1150 = vmatpush.bf16.msra.mxu3 %v1742_v15 }
  0x7d   : > { %1109 = vmatpush.bf16.msra.mxu0 %v1542_v22 }
  0x7e   : > { %1123 = vmatpush.bf16.msra.mxu1 %v1606_v23 }
  0x7f   : > { %1137 = vmatpush.bf16.msra.mxu2 %v1670_v25 }
  0x80   : > { %1151 = vmatpush.bf16.msra.mxu3 %v1734_v29 }
  0x81   : > { %1110 = vmatpush.bf16.msra.mxu0 %v1534_v35 }
  0x82   : > { %1124 = vmatpush.bf16.msra.mxu1 %v1598_v36 }
  0x83   : > { %1138 = vmatpush.bf16.msra.mxu2 %v1662_v37 }
  0x84   : > { %1152 = vmatpush.bf16.msra.mxu3 %v1726_v41 }
  0x85   : > { %1111 = vmatpush.bf16.msra.mxu0 %v1526_v49  ;;  %v380_v49 = vld [vmem:[#allocation2 + $0x8] sm:$0xff] }
  0x86   : > { %1125 = vmatpush.bf16.msra.mxu1 %v1590_v50 }
  0x87   : > { %1139 = vmatpush.bf16.msra.mxu2 %v1654_v51 }
  0x88   : > { %1153 = vmatpush.bf16.msra.mxu3 %v1718_v55 }
  0x89   : > { %1112 = vmatpush.bf16.msra.mxu0 %v1518_v61 }
  0x8a   : > { %1126 = vmatpush.bf16.msra.mxu1 %v1582_v62 }
  0x8b   : > { %1140 = vmatpush.bf16.msra.mxu2 %v1646_v63 }
  0x8c   : > { %1154 = vmatpush.bf16.msra.mxu3 %v1710_v0  ;;  %1113 = vmatmul.bf16.vlgmr.msra.gmra.mxu0 %v2140_v17 }
  0x8d   : > { %1127 = vmatmul.bf16.vlgmr.msra.gmra.mxu1 %v2146_v24 }
  0x8e   : > { %1141 = vmatmul.bf16.vlgmr.msra.gmra.mxu2 %v2203_v42 }
  0x8f   : > { %1155 = vmatmul.bf16.vlgmr.msra.gmra.mxu3 %v2208_v46 }
  0xc9   : > { %v1002_v1 = vpop.f32.mrf.mxu0 }
  0xca   : > { %v1016_v3 = vpop.f32.mrf.mxu1 }
  0xcb   : > { %v1017_v2 = vadd.f32 %v1016_v3, %v1002_v1 }
  0xd1   : > { %v1004_v4 = vpop.f32.mrf.mxu0  ;;  %v1030_v5 = vpop.f32.mrf.mxu2 }
  0xd2   : > { %v1018_v6 = vpop.f32.mrf.mxu1  ;;  %v1031_v12 = vadd.f32 %v1030_v5, %v1017_v2  ;;  %v1044_v7 = vpop.f32.mrf.mxu3 }
  0xd3   : > { %v1019_v9 = vadd.f32 %v1018_v6, %v1004_v4 }
  0xd4   : > { %v1045_v8 = vadd.f32 %v1044_v7, %v1031_v12 }
  0xd9   : > { %v1032_v11 = vpop.f32.mrf.mxu2 }
  0xda   : > { %v1033_v24 = vadd.f32 %v1032_v11, %v1019_v9  ;;  %v1046_v42 = vpop.f32.mrf.mxu3 }
  0xdc   : > { %v1047_v46 = vadd.f32 %v1046_v42, %v1033_v24 }
  0xe9   : > { %v1058_v10 = vpop.f32.mrf.mxu0 }
  0xea   : > { %v1059_v13 = vadd.f32 %v1058_v10, %v1045_v8  ;;  %v1072_v17 = vpop.f32.mrf.mxu1 }
  0xec   : > { %v1073_v15 = vadd.f32 %v1072_v17, %v1059_v13 }
  0xee   : > { %v1161_v16 = vadd.f32 %v1073_v15, %v377_v14 }
  0xf0   : > { %1165 = vst [vmem:[#allocation2 + $0x10] sm:$0xff] %v1161_v16 }
  0xf1   : > { %v1060_v18 = vpop.f32.mrf.mxu0  ;;  %v1086_v25 = vpop.f32.mrf.mxu2 }
  0xf2   : > { %v1061_v19 = vadd.f32 %v1060_v18, %v1047_v46  ;;  %v1074_v20 = vpop.f32.mrf.mxu1  ;;  %v1100_v26 = vpop.f32.mrf.mxu3 }
  0xf3   : > { %v1101_v28 = vadd.f32 %v1100_v26, %v1086_v25 }
  0xf4   : > { %v1075_v22 = vadd.f32 %v1074_v20, %v1061_v19 }
  0xf6   : > { %v1163_v23 = vadd.f32 %v1075_v22, %v379_v21 }
  0xf8   : > { %1167 = vst [vmem:[#allocation2 + $0x18] sm:$0xff] %v1163_v23 }
  0xf9   : > { %v1088_v27 = vpop.f32.mrf.mxu2 }
  0xfa   : > { %v1102_v29 = vpop.f32.mrf.mxu3 }
  0xfb   : > { %v1103_v35 = vadd.f32 %v1102_v29, %v1088_v27 }
 0x109   : > { %v1114_v30 = vpop.f32.mrf.mxu0 }
 0x10a   : > { %v1115_v31 = vadd.f32 %v1114_v30, %v1101_v28  ;;  %v1128_v32 = vpop.f32.mrf.mxu1 }
 0x10c   : > { %v1129_v33 = vadd.f32 %v1128_v32, %v1115_v31 }
 0x111   : > { %v1142_v34 = vpop.f32.mrf.mxu2  ;;  %v1116_v38 = vpop.f32.mrf.mxu0 }
 0x112   : > { %v1143_v36 = vadd.f32 %v1142_v34, %v1129_v33  ;;  %v1156_v37 = vpop.f32.mrf.mxu3  ;;  %v1117_v41 = vadd.f32 %v1116_v38, %v1103_v35  ;;  %v1130_v44 = vpop.f32.mrf.mxu1 }
 0x114   : > { %v1157_v40 = vadd.f32 %v1156_v37, %v1143_v36  ;;  %v1131_v45 = vadd.f32 %v1130_v44, %v1117_v41 }
 0x116   : > { %v1162_v43 = vadd.f32 %v1157_v40, %v378_v39 }
 0x118   : > { %1166 = vst [vmem:[#allocation2] sm:$0xff] %v1162_v43 }
 0x119   : > { %v1144_v47 = vpop.f32.mrf.mxu2 }
 0x11a   : > { %v1145_v48 = vadd.f32 %v1144_v47, %v1131_v45  ;;  %v1158_v50 = vpop.f32.mrf.mxu3 }
 0x11c   : > { %v1159_v51 = vadd.f32 %v1158_v50, %v1145_v48  ;;  %1172 = sbr.rel (%p1767_p11) target bundleno = 305 (0x131), region = 67 }
 0x11e   : > { %v1164_v52 = vadd.f32 %v1159_v51, %v380_v49 }
 0x120   : > { %1168 = vst [vmem:[#allocation2 + $0x8] sm:$0xff] %v1164_v52 }
 0x121   : > { %v1173_v53 = vld [vmem:[#allocation2 + $0x10] sm:$0xff]  ;;  %v1174_v54 = vld [vmem:[#allocation2] sm:$0xff]  ;;  %v1175_v59 = vld [vmem:[#allocation2 + $0x18] sm:$0xff] }
 0x122   : > { %v1177_v55 = vld [vmem:[%s2301_s2] sm:$0x3]  ;;  %v1188_v63 = vld [vmem:[%s2302_s3 + $0x8] sm:$0xff] }
 0x123   : > { %v1179_v56 = vperm.slane %v1177_v55, 0  ;;  %v1180_v57 = vperm.slane %v1177_v55, 1  ;;  %v1187_v58 = vld [vmem:[%s2302_s3] sm:$0xff]  ;;  %v1191_v4 = vunpack.c.l.bf16 %v1188_v63  ;;  %v1192_v5 = vunpack.c.h.bf16 %v1188_v63 }
 0x124   : > { %v1189_v61 = vunpack.c.l.bf16 %v1187_v58  ;;  %v1190_v62 = vunpack.c.h.bf16 %v1187_v58 }
 0x125   : > { %v1183_v0 = vadd.f32 %v1179_v56, %v1173_v53  ;;  %v1184_v1 = vadd.f32 %v1180_v57, %v1174_v54  ;;  %v1185_v3 = vadd.f32 %v1179_v56, %v1175_v59 }
 0x127   : > { %v1176_v60 = vld [vmem:[#allocation2 + $0x8] sm:$0xff]  ;;  %v1193_v6 = vadd.f32 %v1189_v61, %v1183_v0  ;;  %v1194_v12 = vadd.f32 %v1190_v62, %v1184_v1  ;;  %v1195_v7 = vadd.f32 %v1191_v4, %v1185_v3 }
 0x128   : > { %v1186_v2 = vadd.f32 %v1180_v57, %v1176_v60 }
 0x129   : > { %v1197_v9 = vmax.f32 %v1193_v6, 0.0  ;;  %v1198_v10 = vmax.f32 %v1194_v12, 0.0  ;;  %v1199_v11 = vmax.f32 %v1195_v7, 0.0 }
 0x12a   : > { %v1196_v8 = vadd.f32 %v1192_v5, %v1186_v2 }
 0x12b   : > { %v1201_v17 = vpack.c.bf16 %v1198_v10, %v1197_v9 }
 0x12c   : > { %v1200_v13 = vmax.f32 %v1196_v8, 0.0 }
 0x12d   : > { %1203 = vst [vmem:[%s2303_s4] sm:$0xff] %v1201_v17 }
 0x12e   : > { %v1202_v14 = vpack.c.bf16 %v1200_v13, %v1199_v11 }
 0x130   : > { %1204 = vst [vmem:[%s2303_s4 + $0x8] sm:$0xff] %v1202_v14 }
 0x131 PF: > { %s14_s19 = sadd.s32 1, %s1957_s19   ;;  %s2304_s15 = smov %s1945_s16 }
 0x132   : > { %p11_p12 = scmp.ge.s32.totalorder %s14_s19, 5   ;;  %s2305_s16 = smov %s2020_s23 }
 0x133   : > { %s2306_s17 = smov %s1953_s18  ;;  %s2307_s18 = smov %s2309_s20 }
 0x134   :  { %13 = sbr.rel (!%p11_p12) target bundleno = 3 (0x3), region = 111 }

// kernel: _resnet_forward.25
= control target key start
LH: loop header
LB: loop body
LE: loop exit
PB: predicated region body
PF: predicated region fallthrough
CT: control target
= control target key end

     0   :  { %s3009_s0 = inlined_call_operand.vmem [shape: bf16[16,2304], index: 0, kind: input, shape index: {}]   ;;  %s3010_s1 = inlined_call_operand.vmem [shape: bf16[2304,512], index: 1, kind: input, shape index: {}]   ;;  %s3011_s2 = inlined_call_operand.vmem [shape: f32[1,512], index: 2, kind: input, shape index: {}]   ;;  %s3012_s3 = inlined_call_operand.vmem [shape: bf16[16,512], index: 3, kind: output, shape index: {}]  }
   0x1   :  { %3014 = sst [smem:[#allocation7_spill]] %s3009_s0 }
   0x2   :  { %3015 = sst [smem:[#allocation8_spill]] %s3010_s1 }
   0x3   :  { %s2403_s12 = smov 0   ;;  %s2405_s13 = smov 0  }
   0x4   :  { %s2407_s14 = smov 0   ;;  %s2409_s15 = smov 0  }
   0x5   :  { %s2411_s16 = smov 0   ;;  %s2413_s17 = smov 0  }
   0x6   :  { %s2415_s18 = smov 0   ;;  %s2417_s19 = smov 0  }
   0x7   :  { %s2419_s20 = smov 0   ;;  %s2421_s21 = smov 0  }
   0x8   :  { %s2423_s22 = smov 0  }
   0x9 LB: > { %s1670_s23 = sadd.s32 4294967295, %s2380_s22   ;;  %s25_s24 = sadd.s32 1, %s2372_s20  ;;  %s2380_s22 = sphi %s2423_s22, %s13_s22   ;;  %s2376_s21 = sphi %s2421_s21, %s3032_s21   ;;  %s2372_s20 = sphi %s2419_s20, %s3031_s20   ;;  %s2368_s19 = sphi %s2417_s19, %s3030_s19   ;;  %s2364_s18 = sphi %s2415_s18, %s3029_s18   ;;  %s2360_s17 = sphi %s2413_s17, %s3028_s17   ;;  %s2356_s16 = sphi %s2411_s16, %s3027_s16   ;;  %s2352_s15 = sphi %s2409_s15, %s3026_s15   ;;  %s2348_s14 = sphi %s2407_s14, %s3025_s14   ;;  %s2344_s13 = sphi %s2405_s13, %s3024_s13   ;;  %s2340_s12 = sphi %s2403_s12, %s3023_s12  }
   0xa   : > { %p26_p0 = scmp.ge.s32.totalorder %s25_s24, 3  ;;  %s28_s25 = sadd.s32 1, %s2376_s21 }
   0xb   : > { %s41_s26 = sadd.s32 1, %s2360_s17  ;;  %p48_p1 = scmp.ne.s32.totalorder %s2360_s17, %s2356_s16 }
   0xc   : > { %s3034_s24 = smov (%p26_p0, %s25_s24), 0  ;;  %s3036_s25 = smov (!%p26_p0, %s28_s25), %s2376_s21 }
   0xd   : > { %s37_s27 = ssub.s32 %s2372_s20, %s3034_s24  ;;  %p49_p2 = scmp.eq.s32.totalorder %s2380_s22, 0 }
   0xe   : > { %p30_p3 = scmp.ge.s32.totalorder %s3036_s25, 2  ;;  %p39_p4 = scmp.eq.s32.totalorder %s37_s27, 0 }
   0xf   : > { %p2470_p5 = por %p49_p2, %p48_p1  ;;  %s69_s29 = sadd.s32 1, %s2352_s15 }
  0x10   : > { %s3038_s25 = smov (%p30_p3, %s3036_s25), 0  ;;  %p76_p6 = scmp.ne.s32.totalorder %s2352_s15, %s2348_s14 }
  0x11   : > { %3017 = sst [smem:[#allocation6_spill]] %s3038_s25  ;;  %s65_s4 = ssub.s32 %s2376_s21, %s3038_s25 }
  0x12   : > { %s2478_s30 = scalar_select %p39_p4, %s2360_s17, %s41_s26  }
  0x13   : > { %s66_s5 = sor.u32 %s65_s4, %s37_s27  ;;  %p121_p7 = scmp.eq.s32.totalorder %s65_s4, 0 }
  0x14   : > { %p67_p8 = scmp.eq.s32.totalorder %s66_s5, 0  ;;  %p2484_p9 = por %p76_p6, %p49_p2 }
  0x15   : > { %s123_s7 = sadd.s32 1, %s2344_s13  ;;  %p133_p10 = scmp.ne.s32.totalorder %s2344_s13, %s2340_s12 }
  0x16   : > { %s2492_s8 = scalar_select %p67_p8, %s2352_s15, %s69_s29  }
  0x17   : > { %s2495_s9 = scalar_select %p121_p7, %s2344_s13, %s123_s7  }
  0x18   : > { %p134_p11 = scmp.eq.s32.totalorder %s1670_s23, 5  ;;  %p1673_p13 = scmp.ge.s32.totalorder %s2380_s22, 6 }
  0x1a   : > { %p2497_p12 = por %p134_p11, %p133_p10  ;;  %156 = sbr.rel (%p1673_p13) target bundleno = 152 (0x98), region = 16 }
  0x1f   : > { %159 = sbr.rel (!%p2470_p5) target bundleno = 46 (0x2e), region = 20  ;;  %s161_s11 = sand.u32 (%p2470_p5), 1, %s2360_s17  }
  0x20   : > { %s2096_s26 = smul.u32 (%p2470_p5), 24, %s2372_s20  ;;  %s3020_s0 = sld [smem:[#allocation7_spill]] (%p2470_p5) }
  0x21   : > { %s2201_s27 = smul.u32 (%p2470_p5), 48, %s161_s11 }
  0x23   : > { %s163_s23 = scalar_lea.vmem (%p2470_p5), [#allocation3], %s2201_s27 }
  0x26   : > { %s169_s5 = scalar_lea.vmem %s3020_s0, %s2096_s26 }
  0x27   : > { %v182_v0 = vld [vmem:[%s169_s5] sm:$0xff]  ;;  %v184_v1 = vld [vmem:[%s169_s5 + $0x8] sm:$0xff]  ;;  %v186_v2 = vld [vmem:[%s169_s5 + $0x10] sm:$0xff] }
  0x28   : > { %183 = vst [vmem:[%s163_s23] sm:$0xff] %v182_v0  ;;  %v188_v3 = vld [vmem:[%s169_s5 + $0x48] sm:$0xff]  ;;  %v190_v4 = vld [vmem:[%s169_s5 + $0x50] sm:$0xff]  ;;  %v192_v5 = vld [vmem:[%s169_s5 + $0x58] sm:$0xff] }
  0x29   : > { %185 = vst [vmem:[%s163_s23 + $0x8] sm:$0xff] %v184_v1 }
  0x2a   : > { %187 = vst [vmem:[%s163_s23 + $0x10] sm:$0xff] %v186_v2 }
  0x2b   : > { %189 = vst [vmem:[%s163_s23 + $0x18] sm:$0xff] %v188_v3 }
  0x2c   : > { %191 = vst [vmem:[%s163_s23 + $0x20] sm:$0xff] %v190_v4 }
  0x2d   : > { %193 = vst [vmem:[%s163_s23 + $0x28] sm:$0xff] %v192_v5 }
  0x2e PF: > { %199 = sbr.rel (!%p2484_p9) target bundleno = 152 (0x98), region = 43  ;;  %s201_s28 = sand.u32 (%p2484_p9), 1, %s2352_s15  }
  0x2f   : > { %s2202_s7 = smul.u32 (%p2484_p9), 768, %s201_s28  ;;  %s1675_s11 = sshll.u32 (%p2484_p9), %s2376_s21, 1 }
  0x30   : > { %s2097_s26 = smul.u32 (%p2484_p9), 384, %s2372_s20  ;;  %s3021_s1 = sld [smem:[#allocation8_spill]] (%p2484_p9) }
  0x31   : > { %s2522_s6 = scalar_lea.vmem (%p2484_p9), [#allocation4], %s2202_s7 }
  0x32   : > { %s207_s27 = sadd.s32 (%p2484_p9), %s2097_s26, %s1675_s11 }
  0x33   : > { %s1677_s29 = sshll.u32 %s207_s27, 2 }
  0x36   : > { %s2517_s5 = scalar_lea.vmem %s3021_s1, %s1677_s29 }
  0x37   : > { %v428_v6 = vld [vmem:[%s2517_s5] sm:$0xff]  ;;  %v430_v7 = vld [vmem:[%s2517_s5 + $0x10] sm:$0xff] }
  0x38   : > { %v432_v8 = vld [vmem:[%s2517_s5 + $0x20] sm:$0xff]  ;;  %429 = vst [vmem:[%s2522_s6] sm:$0xff] %v428_v6  ;;  %v434_v9 = vld [vmem:[%s2517_s5 + $0x30] sm:$0xff] }
  0x39   : > { %431 = vst [vmem:[%s2522_s6 + $0x8] sm:$0xff] %v430_v7  ;;  %v436_v10 = vld [vmem:[%s2517_s5 + $0x40] sm:$0xff]  ;;  %v438_v11 = vld [vmem:[%s2517_s5 + $0x50] sm:$0xff] }
  0x3a   : > { %433 = vst [vmem:[%s2522_s6 + $0x10] sm:$0xff] %v432_v8  ;;  %v440_v12 = vld [vmem:[%s2517_s5 + $0x60] sm:$0xff]  ;;  %v442_v13 = vld [vmem:[%s2517_s5 + $0x70] sm:$0xff] }
  0x3b   : > { %435 = vst [vmem:[%s2522_s6 + $0x18] sm:$0xff] %v434_v9  ;;  %v444_v14 = vld [vmem:[%s2517_s5 + $0x80] sm:$0xff]  ;;  %v446_v15 = vld [vmem:[%s2517_s5 + $0x90] sm:$0xff] }
  0x3c   : > { %437 = vst [vmem:[%s2522_s6 + $0x20] sm:$0xff] %v436_v10  ;;  %v448_v16 = vld [vmem:[%s2517_s5 + $0xa0] sm:$0xff]  ;;  %v450_v17 = vld [vmem:[%s2517_s5 + $0xb0] sm:$0xff] }
  0x3d   : > { %439 = vst [vmem:[%s2522_s6 + $0x28] sm:$0xff] %v438_v11  ;;  %v452_v18 = vld [vmem:[%s2517_s5 + $0xc0] sm:$0xff]  ;;  %v454_v19 = vld [vmem:[%s2517_s5 + $0xd0] sm:$0xff] }
  0x3e   : > { %441 = vst [vmem:[%s2522_s6 + $0x30] sm:$0xff] %v440_v12  ;;  %v456_v20 = vld [vmem:[%s2517_s5 + $0xe0] sm:$0xff]  ;;  %v458_v21 = vld [vmem:[%s2517_s5 + $0xf0] sm:$0xff] }
  0x3f   : > { %443 = vst [vmem:[%s2522_s6 + $0x38] sm:$0xff] %v442_v13  ;;  %v460_v22 = vld [vmem:[%s2517_s5 + $0x100] sm:$0xff]  ;;  %v462_v23 = vld [vmem:[%s2517_s5 + $0x110] sm:$0xff] }
  0x40   : > { %445 = vst [vmem:[%s2522_s6 + $0x40] sm:$0xff] %v444_v14  ;;  %v464_v24 = vld [vmem:[%s2517_s5 + $0x120] sm:$0xff]  ;;  %v466_v25 = vld [vmem:[%s2517_s5 + $0x130] sm:$0xff] }
  0x41   : > { %447 = vst [vmem:[%s2522_s6 + $0x48] sm:$0xff] %v446_v15  ;;  %v468_v26 = vld [vmem:[%s2517_s5 + $0x140] sm:$0xff]  ;;  %v470_v27 = vld [vmem:[%s2517_s5 + $0x150] sm:$0xff] }
  0x42   : > { %449 = vst [vmem:[%s2522_s6 + $0x50] sm:$0xff] %v448_v16  ;;  %v472_v28 = vld [vmem:[%s2517_s5 + $0x160] sm:$0xff]  ;;  %v474_v29 = vld [vmem:[%s2517_s5 + $0x170] sm:$0xff] }
  0x43   : > { %451 = vst [vmem:[%s2522_s6 + $0x58] sm:$0xff] %v450_v17  ;;  %v476_v30 = vld [vmem:[%s2517_s5 + $0x180] sm:$0xff]  ;;  %v478_v31 = vld [vmem:[%s2517_s5 + $0x190] sm:$0xff] }
  0x44   : > { %453 = vst [vmem:[%s2522_s6 + $0x60] sm:$0xff] %v452_v18  ;;  %v480_v32 = vld [vmem:[%s2517_s5 + $0x1a0] sm:$0xff]  ;;  %v482_v33 = vld [vmem:[%s2517_s5 + $0x1b0] sm:$0xff] }
  0x45   : > { %455 = vst [vmem:[%s2522_s6 + $0x68] sm:$0xff] %v454_v19  ;;  %v484_v34 = vld [vmem:[%s2517_s5 + $0x1c0] sm:$0xff]  ;;  %v486_v35 = vld [vmem:[%s2517_s5 + $0x1d0] sm:$0xff] }
  0x46   : > { %457 = vst [vmem:[%s2522_s6 + $0x70] sm:$0xff] %v456_v20  ;;  %v488_v36 = vld [vmem:[%s2517_s5 + $0x1e0] sm:$0xff]  ;;  %v490_v37 = vld [vmem:[%s2517_s5 + $0x1f0] sm:$0xff] }
  0x47   : > { %459 = vst [vmem:[%s2522_s6 + $0x78] sm:$0xff] %v458_v21  ;;  %v492_v38 = vld [vmem:[%s2517_s5 + $0x200] sm:$0xff]  ;;  %v494_v39 = vld [vmem:[%s2517_s5 + $0x210] sm:$0xff] }
  0x48   : > { %461 = vst [vmem:[%s2522_s6 + $0x80] sm:$0xff] %v460_v22  ;;  %v496_v40 = vld [vmem:[%s2517_s5 + $0x220] sm:$0xff]  ;;  %v498_v41 = vld [vmem:[%s2517_s5 + $0x230] sm:$0xff] }
  0x49   : > { %463 = vst [vmem:[%s2522_s6 + $0x88] sm:$0xff] %v462_v23  ;;  %v500_v42 = vld [vmem:[%s2517_s5 + $0x240] sm:$0xff]  ;;  %v502_v43 = vld [vmem:[%s2517_s5 + $0x250] sm:$0xff] }
  0x4a   : > { %465 = vst [vmem:[%s2522_s6 + $0x90] sm:$0xff] %v464_v24  ;;  %v504_v44 = vld [vmem:[%s2517_s5 + $0x260] sm:$0xff]  ;;  %v506_v45 = vld [vmem:[%s2517_s5 + $0x270] sm:$0xff] }
  0x4b   : > { %467 = vst [vmem:[%s2522_s6 + $0x98] sm:$0xff] %v466_v25  ;;  %v508_v46 = vld [vmem:[%s2517_s5 + $0x280] sm:$0xff]  ;;  %v510_v47 = vld [vmem:[%s2517_s5 + $0x290] sm:$0xff] }
  0x4c   : > { %469 = vst [vmem:[%s2522_s6 + $0xa0] sm:$0xff] %v468_v26  ;;  %v512_v48 = vld [vmem:[%s2517_s5 + $0x2a0] sm:$0xff]  ;;  %v514_v49 = vld [vmem:[%s2517_s5 + $0x2b0] sm:$0xff] }
  0x4d   : > { %471 = vst [vmem:[%s2522_s6 + $0xa8] sm:$0xff] %v470_v27  ;;  %v516_v50 = vld [vmem:[%s2517_s5 + $0x2c0] sm:$0xff]  ;;  %v518_v51 = vld [vmem:[%s2517_s5 + $0x2d0] sm:$0xff] }
  0x4e   : > { %473 = vst [vmem:[%s2522_s6 + $0xb0] sm:$0xff] %v472_v28  ;;  %v520_v52 = vld [vmem:[%s2517_s5 + $0x2e0] sm:$0xff]  ;;  %v522_v53 = vld [vmem:[%s2517_s5 + $0x2f0] sm:$0xff] }
  0x4f   : > { %475 = vst [vmem:[%s2522_s6 + $0xb8] sm:$0xff] %v474_v29  ;;  %v524_v54 = vld [vmem:[%s2517_s5 + $0x300] sm:$0xff]  ;;  %v526_v55 = vld [vmem:[%s2517_s5 + $0x310] sm:$0xff] }
  0x50   : > { %477 = vst [vmem:[%s2522_s6 + $0xc0] sm:$0xff] %v476_v30  ;;  %v528_v56 = vld [vmem:[%s2517_s5 + $0x320] sm:$0xff]  ;;  %v530_v57 = vld [vmem:[%s2517_s5 + $0x330] sm:$0xff] }
  0x51   : > { %479 = vst [vmem:[%s2522_s6 + $0xc8] sm:$0xff] %v478_v31  ;;  %v532_v58 = vld [vmem:[%s2517_s5 + $0x340] sm:$0xff]  ;;  %v534_v59 = vld [vmem:[%s2517_s5 + $0x350] sm:$0xff] }
  0x52   : > { %481 = vst [vmem:[%s2522_s6 + $0xd0] sm:$0xff] %v480_v32  ;;  %v536_v60 = vld [vmem:[%s2517_s5 + $0x360] sm:$0xff]  ;;  %v538_v61 = vld [vmem:[%s2517_s5 + $0x370] sm:$0xff] }
  0x53   : > { %483 = vst [vmem:[%s2522_s6 + $0xd8] sm:$0xff] %v482_v33  ;;  %v540_v62 = vld [vmem:[%s2517_s5 + $0x380] sm:$0xff]  ;;  %v542_v63 = vld [vmem:[%s2517_s5 + $0x390] sm:$0xff] }
  0x54   : > { %485 = vst [vmem:[%s2522_s6 + $0xe0] sm:$0xff] %v484_v34  ;;  %v544_v0 = vld [vmem:[%s2517_s5 + $0x3a0] sm:$0xff]  ;;  %v546_v1 = vld [vmem:[%s2517_s5 + $0x3b0] sm:$0xff] }
  0x55   : > { %487 = vst [vmem:[%s2522_s6 + $0xe8] sm:$0xff] %v486_v35  ;;  %v548_v2 = vld [vmem:[%s2517_s5 + $0x3c0] sm:$0xff]  ;;  %v550_v3 = vld [vmem:[%s2517_s5 + $0x3d0] sm:$0xff] }
  0x56   : > { %489 = vst [vmem:[%s2522_s6 + $0xf0] sm:$0xff] %v488_v36  ;;  %v552_v4 = vld [vmem:[%s2517_s5 + $0x3e0] sm:$0xff]  ;;  %v554_v5 = vld [vmem:[%s2517_s5 + $0x3f0] sm:$0xff] }
  0x57   : > { %491 = vst [vmem:[%s2522_s6 + $0xf8] sm:$0xff] %v490_v37  ;;  %v556_v6 = vld [vmem:[%s2517_s5 + $0x400] sm:$0xff]  ;;  %v558_v7 = vld [vmem:[%s2517_s5 + $0x410] sm:$0xff] }
  0x58   : > { %493 = vst [vmem:[%s2522_s6 + $0x100] sm:$0xff] %v492_v38  ;;  %v560_v8 = vld [vmem:[%s2517_s5 + $0x420] sm:$0xff]  ;;  %v562_v9 = vld [vmem:[%s2517_s5 + $0x430] sm:$0xff] }
  0x59   : > { %495 = vst [vmem:[%s2522_s6 + $0x108] sm:$0xff] %v494_v39  ;;  %v564_v10 = vld [vmem:[%s2517_s5 + $0x440] sm:$0xff]  ;;  %v566_v11 = vld [vmem:[%s2517_s5 + $0x450] sm:$0xff] }
  0x5a   : > { %497 = vst [vmem:[%s2522_s6 + $0x110] sm:$0xff] %v496_v40  ;;  %v568_v12 = vld [vmem:[%s2517_s5 + $0x460] sm:$0xff]  ;;  %v570_v13 = vld [vmem:[%s2517_s5 + $0x470] sm:$0xff] }
  0x5b   : > { %499 = vst [vmem:[%s2522_s6 + $0x118] sm:$0xff] %v498_v41  ;;  %v572_v14 = vld [vmem:[%s2517_s5 + $0x480] sm:$0xff]  ;;  %v574_v15 = vld [vmem:[%s2517_s5 + $0x490] sm:$0xff] }
  0x5c   : > { %501 = vst [vmem:[%s2522_s6 + $0x120] sm:$0xff] %v500_v42  ;;  %v576_v16 = vld [vmem:[%s2517_s5 + $0x4a0] sm:$0xff]  ;;  %v578_v17 = vld [vmem:[%s2517_s5 + $0x4b0] sm:$0xff] }
  0x5d   : > { %503 = vst [vmem:[%s2522_s6 + $0x128] sm:$0xff] %v502_v43  ;;  %v580_v18 = vld [vmem:[%s2517_s5 + $0x4c0] sm:$0xff]  ;;  %v582_v19 = vld [vmem:[%s2517_s5 + $0x4d0] sm:$0xff] }
  0x5e   : > { %505 = vst [vmem:[%s2522_s6 + $0x130] sm:$0xff] %v504_v44  ;;  %v584_v20 = vld [vmem:[%s2517_s5 + $0x4e0] sm:$0xff]  ;;  %v586_v21 = vld [vmem:[%s2517_s5 + $0x4f0] sm:$0xff] }
  0x5f   : > { %507 = vst [vmem:[%s2522_s6 + $0x138] sm:$0xff] %v506_v45  ;;  %v588_v22 = vld [vmem:[%s2517_s5 + $0x500] sm:$0xff]  ;;  %v590_v23 = vld [vmem:[%s2517_s5 + $0x510] sm:$0xff] }
  0x60   : > { %509 = vst [vmem:[%s2522_s6 + $0x140] sm:$0xff] %v508_v46  ;;  %v592_v24 = vld [vmem:[%s2517_s5 + $0x520] sm:$0xff]  ;;  %v594_v25 = vld [vmem:[%s2517_s5 + $0x530] sm:$0xff] }
  0x61   : > { %511 = vst [vmem:[%s2522_s6 + $0x148] sm:$0xff] %v510_v47  ;;  %v596_v26 = vld [vmem:[%s2517_s5 + $0x540] sm:$0xff]  ;;  %v598_v27 = vld [vmem:[%s2517_s5 + $0x550] sm:$0xff] }
  0x62   : > { %513 = vst [vmem:[%s2522_s6 + $0x150] sm:$0xff] %v512_v48  ;;  %v600_v28 = vld [vmem:[%s2517_s5 + $0x560] sm:$0xff]  ;;  %v602_v29 = vld [vmem:[%s2517_s5 + $0x570] sm:$0xff] }
  0x63   : > { %515 = vst [vmem:[%s2522_s6 + $0x158] sm:$0xff] %v514_v49  ;;  %v604_v30 = vld [vmem:[%s2517_s5 + $0x580] sm:$0xff]  ;;  %v606_v31 = vld [vmem:[%s2517_s5 + $0x590] sm:$0xff] }
  0x64   : > { %517 = vst [vmem:[%s2522_s6 + $0x160] sm:$0xff] %v516_v50  ;;  %v608_v32 = vld [vmem:[%s2517_s5 + $0x5a0] sm:$0xff]  ;;  %v610_v33 = vld [vmem:[%s2517_s5 + $0x5b0] sm:$0xff] }
  0x65   : > { %519 = vst [vmem:[%s2522_s6 + $0x168] sm:$0xff] %v518_v51  ;;  %v612_v34 = vld [vmem:[%s2517_s5 + $0x5c0] sm:$0xff]  ;;  %v614_v35 = vld [vmem:[%s2517_s5 + $0x5d0] sm:$0xff] }
  0x66   : > { %521 = vst [vmem:[%s2522_s6 + $0x170] sm:$0xff] %v520_v52  ;;  %v616_v36 = vld [vmem:[%s2517_s5 + $0x5e0] sm:$0xff]  ;;  %v618_v37 = vld [vmem:[%s2517_s5 + $0x5f0] sm:$0xff] }
  0x67   : > { %523 = vst [vmem:[%s2522_s6 + $0x178] sm:$0xff] %v522_v53 }
  0x68   : > { %525 = vst [vmem:[%s2522_s6 + $0x180] sm:$0xff] %v524_v54 }
  0x69   : > { %527 = vst [vmem:[%s2522_s6 + $0x188] sm:$0xff] %v526_v55 }
  0x6a   : > { %529 = vst [vmem:[%s2522_s6 + $0x190] sm:$0xff] %v528_v56 }
  0x6b   : > { %531 = vst [vmem:[%s2522_s6 + $0x198] sm:$0xff] %v530_v57 }
  0x6c   : > { %533 = vst [vmem:[%s2522_s6 + $0x1a0] sm:$0xff] %v532_v58 }
  0x6d   : > { %535 = vst [vmem:[%s2522_s6 + $0x1a8] sm:$0xff] %v534_v59 }
  0x6e   : > { %537 = vst [vmem:[%s2522_s6 + $0x1b0] sm:$0xff] %v536_v60 }
  0x6f   : > { %539 = vst [vmem:[%s2522_s6 + $0x1b8] sm:$0xff] %v538_v61 }
  0x70   : > { %541 = vst [vmem:[%s2522_s6 + $0x1c0] sm:$0xff] %v540_v62 }
  0x71   : > { %543 = vst [vmem:[%s2522_s6 + $0x1c8] sm:$0xff] %v542_v63 }
  0x72   : > { %545 = vst [vmem:[%s2522_s6 + $0x1d0] sm:$0xff] %v544_v0 }
  0x73   : > { %547 = vst [vmem:[%s2522_s6 + $0x1d8] sm:$0xff] %v546_v1 }
  0x74   : > { %549 = vst [vmem:[%s2522_s6 + $0x1e0] sm:$0xff] %v548_v2 }
  0x75   : > { %551 = vst [vmem:[%s2522_s6 + $0x1e8] sm:$0xff] %v550_v3 }
  0x76   : > { %553 = vst [vmem:[%s2522_s6 + $0x1f0] sm:$0xff] %v552_v4 }
  0x77   : > { %555 = vst [vmem:[%s2522_s6 + $0x1f8] sm:$0xff] %v554_v5 }
  0x78   : > { %557 = vst [vmem:[%s2522_s6 + $0x200] sm:$0xff] %v556_v6 }
  0x79   : > { %559 = vst [vmem:[%s2522_s6 + $0x208] sm:$0xff] %v558_v7 }
  0x7a   : > { %561 = vst [vmem:[%s2522_s6 + $0x210] sm:$0xff] %v560_v8 }
  0x7b   : > { %563 = vst [vmem:[%s2522_s6 + $0x218] sm:$0xff] %v562_v9 }
  0x7c   : > { %565 = vst [vmem:[%s2522_s6 + $0x220] sm:$0xff] %v564_v10 }
  0x7d   : > { %567 = vst [vmem:[%s2522_s6 + $0x228] sm:$0xff] %v566_v11 }
  0x7e   : > { %569 = vst [vmem:[%s2522_s6 + $0x230] sm:$0xff] %v568_v12 }
  0x7f   : > { %571 = vst [vmem:[%s2522_s6 + $0x238] sm:$0xff] %v570_v13 }
  0x80   : > { %573 = vst [vmem:[%s2522_s6 + $0x240] sm:$0xff] %v572_v14 }
  0x81   : > { %575 = vst [vmem:[%s2522_s6 + $0x248] sm:$0xff] %v574_v15 }
  0x82   : > { %577 = vst [vmem:[%s2522_s6 + $0x250] sm:$0xff] %v576_v16 }
  0x83   : > { %579 = vst [vmem:[%s2522_s6 + $0x258] sm:$0xff] %v578_v17 }
  0x84   : > { %581 = vst [vmem:[%s2522_s6 + $0x260] sm:$0xff] %v580_v18 }
  0x85   : > { %583 = vst [vmem:[%s2522_s6 + $0x268] sm:$0xff] %v582_v19 }
  0x86   : > { %585 = vst [vmem:[%s2522_s6 + $0x270] sm:$0xff] %v584_v20 }
  0x87   : > { %587 = vst [vmem:[%s2522_s6 + $0x278] sm:$0xff] %v586_v21 }
  0x88   : > { %589 = vst [vmem:[%s2522_s6 + $0x280] sm:$0xff] %v588_v22 }
  0x89   : > { %591 = vst [vmem:[%s2522_s6 + $0x288] sm:$0xff] %v590_v23 }
  0x8a   : > { %593 = vst [vmem:[%s2522_s6 + $0x290] sm:$0xff] %v592_v24 }
  0x8b   : > { %595 = vst [vmem:[%s2522_s6 + $0x298] sm:$0xff] %v594_v25 }
  0x8c   : > { %597 = vst [vmem:[%s2522_s6 + $0x2a0] sm:$0xff] %v596_v26 }
  0x8d   : > { %599 = vst [vmem:[%s2522_s6 + $0x2a8] sm:$0xff] %v598_v27 }
  0x8e   : > { %601 = vst [vmem:[%s2522_s6 + $0x2b0] sm:$0xff] %v600_v28 }
  0x8f   : > { %603 = vst [vmem:[%s2522_s6 + $0x2b8] sm:$0xff] %v602_v29 }
  0x90   : > { %605 = vst [vmem:[%s2522_s6 + $0x2c0] sm:$0xff] %v604_v30 }
  0x91   : > { %607 = vst [vmem:[%s2522_s6 + $0x2c8] sm:$0xff] %v606_v31 }
  0x92   : > { %609 = vst [vmem:[%s2522_s6 + $0x2d0] sm:$0xff] %v608_v32 }
  0x93   : > { %611 = vst [vmem:[%s2522_s6 + $0x2d8] sm:$0xff] %v610_v33 }
  0x94   : > { %613 = vst [vmem:[%s2522_s6 + $0x2e0] sm:$0xff] %v612_v34 }
  0x95   : > { %615 = vst [vmem:[%s2522_s6 + $0x2e8] sm:$0xff] %v614_v35 }
  0x96   : > { %617 = vst [vmem:[%s2522_s6 + $0x2f0] sm:$0xff] %v616_v36 }
  0x97   : > { %619 = vst [vmem:[%s2522_s6 + $0x2f8] sm:$0xff] %v618_v37 }
  0x98 PF: > { %p1678_p0 = scmp.ge.s32.totalorder %s2380_s22, 1  ;;  %p632_p1 = scmp.lt.s32.totalorder %s2380_s22, 7 }
  0x9a   : > { %p633_p2 = pnand %p1678_p0, %p632_p1 }
  0x9b   : > { %s639_s0 = sand.u32 (!%p633_p2), 1, %s2356_s16   ;;  %s646_s23 = sand.u32 (!%p633_p2), 1, %s2348_s14  }
  0x9c   : > { %636 = sbr.rel (%p633_p2) target bundleno = 442 (0x1ba), region = 85  ;;  %s673_s7 = sand.u32 (!%p633_p2), 1, %s2340_s12  }
  0x9d   : > { %s2203_s28 = smul.u32 (!%p633_p2), 48, %s639_s0  ;;  %s1679_s26 = sshll.u32 (!%p633_p2), %s673_s7, 4 }
  0x9e   : > { %s2204_s11 = smul.u32 (!%p633_p2), 768, %s646_s23  ;;  %s1680_s27 = sshll.u32 (!%p633_p2), %s2368_s19, 1 }
  0x9f   : > { %p681_p3 = scmp.lt.s32.totalorder (!%p633_p2), %s1680_s27, 3  ;;  %s2725_s6 = scalar_lea.vmem (!%p633_p2), [#allocation3], %s2203_s28 }
  0xa0   : > { %s2727_s1 = scalar_lea.vmem (!%p633_p2), [#allocation4], %s2204_s11  ;;  %s2729_s25 = scalar_lea.vmem (!%p633_p2), [#allocation5], %s1679_s26 }
  0xa1   : > { %s3040_s27 = smov (!%p681_p3, %s1680_s27), 3  ;;  %p1681_p4 = scmp.ne.s32.totalorder %s2364_s18, 0 }
  0xa2   : > { %s683_s5 = scalar_lea.vmem %s3011_s2, %s3040_s27 }
  0xa3   : > { %690 = sbr.rel (%p1681_p4) target bundleno = 173 (0xad), region = 97 }
  0xa8   : > { %v2382_v38 = vmov 0.0  }
  0xa9   : > { %691 = vst [vmem:[#allocation2 + $0x10] sm:$0xff] %v2382_v38 }
  0xaa   : > { %692 = vst [vmem:[#allocation2] sm:$0xff] %v2382_v38 }
  0xab   : > { %693 = vst [vmem:[#allocation2 + $0x18] sm:$0xff] %v2382_v38 }
  0xac   : > { %694 = vst [vmem:[#allocation2 + $0x8] sm:$0xff] %v2382_v38 }
  0xad PF: > { %v1764_v39 = vld [vmem:[%s2727_s1 + $0x70] sm:$0xf]  ;;  %v2119_v40 = vld [vmem:[%s2727_s1 + $0x74] sm:$0xf0]  ;;  %v1756_v50 = vld [vmem:[%s2727_s1 + $0x60] sm:$0xf] }
  0xae   : > { %v1828_v41 = vld [vmem:[%s2727_s1 + $0xf0] sm:$0xf]  ;;  %v1765_v42 = vor.u32 %v2119_v40, %v1764_v39  ;;  %v2135_v43 = vld [vmem:[%s2727_s1 + $0xf4] sm:$0xf0]  ;;  %v2117_v52 = vld [vmem:[%s2727_s1 + $0x64] sm:$0xf0] }
  0xaf   : > { %v1892_v44 = vld [vmem:[%s2727_s1 + $0x170] sm:$0xf]  ;;  %v2151_v45 = vld [vmem:[%s2727_s1 + $0x174] sm:$0xf0]  ;;  %v1829_v46 = vor.u32 %v2135_v43, %v1828_v41  ;;  %v1820_v53 = vld [vmem:[%s2727_s1 + $0xe0] sm:$0xf]  ;;  %v1757_v55 = vor.u32 %v2117_v52, %v1756_v50 }
  0xb0   : > { %v1893_v47 = vor.u32 %v2151_v45, %v1892_v44  ;;  %v1956_v48 = vld [vmem:[%s2727_s1 + $0x1f0] sm:$0xf]  ;;  %v2167_v49 = vld [vmem:[%s2727_s1 + $0x1f4] sm:$0xf0]  ;;  %1311 = vmatpush.bf16.msra.mxu0 %v1765_v42  ;;  %v2133_v54 = vld [vmem:[%s2727_s1 + $0xe4] sm:$0xf0] }
  0xb1   : > { %v1957_v51 = vor.u32 %v2167_v49, %v1956_v48  ;;  %1325 = vmatpush.bf16.msra.mxu1 %v1829_v46  ;;  %v1821_v56 = vor.u32 %v2133_v54, %v1820_v53  ;;  %v1884_v57 = vld [vmem:[%s2727_s1 + $0x160] sm:$0xf]  ;;  %v2149_v58 = vld [vmem:[%s2727_s1 + $0x164] sm:$0xf0]  ;;  %v1748_v62 = vld [vmem:[%s2727_s1 + $0x50] sm:$0xf] }
  0xb2   : > { %1339 = vmatpush.bf16.msra.mxu2 %v1893_v47  ;;  %v1948_v59 = vld [vmem:[%s2727_s1 + $0x1e0] sm:$0xf]  ;;  %v1885_v60 = vor.u32 %v2149_v58, %v1884_v57  ;;  %v2165_v61 = vld [vmem:[%s2727_s1 + $0x1e4] sm:$0xf0]  ;;  %v2115_v63 = vld [vmem:[%s2727_s1 + $0x54] sm:$0xf0] }
  0xb3   : > { %1353 = vmatpush.bf16.msra.mxu3 %v1957_v51  ;;  %v1949_v0 = vor.u32 %v2165_v61, %v1948_v59  ;;  %v1812_v1 = vld [vmem:[%s2727_s1 + $0xd0] sm:$0xf]  ;;  %v2131_v2 = vld [vmem:[%s2727_s1 + $0xd4] sm:$0xf0]  ;;  %v1749_v4 = vor.u32 %v2115_v63, %v1748_v62  ;;  %v1740_v10 = vld [vmem:[%s2727_s1 + $0x40] sm:$0xf] }
  0xb4   : > { %v1876_v3 = vld [vmem:[%s2727_s1 + $0x150] sm:$0xf]  ;;  %1312 = vmatpush.bf16.msra.mxu0 %v1757_v55  ;;  %v2147_v5 = vld [vmem:[%s2727_s1 + $0x154] sm:$0xf0]  ;;  %v1813_v8 = vor.u32 %v2131_v2, %v1812_v1  ;;  %v2113_v11 = vld [vmem:[%s2727_s1 + $0x44] sm:$0xf0] }
  0xb5   : > { %v1940_v6 = vld [vmem:[%s2727_s1 + $0x1d0] sm:$0xf]  ;;  %v2163_v7 = vld [vmem:[%s2727_s1 + $0x1d4] sm:$0xf0]  ;;  %1326 = vmatpush.bf16.msra.mxu1 %v1821_v56  ;;  %v1877_v9 = vor.u32 %v2147_v5, %v1876_v3  ;;  %v1804_v12 = vld [vmem:[%s2727_s1 + $0xc0] sm:$0xf]  ;;  %v1741_v19 = vor.u32 %v2113_v11, %v1740_v10 }
  0xb6   : > { %1340 = vmatpush.bf16.msra.mxu2 %v1885_v60  ;;  %v1941_v13 = vor.u32 %v2163_v7, %v1940_v6  ;;  %v2129_v14 = vld [vmem:[%s2727_s1 + $0xc4] sm:$0xf0]  ;;  %v1868_v15 = vld [vmem:[%s2727_s1 + $0x140] sm:$0xf]  ;;  %v1732_v22 = vld [vmem:[%s2727_s1 + $0x30] sm:$0xf] }
  0xb7   : > { %1354 = vmatpush.bf16.msra.mxu3 %v1949_v0  ;;  %v2145_v16 = vld [vmem:[%s2727_s1 + $0x144] sm:$0xf0]  ;;  %v1932_v17 = vld [vmem:[%s2727_s1 + $0x1c0] sm:$0xf]  ;;  %v1805_v20 = vor.u32 %v2129_v14, %v1804_v12  ;;  %v2111_v23 = vld [vmem:[%s2727_s1 + $0x34] sm:$0xf0] }
  0xb8   : > { %v2161_v18 = vld [vmem:[%s2727_s1 + $0x1c4] sm:$0xf0]  ;;  %1313 = vmatpush.bf16.msra.mxu0 %v1749_v4  ;;  %v1869_v21 = vor.u32 %v2145_v16, %v1868_v15  ;;  %v1796_v24 = vld [vmem:[%s2727_s1 + $0xb0] sm:$0xf]  ;;  %v2127_v26 = vld [vmem:[%s2727_s1 + $0xb4] sm:$0xf0]  ;;  %v1733_v31 = vor.u32 %v2111_v23, %v1732_v22 }
  0xb9   : > { %1327 = vmatpush.bf16.msra.mxu1 %v1813_v8  ;;  %v1933_v25 = vor.u32 %v2161_v18, %v1932_v17  ;;  %v1860_v27 = vld [vmem:[%s2727_s1 + $0x130] sm:$0xf]  ;;  %v2143_v28 = vld [vmem:[%s2727_s1 + $0x134] sm:$0xf0]  ;;  %v1797_v32 = vor.u32 %v2127_v26, %v1796_v24  ;;  %v1724_v34 = vld [vmem:[%s2727_s1 + $0x20] sm:$0xf] }
  0xba   : > { %1341 = vmatpush.bf16.msra.mxu2 %v1877_v9  ;;  %v1924_v29 = vld [vmem:[%s2727_s1 + $0x1b0] sm:$0xf]  ;;  %v2159_v30 = vld [vmem:[%s2727_s1 + $0x1b4] sm:$0xf0]  ;;  %v1861_v33 = vor.u32 %v2143_v28, %v1860_v27  ;;  %v2109_v35 = vld [vmem:[%s2727_s1 + $0x24] sm:$0xf0] }
  0xbb   : > { %1355 = vmatpush.bf16.msra.mxu3 %v1941_v13  ;;  %v1788_v36 = vld [vmem:[%s2727_s1 + $0xa0] sm:$0xf]  ;;  %v1925_v37 = vor.u32 %v2159_v30, %v1924_v29  ;;  %v2125_v38 = vld [vmem:[%s2727_s1 + $0xa4] sm:$0xf0]  ;;  %v1725_v43 = vor.u32 %v2109_v35, %v1724_v34  ;;  %v1716_v46 = vld [vmem:[%s2727_s1 + $0x10] sm:$0xf] }
  0xbc   : > { %1314 = vmatpush.bf16.msra.mxu0 %v1741_v19  ;;  %v1852_v39 = vld [vmem:[%s2727_s1 + $0x120] sm:$0xf]  ;;  %v2141_v40 = vld [vmem:[%s2727_s1 + $0x124] sm:$0xf0]  ;;  %v1789_v44 = vor.u32 %v2125_v38, %v1788_v36  ;;  %v2107_v47 = vld [vmem:[%s2727_s1 + $0x14] sm:$0xf0] }
  0xbd   : > { %1328 = vmatpush.bf16.msra.mxu1 %v1805_v20  ;;  %v1916_v41 = vld [vmem:[%s2727_s1 + $0x1a0] sm:$0xf]  ;;  %v2157_v42 = vld [vmem:[%s2727_s1 + $0x1a4] sm:$0xf0]  ;;  %v1853_v45 = vor.u32 %v2141_v40, %v1852_v39  ;;  %v1780_v48 = vld [vmem:[%s2727_s1 + $0x90] sm:$0xf]  ;;  %v1717_v55 = vor.u32 %v2107_v47, %v1716_v46 }
  0xbe   : > { %1342 = vmatpush.bf16.msra.mxu2 %v1869_v21  ;;  %v1917_v49 = vor.u32 %v2157_v42, %v1916_v41  ;;  %v2123_v50 = vld [vmem:[%s2727_s1 + $0x94] sm:$0xf0]  ;;  %v1844_v51 = vld [vmem:[%s2727_s1 + $0x110] sm:$0xf]  ;;  %v1708_v56 = vld [vmem:[%s2727_s1] sm:$0xf] }
  0xbf   : > { %1356 = vmatpush.bf16.msra.mxu3 %v1933_v25  ;;  %v2139_v52 = vld [vmem:[%s2727_s1 + $0x114] sm:$0xf0]  ;;  %v1908_v53 = vld [vmem:[%s2727_s1 + $0x190] sm:$0xf]  ;;  %v2105_v57 = vld [vmem:[%s2727_s1 + $0x4] sm:$0xf0]  ;;  %v1781_v58 = vor.u32 %v2123_v50, %v1780_v48 }
  0xc0   : > { %1315 = vmatpush.bf16.msra.mxu0 %v1733_v31  ;;  %v2155_v54 = vld [vmem:[%s2727_s1 + $0x194] sm:$0xf0]  ;;  %v1845_v59 = vor.u32 %v2139_v52, %v1844_v51  ;;  %v1772_v60 = vld [vmem:[%s2727_s1 + $0x80] sm:$0xf]  ;;  %v2121_v61 = vld [vmem:[%s2727_s1 + $0x84] sm:$0xf0]  ;;  %v1709_v6 = vor.u32 %v2105_v57, %v1708_v56 }
  0xc1   : > { %1329 = vmatpush.bf16.msra.mxu1 %v1797_v32  ;;  %v1836_v62 = vld [vmem:[%s2727_s1 + $0x100] sm:$0xf]  ;;  %v1909_v63 = vor.u32 %v2155_v54, %v1908_v53  ;;  %v2137_v0 = vld [vmem:[%s2727_s1 + $0x104] sm:$0xf0]  ;;  %v2020_v3 = vld [vmem:[%s2727_s1 + $0x270] sm:$0xf]  ;;  %v1773_v10 = vor.u32 %v2121_v61, %v1772_v60 }
  0xc2   : > { %1343 = vmatpush.bf16.msra.mxu2 %v1861_v33  ;;  %v1900_v1 = vld [vmem:[%s2727_s1 + $0x180] sm:$0xf]  ;;  %v2153_v2 = vld [vmem:[%s2727_s1 + $0x184] sm:$0xf0]  ;;  %v2183_v4 = vld [vmem:[%s2727_s1 + $0x274] sm:$0xf0]  ;;  %v1837_v11 = vor.u32 %v2137_v0, %v1836_v62 }
  0xc3   : > { %1357 = vmatpush.bf16.msra.mxu3 %v1925_v37  ;;  %v2084_v5 = vld [vmem:[%s2727_s1 + $0x2f0] sm:$0xf]  ;;  %v2199_v7 = vld [vmem:[%s2727_s1 + $0x2f4] sm:$0xf0]  ;;  %v2118_v8 = vld [vmem:[%s2727_s1 + $0x74] sm:$0xf]  ;;  %v1901_v14 = vor.u32 %v2153_v2, %v1900_v1  ;;  %v2021_v15 = vor.u32 %v2183_v4, %v2020_v3 }
  0xc4   : > { %1316 = vmatpush.bf16.msra.mxu0 %v1725_v43  ;;  %v1766_v9 = vld [vmem:[%s2727_s1 + $0x78] sm:$0xf0]  ;;  %v2134_v12 = vld [vmem:[%s2727_s1 + $0xf4] sm:$0xf]  ;;  %v2012_v16 = vld [vmem:[%s2727_s1 + $0x260] sm:$0xf]  ;;  %v2085_v18 = vor.u32 %v2199_v7, %v2084_v5 }
  0xc5   : > { %1330 = vmatpush.bf16.msra.mxu1 %v1789_v44  ;;  %v1830_v13 = vld [vmem:[%s2727_s1 + $0xf8] sm:$0xf0]  ;;  %v2181_v17 = vld [vmem:[%s2727_s1 + $0x264] sm:$0xf0]  ;;  %v1769_v19 = vor.u32 %v2118_v8, %v1766_v9  ;;  %v2076_v20 = vld [vmem:[%s2727_s1 + $0x2e0] sm:$0xf] }
  0xc6   : > { %1344 = vmatpush.bf16.msra.mxu2 %v1853_v45  ;;  %v2197_v21 = vld [vmem:[%s2727_s1 + $0x2e4] sm:$0xf0]  ;;  %v2116_v22 = vld [vmem:[%s2727_s1 + $0x64] sm:$0xf]  ;;  %v1833_v23 = vor.u32 %v2134_v12, %v1830_v13  ;;  %v1758_v24 = vld [vmem:[%s2727_s1 + $0x68] sm:$0xf0]  ;;  %v2013_v30 = vor.u32 %v2181_v17, %v2012_v16 }
  0xc7   : > { %1358 = vmatpush.bf16.msra.mxu3 %v1917_v49  ;;  %v2132_v25 = vld [vmem:[%s2727_s1 + $0xe4] sm:$0xf]  ;;  %v1822_v26 = vld [vmem:[%s2727_s1 + $0xe8] sm:$0xf0]  ;;  %v2004_v27 = vld [vmem:[%s2727_s1 + $0x250] sm:$0xf]  ;;  %v2077_v35 = vor.u32 %v2197_v21, %v2076_v20  ;;  %v1761_v36 = vor.u32 %v2116_v22, %v1758_v24 }
  0xc8   : > { %1317 = vmatpush.bf16.msra.mxu0 %v1717_v55  ;;  %v1684_v28 = vld [vmem:[%s2725_s6] sm:$0xf]  ;;  %v2101_v29 = vld [vmem:[%s2725_s6 + $0x14] sm:$0xf0]  ;;  %v2114_v37 = vld [vmem:[%s2727_s1 + $0x54] sm:$0xf]  ;;  %v1825_v40 = vor.u32 %v2132_v25, %v1822_v26 }
  0xc9   : > { %1331 = vmatpush.bf16.msra.mxu1 %v1781_v58  ;;  %v2179_v31 = vld [vmem:[%s2727_s1 + $0x254] sm:$0xf0]  ;;  %v2068_v32 = vld [vmem:[%s2727_s1 + $0x2d0] sm:$0xf]  ;;  %v2818_v34 = vor.u32 %v2101_v29, %v1684_v28  ;;  %v1750_v38 = vld [vmem:[%s2727_s1 + $0x58] sm:$0xf0] }
  0xca   : > { %1345 = vmatpush.bf16.msra.mxu2 %v1845_v59  ;;  %v2195_v33 = vld [vmem:[%s2727_s1 + $0x2d4] sm:$0xf0]  ;;  %v2130_v39 = vld [vmem:[%s2727_s1 + $0xd4] sm:$0xf]  ;;  %v1814_v41 = vld [vmem:[%s2727_s1 + $0xd8] sm:$0xf0]  ;;  %v2005_v48 = vor.u32 %v2179_v31, %v2004_v27  ;;  %v1753_v52 = vor.u32 %v2114_v37, %v1750_v38 }
  0xcb   : > { %1359 = vmatpush.bf16.msra.mxu3 %v1909_v63  ;;  %v2098_v42 = vld [vmem:[%s2725_s6 + $0x4] sm:$0xf]  ;;  %v1686_v43 = vld [vmem:[%s2725_s6 + $0x18] sm:$0xf0]  ;;  %v1692_v45 = vld [vmem:[%s2725_s6 + $0x8] sm:$0xf]  ;;  %v2069_v51 = vor.u32 %v2195_v33, %v2068_v32  ;;  %v1817_v57 = vor.u32 %v2130_v39, %v1814_v41 }
  0xcc   : > { %1318 = vmatpush.bf16.msra.mxu0 %v1709_v6  ;;  %v2827_v44 = vor.u32 %v2098_v42, %v1686_v43  ;;  %v2102_v46 = vld [vmem:[%s2725_s6 + $0x1c] sm:$0xf0]  ;;  %v2099_v47 = vld [vmem:[%s2725_s6 + $0xc] sm:$0xf]  ;;  %v1694_v50 = vld [vmem:[%s2725_s6 + $0x20] sm:$0xf0] }
  0xcd   : > { %1332 = vmatpush.bf16.msra.mxu1 %v1773_v10  ;;  %v2832_v49 = vor.u32 %v2102_v46, %v1692_v45  ;;  %v1996_v53 = vld [vmem:[%s2727_s1 + $0x240] sm:$0xf]  ;;  %v2177_v54 = vld [vmem:[%s2727_s1 + $0x244] sm:$0xf0]  ;;  %v2838_v56 = vor.u32 %v2099_v47, %v1694_v50  ;;  %v2112_v59 = vld [vmem:[%s2727_s1 + $0x44] sm:$0xf] }
  0xce   : > { %1346 = vmatpush.bf16.msra.mxu2 %v1837_v11  ;;  %v2060_v55 = vld [vmem:[%s2727_s1 + $0x2c0] sm:$0xf]  ;;  %v2193_v58 = vld [vmem:[%s2727_s1 + $0x2c4] sm:$0xf0]  ;;  %v1742_v60 = vld [vmem:[%s2727_s1 + $0x48] sm:$0xf0]  ;;  %v1997_v63 = vor.u32 %v2177_v54, %v1996_v53 }
  0xcf   : > { %1360 = vmatpush.bf16.msra.mxu3 %v1901_v14  ;;  %1319 = vmatmul.bf16.vlgmr.msra.gmra.mxu0 %v2818_v34  ;;  %v2128_v61 = vld [vmem:[%s2727_s1 + $0xc4] sm:$0xf]  ;;  %v1806_v62 = vld [vmem:[%s2727_s1 + $0xc8] sm:$0xf0]  ;;  %v2061_v0 = vor.u32 %v2193_v58, %v2060_v55  ;;  %v1745_v1 = vor.u32 %v2112_v59, %v1742_v60  ;;  %v1988_v2 = vld [vmem:[%s2727_s1 + $0x230] sm:$0xf] }
  0xd0   : > { %1367 = vmatpush.bf16.msrb.mxu0 %v2021_v15  ;;  %1333 = vmatmul.bf16.vlgmr.msra.gmra.mxu1 %v2827_v44  ;;  %v2175_v3 = vld [vmem:[%s2727_s1 + $0x234] sm:$0xf0]  ;;  %v2052_v4 = vld [vmem:[%s2727_s1 + $0x2b0] sm:$0xf]  ;;  %v1809_v5 = vor.u32 %v2128_v61, %v1806_v62  ;;  %v2110_v7 = vld [vmem:[%s2727_s1 + $0x34] sm:$0xf] }
  0xd1   : > { %1381 = vmatpush.bf16.msrb.mxu1 %v2085_v18  ;;  %1347 = vmatmul.bf16.vlgmr.msra.gmra.mxu2 %v2832_v49  ;;  %v2191_v6 = vld [vmem:[%s2727_s1 + $0x2b4] sm:$0xf0]  ;;  %v1734_v8 = vld [vmem:[%s2727_s1 + $0x38] sm:$0xf0]  ;;  %v2126_v9 = vld [vmem:[%s2727_s1 + $0xb4] sm:$0xf]  ;;  %v1989_v11 = vor.u32 %v2175_v3, %v1988_v2 }
  0xd2   : > { %1395 = vmatpush.bf16.msrb.mxu2 %v1769_v19  ;;  %1361 = vmatmul.bf16.vlgmr.msra.gmra.mxu3 %v2838_v56  ;;  %v1798_v10 = vld [vmem:[%s2727_s1 + $0xb8] sm:$0xf0]  ;;  %v2053_v12 = vor.u32 %v2191_v6, %v2052_v4  ;;  %v1737_v13 = vor.u32 %v2110_v7, %v1734_v8  ;;  %v1980_v14 = vld [vmem:[%s2727_s1 + $0x220] sm:$0xf]  ;;  %v2173_v15 = vld [vmem:[%s2727_s1 + $0x224] sm:$0xf0] }
  0xd3   : > { %1409 = vmatpush.bf16.msrb.mxu3 %v1833_v23  ;;  %v2044_v16 = vld [vmem:[%s2727_s1 + $0x2a0] sm:$0xf]  ;;  %v1801_v17 = vor.u32 %v2126_v9, %v1798_v10  ;;  %v2189_v18 = vld [vmem:[%s2727_s1 + $0x2a4] sm:$0xf0]  ;;  %v2108_v19 = vld [vmem:[%s2727_s1 + $0x24] sm:$0xf]  ;;  %v1981_v23 = vor.u32 %v2173_v15, %v1980_v14 }
  0xd4   : > { %1368 = vmatpush.bf16.msrb.mxu0 %v2013_v30  ;;  %v1726_v20 = vld [vmem:[%s2727_s1 + $0x28] sm:$0xf0]  ;;  %v2124_v21 = vld [vmem:[%s2727_s1 + $0xa4] sm:$0xf]  ;;  %v2045_v24 = vor.u32 %v2189_v18, %v2044_v16  ;;  %v1972_v26 = vld [vmem:[%s2727_s1 + $0x210] sm:$0xf] }
  0xd5   : > { %1382 = vmatpush.bf16.msrb.mxu1 %v2077_v35  ;;  %v1790_v22 = vld [vmem:[%s2727_s1 + $0xa8] sm:$0xf0]  ;;  %v1729_v25 = vor.u32 %v2108_v19, %v1726_v20  ;;  %v2171_v27 = vld [vmem:[%s2727_s1 + $0x214] sm:$0xf0]  ;;  %v2036_v28 = vld [vmem:[%s2727_s1 + $0x290] sm:$0xf] }
  0xd6   : > { %1396 = vmatpush.bf16.msrb.mxu2 %v1761_v36  ;;  %v1793_v29 = vor.u32 %v2124_v21, %v1790_v22  ;;  %v2187_v30 = vld [vmem:[%s2727_s1 + $0x294] sm:$0xf0]  ;;  %v2106_v31 = vld [vmem:[%s2727_s1 + $0x14] sm:$0xf]  ;;  %v1718_v32 = vld [vmem:[%s2727_s1 + $0x18] sm:$0xf0]  ;;  %v1973_v36 = vor.u32 %v2171_v27, %v1972_v26 }
  0xd7   : > { %1410 = vmatpush.bf16.msrb.mxu3 %v1825_v40  ;;  %v2122_v33 = vld [vmem:[%s2727_s1 + $0x94] sm:$0xf]  ;;  %v1782_v35 = vld [vmem:[%s2727_s1 + $0x98] sm:$0xf0]  ;;  %v1964_v37 = vld [vmem:[%s2727_s1 + $0x200] sm:$0xf]  ;;  %v2037_v40 = vor.u32 %v2187_v30, %v2036_v28  ;;  %v1721_v41 = vor.u32 %v2106_v31, %v1718_v32 }
  0xd8   : > { %1369 = vmatpush.bf16.msrb.mxu0 %v2005_v48  ;;  %v2169_v38 = vld [vmem:[%s2727_s1 + $0x204] sm:$0xf0]  ;;  %v2028_v39 = vld [vmem:[%s2727_s1 + $0x280] sm:$0xf]  ;;  %v2104_v43 = vld [vmem:[%s2727_s1 + $0x4] sm:$0xf]  ;;  %v1785_v46 = vor.u32 %v2122_v33, %v1782_v35 }
  0xd9   : > { %1383 = vmatpush.bf16.msrb.mxu1 %v2069_v51  ;;  %v2185_v42 = vld [vmem:[%s2727_s1 + $0x284] sm:$0xf0]  ;;  %v1710_v45 = vld [vmem:[%s2727_s1 + $0x8] sm:$0xf0]  ;;  %v2120_v47 = vld [vmem:[%s2727_s1 + $0x84] sm:$0xf]  ;;  %v1965_v54 = vor.u32 %v2169_v38, %v1964_v37 }
  0xda   : > { %1397 = vmatpush.bf16.msrb.mxu2 %v1753_v52  ;;  %v1774_v48 = vld [vmem:[%s2727_s1 + $0x88] sm:$0xf0]  ;;  %v2150_v50 = vld [vmem:[%s2727_s1 + $0x174] sm:$0xf]  ;;  %v1894_v51 = vld [vmem:[%s2727_s1 + $0x178] sm:$0xf0]  ;;  %v2029_v59 = vor.u32 %v2185_v42, %v2028_v39  ;;  %v1713_v60 = vor.u32 %v2104_v43, %v1710_v45 }
  0xdb   : > { %1411 = vmatpush.bf16.msrb.mxu3 %v1817_v57  ;;  %v2166_v52 = vld [vmem:[%s2727_s1 + $0x1f4] sm:$0xf]  ;;  %v1958_v53 = vld [vmem:[%s2727_s1 + $0x1f8] sm:$0xf0]  ;;  %v1700_v62 = vld [vmem:[%s2725_s6 + $0x10] sm:$0xf] }
  0xdc   : > { %1370 = vmatpush.bf16.msrb.mxu0 %v1997_v63  ;;  %v2182_v55 = vld [vmem:[%s2727_s1 + $0x274] sm:$0xf]  ;;  %v2022_v57 = vld [vmem:[%s2727_s1 + $0x278] sm:$0xf0]  ;;  %v2103_v63 = vld [vmem:[%s2725_s6 + $0x24] sm:$0xf0]  ;;  %v1961_v4 = vor.u32 %v2166_v52, %v1958_v53 }
  0xdd   : > { %1384 = vmatpush.bf16.msrb.mxu1 %v2061_v0  ;;  %v2198_v58 = vld [vmem:[%s2727_s1 + $0x2f4] sm:$0xf]  ;;  %v2086_v61 = vld [vmem:[%s2727_s1 + $0x2f8] sm:$0xf0]  ;;  %v1777_v0 = vor.u32 %v2120_v47, %v1774_v48  ;;  %v2148_v6 = vld [vmem:[%s2727_s1 + $0x164] sm:$0xf]  ;;  %v2895_v10 = vor.u32 %v2103_v63, %v1700_v62 }
  0xde   : > { %1398 = vmatpush.bf16.msrb.mxu2 %v1745_v1  ;;  %v1897_v1 = vor.u32 %v2150_v50, %v1894_v51  ;;  %v2100_v2 = vld [vmem:[%s2725_s6 + $0x14] sm:$0xf]  ;;  %v1702_v3 = vld [vmem:[%s2725_s6 + $0x28] sm:$0xf0]  ;;  %v2089_v9 = vor.u32 %v2198_v58, %v2086_v61  ;;  %p2090_p5 = scmp.ne.s32.totalorder %s2364_s18, 2 }
  0xdf   : > { %1412 = vmatpush.bf16.msrb.mxu3 %v1809_v5  ;;  %v2025_v5 = vor.u32 %v2182_v55, %v2022_v57  ;;  %v1886_v7 = vld [vmem:[%s2727_s1 + $0x168] sm:$0xf0]  ;;  %v2164_v8 = vld [vmem:[%s2727_s1 + $0x1e4] sm:$0xf]  ;;  %v2900_v14 = vor.u32 %v2100_v2, %v1702_v3  ;;  %v2146_v20 = vld [vmem:[%s2727_s1 + $0x154] sm:$0xf] }
  0xe0   : > { %1371 = vmatpush.bf16.msrb.mxu0 %v1989_v11  ;;  %v1950_v11 = vld [vmem:[%s2727_s1 + $0x1e8] sm:$0xf0]  ;;  %v2196_v15 = vld [vmem:[%s2727_s1 + $0x2e4] sm:$0xf]  ;;  %v1878_v21 = vld [vmem:[%s2727_s1 + $0x158] sm:$0xf0] }
  0xe1   : > { %1385 = vmatpush.bf16.msrb.mxu1 %v2053_v12  ;;  %v2180_v12 = vld [vmem:[%s2727_s1 + $0x264] sm:$0xf]  ;;  %v2078_v16 = vld [vmem:[%s2727_s1 + $0x2e8] sm:$0xf0]  ;;  %v1953_v18 = vor.u32 %v2164_v8, %v1950_v11  ;;  %v2162_v22 = vld [vmem:[%s2727_s1 + $0x1d4] sm:$0xf] }
  0xe2   : > { %1399 = vmatpush.bf16.msrb.mxu2 %v1737_v13  ;;  %v2014_v13 = vld [vmem:[%s2727_s1 + $0x268] sm:$0xf0]  ;;  %v2006_v26 = vld [vmem:[%s2727_s1 + $0x258] sm:$0xf0]  ;;  %v2194_v27 = vld [vmem:[%s2727_s1 + $0x2d4] sm:$0xf] }
  0xe3   : > { %1413 = vmatpush.bf16.msrb.mxu3 %v1801_v17  ;;  %v1889_v17 = vor.u32 %v2148_v6, %v1886_v7  ;;  %v2017_v19 = vor.u32 %v2180_v12, %v2014_v13  ;;  %v2070_v28 = vld [vmem:[%s2727_s1 + $0x2d8] sm:$0xf0]  ;;  %v2144_v32 = vld [vmem:[%s2727_s1 + $0x144] sm:$0xf]  ;;  %v1870_v33 = vld [vmem:[%s2727_s1 + $0x148] sm:$0xf0] }
  0xe4   : > { %1372 = vmatpush.bf16.msrb.mxu0 %v1981_v23  ;;  %v2081_v23 = vor.u32 %v2196_v15, %v2078_v16  ;;  %v2160_v35 = vld [vmem:[%s2727_s1 + $0x1c4] sm:$0xf]  ;;  %v1998_v38 = vld [vmem:[%s2727_s1 + $0x248] sm:$0xf0]  ;;  %v2142_v43 = vld [vmem:[%s2727_s1 + $0x134] sm:$0xf] }
  0xe5   : > { %1386 = vmatpush.bf16.msrb.mxu1 %v2045_v24  ;;  %v1942_v24 = vld [vmem:[%s2727_s1 + $0x1d8] sm:$0xf0]  ;;  %v2176_v37 = vld [vmem:[%s2727_s1 + $0x244] sm:$0xf]  ;;  %v2062_v39 = vld [vmem:[%s2727_s1 + $0x2c8] sm:$0xf0] }
  0xe6   : > { %1400 = vmatpush.bf16.msrb.mxu2 %v1729_v25  ;;  %v2178_v25 = vld [vmem:[%s2727_s1 + $0x254] sm:$0xf]  ;;  %v1945_v30 = vor.u32 %v2162_v22, %v1942_v24  ;;  %v2001_v42 = vor.u32 %v2176_v37, %v1998_v38  ;;  %v1862_v45 = vld [vmem:[%s2727_s1 + $0x138] sm:$0xf0]  ;;  %v2140_v58 = vld [vmem:[%s2727_s1 + $0x124] sm:$0xf] }
  0xe7   : > { %1414 = vmatpush.bf16.msrb.mxu3 %v1793_v29  ;;  %v1881_v29 = vor.u32 %v2146_v20, %v1878_v21  ;;  %v2009_v31 = vor.u32 %v2178_v25, %v2006_v26  ;;  %v1926_v48 = vld [vmem:[%s2727_s1 + $0x1b8] sm:$0xf0]  ;;  %v2174_v50 = vld [vmem:[%s2727_s1 + $0x234] sm:$0xf]  ;;  %v1918_v62 = vld [vmem:[%s2727_s1 + $0x1a8] sm:$0xf0] }
  0xe8   : > { %1373 = vmatpush.bf16.msrb.mxu0 %v1973_v36  ;;  %v1934_v36 = vld [vmem:[%s2727_s1 + $0x1c8] sm:$0xf0]  ;;  %v1990_v51 = vld [vmem:[%s2727_s1 + $0x238] sm:$0xf0]  ;;  %v2190_v52 = vld [vmem:[%s2727_s1 + $0x2b4] sm:$0xf] }
  0xe9   : > { %1387 = vmatpush.bf16.msrb.mxu1 %v2037_v40  ;;  %v1873_v40 = vor.u32 %v2144_v32, %v1870_v33  ;;  %v2054_v53 = vld [vmem:[%s2727_s1 + $0x2b8] sm:$0xf0]  ;;  %v1993_v57 = vor.u32 %v2174_v50, %v1990_v51  ;;  %v2172_v63 = vld [vmem:[%s2727_s1 + $0x224] sm:$0xf]  ;;  %v2046_v2 = vld [vmem:[%s2727_s1 + $0x2a8] sm:$0xf0] }
  0xea   : > { %1401 = vmatpush.bf16.msrb.mxu2 %v1721_v41  ;;  %v1937_v41 = vor.u32 %v2160_v35, %v1934_v36  ;;  %v2057_v61 = vor.u32 %v2190_v52, %v2054_v53  ;;  %v2138_v6 = vld [vmem:[%s2727_s1 + $0x114] sm:$0xf]  ;;  %v1846_v7 = vld [vmem:[%s2727_s1 + $0x118] sm:$0xf0]  ;;  %v2136_v20 = vld [vmem:[%s2727_s1 + $0x104] sm:$0xf] }
  0xeb   : > { %1415 = vmatpush.bf16.msrb.mxu3 %v1785_v46  ;;  %v2158_v46 = vld [vmem:[%s2727_s1 + $0x1b4] sm:$0xf]  ;;  %v1910_v11 = vld [vmem:[%s2727_s1 + $0x198] sm:$0xf0]  ;;  %v1838_v21 = vld [vmem:[%s2727_s1 + $0x108] sm:$0xf0] }
  0xec   : > { %1374 = vmatpush.bf16.msrb.mxu0 %v1965_v54  ;;  %v1865_v54 = vor.u32 %v2142_v43, %v1862_v45  ;;  %v1929_v55 = vor.u32 %v2158_v46, %v1926_v48  ;;  %v2154_v8 = vld [vmem:[%s2727_s1 + $0x194] sm:$0xf]  ;;  %v1974_v13 = vld [vmem:[%s2727_s1 + $0x218] sm:$0xf0]  ;;  %v2152_v22 = vld [vmem:[%s2727_s1 + $0x184] sm:$0xf] }
  0xed   : > { %1388 = vmatpush.bf16.msrb.mxu1 %v2029_v59  ;;  %v1854_v59 = vld [vmem:[%s2727_s1 + $0x128] sm:$0xf0]  ;;  %v2170_v12 = vld [vmem:[%s2727_s1 + $0x214] sm:$0xf]  ;;  %v2038_v16 = vld [vmem:[%s2727_s1 + $0x298] sm:$0xf0] }
  0xee   : > { %1402 = vmatpush.bf16.msrb.mxu2 %v1713_v60  ;;  %v2156_v60 = vld [vmem:[%s2727_s1 + $0x1a4] sm:$0xf]  ;;  %v1857_v3 = vor.u32 %v2140_v58, %v1854_v59  ;;  %v2186_v15 = vld [vmem:[%s2727_s1 + $0x294] sm:$0xf]  ;;  %v1902_v24 = vld [vmem:[%s2727_s1 + $0x188] sm:$0xf0] }
  0xef   : > { %1416 = vmatpush.bf16.msrb.mxu3 %v1777_v0  ;;  %1375 = vmatmul.bf16.vlgmr.msrb.gmra.mxu0 %v2895_v10  ;;  %v1982_v0 = vld [vmem:[%s2727_s1 + $0x228] sm:$0xf0]  ;;  %v2168_v25 = vld [vmem:[%s2727_s1 + $0x204] sm:$0xf]  ;;  %v695_v46 = vld [vmem:[#allocation2 + $0x10] sm:$0xff] }
  0xf0   : > { %1423 = vmatpush.bf16.msra.mxu0 %v1897_v1  ;;  %1389 = vmatmul.bf16.vlgmr.msrb.gmra.mxu1 %v2900_v14  ;;  %v2188_v1 = vld [vmem:[%s2727_s1 + $0x2a4] sm:$0xf]  ;;  %v1966_v26 = vld [vmem:[%s2727_s1 + $0x208] sm:$0xf0]  ;;  %v697_v53 = vld [vmem:[#allocation2 + $0x18] sm:$0xff] }
  0xf1   : > { %1437 = vmatpush.bf16.msra.mxu1 %v1961_v4  ;;  %1403 = vmatmul.bf16.vlgmr.msrb.gmra.mxu2 %v2818_v34  ;;  %v2073_v34 = vor.u32 %v2194_v27, %v2070_v28  ;;  %v1921_v4 = vor.u32 %v2156_v60, %v1918_v62  ;;  %v2184_v27 = vld [vmem:[%s2727_s1 + $0x284] sm:$0xf]  ;;  %v2030_v28 = vld [vmem:[%s2727_s1 + $0x288] sm:$0xf0] }
  0xf2   : > { %1451 = vmatpush.bf16.msra.mxu2 %v2025_v5  ;;  %1417 = vmatmul.bf16.vlgmr.msrb.gmra.mxu3 %v2827_v44  ;;  %v2192_v44 = vld [vmem:[%s2727_s1 + $0x2c4] sm:$0xf]  ;;  %v1985_v5 = vor.u32 %v2172_v63, %v1982_v0  ;;  %v2033_v32 = vor.u32 %v2184_v27, %v2030_v28 }
  0xf3   : > { %1465 = vmatpush.bf16.msra.mxu3 %v2089_v9  ;;  %v2065_v47 = vor.u32 %v2192_v44, %v2062_v39  ;;  %v2049_v9 = vor.u32 %v2188_v1, %v2046_v2 }
  0xf4   : > { %1424 = vmatpush.bf16.msra.mxu0 %v1889_v17  ;;  %v1849_v17 = vor.u32 %v2138_v6, %v1846_v7  ;;  %v696_v7 = vld [vmem:[#allocation2] sm:$0xff] }
  0xf5   : > { %1438 = vmatpush.bf16.msra.mxu1 %v1953_v18  ;;  %v1913_v18 = vor.u32 %v2154_v8, %v1910_v11 }
  0xf6   : > { %1452 = vmatpush.bf16.msra.mxu2 %v2017_v19  ;;  %v1977_v19 = vor.u32 %v2170_v12, %v1974_v13 }
  0xf7   : > { %1466 = vmatpush.bf16.msra.mxu3 %v2081_v23  ;;  %v2041_v23 = vor.u32 %v2186_v15, %v2038_v16 }
  0xf8   : > { %1425 = vmatpush.bf16.msra.mxu0 %v1881_v29  ;;  %v1841_v29 = vor.u32 %v2136_v20, %v1838_v21 }
  0xf9   : > { %1439 = vmatpush.bf16.msra.mxu1 %v1945_v30  ;;  %v1905_v30 = vor.u32 %v2152_v22, %v1902_v24 }
  0xfa   : > { %1453 = vmatpush.bf16.msra.mxu2 %v2009_v31  ;;  %v1969_v31 = vor.u32 %v2168_v25, %v1966_v26 }
  0xfb   : > { %1467 = vmatpush.bf16.msra.mxu3 %v2073_v34 }
  0xfc   : > { %1426 = vmatpush.bf16.msra.mxu0 %v1873_v40 }
  0xfd   : > { %1440 = vmatpush.bf16.msra.mxu1 %v1937_v41 }
  0xfe   : > { %1454 = vmatpush.bf16.msra.mxu2 %v2001_v42 }
  0xff   : > { %1468 = vmatpush.bf16.msra.mxu3 %v2065_v47 }
 0x100   : > { %1427 = vmatpush.bf16.msra.mxu0 %v1865_v54 }
 0x101   : > { %1441 = vmatpush.bf16.msra.mxu1 %v1929_v55 }
 0x102   : > { %1455 = vmatpush.bf16.msra.mxu2 %v1993_v57 }
 0x103   : > { %1469 = vmatpush.bf16.msra.mxu3 %v2057_v61 }
 0x104   : > { %1428 = vmatpush.bf16.msra.mxu0 %v1857_v3 }
 0x105   : > { %1442 = vmatpush.bf16.msra.mxu1 %v1921_v4 }
 0x106   : > { %1456 = vmatpush.bf16.msra.mxu2 %v1985_v5 }
 0x107   : > { %1470 = vmatpush.bf16.msra.mxu3 %v2049_v9 }
 0x108   : > { %1429 = vmatpush.bf16.msra.mxu0 %v1849_v17  ;;  %v698_v17 = vld [vmem:[#allocation2 + $0x8] sm:$0xff] }
 0x109   : > { %1443 = vmatpush.bf16.msra.mxu1 %v1913_v18 }
 0x10a   : > { %1457 = vmatpush.bf16.msra.mxu2 %v1977_v19 }
 0x10b   : > { %1471 = vmatpush.bf16.msra.mxu3 %v2041_v23 }
 0x10c   : > { %1430 = vmatpush.bf16.msra.mxu0 %v1841_v29 }
 0x10d   : > { %1444 = vmatpush.bf16.msra.mxu1 %v1905_v30 }
 0x10e   : > { %1458 = vmatpush.bf16.msra.mxu2 %v1969_v31 }
 0x10f   : > { %1472 = vmatpush.bf16.msra.mxu3 %v2033_v32  ;;  %1431 = vmatmul.bf16.vlgmr.msra.gmra.mxu0 %v2832_v49 }
 0x110   : > { %1445 = vmatmul.bf16.vlgmr.msra.gmra.mxu1 %v2838_v56 }
 0x111   : > { %1459 = vmatmul.bf16.vlgmr.msra.gmra.mxu2 %v2895_v10 }
 0x112   : > { %1473 = vmatmul.bf16.vlgmr.msra.gmra.mxu3 %v2900_v14 }
 0x14c   : > { %v1320_v33 = vpop.f32.mrf.mxu0 }
 0x14d   : > { %v1334_v35 = vpop.f32.mrf.mxu1 }
 0x14e   : > { %v1335_v34 = vadd.f32 %v1334_v35, %v1320_v33 }
 0x154   : > { %v1322_v36 = vpop.f32.mrf.mxu0  ;;  %v1348_v37 = vpop.f32.mrf.mxu2 }
 0x155   : > { %v1336_v38 = vpop.f32.mrf.mxu1  ;;  %v1349_v44 = vadd.f32 %v1348_v37, %v1335_v34  ;;  %v1362_v39 = vpop.f32.mrf.mxu3 }
 0x156   : > { %v1337_v41 = vadd.f32 %v1336_v38, %v1322_v36 }
 0x157   : > { %v1363_v40 = vadd.f32 %v1362_v39, %v1349_v44 }
 0x15c   : > { %v1350_v43 = vpop.f32.mrf.mxu2 }
 0x15d   : > { %v1351_v56 = vadd.f32 %v1350_v43, %v1337_v41  ;;  %v1364_v10 = vpop.f32.mrf.mxu3 }
 0x15f   : > { %v1365_v14 = vadd.f32 %v1364_v10, %v1351_v56 }
 0x16c   : > { %v1376_v42 = vpop.f32.mrf.mxu0 }
 0x16d   : > { %v1377_v45 = vadd.f32 %v1376_v42, %v1363_v40  ;;  %v1390_v49 = vpop.f32.mrf.mxu1 }
 0x16f   : > { %v1391_v47 = vadd.f32 %v1390_v49, %v1377_v45 }
 0x171   : > { %v1479_v48 = vadd.f32 %v1391_v47, %v695_v46 }
 0x173   : > { %1483 = vst [vmem:[#allocation2 + $0x10] sm:$0xff] %v1479_v48 }
 0x174   : > { %v1378_v50 = vpop.f32.mrf.mxu0  ;;  %v1404_v57 = vpop.f32.mrf.mxu2 }
 0x175   : > { %v1379_v51 = vadd.f32 %v1378_v50, %v1365_v14  ;;  %v1392_v52 = vpop.f32.mrf.mxu1  ;;  %v1418_v58 = vpop.f32.mrf.mxu3 }
 0x176   : > { %v1419_v60 = vadd.f32 %v1418_v58, %v1404_v57 }
 0x177   : > { %v1393_v54 = vadd.f32 %v1392_v52, %v1379_v51 }
 0x179   : > { %v1481_v55 = vadd.f32 %v1393_v54, %v697_v53 }
 0x17b   : > { %1485 = vst [vmem:[#allocation2 + $0x18] sm:$0xff] %v1481_v55 }
 0x17c   : > { %v1406_v59 = vpop.f32.mrf.mxu2 }
 0x17d   : > { %v1420_v61 = vpop.f32.mrf.mxu3 }
 0x17e   : > { %v1421_v3 = vadd.f32 %v1420_v61, %v1406_v59 }
 0x18c   : > { %v1432_v62 = vpop.f32.mrf.mxu0 }
 0x18d   : > { %v1433_v63 = vadd.f32 %v1432_v62, %v1419_v60  ;;  %v1446_v0 = vpop.f32.mrf.mxu1 }
 0x18f   : > { %v1447_v1 = vadd.f32 %v1446_v0, %v1433_v63 }
 0x194   : > { %v1460_v2 = vpop.f32.mrf.mxu2  ;;  %v1434_v6 = vpop.f32.mrf.mxu0 }
 0x195   : > { %v1461_v4 = vadd.f32 %v1460_v2, %v1447_v1  ;;  %v1474_v5 = vpop.f32.mrf.mxu3  ;;  %v1435_v9 = vadd.f32 %v1434_v6, %v1421_v3  ;;  %v1448_v12 = vpop.f32.mrf.mxu1 }
 0x197   : > { %v1475_v8 = vadd.f32 %v1474_v5, %v1461_v4  ;;  %v1449_v13 = vadd.f32 %v1448_v12, %v1435_v9 }
 0x199   : > { %v1480_v11 = vadd.f32 %v1475_v8, %v696_v7 }
 0x19b   : > { %1484 = vst [vmem:[#allocation2] sm:$0xff] %v1480_v11 }
 0x19c   : > { %v1462_v15 = vpop.f32.mrf.mxu2 }
 0x19d   : > { %v1463_v16 = vadd.f32 %v1462_v15, %v1449_v13  ;;  %v1476_v18 = vpop.f32.mrf.mxu3 }
 0x19f   : > { %v1477_v19 = vadd.f32 %v1476_v18, %v1463_v16  ;;  %1490 = sbr.rel (%p2090_p5) target bundleno = 434 (0x1b2), region = 101 }
 0x1a1   : > { %v1482_v20 = vadd.f32 %v1477_v19, %v698_v17 }
 0x1a3   : > { %1486 = vst [vmem:[#allocation2 + $0x8] sm:$0xff] %v1482_v20 }
 0x1a4   : > { %v1491_v21 = vld [vmem:[#allocation2 + $0x10] sm:$0xff]  ;;  %v1492_v22 = vld [vmem:[#allocation2] sm:$0xff]  ;;  %v1493_v26 = vld [vmem:[#allocation2 + $0x18] sm:$0xff] }
 0x1a5   : > { %v1495_v23 = vld [vmem:[%s683_s5] sm:$0x3] }
 0x1a6   : > { %v1497_v24 = vperm.slane %v1495_v23, 0  ;;  %v1498_v25 = vperm.slane %v1495_v23, 1 }
 0x1a8   : > { %v1501_v28 = vadd.f32 %v1497_v24, %v1491_v21  ;;  %v1502_v29 = vadd.f32 %v1498_v25, %v1492_v22  ;;  %v1503_v30 = vadd.f32 %v1497_v24, %v1493_v26 }
 0x1aa   : > { %v1494_v27 = vld [vmem:[#allocation2 + $0x8] sm:$0xff]  ;;  %v1505_v32 = vmax.f32 %v1501_v28, 0.0  ;;  %v1506_v33 = vmax.f32 %v1502_v29, 0.0  ;;  %v1507_v35 = vmax.f32 %v1503_v30, 0.0 }
 0x1ab   : > { %v1504_v31 = vadd.f32 %v1498_v25, %v1494_v27 }
 0x1ac   : > { %v1509_v36 = vpack.c.bf16 %v1506_v33, %v1505_v32 }
 0x1ad   : > { %v1508_v34 = vmax.f32 %v1504_v31, 0.0 }
 0x1ae   : > { %1511 = vst [vmem:[%s2729_s25] sm:$0xff] %v1509_v36 }
 0x1af   : > { %v1510_v37 = vpack.c.bf16 %v1508_v34, %v1507_v35 }
 0x1b1   : > { %1512 = vst [vmem:[%s2729_s25 + $0x8] sm:$0xff] %v1510_v37 }
 0x1b2 PF: > { %1519 = sbr.rel (!%p2497_p12) target bundleno = 442 (0x1ba), region = 105  ;;  %s2200_s14 = sshll.u32 (%p2497_p12), %s2368_s19, 3 }
 0x1b3   : > { %s1525_s0 = scalar_lea.vmem (%p2497_p12), %s3012_s3, %s2200_s14 }
 0x1b5   : > { %v1556_v38 = vld [vmem:[%s2729_s25] sm:$0xff] (%p2497_p12) }
 0x1b6   : > { %1557 = vst [vmem:[%s1525_s0] sm:$0xff] (%p2497_p12), %v1556_v38 }
 0x1b8   : > { %v1558_v44 = vld [vmem:[%s2729_s25 + $0x8] sm:$0xff] }
 0x1b9   : > { %1559 = vst [vmem:[%s1525_s0 + $0x10] sm:$0xff] %v1558_v44 }
 0x1ba PF: > { %s13_s22 = sadd.s32 1, %s2380_s22   ;;  %s3022_s25 = sld [smem:[#allocation6_spill]] }
 0x1bb   : > { %p10_p6 = scmp.ge.s32.totalorder %s13_s22, 8   ;;  %s3023_s12 = smov %s2344_s13 }
 0x1bc   : > { %s3024_s13 = smov %s2495_s9  ;;  %s3025_s14 = smov %s2352_s15 }
 0x1bd   : > { %s3026_s15 = smov %s2492_s8  ;;  %s3027_s16 = smov %s2360_s17 }
 0x1be   : > { %s3028_s17 = smov %s2478_s30  ;;  %s3029_s18 = smov %s2372_s20 }
 0x1bf   : > { %s3030_s19 = smov %s2376_s21  ;;  %s3031_s20 = smov %s3034_s24 }
 0x1c0   : > { %s3032_s21 = smov %s3022_s25  ;;  %12 = sbr.rel (!%p10_p6) target bundleno = 9 (0x9), region = 185 }

// kernel: _resnet_forward.24
= control target key start
LH: loop header
LB: loop body
LE: loop exit
PB: predicated region body
PF: predicated region fallthrough
CT: control target
= control target key end

     0   :  { %s1159_s12 = smov 0   ;;  %s1161_s13 = smov 0   ;;  %s1385_s0 = inlined_call_operand.vmem [shape: bf16[16,256], index: 0, kind: input, shape index: {}]   ;;  %s1386_s1 = inlined_call_operand.vmem [shape: bf16[256,512], index: 1, kind: input, shape index: {}]   ;;  %s1387_s2 = inlined_call_operand.vmem [shape: f32[1,512], index: 2, kind: input, shape index: {}]   ;;  %s1388_s3 = inlined_call_operand.vmem [shape: bf16[16,512], index: 3, kind: output, shape index: {}]  }
   0x1   :  { %s1163_s14 = smov 0   ;;  %s1165_s15 = smov 0  }
   0x2   :  { %s1167_s16 = smov 0  }
   0x3 LB: > { %s28_s17 = sadd.s32 1, %s1133_s15  ;;  %s870_s18 = sadd.s32 4294967295, %s1137_s16   ;;  %s1137_s16 = sphi %s1167_s16, %s13_s16   ;;  %s1133_s15 = sphi %s1165_s15, %s1393_s15   ;;  %s1129_s14 = sphi %s1163_s14, %s1392_s14   ;;  %s1125_s13 = sphi %s1161_s13, %s1391_s13   ;;  %s1121_s12 = sphi %s1159_s12, %s1390_s12  }
   0x4   : > { %p30_p0 = scmp.ge.s32.totalorder %s28_s17, 2  ;;  %p76_p1 = scmp.ne.s32.totalorder %s1125_s13, %s1121_s12 }
   0x5   : > { %p77_p2 = scmp.eq.s32.totalorder %s1137_s16, 0  ;;  %p134_p4 = scmp.eq.s32.totalorder %s870_s18, 1 }
   0x6   : > { %s1395_s17 = smov (%p30_p0, %s28_s17), 0  ;;  %s69_s20 = sadd.s32 1, %s1125_s13 }
   0x7   : > { %p78_p3 = por %p77_p2, %p76_p1  ;;  %s65_s19 = ssub.s32 %s1133_s15, %s1395_s17 }
   0x8   : > { %p67_p5 = scmp.eq.s32.totalorder %s65_s19, 0  ;;  %p1194_p6 = por %p134_p4, %p76_p1 }
   0x9   : > { %p874_p7 = scmp.ge.s32.totalorder %s1137_s16, 2 }
   0xa   : > { %s1199_s22 = scalar_select %p67_p5, %s1125_s13, %s69_s20  }
   0xb   : > { %171 = sbr.rel (%p874_p7) target bundleno = 52 (0x34), region = 20 }
  0x10   : > { %174 = sbr.rel (!%p78_p3) target bundleno = 52 (0x34), region = 24  ;;  %s176_s23 = sand.u32 (%p78_p3), 1, %s1125_s13  }
  0x11   : > { %s1023_s24 = sshll.u32 (%p78_p3), %s1133_s15, 3  ;;  %s875_s25 = sshll.u32 (%p78_p3), %s176_s23, 8 }
  0x12   : > { %s1207_s28 = scalar_lea.vmem (%p78_p3), %s1386_s1, %s1023_s24  ;;  %s1212_s29 = scalar_lea.vmem (%p78_p3), [#allocation3], %s875_s25 }
  0x13   : > { %v275_v0 = vld [vmem:[%s1207_s28] sm:$0xff] (%p78_p3)  ;;  %v277_v1 = vld [vmem:[%s1207_s28 + $0x10] sm:$0xff] (%p78_p3) }
  0x14   : > { %v279_v2 = vld [vmem:[%s1207_s28 + $0x20] sm:$0xff] (%p78_p3)  ;;  %276 = vst [vmem:[%s1212_s29] sm:$0xff] (%p78_p3), %v275_v0  ;;  %v281_v3 = vld [vmem:[%s1207_s28 + $0x30] sm:$0xff] (%p78_p3) }
  0x15   : > { %278 = vst [vmem:[%s1212_s29 + $0x8] sm:$0xff] %v277_v1  ;;  %v283_v4 = vld [vmem:[%s1207_s28 + $0x40] sm:$0xff]  ;;  %v285_v5 = vld [vmem:[%s1207_s28 + $0x50] sm:$0xff] }
  0x16   : > { %280 = vst [vmem:[%s1212_s29 + $0x10] sm:$0xff] %v279_v2  ;;  %v287_v6 = vld [vmem:[%s1207_s28 + $0x60] sm:$0xff]  ;;  %v289_v7 = vld [vmem:[%s1207_s28 + $0x70] sm:$0xff] }
  0x17   : > { %282 = vst [vmem:[%s1212_s29 + $0x18] sm:$0xff] %v281_v3  ;;  %v291_v8 = vld [vmem:[%s1207_s28 + $0x80] sm:$0xff]  ;;  %v293_v9 = vld [vmem:[%s1207_s28 + $0x90] sm:$0xff] }
  0x18   : > { %284 = vst [vmem:[%s1212_s29 + $0x20] sm:$0xff] %v283_v4  ;;  %v295_v10 = vld [vmem:[%s1207_s28 + $0xa0] sm:$0xff]  ;;  %v297_v11 = vld [vmem:[%s1207_s28 + $0xb0] sm:$0xff] }
  0x19   : > { %286 = vst [vmem:[%s1212_s29 + $0x28] sm:$0xff] %v285_v5  ;;  %v299_v12 = vld [vmem:[%s1207_s28 + $0xc0] sm:$0xff]  ;;  %v301_v13 = vld [vmem:[%s1207_s28 + $0xd0] sm:$0xff] }
  0x1a   : > { %288 = vst [vmem:[%s1212_s29 + $0x30] sm:$0xff] %v287_v6  ;;  %v303_v14 = vld [vmem:[%s1207_s28 + $0xe0] sm:$0xff]  ;;  %v305_v15 = vld [vmem:[%s1207_s28 + $0xf0] sm:$0xff] }
  0x1b   : > { %290 = vst [vmem:[%s1212_s29 + $0x38] sm:$0xff] %v289_v7  ;;  %v307_v16 = vld [vmem:[%s1207_s28 + $0x100] sm:$0xff]  ;;  %v309_v17 = vld [vmem:[%s1207_s28 + $0x110] sm:$0xff] }
  0x1c   : > { %292 = vst [vmem:[%s1212_s29 + $0x40] sm:$0xff] %v291_v8  ;;  %v311_v18 = vld [vmem:[%s1207_s28 + $0x120] sm:$0xff]  ;;  %v313_v19 = vld [vmem:[%s1207_s28 + $0x130] sm:$0xff] }
  0x1d   : > { %294 = vst [vmem:[%s1212_s29 + $0x48] sm:$0xff] %v293_v9  ;;  %v315_v20 = vld [vmem:[%s1207_s28 + $0x140] sm:$0xff]  ;;  %v317_v21 = vld [vmem:[%s1207_s28 + $0x150] sm:$0xff] }
  0x1e   : > { %296 = vst [vmem:[%s1212_s29 + $0x50] sm:$0xff] %v295_v10  ;;  %v319_v22 = vld [vmem:[%s1207_s28 + $0x160] sm:$0xff]  ;;  %v321_v23 = vld [vmem:[%s1207_s28 + $0x170] sm:$0xff] }
  0x1f   : > { %298 = vst [vmem:[%s1212_s29 + $0x58] sm:$0xff] %v297_v11  ;;  %v323_v24 = vld [vmem:[%s1207_s28 + $0x180] sm:$0xff]  ;;  %v325_v25 = vld [vmem:[%s1207_s28 + $0x190] sm:$0xff] }
  0x20   : > { %300 = vst [vmem:[%s1212_s29 + $0x60] sm:$0xff] %v299_v12  ;;  %v327_v26 = vld [vmem:[%s1207_s28 + $0x1a0] sm:$0xff]  ;;  %v329_v27 = vld [vmem:[%s1207_s28 + $0x1b0] sm:$0xff] }
  0x21   : > { %302 = vst [vmem:[%s1212_s29 + $0x68] sm:$0xff] %v301_v13  ;;  %v331_v28 = vld [vmem:[%s1207_s28 + $0x1c0] sm:$0xff]  ;;  %v333_v29 = vld [vmem:[%s1207_s28 + $0x1d0] sm:$0xff] }
  0x22   : > { %304 = vst [vmem:[%s1212_s29 + $0x70] sm:$0xff] %v303_v14  ;;  %v335_v30 = vld [vmem:[%s1207_s28 + $0x1e0] sm:$0xff]  ;;  %v337_v31 = vld [vmem:[%s1207_s28 + $0x1f0] sm:$0xff] }
  0x23   : > { %306 = vst [vmem:[%s1212_s29 + $0x78] sm:$0xff] %v305_v15 }
  0x24   : > { %308 = vst [vmem:[%s1212_s29 + $0x80] sm:$0xff] %v307_v16 }
  0x25   : > { %310 = vst [vmem:[%s1212_s29 + $0x88] sm:$0xff] %v309_v17 }
  0x26   : > { %312 = vst [vmem:[%s1212_s29 + $0x90] sm:$0xff] %v311_v18 }
  0x27   : > { %314 = vst [vmem:[%s1212_s29 + $0x98] sm:$0xff] %v313_v19 }
  0x28   : > { %316 = vst [vmem:[%s1212_s29 + $0xa0] sm:$0xff] %v315_v20 }
  0x29   : > { %318 = vst [vmem:[%s1212_s29 + $0xa8] sm:$0xff] %v317_v21 }
  0x2a   : > { %320 = vst [vmem:[%s1212_s29 + $0xb0] sm:$0xff] %v319_v22 }
  0x2b   : > { %322 = vst [vmem:[%s1212_s29 + $0xb8] sm:$0xff] %v321_v23 }
  0x2c   : > { %324 = vst [vmem:[%s1212_s29 + $0xc0] sm:$0xff] %v323_v24 }
  0x2d   : > { %326 = vst [vmem:[%s1212_s29 + $0xc8] sm:$0xff] %v325_v25 }
  0x2e   : > { %328 = vst [vmem:[%s1212_s29 + $0xd0] sm:$0xff] %v327_v26 }
  0x2f   : > { %330 = vst [vmem:[%s1212_s29 + $0xd8] sm:$0xff] %v329_v27 }
  0x30   : > { %332 = vst [vmem:[%s1212_s29 + $0xe0] sm:$0xff] %v331_v28 }
  0x31   : > { %334 = vst [vmem:[%s1212_s29 + $0xe8] sm:$0xff] %v333_v29 }
  0x32   : > { %336 = vst [vmem:[%s1212_s29 + $0xf0] sm:$0xff] %v335_v30 }
  0x33   : > { %338 = vst [vmem:[%s1212_s29 + $0xf8] sm:$0xff] %v337_v31 }
  0x34 PF: > { %p878_p8 = scmp.ge.s32.totalorder %s1137_s16, 1  ;;  %p351_p9 = scmp.lt.s32.totalorder %s1137_s16, 3 }
  0x36   : > { %p352_p10 = pnand %p878_p8, %p351_p9 }
  0x37   : > { %s358_s30 = sand.u32 (!%p352_p10), 1, %s1121_s12   ;;  %s881_s20 = sshll.u32 (!%p352_p10), %s1129_s14, 1 }
  0x38   : > { %355 = sbr.rel (%p352_p10) target bundleno = 252 (0xfc), region = 66  ;;  %s879_s4 = sshll.u32 (!%p352_p10), %s358_s30, 8 }
  0x39   : > { %s1280_s5 = scalar_lea.vmem (!%p352_p10), [#allocation3], %s879_s4  ;;  %p409_p11 = scmp.lt.s32.totalorder (!%p352_p10), %s881_s20, 3 }
  0x3a   : > { %s880_s26 = sshll.u32 (!%p352_p10), %s358_s30, 4 }
  0x3b   : > { %s393_s27 = scalar_lea.vmem (!%p352_p10), [#allocation4], %s880_s26 }
  0x3d   : > { %v948_v32 = vld [vmem:[%s1280_s5 + $0x70] sm:$0xf]  ;;  %v1041_v33 = vld [vmem:[%s1280_s5 + $0x74] sm:$0xf0]  ;;  %v1040_v37 = vld [vmem:[%s1280_s5 + $0x74] sm:$0xf] }
  0x3e   : > { %v1012_v34 = vld [vmem:[%s1280_s5 + $0xf0] sm:$0xf]  ;;  %v949_v35 = vor.u32 %v1041_v33, %v948_v32  ;;  %v1057_v36 = vld [vmem:[%s1280_s5 + $0xf4] sm:$0xf0]  ;;  %v950_v38 = vld [vmem:[%s1280_s5 + $0x78] sm:$0xf0] }
  0x3f   : > { %v1013_v39 = vor.u32 %v1057_v36, %v1012_v34  ;;  %v953_v40 = vor.u32 %v1040_v37, %v950_v38  ;;  %v1056_v41 = vld [vmem:[%s1280_s5 + $0xf4] sm:$0xf]  ;;  %v1014_v42 = vld [vmem:[%s1280_s5 + $0xf8] sm:$0xf0]  ;;  %v940_v43 = vld [vmem:[%s1280_s5 + $0x60] sm:$0xf] }
  0x40   : > { %631 = vmatpush.bf16.msra.mxu0 %v949_v35  ;;  %v1017_v44 = vor.u32 %v1056_v41, %v1014_v42  ;;  %v1039_v45 = vld [vmem:[%s1280_s5 + $0x64] sm:$0xf0]  ;;  %v1004_v46 = vld [vmem:[%s1280_s5 + $0xe0] sm:$0xf]  ;;  %v1038_v50 = vld [vmem:[%s1280_s5 + $0x64] sm:$0xf] }
  0x41   : > { %v1055_v47 = vld [vmem:[%s1280_s5 + $0xe4] sm:$0xf0]  ;;  %645 = vmatpush.bf16.msra.mxu1 %v1013_v39  ;;  %659 = vmatpush.bf16.msra.mxu2 %v953_v40  ;;  %v941_v48 = vor.u32 %v1039_v45, %v940_v43  ;;  %v942_v51 = vld [vmem:[%s1280_s5 + $0x68] sm:$0xf0]  ;;  %v1054_v52 = vld [vmem:[%s1280_s5 + $0xe4] sm:$0xf] }
  0x42   : > { %v1005_v49 = vor.u32 %v1055_v47, %v1004_v46  ;;  %673 = vmatpush.bf16.msra.mxu3 %v1017_v44  ;;  %v945_v53 = vor.u32 %v1038_v50, %v942_v51  ;;  %v1006_v54 = vld [vmem:[%s1280_s5 + $0xe8] sm:$0xf0]  ;;  %v932_v55 = vld [vmem:[%s1280_s5 + $0x50] sm:$0xf]  ;;  %v1037_v56 = vld [vmem:[%s1280_s5 + $0x54] sm:$0xf0] }
  0x43   : > { %v1009_v57 = vor.u32 %v1054_v52, %v1006_v54  ;;  %v996_v58 = vld [vmem:[%s1280_s5 + $0xd0] sm:$0xf]  ;;  %v1053_v59 = vld [vmem:[%s1280_s5 + $0xd4] sm:$0xf0]  ;;  %v1036_v60 = vld [vmem:[%s1280_s5 + $0x54] sm:$0xf]  ;;  %v933_v61 = vor.u32 %v1037_v56, %v932_v55 }
  0x44   : > { %632 = vmatpush.bf16.msra.mxu0 %v941_v48  ;;  %v934_v62 = vld [vmem:[%s1280_s5 + $0x58] sm:$0xf0]  ;;  %v1052_v63 = vld [vmem:[%s1280_s5 + $0xd4] sm:$0xf]  ;;  %v997_v1 = vor.u32 %v1053_v59, %v996_v58  ;;  %v924_v3 = vld [vmem:[%s1280_s5 + $0x40] sm:$0xf] }
  0x45   : > { %v998_v0 = vld [vmem:[%s1280_s5 + $0xd8] sm:$0xf0]  ;;  %646 = vmatpush.bf16.msra.mxu1 %v1005_v49  ;;  %660 = vmatpush.bf16.msra.mxu2 %v945_v53  ;;  %v937_v2 = vor.u32 %v1036_v60, %v934_v62  ;;  %v1035_v4 = vld [vmem:[%s1280_s5 + $0x44] sm:$0xf0]  ;;  %v988_v5 = vld [vmem:[%s1280_s5 + $0xc0] sm:$0xf] }
  0x46   : > { %674 = vmatpush.bf16.msra.mxu3 %v1009_v57  ;;  %v1001_v6 = vor.u32 %v1052_v63, %v998_v0  ;;  %v1051_v7 = vld [vmem:[%s1280_s5 + $0xc4] sm:$0xf0]  ;;  %v1034_v8 = vld [vmem:[%s1280_s5 + $0x44] sm:$0xf]  ;;  %v926_v9 = vld [vmem:[%s1280_s5 + $0x48] sm:$0xf0]  ;;  %v925_v12 = vor.u32 %v1035_v4, %v924_v3 }
  0x47   : > { %v1050_v10 = vld [vmem:[%s1280_s5 + $0xc4] sm:$0xf]  ;;  %v990_v11 = vld [vmem:[%s1280_s5 + $0xc8] sm:$0xf0]  ;;  %v989_v13 = vor.u32 %v1051_v7, %v988_v5  ;;  %v929_v14 = vor.u32 %v1034_v8, %v926_v9  ;;  %v916_v15 = vld [vmem:[%s1280_s5 + $0x30] sm:$0xf] }
  0x48   : > { %633 = vmatpush.bf16.msra.mxu0 %v933_v61  ;;  %v1033_v16 = vld [vmem:[%s1280_s5 + $0x34] sm:$0xf0]  ;;  %v980_v17 = vld [vmem:[%s1280_s5 + $0xb0] sm:$0xf]  ;;  %v993_v18 = vor.u32 %v1050_v10, %v990_v11  ;;  %v1032_v20 = vld [vmem:[%s1280_s5 + $0x34] sm:$0xf] }
  0x49   : > { %647 = vmatpush.bf16.msra.mxu1 %v997_v1  ;;  %661 = vmatpush.bf16.msra.mxu2 %v937_v2  ;;  %v1049_v19 = vld [vmem:[%s1280_s5 + $0xb4] sm:$0xf0]  ;;  %v918_v21 = vld [vmem:[%s1280_s5 + $0x38] sm:$0xf0]  ;;  %v1048_v22 = vld [vmem:[%s1280_s5 + $0xb4] sm:$0xf]  ;;  %v917_v24 = vor.u32 %v1033_v16, %v916_v15 }
  0x4a   : > { %675 = vmatpush.bf16.msra.mxu3 %v1001_v6  ;;  %v982_v23 = vld [vmem:[%s1280_s5 + $0xb8] sm:$0xf0]  ;;  %v981_v25 = vor.u32 %v1049_v19, %v980_v17  ;;  %v921_v26 = vor.u32 %v1032_v20, %v918_v21  ;;  %v908_v27 = vld [vmem:[%s1280_s5 + $0x20] sm:$0xf]  ;;  %v1031_v28 = vld [vmem:[%s1280_s5 + $0x24] sm:$0xf0] }
  0x4b   : > { %v972_v29 = vld [vmem:[%s1280_s5 + $0xa0] sm:$0xf]  ;;  %v985_v30 = vor.u32 %v1048_v22, %v982_v23  ;;  %v1047_v31 = vld [vmem:[%s1280_s5 + $0xa4] sm:$0xf0]  ;;  %v1030_v32 = vld [vmem:[%s1280_s5 + $0x24] sm:$0xf]  ;;  %v909_v36 = vor.u32 %v1031_v28, %v908_v27 }
  0x4c   : > { %634 = vmatpush.bf16.msra.mxu0 %v925_v12  ;;  %v910_v33 = vld [vmem:[%s1280_s5 + $0x28] sm:$0xf0]  ;;  %v1046_v34 = vld [vmem:[%s1280_s5 + $0xa4] sm:$0xf]  ;;  %v973_v37 = vor.u32 %v1047_v31, %v972_v29  ;;  %v900_v39 = vld [vmem:[%s1280_s5 + $0x10] sm:$0xf] }
  0x4d   : > { %648 = vmatpush.bf16.msra.mxu1 %v989_v13  ;;  %662 = vmatpush.bf16.msra.mxu2 %v929_v14  ;;  %v974_v35 = vld [vmem:[%s1280_s5 + $0xa8] sm:$0xf0]  ;;  %v913_v38 = vor.u32 %v1030_v32, %v910_v33  ;;  %v1029_v40 = vld [vmem:[%s1280_s5 + $0x14] sm:$0xf0]  ;;  %v964_v41 = vld [vmem:[%s1280_s5 + $0x90] sm:$0xf] }
  0x4e   : > { %676 = vmatpush.bf16.msra.mxu3 %v993_v18  ;;  %v977_v42 = vor.u32 %v1046_v34, %v974_v35  ;;  %v1045_v43 = vld [vmem:[%s1280_s5 + $0x94] sm:$0xf0]  ;;  %v1028_v44 = vld [vmem:[%s1280_s5 + $0x14] sm:$0xf]  ;;  %v902_v45 = vld [vmem:[%s1280_s5 + $0x18] sm:$0xf0]  ;;  %v901_v48 = vor.u32 %v1029_v40, %v900_v39 }
  0x4f   : > { %v1044_v46 = vld [vmem:[%s1280_s5 + $0x94] sm:$0xf]  ;;  %v966_v47 = vld [vmem:[%s1280_s5 + $0x98] sm:$0xf0]  ;;  %v965_v49 = vor.u32 %v1045_v43, %v964_v41  ;;  %v905_v50 = vor.u32 %v1028_v44, %v902_v45  ;;  %v892_v51 = vld [vmem:[%s1280_s5] sm:$0xf] }
  0x50   : > { %635 = vmatpush.bf16.msra.mxu0 %v917_v24  ;;  %v1027_v52 = vld [vmem:[%s1280_s5 + $0x4] sm:$0xf0]  ;;  %v956_v53 = vld [vmem:[%s1280_s5 + $0x80] sm:$0xf]  ;;  %v969_v54 = vor.u32 %v1044_v46, %v966_v47  ;;  %v1026_v56 = vld [vmem:[%s1280_s5 + $0x4] sm:$0xf] }
  0x51   : > { %649 = vmatpush.bf16.msra.mxu1 %v981_v25  ;;  %663 = vmatpush.bf16.msra.mxu2 %v921_v26  ;;  %v1043_v55 = vld [vmem:[%s1280_s5 + $0x84] sm:$0xf0]  ;;  %v894_v57 = vld [vmem:[%s1280_s5 + $0x8] sm:$0xf0]  ;;  %v1042_v58 = vld [vmem:[%s1280_s5 + $0x84] sm:$0xf]  ;;  %v893_v60 = vor.u32 %v1027_v52, %v892_v51 }
  0x52   : > { %677 = vmatpush.bf16.msra.mxu3 %v985_v30  ;;  %v958_v59 = vld [vmem:[%s1280_s5 + $0x88] sm:$0xf0]  ;;  %v884_v61 = vld [vmem:[%s1385_s0] sm:$0xf]  ;;  %v1025_v62 = vld [vmem:[%s1385_s0 + $0x4] sm:$0xf0]  ;;  %v957_v63 = vor.u32 %v1043_v55, %v956_v53  ;;  %v897_v0 = vor.u32 %v1026_v56, %v894_v57 }
  0x53   : > { %v1024_v1 = vld [vmem:[%s1385_s0 + $0x4] sm:$0xf]  ;;  %v886_v2 = vld [vmem:[%s1385_s0 + $0x8] sm:$0xf0]  ;;  %v961_v3 = vor.u32 %v1042_v58, %v958_v59  ;;  %v885_v4 = vor.u32 %v1025_v62, %v884_v61  ;;  %s1397_s20 = smov (!%p409_p11, %s881_s20), 3  ;;  %s1058_s12 = sshll.u32 (%p1194_p6), %s1129_s14, 3 }
  0x54   : > { %636 = vmatpush.bf16.msra.mxu0 %v909_v36  ;;  %v889_v5 = vor.u32 %v1024_v1, %v886_v2  ;;  %s411_s25 = scalar_lea.vmem %s1387_s2, %s1397_s20  ;;  %s728_s30 = scalar_lea.vmem (%p1194_p6), %s1388_s3, %s1058_s12 }
  0x55   : > { %650 = vmatpush.bf16.msra.mxu1 %v973_v37  ;;  %664 = vmatpush.bf16.msra.mxu2 %v913_v38  ;;  %v702_v8 = vld [vmem:[%s411_s25] sm:$0x3] }
  0x56   : > { %678 = vmatpush.bf16.msra.mxu3 %v977_v42  ;;  %v704_v10 = vperm.slane %v702_v8, 0  ;;  %v705_v12 = vperm.slane %v702_v8, 1 }
  0x58   : > { %637 = vmatpush.bf16.msra.mxu0 %v901_v48 }
  0x59   : > { %651 = vmatpush.bf16.msra.mxu1 %v965_v49  ;;  %665 = vmatpush.bf16.msra.mxu2 %v905_v50 }
  0x5a   : > { %679 = vmatpush.bf16.msra.mxu3 %v969_v54 }
  0x5c   : > { %638 = vmatpush.bf16.msra.mxu0 %v893_v60 }
  0x5d   : > { %652 = vmatpush.bf16.msra.mxu1 %v957_v63  ;;  %666 = vmatpush.bf16.msra.mxu2 %v897_v0 }
  0x5e   : > { %680 = vmatpush.bf16.msra.mxu3 %v961_v3 }
  0x5f   : > { %639 = vmatmul.bf16.vlgmr.msra.gmra.mxu0 %v885_v4 }
  0x60   : > { %653 = vmatmul.bf16.vlgmr.msra.gmra.mxu1 %v889_v5  ;;  %667 = vmatmul.bf16.vlgmr.msra.gmra.mxu2 %v885_v4 }
  0x61   : > { %681 = vmatmul.bf16.vlgmr.msra.gmra.mxu3 %v889_v5 }
  0xdc   : > { %v640_v6 = vpop.f32.mrf.mxu0 }
  0xdd   : > { %v654_v7 = vpop.f32.mrf.mxu1 }
  0xde   : > { %v655_v9 = vadd.f32 %v654_v7, %v640_v6 }
  0xe0   : > { %v708_v14 = vadd.f32 %v704_v10, %v655_v9 }
  0xe3   : > { %v668_v11 = vpop.f32.mrf.mxu2 }
  0xe4   : > { %v682_v13 = vpop.f32.mrf.mxu3  ;;  %v642_v17 = vpop.f32.mrf.mxu0 }
  0xe5   : > { %v683_v15 = vadd.f32 %v682_v13, %v668_v11  ;;  %v656_v18 = vpop.f32.mrf.mxu1 }
  0xe6   : > { %v657_v20 = vadd.f32 %v656_v18, %v642_v17 }
  0xe7   : > { %v709_v16 = vadd.f32 %v705_v12, %v683_v15 }
  0xe8   : > { %v710_v24 = vadd.f32 %v704_v10, %v657_v20 }
  0xe9   : > { %v712_v19 = vpack.c.bf16 %v709_v16, %v708_v14 }
  0xeb   : > { %714 = vst [vmem:[%s393_s27] sm:$0xff] %v712_v19  ;;  %v670_v21 = vpop.f32.mrf.mxu2 }
  0xec   : > { %v684_v22 = vpop.f32.mrf.mxu3 }
  0xed   : > { %v685_v23 = vadd.f32 %v684_v22, %v670_v21 }
  0xef   : > { %v711_v25 = vadd.f32 %v705_v12, %v685_v23  ;;  %722 = sbr.rel (!%p1194_p6) target bundleno = 252 (0xfc), region = 82 }
  0xf1   : > { %v713_v26 = vpack.c.bf16 %v711_v25, %v710_v24 }
  0xf2   : > { %v759_v27 = vld [vmem:[%s393_s27] sm:$0xff] (%p1194_p6) }
  0xf3   : > { %715 = vst [vmem:[%s393_s27 + $0x8] sm:$0xff] %v713_v26 }
  0xf4   : > { %760 = vst [vmem:[%s728_s30] sm:$0xff] %v759_v27 }
  0xfa   : > { %v761_v28 = vld [vmem:[%s393_s27 + $0x8] sm:$0xff] }
  0xfb   : > { %762 = vst [vmem:[%s728_s30 + $0x10] sm:$0xff] %v761_v28 }
  0xfc PF: > { %s13_s16 = sadd.s32 1, %s1137_s16   ;;  %s1390_s12 = smov %s1125_s13 }
  0xfd   : > { %p10_p12 = scmp.ge.s32.totalorder %s13_s16, 4   ;;  %s1391_s13 = smov %s1199_s22 }
  0xfe   : > { %s1392_s14 = smov %s1133_s15  ;;  %s1393_s15 = smov %s1395_s17 }
  0xff   :  { %12 = sbr.rel (!%p10_p12) target bundleno = 3 (0x3), region = 157 }

// kernel: _resnet_forward.26
= control target key start
LH: loop header
LB: loop body
LE: loop exit
PB: predicated region body
PF: predicated region fallthrough
CT: control target
= control target key end

     0   :  { %s3169_s0 = inlined_call_operand.vmem [shape: bf16[16,4608], index: 0, kind: input, shape index: {}]   ;;  %s3170_s1 = inlined_call_operand.vmem [shape: bf16[4608,512], index: 1, kind: input, shape index: {}]   ;;  %s3171_s2 = inlined_call_operand.vmem [shape: f32[1,512], index: 2, kind: input, shape index: {}]   ;;  %s3172_s3 = inlined_call_operand.vmem [shape: bf16[16,512], index: 3, kind: input, shape index: {}]   ;;  %s3173_s4 = inlined_call_operand.vmem [shape: bf16[16,512], index: 4, kind: output, shape index: {}]  }
   0x1   :  { %3176 = sst [smem:[#allocation9_spill]] %s3169_s0 }
   0x2   :  { %s2538_s15 = smov 0   ;;  %s2540_s16 = smov 0  }
   0x3   :  { %s2542_s17 = smov 0   ;;  %s2544_s18 = smov 0  }
   0x4   :  { %s2546_s19 = smov 0   ;;  %s2548_s20 = smov 0  }
   0x5   :  { %s2550_s21 = smov 0   ;;  %s2552_s22 = smov 0  }
   0x6   :  { %s2554_s23 = smov 0   ;;  %s2556_s24 = smov 0  }
   0x7   :  { %s2558_s25 = smov 0  }
   0x8 LB: > { %s1795_s26 = sadd.s32 4294967295, %s2510_s25   ;;  %s26_s27 = sadd.s32 1, %s2502_s23  ;;  %s2510_s25 = sphi %s2558_s25, %s14_s25   ;;  %s2506_s24 = sphi %s2556_s24, %s3195_s24   ;;  %s2502_s23 = sphi %s2554_s23, %s3194_s23   ;;  %s2498_s22 = sphi %s2552_s22, %s3193_s22   ;;  %s2494_s21 = sphi %s2550_s21, %s3192_s21   ;;  %s2490_s20 = sphi %s2548_s20, %s3191_s20   ;;  %s2486_s19 = sphi %s2546_s19, %s3190_s19   ;;  %s2482_s18 = sphi %s2544_s18, %s3189_s18   ;;  %s2478_s17 = sphi %s2542_s17, %s3188_s17   ;;  %s2474_s16 = sphi %s2540_s16, %s3187_s16   ;;  %s2470_s15 = sphi %s2538_s15, %s3186_s15  }
   0x9   : > { %p27_p0 = scmp.ge.s32.totalorder %s26_s27, 6  ;;  %s29_s28 = sadd.s32 1, %s2506_s24 }
   0xa   : > { %s42_s29 = sadd.s32 1, %s2490_s20  ;;  %p49_p1 = scmp.ne.s32.totalorder %s2490_s20, %s2486_s19 }
   0xb   : > { %s3197_s27 = smov (%p27_p0, %s26_s27), 0  ;;  %s3199_s28 = smov (!%p27_p0, %s29_s28), %s2506_s24 }
   0xc   : > { %3177 = sst [smem:[#allocation7_spill]] %s3197_s27  ;;  %s38_s30 = ssub.s32 %s2502_s23, %s3197_s27 }
   0xd   : > { %p50_p2 = scmp.eq.s32.totalorder %s2510_s25, 0  ;;  %p31_p3 = scmp.ge.s32.totalorder %s3199_s28, 2 }
   0xe   : > { %p40_p4 = scmp.eq.s32.totalorder %s38_s30, 0  ;;  %s70_s6 = sadd.s32 1, %s2482_s18 }
   0xf   : > { %p2607_p5 = por %p50_p2, %p49_p1  ;;  %s3201_s28 = smov (%p31_p3, %s3199_s28), 0 }
  0x10   : > { %3179 = sst [smem:[#allocation8_spill]] %s3201_s28  ;;  %s66_s8 = ssub.s32 %s2506_s24, %s3201_s28 }
  0x11   : > { %s2615_s7 = scalar_select %p40_p4, %s2490_s20, %s42_s29  }
  0x12   : > { %p77_p6 = scmp.ne.s32.totalorder %s2482_s18, %s2478_s17  ;;  %s67_s9 = sor.u32 %s66_s8, %s38_s30 }
  0x13   : > { %p122_p7 = scmp.eq.s32.totalorder %s66_s8, 0  ;;  %p68_p8 = scmp.eq.s32.totalorder %s67_s9, 0 }
  0x14   : > { %p2623_p9 = por %p77_p6, %p50_p2  ;;  %s124_s11 = sadd.s32 1, %s2474_s16 }
  0x15   : > { %p131_p10 = scmp.ne.s32.totalorder %s2474_s16, %s2470_s15  ;;  %p163_p12 = scmp.eq.s32.totalorder %s1795_s26, 11 }
  0x16   : > { %s2631_s12 = scalar_select %p68_p8, %s2482_s18, %s70_s6  }
  0x17   : > { %s2634_s13 = scalar_select %p122_p7, %s2474_s16, %s124_s11  }
  0x18   : > { %p2638_p11 = por %p131_p10, %p50_p2  ;;  %p2642_p13 = por %p163_p12, %p131_p10 }
  0x19   : > { %p1798_p0 = scmp.ge.s32.totalorder %s2510_s25, 12 }
  0x1b   : > { %185 = sbr.rel (%p1798_p0) target bundleno = 157 (0x9d), region = 16 }
  0x20   : > { %188 = sbr.rel (!%p2607_p5) target bundleno = 47 (0x2f), region = 20  ;;  %s190_s30 = sand.u32 (%p2607_p5), 1, %s2490_s20  }
  0x21   : > { %s2225_s6 = smul.u32 (%p2607_p5), 24, %s2502_s23  ;;  %s3183_s0 = sld [smem:[#allocation9_spill]] (%p2607_p5) }
  0x22   : > { %s2331_s8 = smul.u32 (%p2607_p5), 48, %s190_s30 }
  0x24   : > { %s192_s26 = scalar_lea.vmem (%p2607_p5), [#allocation3], %s2331_s8 }
  0x27   : > { %s198_s28 = scalar_lea.vmem %s3183_s0, %s2225_s6 }
  0x28   : > { %v211_v0 = vld [vmem:[%s198_s28] sm:$0xff]  ;;  %v213_v1 = vld [vmem:[%s198_s28 + $0x8] sm:$0xff]  ;;  %v215_v2 = vld [vmem:[%s198_s28 + $0x10] sm:$0xff] }
  0x29   : > { %212 = vst [vmem:[%s192_s26] sm:$0xff] %v211_v0  ;;  %v217_v3 = vld [vmem:[%s198_s28 + $0x90] sm:$0xff]  ;;  %v219_v4 = vld [vmem:[%s198_s28 + $0x98] sm:$0xff]  ;;  %v221_v5 = vld [vmem:[%s198_s28 + $0xa0] sm:$0xff] }
  0x2a   : > { %214 = vst [vmem:[%s192_s26 + $0x8] sm:$0xff] %v213_v1 }
  0x2b   : > { %216 = vst [vmem:[%s192_s26 + $0x10] sm:$0xff] %v215_v2 }
  0x2c   : > { %218 = vst [vmem:[%s192_s26 + $0x18] sm:$0xff] %v217_v3 }
  0x2d   : > { %220 = vst [vmem:[%s192_s26 + $0x20] sm:$0xff] %v219_v4 }
  0x2e   : > { %222 = vst [vmem:[%s192_s26 + $0x28] sm:$0xff] %v221_v5 }
  0x2f PF: > { %228 = sbr.rel (!%p2623_p9) target bundleno = 151 (0x97), region = 43  ;;  %s230_s5 = sand.u32 (%p2623_p9), 1, %s2482_s18  }
  0x30   : > { %s2332_s30 = smul.u32 (%p2623_p9), 768, %s230_s5  ;;  %s1800_s6 = sshll.u32 (%p2623_p9), %s2506_s24, 1 }
  0x31   : > { %s2226_s8 = smul.u32 (%p2623_p9), 384, %s2502_s23 }
  0x32   : > { %s2667_s10 = scalar_lea.vmem (%p2623_p9), [#allocation4], %s2332_s30 }
  0x33   : > { %s236_s9 = sadd.s32 (%p2623_p9), %s2226_s8, %s1800_s6 }
  0x34   : > { %s1802_s11 = sshll.u32 %s236_s9, 2 }
  0x35   : > { %s2662_s28 = scalar_lea.vmem %s3170_s1, %s1802_s11 }
  0x36   : > { %v457_v6 = vld [vmem:[%s2662_s28] sm:$0xff]  ;;  %v459_v7 = vld [vmem:[%s2662_s28 + $0x10] sm:$0xff] }
  0x37   : > { %v461_v8 = vld [vmem:[%s2662_s28 + $0x20] sm:$0xff]  ;;  %458 = vst [vmem:[%s2667_s10] sm:$0xff] %v457_v6  ;;  %v463_v9 = vld [vmem:[%s2662_s28 + $0x30] sm:$0xff] }
  0x38   : > { %460 = vst [vmem:[%s2667_s10 + $0x8] sm:$0xff] %v459_v7  ;;  %v465_v10 = vld [vmem:[%s2662_s28 + $0x40] sm:$0xff]  ;;  %v467_v11 = vld [vmem:[%s2662_s28 + $0x50] sm:$0xff] }
  0x39   : > { %462 = vst [vmem:[%s2667_s10 + $0x10] sm:$0xff] %v461_v8  ;;  %v469_v12 = vld [vmem:[%s2662_s28 + $0x60] sm:$0xff]  ;;  %v471_v13 = vld [vmem:[%s2662_s28 + $0x70] sm:$0xff] }
  0x3a   : > { %464 = vst [vmem:[%s2667_s10 + $0x18] sm:$0xff] %v463_v9  ;;  %v473_v14 = vld [vmem:[%s2662_s28 + $0x80] sm:$0xff]  ;;  %v475_v15 = vld [vmem:[%s2662_s28 + $0x90] sm:$0xff] }
  0x3b   : > { %466 = vst [vmem:[%s2667_s10 + $0x20] sm:$0xff] %v465_v10  ;;  %v477_v16 = vld [vmem:[%s2662_s28 + $0xa0] sm:$0xff]  ;;  %v479_v17 = vld [vmem:[%s2662_s28 + $0xb0] sm:$0xff] }
  0x3c   : > { %468 = vst [vmem:[%s2667_s10 + $0x28] sm:$0xff] %v467_v11  ;;  %v481_v18 = vld [vmem:[%s2662_s28 + $0xc0] sm:$0xff]  ;;  %v483_v19 = vld [vmem:[%s2662_s28 + $0xd0] sm:$0xff] }
  0x3d   : > { %470 = vst [vmem:[%s2667_s10 + $0x30] sm:$0xff] %v469_v12  ;;  %v485_v20 = vld [vmem:[%s2662_s28 + $0xe0] sm:$0xff]  ;;  %v487_v21 = vld [vmem:[%s2662_s28 + $0xf0] sm:$0xff] }
  0x3e   : > { %472 = vst [vmem:[%s2667_s10 + $0x38] sm:$0xff] %v471_v13  ;;  %v489_v22 = vld [vmem:[%s2662_s28 + $0x100] sm:$0xff]  ;;  %v491_v23 = vld [vmem:[%s2662_s28 + $0x110] sm:$0xff] }
  0x3f   : > { %474 = vst [vmem:[%s2667_s10 + $0x40] sm:$0xff] %v473_v14  ;;  %v493_v24 = vld [vmem:[%s2662_s28 + $0x120] sm:$0xff]  ;;  %v495_v25 = vld [vmem:[%s2662_s28 + $0x130] sm:$0xff] }
  0x40   : > { %476 = vst [vmem:[%s2667_s10 + $0x48] sm:$0xff] %v475_v15  ;;  %v497_v26 = vld [vmem:[%s2662_s28 + $0x140] sm:$0xff]  ;;  %v499_v27 = vld [vmem:[%s2662_s28 + $0x150] sm:$0xff] }
  0x41   : > { %478 = vst [vmem:[%s2667_s10 + $0x50] sm:$0xff] %v477_v16  ;;  %v501_v28 = vld [vmem:[%s2662_s28 + $0x160] sm:$0xff]  ;;  %v503_v29 = vld [vmem:[%s2662_s28 + $0x170] sm:$0xff] }
  0x42   : > { %480 = vst [vmem:[%s2667_s10 + $0x58] sm:$0xff] %v479_v17  ;;  %v505_v30 = vld [vmem:[%s2662_s28 + $0x180] sm:$0xff]  ;;  %v507_v31 = vld [vmem:[%s2662_s28 + $0x190] sm:$0xff] }
  0x43   : > { %482 = vst [vmem:[%s2667_s10 + $0x60] sm:$0xff] %v481_v18  ;;  %v509_v32 = vld [vmem:[%s2662_s28 + $0x1a0] sm:$0xff]  ;;  %v511_v33 = vld [vmem:[%s2662_s28 + $0x1b0] sm:$0xff] }
  0x44   : > { %484 = vst [vmem:[%s2667_s10 + $0x68] sm:$0xff] %v483_v19  ;;  %v513_v34 = vld [vmem:[%s2662_s28 + $0x1c0] sm:$0xff]  ;;  %v515_v35 = vld [vmem:[%s2662_s28 + $0x1d0] sm:$0xff] }
  0x45   : > { %486 = vst [vmem:[%s2667_s10 + $0x70] sm:$0xff] %v485_v20  ;;  %v517_v36 = vld [vmem:[%s2662_s28 + $0x1e0] sm:$0xff]  ;;  %v519_v37 = vld [vmem:[%s2662_s28 + $0x1f0] sm:$0xff] }
  0x46   : > { %488 = vst [vmem:[%s2667_s10 + $0x78] sm:$0xff] %v487_v21  ;;  %v521_v38 = vld [vmem:[%s2662_s28 + $0x200] sm:$0xff]  ;;  %v523_v39 = vld [vmem:[%s2662_s28 + $0x210] sm:$0xff] }
  0x47   : > { %490 = vst [vmem:[%s2667_s10 + $0x80] sm:$0xff] %v489_v22  ;;  %v525_v40 = vld [vmem:[%s2662_s28 + $0x220] sm:$0xff]  ;;  %v527_v41 = vld [vmem:[%s2662_s28 + $0x230] sm:$0xff] }
  0x48   : > { %492 = vst [vmem:[%s2667_s10 + $0x88] sm:$0xff] %v491_v23  ;;  %v529_v42 = vld [vmem:[%s2662_s28 + $0x240] sm:$0xff]  ;;  %v531_v43 = vld [vmem:[%s2662_s28 + $0x250] sm:$0xff] }
  0x49   : > { %494 = vst [vmem:[%s2667_s10 + $0x90] sm:$0xff] %v493_v24  ;;  %v533_v44 = vld [vmem:[%s2662_s28 + $0x260] sm:$0xff]  ;;  %v535_v45 = vld [vmem:[%s2662_s28 + $0x270] sm:$0xff] }
  0x4a   : > { %496 = vst [vmem:[%s2667_s10 + $0x98] sm:$0xff] %v495_v25  ;;  %v537_v46 = vld [vmem:[%s2662_s28 + $0x280] sm:$0xff]  ;;  %v539_v47 = vld [vmem:[%s2662_s28 + $0x290] sm:$0xff] }
  0x4b   : > { %498 = vst [vmem:[%s2667_s10 + $0xa0] sm:$0xff] %v497_v26  ;;  %v541_v48 = vld [vmem:[%s2662_s28 + $0x2a0] sm:$0xff]  ;;  %v543_v49 = vld [vmem:[%s2662_s28 + $0x2b0] sm:$0xff] }
  0x4c   : > { %500 = vst [vmem:[%s2667_s10 + $0xa8] sm:$0xff] %v499_v27  ;;  %v545_v50 = vld [vmem:[%s2662_s28 + $0x2c0] sm:$0xff]  ;;  %v547_v51 = vld [vmem:[%s2662_s28 + $0x2d0] sm:$0xff] }
  0x4d   : > { %502 = vst [vmem:[%s2667_s10 + $0xb0] sm:$0xff] %v501_v28  ;;  %v549_v52 = vld [vmem:[%s2662_s28 + $0x2e0] sm:$0xff]  ;;  %v551_v53 = vld [vmem:[%s2662_s28 + $0x2f0] sm:$0xff] }
  0x4e   : > { %504 = vst [vmem:[%s2667_s10 + $0xb8] sm:$0xff] %v503_v29  ;;  %v553_v54 = vld [vmem:[%s2662_s28 + $0x300] sm:$0xff]  ;;  %v555_v55 = vld [vmem:[%s2662_s28 + $0x310] sm:$0xff] }
  0x4f   : > { %506 = vst [vmem:[%s2667_s10 + $0xc0] sm:$0xff] %v505_v30  ;;  %v557_v56 = vld [vmem:[%s2662_s28 + $0x320] sm:$0xff]  ;;  %v559_v57 = vld [vmem:[%s2662_s28 + $0x330] sm:$0xff] }
  0x50   : > { %508 = vst [vmem:[%s2667_s10 + $0xc8] sm:$0xff] %v507_v31  ;;  %v561_v58 = vld [vmem:[%s2662_s28 + $0x340] sm:$0xff]  ;;  %v563_v59 = vld [vmem:[%s2662_s28 + $0x350] sm:$0xff] }
  0x51   : > { %510 = vst [vmem:[%s2667_s10 + $0xd0] sm:$0xff] %v509_v32  ;;  %v565_v60 = vld [vmem:[%s2662_s28 + $0x360] sm:$0xff]  ;;  %v567_v61 = vld [vmem:[%s2662_s28 + $0x370] sm:$0xff] }
  0x52   : > { %512 = vst [vmem:[%s2667_s10 + $0xd8] sm:$0xff] %v511_v33  ;;  %v569_v62 = vld [vmem:[%s2662_s28 + $0x380] sm:$0xff]  ;;  %v571_v63 = vld [vmem:[%s2662_s28 + $0x390] sm:$0xff] }
  0x53   : > { %514 = vst [vmem:[%s2667_s10 + $0xe0] sm:$0xff] %v513_v34  ;;  %v573_v0 = vld [vmem:[%s2662_s28 + $0x3a0] sm:$0xff]  ;;  %v575_v1 = vld [vmem:[%s2662_s28 + $0x3b0] sm:$0xff] }
  0x54   : > { %516 = vst [vmem:[%s2667_s10 + $0xe8] sm:$0xff] %v515_v35  ;;  %v577_v2 = vld [vmem:[%s2662_s28 + $0x3c0] sm:$0xff]  ;;  %v579_v3 = vld [vmem:[%s2662_s28 + $0x3d0] sm:$0xff] }
  0x55   : > { %518 = vst [vmem:[%s2667_s10 + $0xf0] sm:$0xff] %v517_v36  ;;  %v581_v4 = vld [vmem:[%s2662_s28 + $0x3e0] sm:$0xff]  ;;  %v583_v5 = vld [vmem:[%s2662_s28 + $0x3f0] sm:$0xff] }
  0x56   : > { %520 = vst [vmem:[%s2667_s10 + $0xf8] sm:$0xff] %v519_v37  ;;  %v585_v6 = vld [vmem:[%s2662_s28 + $0x400] sm:$0xff]  ;;  %v587_v7 = vld [vmem:[%s2662_s28 + $0x410] sm:$0xff] }
  0x57   : > { %522 = vst [vmem:[%s2667_s10 + $0x100] sm:$0xff] %v521_v38  ;;  %v589_v8 = vld [vmem:[%s2662_s28 + $0x420] sm:$0xff]  ;;  %v591_v9 = vld [vmem:[%s2662_s28 + $0x430] sm:$0xff] }
  0x58   : > { %524 = vst [vmem:[%s2667_s10 + $0x108] sm:$0xff] %v523_v39  ;;  %v593_v10 = vld [vmem:[%s2662_s28 + $0x440] sm:$0xff]  ;;  %v595_v11 = vld [vmem:[%s2662_s28 + $0x450] sm:$0xff] }
  0x59   : > { %526 = vst [vmem:[%s2667_s10 + $0x110] sm:$0xff] %v525_v40  ;;  %v597_v12 = vld [vmem:[%s2662_s28 + $0x460] sm:$0xff]  ;;  %v599_v13 = vld [vmem:[%s2662_s28 + $0x470] sm:$0xff] }
  0x5a   : > { %528 = vst [vmem:[%s2667_s10 + $0x118] sm:$0xff] %v527_v41  ;;  %v601_v14 = vld [vmem:[%s2662_s28 + $0x480] sm:$0xff]  ;;  %v603_v15 = vld [vmem:[%s2662_s28 + $0x490] sm:$0xff] }
  0x5b   : > { %530 = vst [vmem:[%s2667_s10 + $0x120] sm:$0xff] %v529_v42  ;;  %v605_v16 = vld [vmem:[%s2662_s28 + $0x4a0] sm:$0xff]  ;;  %v607_v17 = vld [vmem:[%s2662_s28 + $0x4b0] sm:$0xff] }
  0x5c   : > { %532 = vst [vmem:[%s2667_s10 + $0x128] sm:$0xff] %v531_v43  ;;  %v609_v18 = vld [vmem:[%s2662_s28 + $0x4c0] sm:$0xff]  ;;  %v611_v19 = vld [vmem:[%s2662_s28 + $0x4d0] sm:$0xff] }
  0x5d   : > { %534 = vst [vmem:[%s2667_s10 + $0x130] sm:$0xff] %v533_v44  ;;  %v613_v20 = vld [vmem:[%s2662_s28 + $0x4e0] sm:$0xff]  ;;  %v615_v21 = vld [vmem:[%s2662_s28 + $0x4f0] sm:$0xff] }
  0x5e   : > { %536 = vst [vmem:[%s2667_s10 + $0x138] sm:$0xff] %v535_v45  ;;  %v617_v22 = vld [vmem:[%s2662_s28 + $0x500] sm:$0xff]  ;;  %v619_v23 = vld [vmem:[%s2662_s28 + $0x510] sm:$0xff] }
  0x5f   : > { %538 = vst [vmem:[%s2667_s10 + $0x140] sm:$0xff] %v537_v46  ;;  %v621_v24 = vld [vmem:[%s2662_s28 + $0x520] sm:$0xff]  ;;  %v623_v25 = vld [vmem:[%s2662_s28 + $0x530] sm:$0xff] }
  0x60   : > { %540 = vst [vmem:[%s2667_s10 + $0x148] sm:$0xff] %v539_v47  ;;  %v625_v26 = vld [vmem:[%s2662_s28 + $0x540] sm:$0xff]  ;;  %v627_v27 = vld [vmem:[%s2662_s28 + $0x550] sm:$0xff] }
  0x61   : > { %542 = vst [vmem:[%s2667_s10 + $0x150] sm:$0xff] %v541_v48  ;;  %v629_v28 = vld [vmem:[%s2662_s28 + $0x560] sm:$0xff]  ;;  %v631_v29 = vld [vmem:[%s2662_s28 + $0x570] sm:$0xff] }
  0x62   : > { %544 = vst [vmem:[%s2667_s10 + $0x158] sm:$0xff] %v543_v49  ;;  %v633_v30 = vld [vmem:[%s2662_s28 + $0x580] sm:$0xff]  ;;  %v635_v31 = vld [vmem:[%s2662_s28 + $0x590] sm:$0xff] }
  0x63   : > { %546 = vst [vmem:[%s2667_s10 + $0x160] sm:$0xff] %v545_v50  ;;  %v637_v32 = vld [vmem:[%s2662_s28 + $0x5a0] sm:$0xff]  ;;  %v639_v33 = vld [vmem:[%s2662_s28 + $0x5b0] sm:$0xff] }
  0x64   : > { %548 = vst [vmem:[%s2667_s10 + $0x168] sm:$0xff] %v547_v51  ;;  %v641_v34 = vld [vmem:[%s2662_s28 + $0x5c0] sm:$0xff]  ;;  %v643_v35 = vld [vmem:[%s2662_s28 + $0x5d0] sm:$0xff] }
  0x65   : > { %550 = vst [vmem:[%s2667_s10 + $0x170] sm:$0xff] %v549_v52  ;;  %v645_v36 = vld [vmem:[%s2662_s28 + $0x5e0] sm:$0xff]  ;;  %v647_v37 = vld [vmem:[%s2662_s28 + $0x5f0] sm:$0xff] }
  0x66   : > { %552 = vst [vmem:[%s2667_s10 + $0x178] sm:$0xff] %v551_v53 }
  0x67   : > { %554 = vst [vmem:[%s2667_s10 + $0x180] sm:$0xff] %v553_v54 }
  0x68   : > { %556 = vst [vmem:[%s2667_s10 + $0x188] sm:$0xff] %v555_v55 }
  0x69   : > { %558 = vst [vmem:[%s2667_s10 + $0x190] sm:$0xff] %v557_v56 }
  0x6a   : > { %560 = vst [vmem:[%s2667_s10 + $0x198] sm:$0xff] %v559_v57 }
  0x6b   : > { %562 = vst [vmem:[%s2667_s10 + $0x1a0] sm:$0xff] %v561_v58 }
  0x6c   : > { %564 = vst [vmem:[%s2667_s10 + $0x1a8] sm:$0xff] %v563_v59 }
  0x6d   : > { %566 = vst [vmem:[%s2667_s10 + $0x1b0] sm:$0xff] %v565_v60 }
  0x6e   : > { %568 = vst [vmem:[%s2667_s10 + $0x1b8] sm:$0xff] %v567_v61 }
  0x6f   : > { %570 = vst [vmem:[%s2667_s10 + $0x1c0] sm:$0xff] %v569_v62 }
  0x70   : > { %572 = vst [vmem:[%s2667_s10 + $0x1c8] sm:$0xff] %v571_v63 }
  0x71   : > { %574 = vst [vmem:[%s2667_s10 + $0x1d0] sm:$0xff] %v573_v0 }
  0x72   : > { %576 = vst [vmem:[%s2667_s10 + $0x1d8] sm:$0xff] %v575_v1 }
  0x73   : > { %578 = vst [vmem:[%s2667_s10 + $0x1e0] sm:$0xff] %v577_v2 }
  0x74   : > { %580 = vst [vmem:[%s2667_s10 + $0x1e8] sm:$0xff] %v579_v3 }
  0x75   : > { %582 = vst [vmem:[%s2667_s10 + $0x1f0] sm:$0xff] %v581_v4 }
  0x76   : > { %584 = vst [vmem:[%s2667_s10 + $0x1f8] sm:$0xff] %v583_v5 }
  0x77   : > { %586 = vst [vmem:[%s2667_s10 + $0x200] sm:$0xff] %v585_v6 }
  0x78   : > { %588 = vst [vmem:[%s2667_s10 + $0x208] sm:$0xff] %v587_v7 }
  0x79   : > { %590 = vst [vmem:[%s2667_s10 + $0x210] sm:$0xff] %v589_v8 }
  0x7a   : > { %592 = vst [vmem:[%s2667_s10 + $0x218] sm:$0xff] %v591_v9 }
  0x7b   : > { %594 = vst [vmem:[%s2667_s10 + $0x220] sm:$0xff] %v593_v10 }
  0x7c   : > { %596 = vst [vmem:[%s2667_s10 + $0x228] sm:$0xff] %v595_v11 }
  0x7d   : > { %598 = vst [vmem:[%s2667_s10 + $0x230] sm:$0xff] %v597_v12 }
  0x7e   : > { %600 = vst [vmem:[%s2667_s10 + $0x238] sm:$0xff] %v599_v13 }
  0x7f   : > { %602 = vst [vmem:[%s2667_s10 + $0x240] sm:$0xff] %v601_v14 }
  0x80   : > { %604 = vst [vmem:[%s2667_s10 + $0x248] sm:$0xff] %v603_v15 }
  0x81   : > { %606 = vst [vmem:[%s2667_s10 + $0x250] sm:$0xff] %v605_v16 }
  0x82   : > { %608 = vst [vmem:[%s2667_s10 + $0x258] sm:$0xff] %v607_v17 }
  0x83   : > { %610 = vst [vmem:[%s2667_s10 + $0x260] sm:$0xff] %v609_v18 }
  0x84   : > { %612 = vst [vmem:[%s2667_s10 + $0x268] sm:$0xff] %v611_v19 }
  0x85   : > { %614 = vst [vmem:[%s2667_s10 + $0x270] sm:$0xff] %v613_v20 }
  0x86   : > { %616 = vst [vmem:[%s2667_s10 + $0x278] sm:$0xff] %v615_v21 }
  0x87   : > { %618 = vst [vmem:[%s2667_s10 + $0x280] sm:$0xff] %v617_v22 }
  0x88   : > { %620 = vst [vmem:[%s2667_s10 + $0x288] sm:$0xff] %v619_v23 }
  0x89   : > { %622 = vst [vmem:[%s2667_s10 + $0x290] sm:$0xff] %v621_v24 }
  0x8a   : > { %624 = vst [vmem:[%s2667_s10 + $0x298] sm:$0xff] %v623_v25 }
  0x8b   : > { %626 = vst [vmem:[%s2667_s10 + $0x2a0] sm:$0xff] %v625_v26 }
  0x8c   : > { %628 = vst [vmem:[%s2667_s10 + $0x2a8] sm:$0xff] %v627_v27 }
  0x8d   : > { %630 = vst [vmem:[%s2667_s10 + $0x2b0] sm:$0xff] %v629_v28 }
  0x8e   : > { %632 = vst [vmem:[%s2667_s10 + $0x2b8] sm:$0xff] %v631_v29 }
  0x8f   : > { %634 = vst [vmem:[%s2667_s10 + $0x2c0] sm:$0xff] %v633_v30 }
  0x90   : > { %636 = vst [vmem:[%s2667_s10 + $0x2c8] sm:$0xff] %v635_v31 }
  0x91   : > { %638 = vst [vmem:[%s2667_s10 + $0x2d0] sm:$0xff] %v637_v32 }
  0x92   : > { %640 = vst [vmem:[%s2667_s10 + $0x2d8] sm:$0xff] %v639_v33 }
  0x93   : > { %642 = vst [vmem:[%s2667_s10 + $0x2e0] sm:$0xff] %v641_v34 }
  0x94   : > { %644 = vst [vmem:[%s2667_s10 + $0x2e8] sm:$0xff] %v643_v35 }
  0x95   : > { %646 = vst [vmem:[%s2667_s10 + $0x2f0] sm:$0xff] %v645_v36 }
  0x96   : > { %648 = vst [vmem:[%s2667_s10 + $0x2f8] sm:$0xff] %v647_v37 }
  0x97 PF: > { %662 = sbr.rel (!%p2638_p11) target bundleno = 157 (0x9d), region = 85  ;;  %s664_s0 = sand.u32 (%p2638_p11), 1, %s2474_s16  }
  0x98   : > { %s2227_s27 = sshll.u32 (%p2638_p11), %s2506_s24, 3  ;;  %s1803_s26 = sshll.u32 (%p2638_p11), %s664_s0, 4 }
  0x99   : > { %s672_s6 = scalar_lea.vmem (%p2638_p11), %s3172_s3, %s2227_s27  ;;  %s666_s8 = scalar_lea.vmem (%p2638_p11), [#allocation5], %s1803_s26 }
  0x9a   : > { %v703_v38 = vld [vmem:[%s672_s6] sm:$0xff] (%p2638_p11)  ;;  %v705_v39 = vld [vmem:[%s672_s6 + $0x10] sm:$0xff] (%p2638_p11) }
  0x9b   : > { %704 = vst [vmem:[%s666_s8] sm:$0xff] (%p2638_p11), %v703_v38 }
  0x9c   : > { %706 = vst [vmem:[%s666_s8 + $0x8] sm:$0xff] %v705_v39 }
  0x9d PF: > { %p1806_p1 = scmp.ge.s32.totalorder %s2510_s25, 1  ;;  %p711_p2 = scmp.lt.s32.totalorder %s2510_s25, 13 }
  0x9f   : > { %p712_p3 = pnand %p1806_p1, %p711_p2 }
  0xa0   : > { %s718_s14 = sand.u32 (!%p712_p3), 1, %s2486_s19   ;;  %s725_s9 = sand.u32 (!%p712_p3), 1, %s2478_s17  }
  0xa1   : > { %715 = sbr.rel (%p712_p3) target bundleno = 450 (0x1c2), region = 123  ;;  %s732_s28 = sand.u32 (!%p712_p3), 1, %s2470_s15  }
  0xa2   : > { %s2333_s11 = smul.u32 (!%p712_p3), 48, %s718_s14  ;;  %s2870_s0 = sshll.u32 (!%p712_p3), %s732_s28, 4 }
  0xa3   : > { %s2334_s10 = smul.u32 (!%p712_p3), 768, %s725_s9  ;;  %s1809_s27 = sshll.u32 (!%p712_p3), %s2498_s22, 1 }
  0xa4   : > { %p773_p4 = scmp.lt.s32.totalorder (!%p712_p3), %s1809_s27, 3  ;;  %s2879_s6 = scalar_lea.vmem (!%p712_p3), [#allocation3], %s2333_s11 }
  0xa5   : > { %s2881_s19 = scalar_lea.vmem (!%p712_p3), [#allocation4], %s2334_s10  ;;  %s734_s17 = scalar_lea.vmem (!%p712_p3), [#allocation5], %s2870_s0 }
  0xa6   : > { %s3203_s27 = smov (!%p773_p4, %s1809_s27), 3  ;;  %s2885_s15 = scalar_lea.vmem [#allocation6], %s2870_s0 }
  0xa7   : > { %s775_s30 = scalar_lea.vmem %s3171_s2, %s3203_s27  ;;  %p1810_p5 = scmp.ne.s32.totalorder %s2494_s21, 0 }
  0xa9   : > { %784 = sbr.rel (%p1810_p5) target bundleno = 179 (0xb3), region = 139 }
  0xae   : > { %v2512_v40 = vmov 0.0  }
  0xaf   : > { %785 = vst [vmem:[#allocation2 + $0x10] sm:$0xff] %v2512_v40 }
  0xb0   : > { %786 = vst [vmem:[#allocation2] sm:$0xff] %v2512_v40 }
  0xb1   : > { %787 = vst [vmem:[#allocation2 + $0x18] sm:$0xff] %v2512_v40 }
  0xb2   : > { %788 = vst [vmem:[#allocation2 + $0x8] sm:$0xff] %v2512_v40 }
  0xb3 PF: > { %v1893_v41 = vld [vmem:[%s2881_s19 + $0x70] sm:$0xf]  ;;  %v2249_v42 = vld [vmem:[%s2881_s19 + $0x74] sm:$0xf0]  ;;  %v1885_v52 = vld [vmem:[%s2881_s19 + $0x60] sm:$0xf] }
  0xb4   : > { %v1957_v43 = vld [vmem:[%s2881_s19 + $0xf0] sm:$0xf]  ;;  %v1894_v44 = vor.u32 %v2249_v42, %v1893_v41  ;;  %v2265_v45 = vld [vmem:[%s2881_s19 + $0xf4] sm:$0xf0]  ;;  %v2247_v54 = vld [vmem:[%s2881_s19 + $0x64] sm:$0xf0] }
  0xb5   : > { %v2021_v46 = vld [vmem:[%s2881_s19 + $0x170] sm:$0xf]  ;;  %v2281_v47 = vld [vmem:[%s2881_s19 + $0x174] sm:$0xf0]  ;;  %v1958_v48 = vor.u32 %v2265_v45, %v1957_v43  ;;  %v1949_v55 = vld [vmem:[%s2881_s19 + $0xe0] sm:$0xf]  ;;  %v1886_v57 = vor.u32 %v2247_v54, %v1885_v52 }
  0xb6   : > { %v2022_v49 = vor.u32 %v2281_v47, %v2021_v46  ;;  %v2085_v50 = vld [vmem:[%s2881_s19 + $0x1f0] sm:$0xf]  ;;  %v2297_v51 = vld [vmem:[%s2881_s19 + $0x1f4] sm:$0xf0]  ;;  %1405 = vmatpush.bf16.msra.mxu0 %v1894_v44  ;;  %v2263_v56 = vld [vmem:[%s2881_s19 + $0xe4] sm:$0xf0] }
  0xb7   : > { %v2086_v53 = vor.u32 %v2297_v51, %v2085_v50  ;;  %1419 = vmatpush.bf16.msra.mxu1 %v1958_v48  ;;  %v1950_v58 = vor.u32 %v2263_v56, %v1949_v55  ;;  %v2013_v59 = vld [vmem:[%s2881_s19 + $0x160] sm:$0xf]  ;;  %v2279_v60 = vld [vmem:[%s2881_s19 + $0x164] sm:$0xf0]  ;;  %v1877_v0 = vld [vmem:[%s2881_s19 + $0x50] sm:$0xf] }
  0xb8   : > { %1433 = vmatpush.bf16.msra.mxu2 %v2022_v49  ;;  %v2077_v61 = vld [vmem:[%s2881_s19 + $0x1e0] sm:$0xf]  ;;  %v2014_v62 = vor.u32 %v2279_v60, %v2013_v59  ;;  %v2295_v63 = vld [vmem:[%s2881_s19 + $0x1e4] sm:$0xf0]  ;;  %v2245_v1 = vld [vmem:[%s2881_s19 + $0x54] sm:$0xf0] }
  0xb9   : > { %1447 = vmatpush.bf16.msra.mxu3 %v2086_v53  ;;  %v2078_v2 = vor.u32 %v2295_v63, %v2077_v61  ;;  %v1941_v3 = vld [vmem:[%s2881_s19 + $0xd0] sm:$0xf]  ;;  %v2261_v4 = vld [vmem:[%s2881_s19 + $0xd4] sm:$0xf0]  ;;  %v1878_v6 = vor.u32 %v2245_v1, %v1877_v0  ;;  %v1869_v12 = vld [vmem:[%s2881_s19 + $0x40] sm:$0xf] }
  0xba   : > { %v2005_v5 = vld [vmem:[%s2881_s19 + $0x150] sm:$0xf]  ;;  %1406 = vmatpush.bf16.msra.mxu0 %v1886_v57  ;;  %v2277_v7 = vld [vmem:[%s2881_s19 + $0x154] sm:$0xf0]  ;;  %v1942_v10 = vor.u32 %v2261_v4, %v1941_v3  ;;  %v2243_v13 = vld [vmem:[%s2881_s19 + $0x44] sm:$0xf0] }
  0xbb   : > { %v2069_v8 = vld [vmem:[%s2881_s19 + $0x1d0] sm:$0xf]  ;;  %v2293_v9 = vld [vmem:[%s2881_s19 + $0x1d4] sm:$0xf0]  ;;  %1420 = vmatpush.bf16.msra.mxu1 %v1950_v58  ;;  %v2006_v11 = vor.u32 %v2277_v7, %v2005_v5  ;;  %v1933_v14 = vld [vmem:[%s2881_s19 + $0xc0] sm:$0xf]  ;;  %v1870_v21 = vor.u32 %v2243_v13, %v1869_v12 }
  0xbc   : > { %1434 = vmatpush.bf16.msra.mxu2 %v2014_v62  ;;  %v2070_v15 = vor.u32 %v2293_v9, %v2069_v8  ;;  %v2259_v16 = vld [vmem:[%s2881_s19 + $0xc4] sm:$0xf0]  ;;  %v1997_v17 = vld [vmem:[%s2881_s19 + $0x140] sm:$0xf]  ;;  %v1861_v24 = vld [vmem:[%s2881_s19 + $0x30] sm:$0xf] }
  0xbd   : > { %1448 = vmatpush.bf16.msra.mxu3 %v2078_v2  ;;  %v2275_v18 = vld [vmem:[%s2881_s19 + $0x144] sm:$0xf0]  ;;  %v2061_v19 = vld [vmem:[%s2881_s19 + $0x1c0] sm:$0xf]  ;;  %v1934_v22 = vor.u32 %v2259_v16, %v1933_v14  ;;  %v2241_v25 = vld [vmem:[%s2881_s19 + $0x34] sm:$0xf0] }
  0xbe   : > { %v2291_v20 = vld [vmem:[%s2881_s19 + $0x1c4] sm:$0xf0]  ;;  %1407 = vmatpush.bf16.msra.mxu0 %v1878_v6  ;;  %v1998_v23 = vor.u32 %v2275_v18, %v1997_v17  ;;  %v1925_v26 = vld [vmem:[%s2881_s19 + $0xb0] sm:$0xf]  ;;  %v2257_v28 = vld [vmem:[%s2881_s19 + $0xb4] sm:$0xf0]  ;;  %v1862_v33 = vor.u32 %v2241_v25, %v1861_v24 }
  0xbf   : > { %1421 = vmatpush.bf16.msra.mxu1 %v1942_v10  ;;  %v2062_v27 = vor.u32 %v2291_v20, %v2061_v19  ;;  %v1989_v29 = vld [vmem:[%s2881_s19 + $0x130] sm:$0xf]  ;;  %v2273_v30 = vld [vmem:[%s2881_s19 + $0x134] sm:$0xf0]  ;;  %v1926_v34 = vor.u32 %v2257_v28, %v1925_v26  ;;  %v1853_v36 = vld [vmem:[%s2881_s19 + $0x20] sm:$0xf] }
  0xc0   : > { %1435 = vmatpush.bf16.msra.mxu2 %v2006_v11  ;;  %v2053_v31 = vld [vmem:[%s2881_s19 + $0x1b0] sm:$0xf]  ;;  %v2289_v32 = vld [vmem:[%s2881_s19 + $0x1b4] sm:$0xf0]  ;;  %v1990_v35 = vor.u32 %v2273_v30, %v1989_v29  ;;  %v2239_v37 = vld [vmem:[%s2881_s19 + $0x24] sm:$0xf0] }
  0xc1   : > { %1449 = vmatpush.bf16.msra.mxu3 %v2070_v15  ;;  %v1917_v38 = vld [vmem:[%s2881_s19 + $0xa0] sm:$0xf]  ;;  %v2054_v39 = vor.u32 %v2289_v32, %v2053_v31  ;;  %v2255_v40 = vld [vmem:[%s2881_s19 + $0xa4] sm:$0xf0]  ;;  %v1854_v45 = vor.u32 %v2239_v37, %v1853_v36  ;;  %v1845_v48 = vld [vmem:[%s2881_s19 + $0x10] sm:$0xf] }
  0xc2   : > { %1408 = vmatpush.bf16.msra.mxu0 %v1870_v21  ;;  %v1981_v41 = vld [vmem:[%s2881_s19 + $0x120] sm:$0xf]  ;;  %v2271_v42 = vld [vmem:[%s2881_s19 + $0x124] sm:$0xf0]  ;;  %v1918_v46 = vor.u32 %v2255_v40, %v1917_v38  ;;  %v2237_v49 = vld [vmem:[%s2881_s19 + $0x14] sm:$0xf0] }
  0xc3   : > { %1422 = vmatpush.bf16.msra.mxu1 %v1934_v22  ;;  %v2045_v43 = vld [vmem:[%s2881_s19 + $0x1a0] sm:$0xf]  ;;  %v2287_v44 = vld [vmem:[%s2881_s19 + $0x1a4] sm:$0xf0]  ;;  %v1982_v47 = vor.u32 %v2271_v42, %v1981_v41  ;;  %v1909_v50 = vld [vmem:[%s2881_s19 + $0x90] sm:$0xf]  ;;  %v1846_v57 = vor.u32 %v2237_v49, %v1845_v48 }
  0xc4   : > { %1436 = vmatpush.bf16.msra.mxu2 %v1998_v23  ;;  %v2046_v51 = vor.u32 %v2287_v44, %v2045_v43  ;;  %v2253_v52 = vld [vmem:[%s2881_s19 + $0x94] sm:$0xf0]  ;;  %v1973_v53 = vld [vmem:[%s2881_s19 + $0x110] sm:$0xf]  ;;  %v1837_v58 = vld [vmem:[%s2881_s19] sm:$0xf] }
  0xc5   : > { %1450 = vmatpush.bf16.msra.mxu3 %v2062_v27  ;;  %v2269_v54 = vld [vmem:[%s2881_s19 + $0x114] sm:$0xf0]  ;;  %v2037_v55 = vld [vmem:[%s2881_s19 + $0x190] sm:$0xf]  ;;  %v2235_v59 = vld [vmem:[%s2881_s19 + $0x4] sm:$0xf0]  ;;  %v1910_v60 = vor.u32 %v2253_v52, %v1909_v50 }
  0xc6   : > { %1409 = vmatpush.bf16.msra.mxu0 %v1862_v33  ;;  %v2285_v56 = vld [vmem:[%s2881_s19 + $0x194] sm:$0xf0]  ;;  %v1974_v61 = vor.u32 %v2269_v54, %v1973_v53  ;;  %v1901_v62 = vld [vmem:[%s2881_s19 + $0x80] sm:$0xf]  ;;  %v2251_v63 = vld [vmem:[%s2881_s19 + $0x84] sm:$0xf0]  ;;  %v1838_v8 = vor.u32 %v2235_v59, %v1837_v58 }
  0xc7   : > { %1423 = vmatpush.bf16.msra.mxu1 %v1926_v34  ;;  %v1965_v0 = vld [vmem:[%s2881_s19 + $0x100] sm:$0xf]  ;;  %v2038_v1 = vor.u32 %v2285_v56, %v2037_v55  ;;  %v2267_v2 = vld [vmem:[%s2881_s19 + $0x104] sm:$0xf0]  ;;  %v2149_v5 = vld [vmem:[%s2881_s19 + $0x270] sm:$0xf]  ;;  %v1902_v12 = vor.u32 %v2251_v63, %v1901_v62 }
  0xc8   : > { %1437 = vmatpush.bf16.msra.mxu2 %v1990_v35  ;;  %v2029_v3 = vld [vmem:[%s2881_s19 + $0x180] sm:$0xf]  ;;  %v2283_v4 = vld [vmem:[%s2881_s19 + $0x184] sm:$0xf0]  ;;  %v2313_v6 = vld [vmem:[%s2881_s19 + $0x274] sm:$0xf0]  ;;  %v1966_v13 = vor.u32 %v2267_v2, %v1965_v0 }
  0xc9   : > { %1451 = vmatpush.bf16.msra.mxu3 %v2054_v39  ;;  %v2213_v7 = vld [vmem:[%s2881_s19 + $0x2f0] sm:$0xf]  ;;  %v2329_v9 = vld [vmem:[%s2881_s19 + $0x2f4] sm:$0xf0]  ;;  %v2248_v10 = vld [vmem:[%s2881_s19 + $0x74] sm:$0xf]  ;;  %v2030_v16 = vor.u32 %v2283_v4, %v2029_v3  ;;  %v2150_v17 = vor.u32 %v2313_v6, %v2149_v5 }
  0xca   : > { %1410 = vmatpush.bf16.msra.mxu0 %v1854_v45  ;;  %v1895_v11 = vld [vmem:[%s2881_s19 + $0x78] sm:$0xf0]  ;;  %v2264_v14 = vld [vmem:[%s2881_s19 + $0xf4] sm:$0xf]  ;;  %v2141_v18 = vld [vmem:[%s2881_s19 + $0x260] sm:$0xf]  ;;  %v2214_v20 = vor.u32 %v2329_v9, %v2213_v7 }
  0xcb   : > { %1424 = vmatpush.bf16.msra.mxu1 %v1918_v46  ;;  %v1959_v15 = vld [vmem:[%s2881_s19 + $0xf8] sm:$0xf0]  ;;  %v2311_v19 = vld [vmem:[%s2881_s19 + $0x264] sm:$0xf0]  ;;  %v1898_v21 = vor.u32 %v2248_v10, %v1895_v11  ;;  %v2205_v22 = vld [vmem:[%s2881_s19 + $0x2e0] sm:$0xf] }
  0xcc   : > { %1438 = vmatpush.bf16.msra.mxu2 %v1982_v47  ;;  %v2327_v23 = vld [vmem:[%s2881_s19 + $0x2e4] sm:$0xf0]  ;;  %v2246_v24 = vld [vmem:[%s2881_s19 + $0x64] sm:$0xf]  ;;  %v1962_v25 = vor.u32 %v2264_v14, %v1959_v15  ;;  %v1887_v26 = vld [vmem:[%s2881_s19 + $0x68] sm:$0xf0]  ;;  %v2142_v32 = vor.u32 %v2311_v19, %v2141_v18 }
  0xcd   : > { %1452 = vmatpush.bf16.msra.mxu3 %v2046_v51  ;;  %v2262_v27 = vld [vmem:[%s2881_s19 + $0xe4] sm:$0xf]  ;;  %v1951_v28 = vld [vmem:[%s2881_s19 + $0xe8] sm:$0xf0]  ;;  %v2133_v29 = vld [vmem:[%s2881_s19 + $0x250] sm:$0xf]  ;;  %v2206_v37 = vor.u32 %v2327_v23, %v2205_v22  ;;  %v1890_v38 = vor.u32 %v2246_v24, %v1887_v26 }
  0xce   : > { %1411 = vmatpush.bf16.msra.mxu0 %v1846_v57  ;;  %v1813_v30 = vld [vmem:[%s2879_s6] sm:$0xf]  ;;  %v2231_v31 = vld [vmem:[%s2879_s6 + $0x14] sm:$0xf0]  ;;  %v2244_v39 = vld [vmem:[%s2881_s19 + $0x54] sm:$0xf]  ;;  %v1954_v42 = vor.u32 %v2262_v27, %v1951_v28 }
  0xcf   : > { %1425 = vmatpush.bf16.msra.mxu1 %v1910_v60  ;;  %v2309_v33 = vld [vmem:[%s2881_s19 + $0x254] sm:$0xf0]  ;;  %v2197_v34 = vld [vmem:[%s2881_s19 + $0x2d0] sm:$0xf]  ;;  %v2974_v36 = vor.u32 %v2231_v31, %v1813_v30  ;;  %v1879_v40 = vld [vmem:[%s2881_s19 + $0x58] sm:$0xf0] }
  0xd0   : > { %1439 = vmatpush.bf16.msra.mxu2 %v1974_v61  ;;  %v2325_v35 = vld [vmem:[%s2881_s19 + $0x2d4] sm:$0xf0]  ;;  %v2260_v41 = vld [vmem:[%s2881_s19 + $0xd4] sm:$0xf]  ;;  %v1943_v43 = vld [vmem:[%s2881_s19 + $0xd8] sm:$0xf0]  ;;  %v2134_v50 = vor.u32 %v2309_v33, %v2133_v29  ;;  %v1882_v54 = vor.u32 %v2244_v39, %v1879_v40 }
  0xd1   : > { %1453 = vmatpush.bf16.msra.mxu3 %v2038_v1  ;;  %v2228_v44 = vld [vmem:[%s2879_s6 + $0x4] sm:$0xf]  ;;  %v1815_v45 = vld [vmem:[%s2879_s6 + $0x18] sm:$0xf0]  ;;  %v1821_v47 = vld [vmem:[%s2879_s6 + $0x8] sm:$0xf]  ;;  %v2198_v53 = vor.u32 %v2325_v35, %v2197_v34  ;;  %v1946_v59 = vor.u32 %v2260_v41, %v1943_v43 }
  0xd2   : > { %1412 = vmatpush.bf16.msra.mxu0 %v1838_v8  ;;  %v2983_v46 = vor.u32 %v2228_v44, %v1815_v45  ;;  %v2232_v48 = vld [vmem:[%s2879_s6 + $0x1c] sm:$0xf0]  ;;  %v2229_v49 = vld [vmem:[%s2879_s6 + $0xc] sm:$0xf]  ;;  %v1823_v52 = vld [vmem:[%s2879_s6 + $0x20] sm:$0xf0] }
  0xd3   : > { %1426 = vmatpush.bf16.msra.mxu1 %v1902_v12  ;;  %v2988_v51 = vor.u32 %v2232_v48, %v1821_v47  ;;  %v2125_v55 = vld [vmem:[%s2881_s19 + $0x240] sm:$0xf]  ;;  %v2307_v56 = vld [vmem:[%s2881_s19 + $0x244] sm:$0xf0]  ;;  %v2994_v58 = vor.u32 %v2229_v49, %v1823_v52  ;;  %v2242_v61 = vld [vmem:[%s2881_s19 + $0x44] sm:$0xf] }
  0xd4   : > { %1440 = vmatpush.bf16.msra.mxu2 %v1966_v13  ;;  %v2189_v57 = vld [vmem:[%s2881_s19 + $0x2c0] sm:$0xf]  ;;  %v2323_v60 = vld [vmem:[%s2881_s19 + $0x2c4] sm:$0xf0]  ;;  %v1871_v62 = vld [vmem:[%s2881_s19 + $0x48] sm:$0xf0]  ;;  %v2126_v1 = vor.u32 %v2307_v56, %v2125_v55 }
  0xd5   : > { %1454 = vmatpush.bf16.msra.mxu3 %v2030_v16  ;;  %1413 = vmatmul.bf16.vlgmr.msra.gmra.mxu0 %v2974_v36  ;;  %v2258_v63 = vld [vmem:[%s2881_s19 + $0xc4] sm:$0xf]  ;;  %v1935_v0 = vld [vmem:[%s2881_s19 + $0xc8] sm:$0xf0]  ;;  %v2190_v2 = vor.u32 %v2323_v60, %v2189_v57  ;;  %v1874_v3 = vor.u32 %v2242_v61, %v1871_v62  ;;  %v2117_v4 = vld [vmem:[%s2881_s19 + $0x230] sm:$0xf] }
  0xd6   : > { %1461 = vmatpush.bf16.msrb.mxu0 %v2150_v17  ;;  %1427 = vmatmul.bf16.vlgmr.msra.gmra.mxu1 %v2983_v46  ;;  %v2305_v5 = vld [vmem:[%s2881_s19 + $0x234] sm:$0xf0]  ;;  %v2181_v6 = vld [vmem:[%s2881_s19 + $0x2b0] sm:$0xf]  ;;  %v1938_v7 = vor.u32 %v2258_v63, %v1935_v0  ;;  %v2240_v9 = vld [vmem:[%s2881_s19 + $0x34] sm:$0xf] }
  0xd7   : > { %1475 = vmatpush.bf16.msrb.mxu1 %v2214_v20  ;;  %1441 = vmatmul.bf16.vlgmr.msra.gmra.mxu2 %v2988_v51  ;;  %v2321_v8 = vld [vmem:[%s2881_s19 + $0x2b4] sm:$0xf0]  ;;  %v1863_v10 = vld [vmem:[%s2881_s19 + $0x38] sm:$0xf0]  ;;  %v2256_v11 = vld [vmem:[%s2881_s19 + $0xb4] sm:$0xf]  ;;  %v2118_v13 = vor.u32 %v2305_v5, %v2117_v4 }
  0xd8   : > { %1489 = vmatpush.bf16.msrb.mxu2 %v1898_v21  ;;  %1455 = vmatmul.bf16.vlgmr.msra.gmra.mxu3 %v2994_v58  ;;  %v1927_v12 = vld [vmem:[%s2881_s19 + $0xb8] sm:$0xf0]  ;;  %v2182_v14 = vor.u32 %v2321_v8, %v2181_v6  ;;  %v1866_v15 = vor.u32 %v2240_v9, %v1863_v10  ;;  %v2109_v16 = vld [vmem:[%s2881_s19 + $0x220] sm:$0xf]  ;;  %v2303_v17 = vld [vmem:[%s2881_s19 + $0x224] sm:$0xf0] }
  0xd9   : > { %1503 = vmatpush.bf16.msrb.mxu3 %v1962_v25  ;;  %v2173_v18 = vld [vmem:[%s2881_s19 + $0x2a0] sm:$0xf]  ;;  %v1930_v19 = vor.u32 %v2256_v11, %v1927_v12  ;;  %v2319_v20 = vld [vmem:[%s2881_s19 + $0x2a4] sm:$0xf0]  ;;  %v2238_v21 = vld [vmem:[%s2881_s19 + $0x24] sm:$0xf]  ;;  %v2110_v25 = vor.u32 %v2303_v17, %v2109_v16 }
  0xda   : > { %1462 = vmatpush.bf16.msrb.mxu0 %v2142_v32  ;;  %v1855_v22 = vld [vmem:[%s2881_s19 + $0x28] sm:$0xf0]  ;;  %v2254_v23 = vld [vmem:[%s2881_s19 + $0xa4] sm:$0xf]  ;;  %v2174_v26 = vor.u32 %v2319_v20, %v2173_v18  ;;  %v2101_v28 = vld [vmem:[%s2881_s19 + $0x210] sm:$0xf] }
  0xdb   : > { %1476 = vmatpush.bf16.msrb.mxu1 %v2206_v37  ;;  %v1919_v24 = vld [vmem:[%s2881_s19 + $0xa8] sm:$0xf0]  ;;  %v1858_v27 = vor.u32 %v2238_v21, %v1855_v22  ;;  %v2301_v29 = vld [vmem:[%s2881_s19 + $0x214] sm:$0xf0]  ;;  %v2165_v30 = vld [vmem:[%s2881_s19 + $0x290] sm:$0xf] }
  0xdc   : > { %1490 = vmatpush.bf16.msrb.mxu2 %v1890_v38  ;;  %v1922_v31 = vor.u32 %v2254_v23, %v1919_v24  ;;  %v2317_v32 = vld [vmem:[%s2881_s19 + $0x294] sm:$0xf0]  ;;  %v2236_v33 = vld [vmem:[%s2881_s19 + $0x14] sm:$0xf]  ;;  %v1847_v34 = vld [vmem:[%s2881_s19 + $0x18] sm:$0xf0]  ;;  %v2102_v38 = vor.u32 %v2301_v29, %v2101_v28 }
  0xdd   : > { %1504 = vmatpush.bf16.msrb.mxu3 %v1954_v42  ;;  %v2252_v35 = vld [vmem:[%s2881_s19 + $0x94] sm:$0xf]  ;;  %v1911_v37 = vld [vmem:[%s2881_s19 + $0x98] sm:$0xf0]  ;;  %v2093_v39 = vld [vmem:[%s2881_s19 + $0x200] sm:$0xf]  ;;  %v2166_v42 = vor.u32 %v2317_v32, %v2165_v30  ;;  %v1850_v43 = vor.u32 %v2236_v33, %v1847_v34 }
  0xde   : > { %1463 = vmatpush.bf16.msrb.mxu0 %v2134_v50  ;;  %v2299_v40 = vld [vmem:[%s2881_s19 + $0x204] sm:$0xf0]  ;;  %v2157_v41 = vld [vmem:[%s2881_s19 + $0x280] sm:$0xf]  ;;  %v2234_v45 = vld [vmem:[%s2881_s19 + $0x4] sm:$0xf]  ;;  %v1914_v48 = vor.u32 %v2252_v35, %v1911_v37 }
  0xdf   : > { %1477 = vmatpush.bf16.msrb.mxu1 %v2198_v53  ;;  %v2315_v44 = vld [vmem:[%s2881_s19 + $0x284] sm:$0xf0]  ;;  %v1839_v47 = vld [vmem:[%s2881_s19 + $0x8] sm:$0xf0]  ;;  %v2250_v49 = vld [vmem:[%s2881_s19 + $0x84] sm:$0xf]  ;;  %v2094_v56 = vor.u32 %v2299_v40, %v2093_v39 }
  0xe0   : > { %1491 = vmatpush.bf16.msrb.mxu2 %v1882_v54  ;;  %v1903_v50 = vld [vmem:[%s2881_s19 + $0x88] sm:$0xf0]  ;;  %v2280_v52 = vld [vmem:[%s2881_s19 + $0x174] sm:$0xf]  ;;  %v2023_v53 = vld [vmem:[%s2881_s19 + $0x178] sm:$0xf0]  ;;  %v2158_v61 = vor.u32 %v2315_v44, %v2157_v41  ;;  %v1842_v62 = vor.u32 %v2234_v45, %v1839_v47 }
  0xe1   : > { %1505 = vmatpush.bf16.msrb.mxu3 %v1946_v59  ;;  %v2296_v54 = vld [vmem:[%s2881_s19 + $0x1f4] sm:$0xf]  ;;  %v2087_v55 = vld [vmem:[%s2881_s19 + $0x1f8] sm:$0xf0]  ;;  %v1829_v0 = vld [vmem:[%s2879_s6 + $0x10] sm:$0xf] }
  0xe2   : > { %1464 = vmatpush.bf16.msrb.mxu0 %v2126_v1  ;;  %v2312_v57 = vld [vmem:[%s2881_s19 + $0x274] sm:$0xf]  ;;  %v2151_v59 = vld [vmem:[%s2881_s19 + $0x278] sm:$0xf0]  ;;  %v2233_v1 = vld [vmem:[%s2879_s6 + $0x24] sm:$0xf0]  ;;  %v2090_v6 = vor.u32 %v2296_v54, %v2087_v55 }
  0xe3   : > { %1478 = vmatpush.bf16.msrb.mxu1 %v2190_v2  ;;  %v2328_v60 = vld [vmem:[%s2881_s19 + $0x2f4] sm:$0xf]  ;;  %v2215_v63 = vld [vmem:[%s2881_s19 + $0x2f8] sm:$0xf0]  ;;  %v1906_v2 = vor.u32 %v2250_v49, %v1903_v50  ;;  %v2278_v8 = vld [vmem:[%s2881_s19 + $0x164] sm:$0xf]  ;;  %v3051_v12 = vor.u32 %v2233_v1, %v1829_v0 }
  0xe4   : > { %1492 = vmatpush.bf16.msrb.mxu2 %v1874_v3  ;;  %v2026_v3 = vor.u32 %v2280_v52, %v2023_v53  ;;  %v2230_v4 = vld [vmem:[%s2879_s6 + $0x14] sm:$0xf]  ;;  %v1831_v5 = vld [vmem:[%s2879_s6 + $0x28] sm:$0xf0]  ;;  %v2218_v11 = vor.u32 %v2328_v60, %v2215_v63  ;;  %p2219_p6 = scmp.ne.s32.totalorder %s2494_s21, 5 }
  0xe5   : > { %1506 = vmatpush.bf16.msrb.mxu3 %v1938_v7  ;;  %v2154_v7 = vor.u32 %v2312_v57, %v2151_v59  ;;  %v2015_v9 = vld [vmem:[%s2881_s19 + $0x168] sm:$0xf0]  ;;  %v2294_v10 = vld [vmem:[%s2881_s19 + $0x1e4] sm:$0xf]  ;;  %v3056_v16 = vor.u32 %v2230_v4, %v1831_v5  ;;  %v2276_v22 = vld [vmem:[%s2881_s19 + $0x154] sm:$0xf] }
  0xe6   : > { %1465 = vmatpush.bf16.msrb.mxu0 %v2118_v13  ;;  %v2079_v13 = vld [vmem:[%s2881_s19 + $0x1e8] sm:$0xf0]  ;;  %v2326_v17 = vld [vmem:[%s2881_s19 + $0x2e4] sm:$0xf]  ;;  %v2007_v23 = vld [vmem:[%s2881_s19 + $0x158] sm:$0xf0] }
  0xe7   : > { %1479 = vmatpush.bf16.msrb.mxu1 %v2182_v14  ;;  %v2310_v14 = vld [vmem:[%s2881_s19 + $0x264] sm:$0xf]  ;;  %v2207_v18 = vld [vmem:[%s2881_s19 + $0x2e8] sm:$0xf0]  ;;  %v2082_v20 = vor.u32 %v2294_v10, %v2079_v13  ;;  %v2292_v24 = vld [vmem:[%s2881_s19 + $0x1d4] sm:$0xf] }
  0xe8   : > { %1493 = vmatpush.bf16.msrb.mxu2 %v1866_v15  ;;  %v2143_v15 = vld [vmem:[%s2881_s19 + $0x268] sm:$0xf0]  ;;  %v2135_v28 = vld [vmem:[%s2881_s19 + $0x258] sm:$0xf0]  ;;  %v2324_v29 = vld [vmem:[%s2881_s19 + $0x2d4] sm:$0xf] }
  0xe9   : > { %1507 = vmatpush.bf16.msrb.mxu3 %v1930_v19  ;;  %v2018_v19 = vor.u32 %v2278_v8, %v2015_v9  ;;  %v2146_v21 = vor.u32 %v2310_v14, %v2143_v15  ;;  %v2199_v30 = vld [vmem:[%s2881_s19 + $0x2d8] sm:$0xf0]  ;;  %v2274_v34 = vld [vmem:[%s2881_s19 + $0x144] sm:$0xf]  ;;  %v1999_v35 = vld [vmem:[%s2881_s19 + $0x148] sm:$0xf0] }
  0xea   : > { %1466 = vmatpush.bf16.msrb.mxu0 %v2110_v25  ;;  %v2210_v25 = vor.u32 %v2326_v17, %v2207_v18  ;;  %v2290_v37 = vld [vmem:[%s2881_s19 + $0x1c4] sm:$0xf]  ;;  %v2127_v40 = vld [vmem:[%s2881_s19 + $0x248] sm:$0xf0]  ;;  %v2272_v45 = vld [vmem:[%s2881_s19 + $0x134] sm:$0xf] }
  0xeb   : > { %1480 = vmatpush.bf16.msrb.mxu1 %v2174_v26  ;;  %v2071_v26 = vld [vmem:[%s2881_s19 + $0x1d8] sm:$0xf0]  ;;  %v2306_v39 = vld [vmem:[%s2881_s19 + $0x244] sm:$0xf]  ;;  %v2191_v41 = vld [vmem:[%s2881_s19 + $0x2c8] sm:$0xf0] }
  0xec   : > { %1494 = vmatpush.bf16.msrb.mxu2 %v1858_v27  ;;  %v2308_v27 = vld [vmem:[%s2881_s19 + $0x254] sm:$0xf]  ;;  %v2074_v32 = vor.u32 %v2292_v24, %v2071_v26  ;;  %v2130_v44 = vor.u32 %v2306_v39, %v2127_v40  ;;  %v1991_v47 = vld [vmem:[%s2881_s19 + $0x138] sm:$0xf0]  ;;  %v2270_v60 = vld [vmem:[%s2881_s19 + $0x124] sm:$0xf] }
  0xed   : > { %1508 = vmatpush.bf16.msrb.mxu3 %v1922_v31  ;;  %v2010_v31 = vor.u32 %v2276_v22, %v2007_v23  ;;  %v2138_v33 = vor.u32 %v2308_v27, %v2135_v28  ;;  %v2055_v50 = vld [vmem:[%s2881_s19 + $0x1b8] sm:$0xf0]  ;;  %v2304_v52 = vld [vmem:[%s2881_s19 + $0x234] sm:$0xf]  ;;  %v2047_v0 = vld [vmem:[%s2881_s19 + $0x1a8] sm:$0xf0] }
  0xee   : > { %1467 = vmatpush.bf16.msrb.mxu0 %v2102_v38  ;;  %v2063_v38 = vld [vmem:[%s2881_s19 + $0x1c8] sm:$0xf0]  ;;  %v2119_v53 = vld [vmem:[%s2881_s19 + $0x238] sm:$0xf0]  ;;  %v2320_v54 = vld [vmem:[%s2881_s19 + $0x2b4] sm:$0xf] }
  0xef   : > { %1481 = vmatpush.bf16.msrb.mxu1 %v2166_v42  ;;  %v2002_v42 = vor.u32 %v2274_v34, %v1999_v35  ;;  %v2183_v55 = vld [vmem:[%s2881_s19 + $0x2b8] sm:$0xf0]  ;;  %v2122_v59 = vor.u32 %v2304_v52, %v2119_v53  ;;  %v2302_v1 = vld [vmem:[%s2881_s19 + $0x224] sm:$0xf]  ;;  %v2175_v4 = vld [vmem:[%s2881_s19 + $0x2a8] sm:$0xf0] }
  0xf0   : > { %1495 = vmatpush.bf16.msrb.mxu2 %v1850_v43  ;;  %v2066_v43 = vor.u32 %v2290_v37, %v2063_v38  ;;  %v2186_v63 = vor.u32 %v2320_v54, %v2183_v55  ;;  %v2268_v8 = vld [vmem:[%s2881_s19 + $0x114] sm:$0xf]  ;;  %v1975_v9 = vld [vmem:[%s2881_s19 + $0x118] sm:$0xf0]  ;;  %v2266_v22 = vld [vmem:[%s2881_s19 + $0x104] sm:$0xf] }
  0xf1   : > { %1509 = vmatpush.bf16.msrb.mxu3 %v1914_v48  ;;  %v2288_v48 = vld [vmem:[%s2881_s19 + $0x1b4] sm:$0xf]  ;;  %v2039_v13 = vld [vmem:[%s2881_s19 + $0x198] sm:$0xf0]  ;;  %v1967_v23 = vld [vmem:[%s2881_s19 + $0x108] sm:$0xf0] }
  0xf2   : > { %1468 = vmatpush.bf16.msrb.mxu0 %v2094_v56  ;;  %v1994_v56 = vor.u32 %v2272_v45, %v1991_v47  ;;  %v2058_v57 = vor.u32 %v2288_v48, %v2055_v50  ;;  %v2284_v10 = vld [vmem:[%s2881_s19 + $0x194] sm:$0xf]  ;;  %v2103_v15 = vld [vmem:[%s2881_s19 + $0x218] sm:$0xf0]  ;;  %v2282_v24 = vld [vmem:[%s2881_s19 + $0x184] sm:$0xf] }
  0xf3   : > { %1482 = vmatpush.bf16.msrb.mxu1 %v2158_v61  ;;  %v1983_v61 = vld [vmem:[%s2881_s19 + $0x128] sm:$0xf0]  ;;  %v2300_v14 = vld [vmem:[%s2881_s19 + $0x214] sm:$0xf]  ;;  %v2167_v18 = vld [vmem:[%s2881_s19 + $0x298] sm:$0xf0] }
  0xf4   : > { %1496 = vmatpush.bf16.msrb.mxu2 %v1842_v62  ;;  %v2286_v62 = vld [vmem:[%s2881_s19 + $0x1a4] sm:$0xf]  ;;  %v1986_v5 = vor.u32 %v2270_v60, %v1983_v61  ;;  %v2316_v17 = vld [vmem:[%s2881_s19 + $0x294] sm:$0xf]  ;;  %v2031_v26 = vld [vmem:[%s2881_s19 + $0x188] sm:$0xf0] }
  0xf5   : > { %1510 = vmatpush.bf16.msrb.mxu3 %v1906_v2  ;;  %1469 = vmatmul.bf16.vlgmr.msrb.gmra.mxu0 %v3051_v12  ;;  %v2111_v2 = vld [vmem:[%s2881_s19 + $0x228] sm:$0xf0]  ;;  %v2298_v27 = vld [vmem:[%s2881_s19 + $0x204] sm:$0xf]  ;;  %v789_v48 = vld [vmem:[#allocation2 + $0x10] sm:$0xff] }
  0xf6   : > { %1517 = vmatpush.bf16.msra.mxu0 %v2026_v3  ;;  %1483 = vmatmul.bf16.vlgmr.msrb.gmra.mxu1 %v3056_v16  ;;  %v2318_v3 = vld [vmem:[%s2881_s19 + $0x2a4] sm:$0xf]  ;;  %v2095_v28 = vld [vmem:[%s2881_s19 + $0x208] sm:$0xf0]  ;;  %v791_v55 = vld [vmem:[#allocation2 + $0x18] sm:$0xff] }
  0xf7   : > { %1531 = vmatpush.bf16.msra.mxu1 %v2090_v6  ;;  %1497 = vmatmul.bf16.vlgmr.msrb.gmra.mxu2 %v2974_v36  ;;  %v2202_v36 = vor.u32 %v2324_v29, %v2199_v30  ;;  %v2050_v6 = vor.u32 %v2286_v62, %v2047_v0  ;;  %v2314_v29 = vld [vmem:[%s2881_s19 + $0x284] sm:$0xf]  ;;  %v2159_v30 = vld [vmem:[%s2881_s19 + $0x288] sm:$0xf0] }
  0xf8   : > { %1545 = vmatpush.bf16.msra.mxu2 %v2154_v7  ;;  %1511 = vmatmul.bf16.vlgmr.msrb.gmra.mxu3 %v2983_v46  ;;  %v2322_v46 = vld [vmem:[%s2881_s19 + $0x2c4] sm:$0xf]  ;;  %v2114_v7 = vor.u32 %v2302_v1, %v2111_v2  ;;  %v2162_v34 = vor.u32 %v2314_v29, %v2159_v30 }
  0xf9   : > { %1559 = vmatpush.bf16.msra.mxu3 %v2218_v11  ;;  %v2194_v49 = vor.u32 %v2322_v46, %v2191_v41  ;;  %v2178_v11 = vor.u32 %v2318_v3, %v2175_v4 }
  0xfa   : > { %1518 = vmatpush.bf16.msra.mxu0 %v2018_v19  ;;  %v1978_v19 = vor.u32 %v2268_v8, %v1975_v9  ;;  %v790_v9 = vld [vmem:[#allocation2] sm:$0xff] }
  0xfb   : > { %1532 = vmatpush.bf16.msra.mxu1 %v2082_v20  ;;  %v2042_v20 = vor.u32 %v2284_v10, %v2039_v13 }
  0xfc   : > { %1546 = vmatpush.bf16.msra.mxu2 %v2146_v21  ;;  %v2106_v21 = vor.u32 %v2300_v14, %v2103_v15 }
  0xfd   : > { %1560 = vmatpush.bf16.msra.mxu3 %v2210_v25  ;;  %v2170_v25 = vor.u32 %v2316_v17, %v2167_v18 }
  0xfe   : > { %1519 = vmatpush.bf16.msra.mxu0 %v2010_v31  ;;  %v1970_v31 = vor.u32 %v2266_v22, %v1967_v23 }
  0xff   : > { %1533 = vmatpush.bf16.msra.mxu1 %v2074_v32  ;;  %v2034_v32 = vor.u32 %v2282_v24, %v2031_v26 }
 0x100   : > { %1547 = vmatpush.bf16.msra.mxu2 %v2138_v33  ;;  %v2098_v33 = vor.u32 %v2298_v27, %v2095_v28 }
 0x101   : > { %1561 = vmatpush.bf16.msra.mxu3 %v2202_v36 }
 0x102   : > { %1520 = vmatpush.bf16.msra.mxu0 %v2002_v42 }
 0x103   : > { %1534 = vmatpush.bf16.msra.mxu1 %v2066_v43 }
 0x104   : > { %1548 = vmatpush.bf16.msra.mxu2 %v2130_v44 }
 0x105   : > { %1562 = vmatpush.bf16.msra.mxu3 %v2194_v49 }
 0x106   : > { %1521 = vmatpush.bf16.msra.mxu0 %v1994_v56 }
 0x107   : > { %1535 = vmatpush.bf16.msra.mxu1 %v2058_v57 }
 0x108   : > { %1549 = vmatpush.bf16.msra.mxu2 %v2122_v59 }
 0x109   : > { %1563 = vmatpush.bf16.msra.mxu3 %v2186_v63 }
 0x10a   : > { %1522 = vmatpush.bf16.msra.mxu0 %v1986_v5 }
 0x10b   : > { %1536 = vmatpush.bf16.msra.mxu1 %v2050_v6 }
 0x10c   : > { %1550 = vmatpush.bf16.msra.mxu2 %v2114_v7 }
 0x10d   : > { %1564 = vmatpush.bf16.msra.mxu3 %v2178_v11 }
 0x10e   : > { %1523 = vmatpush.bf16.msra.mxu0 %v1978_v19  ;;  %v792_v19 = vld [vmem:[#allocation2 + $0x8] sm:$0xff] }
 0x10f   : > { %1537 = vmatpush.bf16.msra.mxu1 %v2042_v20 }
 0x110   : > { %1551 = vmatpush.bf16.msra.mxu2 %v2106_v21 }
 0x111   : > { %1565 = vmatpush.bf16.msra.mxu3 %v2170_v25 }
 0x112   : > { %1524 = vmatpush.bf16.msra.mxu0 %v1970_v31 }
 0x113   : > { %1538 = vmatpush.bf16.msra.mxu1 %v2034_v32 }
 0x114   : > { %1552 = vmatpush.bf16.msra.mxu2 %v2098_v33 }
 0x115   : > { %1566 = vmatpush.bf16.msra.mxu3 %v2162_v34  ;;  %1525 = vmatmul.bf16.vlgmr.msra.gmra.mxu0 %v2988_v51 }
 0x116   : > { %1539 = vmatmul.bf16.vlgmr.msra.gmra.mxu1 %v2994_v58 }
 0x117   : > { %1553 = vmatmul.bf16.vlgmr.msra.gmra.mxu2 %v3051_v12 }
 0x118   : > { %1567 = vmatmul.bf16.vlgmr.msra.gmra.mxu3 %v3056_v16 }
 0x152   : > { %v1414_v35 = vpop.f32.mrf.mxu0 }
 0x153   : > { %v1428_v37 = vpop.f32.mrf.mxu1 }
 0x154   : > { %v1429_v36 = vadd.f32 %v1428_v37, %v1414_v35 }
 0x15a   : > { %v1416_v38 = vpop.f32.mrf.mxu0  ;;  %v1442_v39 = vpop.f32.mrf.mxu2 }
 0x15b   : > { %v1430_v40 = vpop.f32.mrf.mxu1  ;;  %v1443_v46 = vadd.f32 %v1442_v39, %v1429_v36  ;;  %v1456_v41 = vpop.f32.mrf.mxu3 }
 0x15c   : > { %v1431_v43 = vadd.f32 %v1430_v40, %v1416_v38 }
 0x15d   : > { %v1457_v42 = vadd.f32 %v1456_v41, %v1443_v46 }
 0x162   : > { %v1444_v45 = vpop.f32.mrf.mxu2 }
 0x163   : > { %v1445_v58 = vadd.f32 %v1444_v45, %v1431_v43  ;;  %v1458_v12 = vpop.f32.mrf.mxu3 }
 0x165   : > { %v1459_v16 = vadd.f32 %v1458_v12, %v1445_v58 }
 0x172   : > { %v1470_v44 = vpop.f32.mrf.mxu0 }
 0x173   : > { %v1471_v47 = vadd.f32 %v1470_v44, %v1457_v42  ;;  %v1484_v51 = vpop.f32.mrf.mxu1 }
 0x175   : > { %v1485_v49 = vadd.f32 %v1484_v51, %v1471_v47 }
 0x177   : > { %v1573_v50 = vadd.f32 %v1485_v49, %v789_v48 }
 0x179   : > { %1577 = vst [vmem:[#allocation2 + $0x10] sm:$0xff] %v1573_v50 }
 0x17a   : > { %v1472_v52 = vpop.f32.mrf.mxu0  ;;  %v1498_v59 = vpop.f32.mrf.mxu2 }
 0x17b   : > { %v1473_v53 = vadd.f32 %v1472_v52, %v1459_v16  ;;  %v1486_v54 = vpop.f32.mrf.mxu1  ;;  %v1512_v60 = vpop.f32.mrf.mxu3 }
 0x17c   : > { %v1513_v62 = vadd.f32 %v1512_v60, %v1498_v59 }
 0x17d   : > { %v1487_v56 = vadd.f32 %v1486_v54, %v1473_v53 }
 0x17f   : > { %v1575_v57 = vadd.f32 %v1487_v56, %v791_v55 }
 0x181   : > { %1579 = vst [vmem:[#allocation2 + $0x18] sm:$0xff] %v1575_v57 }
 0x182   : > { %v1500_v61 = vpop.f32.mrf.mxu2 }
 0x183   : > { %v1514_v63 = vpop.f32.mrf.mxu3 }
 0x184   : > { %v1515_v5 = vadd.f32 %v1514_v63, %v1500_v61 }
 0x192   : > { %v1526_v0 = vpop.f32.mrf.mxu0 }
 0x193   : > { %v1527_v1 = vadd.f32 %v1526_v0, %v1513_v62  ;;  %v1540_v2 = vpop.f32.mrf.mxu1 }
 0x195   : > { %v1541_v3 = vadd.f32 %v1540_v2, %v1527_v1 }
 0x19a   : > { %v1554_v4 = vpop.f32.mrf.mxu2  ;;  %v1528_v8 = vpop.f32.mrf.mxu0 }
 0x19b   : > { %v1555_v6 = vadd.f32 %v1554_v4, %v1541_v3  ;;  %v1568_v7 = vpop.f32.mrf.mxu3  ;;  %v1529_v11 = vadd.f32 %v1528_v8, %v1515_v5  ;;  %v1542_v14 = vpop.f32.mrf.mxu1 }
 0x19d   : > { %v1569_v10 = vadd.f32 %v1568_v7, %v1555_v6  ;;  %v1543_v15 = vadd.f32 %v1542_v14, %v1529_v11 }
 0x19f   : > { %v1574_v13 = vadd.f32 %v1569_v10, %v790_v9 }
 0x1a1   : > { %1578 = vst [vmem:[#allocation2] sm:$0xff] %v1574_v13 }
 0x1a2   : > { %v1556_v17 = vpop.f32.mrf.mxu2 }
 0x1a3   : > { %v1557_v18 = vadd.f32 %v1556_v17, %v1543_v15  ;;  %v1570_v20 = vpop.f32.mrf.mxu3 }
 0x1a5   : > { %v1571_v21 = vadd.f32 %v1570_v20, %v1557_v18  ;;  %1584 = sbr.rel (%p2219_p6) target bundleno = 442 (0x1ba), region = 143 }
 0x1a7   : > { %v1576_v22 = vadd.f32 %v1571_v21, %v792_v19 }
 0x1a9   : > { %1580 = vst [vmem:[#allocation2 + $0x8] sm:$0xff] %v1576_v22 }
 0x1aa   : > { %v1585_v23 = vld [vmem:[#allocation2 + $0x10] sm:$0xff]  ;;  %v1586_v24 = vld [vmem:[#allocation2] sm:$0xff]  ;;  %v1587_v29 = vld [vmem:[#allocation2 + $0x18] sm:$0xff] }
 0x1ab   : > { %v1589_v25 = vld [vmem:[%s775_s30] sm:$0x3]  ;;  %v1600_v33 = vld [vmem:[%s734_s17 + $0x8] sm:$0xff] }
 0x1ac   : > { %v1591_v26 = vperm.slane %v1589_v25, 0  ;;  %v1592_v27 = vperm.slane %v1589_v25, 1  ;;  %v1599_v28 = vld [vmem:[%s734_s17] sm:$0xff]  ;;  %v1603_v38 = vunpack.c.l.bf16 %v1600_v33  ;;  %v1604_v39 = vunpack.c.h.bf16 %v1600_v33 }
 0x1ad   : > { %v1601_v31 = vunpack.c.l.bf16 %v1599_v28  ;;  %v1602_v32 = vunpack.c.h.bf16 %v1599_v28 }
 0x1ae   : > { %v1595_v34 = vadd.f32 %v1591_v26, %v1585_v23  ;;  %v1596_v35 = vadd.f32 %v1592_v27, %v1586_v24  ;;  %v1597_v37 = vadd.f32 %v1591_v26, %v1587_v29 }
 0x1b0   : > { %v1588_v30 = vld [vmem:[#allocation2 + $0x8] sm:$0xff]  ;;  %v1605_v40 = vadd.f32 %v1601_v31, %v1595_v34  ;;  %v1606_v46 = vadd.f32 %v1602_v32, %v1596_v35  ;;  %v1607_v41 = vadd.f32 %v1603_v38, %v1597_v37 }
 0x1b1   : > { %v1598_v36 = vadd.f32 %v1592_v27, %v1588_v30 }
 0x1b2   : > { %v1609_v43 = vmax.f32 %v1605_v40, 0.0  ;;  %v1610_v44 = vmax.f32 %v1606_v46, 0.0  ;;  %v1611_v45 = vmax.f32 %v1607_v41, 0.0 }
 0x1b3   : > { %v1608_v42 = vadd.f32 %v1604_v39, %v1598_v36 }
 0x1b4   : > { %v1613_v51 = vpack.c.bf16 %v1610_v44, %v1609_v43 }
 0x1b5   : > { %v1612_v47 = vmax.f32 %v1608_v42, 0.0 }
 0x1b6   : > { %1615 = vst [vmem:[%s2885_s15] sm:$0xff] %v1613_v51 }
 0x1b7   : > { %v1614_v48 = vpack.c.bf16 %v1612_v47, %v1611_v45 }
 0x1b9   : > { %1616 = vst [vmem:[%s2885_s15 + $0x8] sm:$0xff] %v1614_v48 }
 0x1ba PF: > { %1623 = sbr.rel (!%p2642_p13) target bundleno = 450 (0x1c2), region = 147  ;;  %s2330_s21 = sshll.u32 (%p2642_p13), %s2498_s22, 3 }
 0x1bb   : > { %s1629_s28 = scalar_lea.vmem (%p2642_p13), %s3173_s4, %s2330_s21 }
 0x1bd   : > { %v1660_v58 = vld [vmem:[%s2885_s15] sm:$0xff] (%p2642_p13) }
 0x1be   : > { %1661 = vst [vmem:[%s1629_s28] sm:$0xff] (%p2642_p13), %v1660_v58 }
 0x1c0   : > { %v1662_v49 = vld [vmem:[%s2885_s15 + $0x8] sm:$0xff] }
 0x1c1   : > { %1663 = vst [vmem:[%s1629_s28 + $0x10] sm:$0xff] %v1662_v49 }
 0x1c2 PF: > { %s14_s25 = sadd.s32 1, %s2510_s25   ;;  %s3184_s29 = sld [smem:[#allocation7_spill]] }
 0x1c3   : > { %p11_p7 = scmp.ge.s32.totalorder %s14_s25, 14   ;;  %s3185_s10 = sld [smem:[#allocation8_spill]] }
 0x1c4   : > { %s3186_s15 = smov %s2474_s16  ;;  %s3187_s16 = smov %s2634_s13 }
 0x1c5   : > { %s3188_s17 = smov %s2482_s18  ;;  %s3189_s18 = smov %s2631_s12 }
 0x1c6   : > { %s3190_s19 = smov %s2490_s20  ;;  %s3191_s20 = smov %s2615_s7 }
 0x1c7   : > { %s3192_s21 = smov %s2502_s23  ;;  %s3193_s22 = smov %s2506_s24 }
 0x1c8   : > { %s3194_s23 = smov %s3184_s29  ;;  %13 = sbr.rel (!%p11_p7) target bundleno = 8 (0x8), region = 235 }
 0x1c9   : > { %s3195_s24 = smov %s3185_s10 }

// kernel: _resnet_forward.27
= control target key start
LH: loop header
LB: loop body
LE: loop exit
PB: predicated region body
PF: predicated region fallthrough
CT: control target
= control target key end

     0   :  { %s732_s0 = inlined_call_operand.vmem [shape: bf16[2,1,512], index: 0, kind: input, shape index: {}]   ;;  %s733_s1 = inlined_call_operand.vmem [shape: bf16[512,10], index: 1, kind: input, shape index: {}]   ;;  %s734_s2 = inlined_call_operand.vmem [shape: f32[1,10], index: 2, kind: input, shape index: {}]   ;;  %s735_s3 = inlined_call_operand.hbm [shape: f32[2,10], index: 3, kind: output, shape index: {}]  }
   0x1   :  { %v545_v0 = vld [vmem:[%s733_s1 + $0x38] sm:$0xff]  ;;  %v544_v4 = vld [vmem:[%s733_s1 + $0x30] sm:$0xff]  ;;  %v543_v8 = vld [vmem:[%s733_s1 + $0x28] sm:$0xff] }
   0x2   :  { %v553_v1 = vld [vmem:[%s733_s1 + $0x78] sm:$0xff]  ;;  %340 = vmatpush.bf16.msra.mxu0 %v545_v0  ;;  %v552_v5 = vld [vmem:[%s733_s1 + $0x70] sm:$0xff]  ;;  %v551_v9 = vld [vmem:[%s733_s1 + $0x68] sm:$0xff] }
   0x3   :  { %v561_v2 = vld [vmem:[%s733_s1 + $0xb8] sm:$0xff]  ;;  %353 = vmatpush.bf16.msra.mxu1 %v553_v1  ;;  %v560_v6 = vld [vmem:[%s733_s1 + $0xb0] sm:$0xff]  ;;  %v559_v10 = vld [vmem:[%s733_s1 + $0xa8] sm:$0xff] }
   0x4   :  { %v569_v3 = vld [vmem:[%s733_s1 + $0xf8] sm:$0xff]  ;;  %366 = vmatpush.bf16.msra.mxu2 %v561_v2  ;;  %v568_v7 = vld [vmem:[%s733_s1 + $0xf0] sm:$0xff]  ;;  %v567_v11 = vld [vmem:[%s733_s1 + $0xe8] sm:$0xff] }
   0x5   :  { %379 = vmatpush.bf16.msra.mxu3 %v569_v3  ;;  %v542_v12 = vld [vmem:[%s733_s1 + $0x20] sm:$0xff] }
   0x6   :  { %341 = vmatpush.bf16.msra.mxu0 %v544_v4  ;;  %v550_v13 = vld [vmem:[%s733_s1 + $0x60] sm:$0xff] }
   0x7   :  { %354 = vmatpush.bf16.msra.mxu1 %v552_v5  ;;  %v558_v14 = vld [vmem:[%s733_s1 + $0xa0] sm:$0xff] }
   0x8   :  { %367 = vmatpush.bf16.msra.mxu2 %v560_v6  ;;  %v571_v15 = vld [vmem:[%s732_s0] sm:$0xff]  }
   0x9   :  { %380 = vmatpush.bf16.msra.mxu3 %v568_v7  ;;  %v566_v16 = vld [vmem:[%s733_s1 + $0xe0] sm:$0xff]  ;;  %v572_v17 = vunpack.c.l.bf16 %v571_v15  ;;  %v573_v18 = vunpack.c.h.bf16 %v571_v15 }
   0xa   :  { %342 = vmatpush.bf16.msra.mxu0 %v543_v8 }
   0xb   :  { %355 = vmatpush.bf16.msra.mxu1 %v551_v9 }
   0xc   :  { %368 = vmatpush.bf16.msra.mxu2 %v559_v10 }
   0xd   :  { %381 = vmatpush.bf16.msra.mxu3 %v567_v11 }
   0xe   :  { %8 = vsyncpa [#allocation3], 0  ;;  %v27_v19 = vperm.slane %v573_v18, 0  ;;  %v28_v20 = vperm.slane %v573_v18, 2  ;;  %343 = vmatpush.bf16.msra.mxu0 %v542_v12  ;;  %v541_v21 = vld [vmem:[%s733_s1 + $0x18] sm:$0xff]  ;;  %v23_v23 = vperm.slane %v572_v17, 0 }
   0xf   :  { %356 = vmatpush.bf16.msra.mxu1 %v550_v13  ;;  %v549_v22 = vld [vmem:[%s733_s1 + $0x58] sm:$0xff]  ;;  %v24_v24 = vperm.slane %v572_v17, 2  ;;  %v29_v25 = vperm.slane %v573_v18, 4  ;;  %v30_v26 = vperm.slane %v573_v18, 6  ;;  %v25_v30 = vperm.slane %v572_v17, 4  ;;  %v540_v35 = vld [vmem:[%s733_s1 + $0x10] sm:$0xff] }
  0x10   :  { %369 = vmatpush.bf16.msra.mxu2 %v558_v14  ;;  %v557_v27 = vld [vmem:[%s733_s1 + $0x98] sm:$0xff]  ;;  %v43_v29 = vpack.c.bf16 %v27_v19, %v27_v19  ;;  %v26_v31 = vperm.slane %v572_v17, 6  ;;  %v44_v32 = vpack.c.bf16 %v28_v20, %v28_v20  ;;  %v548_v36 = vld [vmem:[%s733_s1 + $0x50] sm:$0xff]  ;;  %v39_v37 = vpack.c.bf16 %v23_v23, %v23_v23  ;;  %v539_v47 = vld [vmem:[%s733_s1 + $0x8] sm:$0xff]  ;;  %s401_s27 = sshll.u32 %s735_s3, 4  ;;  %s402_s27 = int_to_ptr.hbm [resolvable:$true] %s401_s27 }
  0x11   :  { %382 = vmatpush.bf16.msra.mxu3 %v566_v16  ;;  %v565_v28 = vld [vmem:[%s733_s1 + $0xd8] sm:$0xff]  ;;  %v45_v33 = vpack.c.bf16 %v29_v25, %v29_v25  ;;  %v46_v34 = vpack.c.bf16 %v30_v26, %v30_v26  ;;  %v40_v39 = vpack.c.bf16 %v24_v24, %v24_v24  ;;  %v556_v41 = vld [vmem:[%s733_s1 + $0x90] sm:$0xff]  ;;  %v41_v43 = vpack.c.bf16 %v25_v30, %v25_v30  ;;  %v547_v48 = vld [vmem:[%s733_s1 + $0x48] sm:$0xff] }
  0x12   :  { %344 = vmatpush.bf16.msra.mxu0 %v541_v21  ;;  %v127_v38 = vunpack.c.l.b16 %v43_v29  ;;  %v128_v40 = vunpack.c.l.b16 %v44_v32  ;;  %v564_v42 = vld [vmem:[%s733_s1 + $0xd0] sm:$0xff]  ;;  %v42_v45 = vpack.c.bf16 %v26_v31, %v26_v31  ;;  %vm132_vm0 = vcmask 1041409   ;;  %v555_v53 = vld [vmem:[%s733_s1 + $0x88] sm:$0xff]  ;;  %v538_v59 = vld [vmem:[%s733_s1] sm:$0xff] }
  0x13   :  { %357 = vmatpush.bf16.msra.mxu1 %v549_v22  ;;  %v129_v44 = vunpack.c.l.b16 %v45_v33  ;;  %v130_v46 = vunpack.c.l.b16 %v46_v34  ;;  %v123_v49 = vunpack.c.l.b16 %v39_v37  ;;  %v124_v51 = vunpack.c.l.b16 %v40_v39  ;;  %v563_v54 = vld [vmem:[%s733_s1 + $0xc8] sm:$0xff]  ;;  %v546_v60 = vld [vmem:[%s733_s1 + $0x40] sm:$0xff] }
  0x14   :  { %370 = vmatpush.bf16.msra.mxu2 %v557_v27  ;;  %v131_v50 = vrot.slane %v127_v38, 7  ;;  %v134_v52 = vrot.slane %v128_v40, 7  ;;  %v125_v55 = vunpack.c.l.b16 %v41_v43  ;;  %v126_v57 = vunpack.c.l.b16 %v42_v45  ;;  %v554_v63 = vld [vmem:[%s733_s1 + $0x80] sm:$0xff] }
  0x15   :  { %383 = vmatpush.bf16.msra.mxu3 %v565_v28  ;;  %v136_v56 = vrot.slane %v129_v44, 7  ;;  %v138_v58 = vrot.slane %v130_v46, 7  ;;  %v562_v0 = vld [vmem:[%s733_s1 + $0xc0] sm:$0xff]  ;;  %s602_s1 = smov [#allocation2]   ;;  %vm392_vm1 = vcmask 74752  }
  0x16   :  { %345 = vmatpush.bf16.msra.mxu0 %v540_v35  ;;  %v133_v61 = vsel %vm132_vm0, %v131_v50, %v123_v49  ;;  %v135_v62 = vsel %vm132_vm0, %v134_v52, %v124_v51  ;;  %v575_v7 = vld [vmem:[%s734_s2] ss:$0 sm:$0xff]  ;;  %s399_s24 = sshll.u32 %s602_s1, 4  ;;  %s400_s24 = int_to_ptr.vmem [resolvable:$true] %s399_s24 }
  0x17   :  { %358 = vmatpush.bf16.msra.mxu1 %v548_v36  ;;  %v137_v1 = vsel %vm132_vm0, %v136_v56, %v125_v55  ;;  %v139_v2 = vsel %vm132_vm0, %v138_v58, %v126_v57  ;;  %v140_v3 = vpack.c.b16 %v133_v61, %v133_v61  ;;  %v141_v4 = vpack.c.b16 %v135_v62, %v135_v62 }
  0x18   :  { %371 = vmatpush.bf16.msra.mxu2 %v556_v41  ;;  %v142_v5 = vpack.c.b16 %v137_v1, %v137_v1  ;;  %v143_v6 = vpack.c.b16 %v139_v2, %v139_v2 }
  0x19   :  { %384 = vmatpush.bf16.msra.mxu3 %v564_v42 }
  0x1a   :  { %346 = vmatpush.bf16.msra.mxu0 %v539_v47 }
  0x1b   :  { %359 = vmatpush.bf16.msra.mxu1 %v547_v48 }
  0x1c   :  { %372 = vmatpush.bf16.msra.mxu2 %v555_v53 }
  0x1d   :  { %385 = vmatpush.bf16.msra.mxu3 %v563_v54 }
  0x1e   :  { %347 = vmatpush.bf16.msra.mxu0 %v538_v59 }
  0x1f   :  { %360 = vmatpush.bf16.msra.mxu1 %v546_v60 }
  0x20   :  { %373 = vmatpush.bf16.msra.mxu2 %v554_v63 }
  0x21   :  { %386 = vmatpush.bf16.msra.mxu3 %v562_v0  ;;  %348 = vmatmul.bf16.vlgmr.msra.gmra.mxu0 %v140_v3 }
  0x22   :  { %361 = vmatmul.bf16.vlgmr.msra.gmra.mxu1 %v141_v4 }
  0x23   :  { %374 = vmatmul.bf16.vlgmr.msra.gmra.mxu2 %v142_v5 }
  0x24   :  { %387 = vmatmul.bf16.vlgmr.msra.gmra.mxu3 %v143_v6 }
  0x9e   :  { %v349_v8 = vpop.f32.mrf.mxu0 }
  0x9f   :  { %v362_v9 = vpop.f32.mrf.mxu1  ;;  %v350_v10 = vadd.f32 %v575_v7, %v349_v8 }
  0xa1   :  { %v363_v11 = vadd.f32 %v362_v9, %v350_v10 }
  0xa6   :  { %v375_v12 = vpop.f32.mrf.mxu2  ;;  %v351_v15 = vpop.f32.mrf.mxu0 }
  0xa7   :  { %v388_v13 = vpop.f32.mrf.mxu3  ;;  %v376_v14 = vadd.f32 %v375_v12, %v363_v11  ;;  %v364_v16 = vpop.f32.mrf.mxu1 }
  0xa9   :  { %v389_v17 = vadd.f32 %v388_v13, %v376_v14 }
  0xab   :  { %393 = vst.msk [vmem:[#allocation2] sm:$0x3] %vm392_vm1, %v389_v17 }
  0xac   :  { %404 = dma.vmem_to_hbm [thread:$0]  %s400_s24, 32, %s402_s27, [#allocation3]  }
  0xae   :  { %v377_v18 = vpop.f32.mrf.mxu2 }
  0xaf   :  { %v390_v19 = vpop.f32.mrf.mxu3 }
  0xb0   :  { %600 = dma.done.wait [#allocation3], 32  }
  0xb1   :  { %601 = vsyncadd [#allocation3], 4294967264 }
  0xb2   :  { %409 = vsyncpa [#allocation3], 1 }

</bundles_post_ra>
